<compile_context>
chip_gen: v7x
topology: tpu7x:2x2x1
jax: 0.10.0
libtpu: 0.0.40
codegen_flags: <defaults>
</compile_context>

<pallas_src>
import functools

import jax
import jax.numpy as jnp
from jax import lax
from jax.experimental import pallas as pl
from jax.experimental.pallas import tpu as pltpu

A_SLOPE = 0.49
EPS_F32 = float(jnp.finfo(jnp.float32).eps)
BN_EPS = 1e-5
GUARD = 8  # extra zero rows after the flat slab so tap slices never read OOB


def _vmem_limit_bytes():
    try:
        cap = pltpu.get_tpu_info().vmem_capacity_bytes
    except Exception:
        cap = 64 * 1024 * 1024
    return min(int(cap * 3 // 4), 100 * 1024 * 1024)


def _soft_lrelu(x):
    a = A_SLOPE
    e = EPS_F32
    return (1.0 - a) * x + a * jnp.sqrt(x * x + e * e) - a * e


# ---------------------------------------------------------------------------
# Fused 3x3 conv (stride=1, pad=1) + BN batch-stat accumulation.
# Optional fused prologue (fuse_bn): BN1-apply + soft_lrelu + zero-pad of the
# previous layer's output, written into a VMEM flat slab (never hits HBM).
# One grid step == one batch image.  Pseudo-output has H*(W+2) rows; the two
# junk columns per row are zeroed via `mask`.
# ---------------------------------------------------------------------------
def _conv3x3_bn_stats_kernel(H, W, fuse_bn, *refs):
    Wp = W + 2
    M = H * Wp                      # pseudo-output rows per image

    if fuse_bn:
        (mask_ref, y_prev_ref, scale_ref, shift_ref, w_ref,
         y_ref, ssum_ref, ssq_ref, hflat_ref, acc_ref) = refs
        c_prev = y_prev_ref.shape[-1]
        nrows = hflat_ref.shape[0]
        # BN1 apply + soft_lrelu (f32), re-zero junk columns, then one
        # contiguous store into the padded flat slab at offset Wp+1:
        # pseudo row h*Wp+w  ->  padded row (h+1)*Wp + (w+1); the masked zeros
        # land exactly on the halo cells, the strips below are zeroed here.
        h = y_prev_ref[...].astype(jnp.float32) * scale_ref[...] + shift_ref[...]
        h = _soft_lrelu(h) * mask_ref[...]
        hflat_ref[0:Wp + 1, :] = jnp.zeros((Wp + 1, c_prev), jnp.bfloat16)
        hflat_ref[Wp + 1 + M:, :] = jnp.zeros((nrows - (Wp + 1 + M), c_prev),
                                              jnp.bfloat16)
        hflat_ref[Wp + 1:Wp + 1 + M, :] = h.astype(jnp.bfloat16)
        src = hflat_ref
    else:
        mask_ref, x_ref, w_ref, y_ref, ssum_ref, ssq_ref, acc_ref = refs
        src = x_ref

    cout = y_ref.shape[-1]
    acc_ref[...] = jnp.zeros((M, cout), jnp.float32)
    for kh in range(3):
        for kw in range(3):
            o = kh * Wp + kw        # contiguous tap slice of the flat slab
            acc_ref[...] += jnp.dot(src[o:o + M, :], w_ref[kh * 3 + kw],
                                    preferred_element_type=jnp.float32)

    y = acc_ref[...] * mask_ref[...]           # zero the junk columns
    y_ref[...] = y.astype(y_ref.dtype)          # bf16 pseudo-layout output
    ssum_ref[...] = jnp.sum(y, axis=0, keepdims=True)
    ssq_ref[...] = jnp.sum(y * y, axis=0, keepdims=True)


def _conv3x3_call(H, W, N, act, w9, mask, scale=None, shift=None):
    Wp = W + 2
    M = H * Wp
    nrows = (H + 2) * Wp + GUARD
    cin = w9.shape[1]
    cout = w9.shape[2]
    fuse_bn = scale is not None
    vmem = _vmem_limit_bytes()

    if fuse_bn:
        in_specs = [
            pl.BlockSpec((M, 1), lambda n: (0, 0)),
            pl.BlockSpec((None, M, cin), lambda n: (n, 0, 0)),
            pl.BlockSpec((1, cin), lambda n: (0, 0)),
            pl.BlockSpec((1, cin), lambda n: (0, 0)),
            pl.BlockSpec((9, cin, cout), lambda n: (0, 0, 0)),
        ]
        args = (mask, act, scale, shift, w9)
        scratch = [pltpu.VMEM((nrows, cin), jnp.bfloat16),
                   pltpu.VMEM((M, cout), jnp.float32)]
    else:
        in_specs = [
            pl.BlockSpec((M, 1), lambda n: (0, 0)),
            pl.BlockSpec((None, nrows, cin), lambda n: (n, 0, 0)),
            pl.BlockSpec((9, cin, cout), lambda n: (0, 0, 0)),
        ]
        args = (mask, act, w9)
        scratch = [pltpu.VMEM((M, cout), jnp.float32)]

    return pl.pallas_call(
        functools.partial(_conv3x3_bn_stats_kernel, H, W, fuse_bn),
        out_shape=(jax.ShapeDtypeStruct((N, M, cout), jnp.bfloat16),
                   jax.ShapeDtypeStruct((N, 1, cout), jnp.float32),
                   jax.ShapeDtypeStruct((N, 1, cout), jnp.float32)),
        grid_spec=pltpu.PrefetchScalarGridSpec(
            num_scalar_prefetch=0,
            grid=(N,),
            in_specs=in_specs,
            out_specs=(
                pl.BlockSpec((None, M, cout), lambda n: (n, 0, 0)),
                pl.BlockSpec((None, 1, cout), lambda n: (n, 0, 0)),
                pl.BlockSpec((None, 1, cout), lambda n: (n, 0, 0)),
            ),
            scratch_shapes=scratch),
        compiler_params=pltpu.CompilerParams(
            dimension_semantics=("parallel",),
            vmem_limit_bytes=vmem),
    )(*args)


# ---------------------------------------------------------------------------
# Final epilogue: BN2 apply + identity-shortcut add + soft_lrelu.
# Operates on a lane-dense (rows, L) view (L = 128 when channels | 128).
# ---------------------------------------------------------------------------
def _bn_add_act_kernel(y_ref, scale_ref, shift_ref, res_ref, o_ref):
    y = (y_ref[...].astype(jnp.float32) * scale_ref[...] + shift_ref[...]
         + res_ref[...].astype(jnp.float32))
    o_ref[...] = _soft_lrelu(y)


def bn_add_act(y_flat, scale_t, shift_t, res_flat):
    R, L = y_flat.shape
    TR = R if R <= 1024 else 1024
    return pl.pallas_call(
        _bn_add_act_kernel,
        out_shape=jax.ShapeDtypeStruct((R, L), jnp.float32),
        grid_spec=pltpu.PrefetchScalarGridSpec(
            num_scalar_prefetch=0,
            grid=(pl.cdiv(R, TR),),
            in_specs=[
                pl.BlockSpec((TR, L), lambda i: (i, 0)),
                pl.BlockSpec((1, L), lambda i: (0, 0)),
                pl.BlockSpec((1, L), lambda i: (0, 0)),
                pl.BlockSpec((TR, L), lambda i: (i, 0)),
            ],
            out_specs=pl.BlockSpec((TR, L), lambda i: (i, 0))),
        compiler_params=pltpu.CompilerParams(
            dimension_semantics=("parallel",),
            vmem_limit_bytes=_vmem_limit_bytes()),
    )(y_flat, scale_t, shift_t, res_flat)


# ---------------------------------------------------------------------------
# Plain-JAX glue: weight packing, BN scale/shift from per-image partial sums.
# ---------------------------------------------------------------------------
def _pack_conv_weight(w_oihw):
    """PyTorch (Cout, Cin, 3, 3) -> (9, Cin, Cout) bf16, tap index = kh*3+kw."""
    c_out, c_in, kh, kw = w_oihw.shape
    w = jnp.transpose(w_oihw, (2, 3, 1, 0)).reshape(kh * kw, c_in, c_out)
    return w.astype(jnp.bfloat16)


def _bn_scale_shift(ssum, ssq, gamma, beta, count):
    """Training-mode (batch-stat) BatchNorm scale/shift from per-image sums."""
    s = jnp.sum(ssum, axis=0)                  # (1, C)
    q = jnp.sum(ssq, axis=0)                   # (1, C)
    mean = s / count
    # TODO(synk): single-pass E[x^2]-E[x]^2 can lose precision when |mean|>>std;
    # use a shifted two-pass reduction if this ever feeds training gradients.
    var = jnp.maximum(q / count - mean * mean, 0.0)
    scale = gamma * lax.rsqrt(var + BN_EPS)
    shift = beta - mean * scale
    return scale, shift


# ---------------------------------------------------------------------------
# BasicBlock forward
# ---------------------------------------------------------------------------
def basic_block_forward(x_nchw, params):
    N, c_in, H, W = x_nchw.shape
    planes = params["w1"].shape[0]
    if c_in != planes:
        raise NotImplementedError(
            "projection shortcut (in_planes != planes) not implemented")

    Wp = W + 2
    M = H * Wp
    nrow = (H + 2) * Wp
    count = float(N * H * W)

    x_nhwc = jnp.transpose(x_nchw, (0, 2, 3, 1)).astype(jnp.float32)

    # Padded flat bf16 slab for conv1: (N, (H+2)*(W+2)+GUARD, Cin).
    x_flat = jnp.pad(x_nhwc, ((0, 0), (1, 1), (1, 1), (0, 0)))
    x_flat = x_flat.reshape(N, nrow, c_in)
    x_flat = jnp.pad(x_flat, ((0, 0), (0, GUARD), (0, 0))).astype(jnp.bfloat16)

    # Validity mask of the pseudo-output columns (w < W), shape (M, 1) f32.
    col = jnp.arange(M, dtype=jnp.int32) % Wp
    mask = (col < W).astype(jnp.float32).reshape(M, 1)

    w1 = _pack_conv_weight(params["w1"])
    w2 = _pack_conv_weight(params["w2"])

    # conv1 + bn1 batch stats (one fused kernel).
    y1, s1, q1 = _conv3x3_call(H, W, N, x_flat, w1, mask)
    scale1, shift1 = _bn_scale_shift(s1, q1, params["gamma1"], params["beta1"], count)

    # bn1-apply + soft_lrelu + pad (in-VMEM prologue) + conv2 + bn2 stats.
    y2, s2, q2 = _conv3x3_call(H, W, N, y1, w2, mask, scale1, shift1)
    scale2, shift2 = _bn_scale_shift(s2, q2, params["gamma2"], params["beta2"], count)

    # Identity shortcut in the same pseudo layout (junk columns = 0), bf16.
    res = jnp.pad(x_nhwc, ((0, 0), (0, 0), (0, 2), (0, 0)))
    res = res.reshape(N, M, planes).astype(jnp.bfloat16)

    # Lane-dense view for the epilogue (fold channels into 128-wide lanes).
    total = N * M * planes
    if planes % 128 == 0:
        L = planes
    elif (128 % planes == 0) and (total % 128 == 0):
        L = 128
    else:
        L = planes
    reps = L // planes
    R = total // L
    y2_flat = y2.reshape(R, L)
    res_flat = res.reshape(R, L)
    scale_t = jnp.tile(scale2, (1, reps))
    shift_t = jnp.tile(shift2, (1, reps))

    out_flat = bn_add_act(y2_flat, scale_t, shift_t, res_flat)

    out = out_flat.reshape(N, H, Wp, planes)[:, :, :W, :]   # drop junk columns
    return jnp.transpose(out, (0, 3, 1, 2))                 # back to NCHW


def init_params(key, in_planes, planes):
    k1, k2 = jax.random.split(key)
    fan1 = in_planes * 9
    fan2 = planes * 9
    return {
        "w1": jax.random.normal(k1, (planes, in_planes, 3, 3), jnp.float32)
              * (2.0 / fan1) ** 0.5,
        "w2": jax.random.normal(k2, (planes, planes, 3, 3), jnp.float32)
              * (2.0 / fan2) ** 0.5,
        "gamma1": jnp.ones((1, planes), jnp.float32),
        "beta1": jnp.zeros((1, planes), jnp.float32),
        "gamma2": jnp.ones((1, planes), jnp.float32),
        "beta2": jnp.zeros((1, planes), jnp.float32),
    }


# Pure-JAX f32 reference (training-mode BN), for a numerical sanity check.
def _reference_forward(x, params):
    def conv(z, w):
        return lax.conv_general_dilated(
            z, w, window_strides=(1, 1), padding=((1, 1), (1, 1)),
            dimension_numbers=("NCHW", "OIHW", "NCHW"))

    def bn(y, gamma, beta):
        mean = jnp.mean(y, axis=(0, 2, 3), keepdims=True)
        var = jnp.mean((y - mean) ** 2, axis=(0, 2, 3), keepdims=True)
        g = gamma.reshape(1, -1, 1, 1)
        b = beta.reshape(1, -1, 1, 1)
        return (y - mean) * lax.rsqrt(var + BN_EPS) * g + b

    h = _soft_lrelu(bn(conv(x, params["w1"]), params["gamma1"], params["beta1"]))
    y = bn(conv(h, params["w2"]), params["gamma2"], params["beta2"]) + x
    return _soft_lrelu(y)


if __name__ == "__main__":
    key = jax.random.PRNGKey(0)
    kx, kp = jax.random.split(key)

    N, C, H, W = 2, 8, 16, 16      # in_planes = planes = 8, stride = 1
    x = jax.random.normal(kx, (N, C, H, W), jnp.float32)
    params = init_params(kp, in_planes=C, planes=C)

    fwd = jax.jit(functools.partial(basic_block_forward, params=params))
    out = fwd(x)
    jax.block_until_ready(out)

    assert out.shape == (N, C, H, W)
    assert bool(jnp.all(jnp.isfinite(out)))
    ref = _reference_forward(x, params)
    max_err = float(jnp.max(jnp.abs(out - ref)))
    assert max_err < 0.25, f"max abs error vs reference: {max_err}"
    print("KERNEL_OK")
</pallas_src>

<mosaic_0001>
module attributes {stable_mosaic.version = 11 : i64} {
  func.func @_bn_add_act_kernel(%arg0: i32, %arg1: memref<36x128xbf16, #tpu.memory_space<vmem>>, %arg2: memref<1x128xf32, #tpu.memory_space<vmem>>, %arg3: memref<1x128xf32, #tpu.memory_space<vmem>>, %arg4: memref<36x128xbf16, #tpu.memory_space<vmem>>, %arg5: memref<36x128xf32, #tpu.memory_space<vmem>>) attributes {dimension_semantics = [#tpu.dimension_semantics<parallel>], iteration_bounds = array<i64: 1>, scalar_prefetch = 0 : i64, scratch_operands = 0 : i64, tpu.core_type = #tpu.core_type<tc>, window_params = [{transform_indices = @transform_0, window_bounds = array<i64: 36, 128>}, {pipeline_mode = #tpu.pipeline_mode<synchronous>, transform_indices = @transform_1, window_bounds = array<i64: 1, 128>}, {pipeline_mode = #tpu.pipeline_mode<synchronous>, transform_indices = @transform_2, window_bounds = array<i64: 1, 128>}, {transform_indices = @transform_3, window_bounds = array<i64: 36, 128>}, {transform_indices = @transform_4, window_bounds = array<i64: 36, 128>}]} {
    %c0 = arith.constant 0 : index
    %c0_0 = arith.constant 0 : index
    %0 = vector.load %arg1[%c0, %c0_0] : memref<36x128xbf16, #tpu.memory_space<vmem>>, vector<36x128xbf16>
    %1 = arith.extf %0 : vector<36x128xbf16> to vector<36x128xf32>
    %c0_1 = arith.constant 0 : index
    %c0_2 = arith.constant 0 : index
    %2 = vector.load %arg2[%c0_1, %c0_2] : memref<1x128xf32, #tpu.memory_space<vmem>>, vector<1x128xf32>
    %3 = vector.broadcast %2 : vector<1x128xf32> to vector<36x128xf32>
    %4 = arith.mulf %1, %3 : vector<36x128xf32>
    %c0_3 = arith.constant 0 : index
    %c0_4 = arith.constant 0 : index
    %5 = vector.load %arg3[%c0_3, %c0_4] : memref<1x128xf32, #tpu.memory_space<vmem>>, vector<1x128xf32>
    %6 = vector.broadcast %5 : vector<1x128xf32> to vector<36x128xf32>
    %7 = arith.addf %4, %6 : vector<36x128xf32>
    %c0_5 = arith.constant 0 : index
    %c0_6 = arith.constant 0 : index
    %8 = vector.load %arg4[%c0_5, %c0_6] : memref<36x128xbf16, #tpu.memory_space<vmem>>, vector<36x128xbf16>
    %9 = arith.extf %8 : vector<36x128xbf16> to vector<36x128xf32>
    %10 = arith.addf %7, %9 : vector<36x128xf32>
    %cst = arith.constant 5.100000e-01 : f32
    %11 = vector.broadcast %cst : f32 to vector<36x128xf32>
    %12 = arith.mulf %11, %10 : vector<36x128xf32>
    %13 = arith.mulf %10, %10 : vector<36x128xf32>
    %cst_7 = arith.constant 1.42108547E-14 : f32
    %14 = vector.broadcast %cst_7 : f32 to vector<36x128xf32>
    %15 = arith.addf %13, %14 : vector<36x128xf32>
    %16 = math.sqrt %15 : vector<36x128xf32>
    %cst_8 = arith.constant 4.900000e-01 : f32
    %17 = vector.broadcast %cst_8 : f32 to vector<36x128xf32>
    %18 = arith.mulf %17, %16 : vector<36x128xf32>
    %19 = arith.addf %12, %18 : vector<36x128xf32>
    %cst_9 = arith.constant 5.8412553E-8 : f32
    %20 = vector.broadcast %cst_9 : f32 to vector<36x128xf32>
    %21 = arith.subf %19, %20 : vector<36x128xf32>
    %c0_10 = arith.constant 0 : index
    %c0_11 = arith.constant 0 : index
    %22 = vector.load %arg5[%c0_10, %c0_11] : memref<36x128xf32, #tpu.memory_space<vmem>>, vector<36x128xf32>
    tpu.vector_store %arg5[%c0_10, %c0_11], %21 {strides = array<i32>} : memref<36x128xf32, #tpu.memory_space<vmem>>, vector<36x128xf32>,
    return
  }
  func.func @transform_0(%arg0: i32) -> (i32, i32) {
    %c0_i32 = arith.constant 0 : i32
    %c0_i32_0 = arith.constant 0 : i32
    return %arg0, %c0_i32 : i32, i32
  }
  func.func @transform_1(%arg0: i32) -> (i32, i32) {
    %c0_i32 = arith.constant 0 : i32
    %c0_i32_0 = arith.constant 0 : i32
    %c0_i32_1 = arith.constant 0 : i32
    return %c0_i32, %c0_i32_0 : i32, i32
  }
  func.func @transform_2(%arg0: i32) -> (i32, i32) {
    %c0_i32 = arith.constant 0 : i32
    %c0_i32_0 = arith.constant 0 : i32
    %c0_i32_1 = arith.constant 0 : i32
    return %c0_i32, %c0_i32_0 : i32, i32
  }
  func.func @transform_3(%arg0: i32) -> (i32, i32) {
    %c0_i32 = arith.constant 0 : i32
    %c0_i32_0 = arith.constant 0 : i32
    return %arg0, %c0_i32 : i32, i32
  }
  func.func @transform_4(%arg0: i32) -> (i32, i32) {
    %c0_i32 = arith.constant 0 : i32
    %c0_i32_0 = arith.constant 0 : i32
    return %arg0, %c0_i32 : i32, i32
  }
}

module attributes {stable_mosaic.version = 11 : i64} {
  func.func @_conv3x3_bn_stats_kernel(%arg0: i32, %arg1: memref<288x1xf32, #tpu.memory_space<vmem>>, %arg2: memref<1x332x8xbf16, #tpu.memory_space<vmem>>, %arg3: memref<9x8x8xbf16, #tpu.memory_space<vmem>>, %arg4: memref<1x288x8xbf16, #tpu.memory_space<vmem>>, %arg5: memref<1x1x8xf32, #tpu.memory_space<vmem>>, %arg6: memref<1x1x8xf32, #tpu.memory_space<vmem>>, %arg7: memref<288x8xf32, #tpu.memory_space<vmem>>) attributes {dimension_semantics = [#tpu.dimension_semantics<parallel>], iteration_bounds = array<i64: 2>, scalar_prefetch = 0 : i64, scratch_operands = 1 : i64, tpu.core_type = #tpu.core_type<tc>, window_params = [{pipeline_mode = #tpu.pipeline_mode<synchronous>, transform_indices = @transform_0, window_bounds = array<i64: 288, 1>}, {transform_indices = @transform_1, window_bounds = array<i64: 1, 332, 8>}, {pipeline_mode = #tpu.pipeline_mode<synchronous>, transform_indices = @transform_2, window_bounds = array<i64: 9, 8, 8>}, {transform_indices = @transform_3, window_bounds = array<i64: 1, 288, 8>}, {transform_indices = @transform_4, window_bounds = array<i64: 1, 1, 8>}, {transform_indices = @transform_5, window_bounds = array<i64: 1, 1, 8>}]} {
    %cst = arith.constant 0.000000e+00 : f32
    %0 = vector.broadcast %cst : f32 to vector<288x8xf32>
    %c0 = arith.constant 0 : index
    %c0_0 = arith.constant 0 : index
    %1 = vector.load %arg7[%c0, %c0_0] : memref<288x8xf32, #tpu.memory_space<vmem>>, vector<288x8xf32>
    tpu.vector_store %arg7[%c0, %c0_0], %0 {strides = array<i32>} : memref<288x8xf32, #tpu.memory_space<vmem>>, vector<288x8xf32>,
    %c0_1 = arith.constant 0 : index
    %c0_2 = arith.constant 0 : index
    %2 = vector.load %arg7[%c0_1, %c0_2] : memref<288x8xf32, #tpu.memory_space<vmem>>, vector<288x8xf32>
    %c0_3 = arith.constant 0 : index
    %c0_4 = arith.constant 0 : index
    %c0_5 = arith.constant 0 : index
    %3 = vector.load %arg2[%c0_3, %c0_4, %c0_5] : memref<1x332x8xbf16, #tpu.memory_space<vmem>>, vector<1x288x8xbf16>
    %4 = vector.shape_cast %3 : vector<1x288x8xbf16> to vector<288x8xbf16>
    %c0_6 = arith.constant 0 : index
    %c0_7 = arith.constant 0 : index
    %c0_8 = arith.constant 0 : index
    %5 = vector.load %arg3[%c0_6, %c0_7, %c0_8] : memref<9x8x8xbf16, #tpu.memory_space<vmem>>, vector<1x8x8xbf16>
    %6 = vector.shape_cast %5 : vector<1x8x8xbf16> to vector<8x8xbf16>
    %cst_9 = arith.constant dense<0.000000e+00> : vector<288x8xf32>
    %7 = tpu.matmul %4, %6, %cst_9 {dimension_numbers = #tpu.dot_dimension_numbers<[1], [0], [0], [1], [0, 0, 1, 1], [], []>} : vector<288x8xbf16>, vector<8x8xbf16>, vector<288x8xf32> -> vector<288x8xf32>
    %8 = arith.addf %2, %7 : vector<288x8xf32>
    %c0_10 = arith.constant 0 : index
    %c0_11 = arith.constant 0 : index
    %9 = vector.load %arg7[%c0_10, %c0_11] : memref<288x8xf32, #tpu.memory_space<vmem>>, vector<288x8xf32>
    tpu.vector_store %arg7[%c0_10, %c0_11], %8 {strides = array<i32>} : memref<288x8xf32, #tpu.memory_space<vmem>>, vector<288x8xf32>,
    %c0_12 = arith.constant 0 : index
    %c0_13 = arith.constant 0 : index
    %10 = vector.load %arg7[%c0_12, %c0_13] : memref<288x8xf32, #tpu.memory_space<vmem>>, vector<288x8xf32>
    %c0_14 = arith.constant 0 : index
    %c1 = arith.constant 1 : index
    %c0_15 = arith.constant 0 : index
    %11 = vector.load %arg2[%c0_14, %c1, %c0_15] : memref<1x332x8xbf16, #tpu.memory_space<vmem>>, vector<1x288x8xbf16>
    %12 = vector.shape_cast %11 : vector<1x288x8xbf16> to vector<288x8xbf16>
    %c1_16 = arith.constant 1 : index
    %c0_17 = arith.constant 0 : index
    %c0_18 = arith.constant 0 : index
    %13 = vector.load %arg3[%c1_16, %c0_17, %c0_18] : memref<9x8x8xbf16, #tpu.memory_space<vmem>>, vector<1x8x8xbf16>
    %14 = vector.shape_cast %13 : vector<1x8x8xbf16> to vector<8x8xbf16>
    %cst_19 = arith.constant dense<0.000000e+00> : vector<288x8xf32>
    %15 = tpu.matmul %12, %14, %cst_19 {dimension_numbers = #tpu.dot_dimension_numbers<[1], [0], [0], [1], [0, 0, 1, 1], [], []>} : vector<288x8xbf16>, vector<8x8xbf16>, vector<288x8xf32> -> vector<288x8xf32>
    %16 = arith.addf %10, %15 : vector<288x8xf32>
    %c0_20 = arith.constant 0 : index
    %c0_21 = arith.constant 0 : index
    %17 = vector.load %arg7[%c0_20, %c0_21] : memref<288x8xf32, #tpu.memory_space<vmem>>, vector<288x8xf32>
    tpu.vector_store %arg7[%c0_20, %c0_21], %16 {strides = array<i32>} : memref<288x8xf32, #tpu.memory_space<vmem>>, vector<288x8xf32>,
    %c0_22 = arith.constant 0 : index
    %c0_23 = arith.constant 0 : index
    %18 = vector.load %arg7[%c0_22, %c0_23] : memref<288x8xf32, #tpu.memory_space<vmem>>, vector<288x8xf32>
    %c0_24 = arith.constant 0 : index
    %c2 = arith.constant 2 : index
    %c0_25 = arith.constant 0 : index
    %19 = vector.load %arg2[%c0_24, %c2, %c0_25] : memref<1x332x8xbf16, #tpu.memory_space<vmem>>, vector<1x288x8xbf16>
    %20 = vector.shape_cast %19 : vector<1x288x8xbf16> to vector<288x8xbf16>
    %c2_26 = arith.constant 2 : index
    %c0_27 = arith.constant 0 : index
    %c0_28 = arith.constant 0 : index
    %21 = vector.load %arg3[%c2_26, %c0_27, %c0_28] : memref<9x8x8xbf16, #tpu.memory_space<vmem>>, vector<1x8x8xbf16>
    %22 = vector.shape_cast %21 : vector<1x8x8xbf16> to vector<8x8xbf16>
    %cst_29 = arith.constant dense<0.000000e+00> : vector<288x8xf32>
    %23 = tpu.matmul %20, %22, %cst_29 {dimension_numbers = #tpu.dot_dimension_numbers<[1], [0], [0], [1], [0, 0, 1, 1], [], []>} : vector<288x8xbf16>, vector<8x8xbf16>, vector<288x8xf32> -> vector<288x8xf32>
    %24 = arith.addf %18, %23 : vector<288x8xf32>
    %c0_30 = arith.constant 0 : index
    %c0_31 = arith.constant 0 : index
    %25 = vector.load %arg7[%c0_30, %c0_31] : memref<288x8xf32, #tpu.memory_space<vmem>>, vector<288x8xf32>
    tpu.vector_store %arg7[%c0_30, %c0_31], %24 {strides = array<i32>} : memref<288x8xf32, #tpu.memory_space<vmem>>, vector<288x8xf32>,
    %c0_32 = arith.constant 0 : index
    %c0_33 = arith.constant 0 : index
    %26 = vector.load %arg7[%c0_32, %c0_33] : memref<288x8xf32, #tpu.memory_space<vmem>>, vector<288x8xf32>
    %c0_34 = arith.constant 0 : index
    %c18 = arith.constant 18 : index
    %c0_35 = arith.constant 0 : index
    %27 = vector.load %arg2[%c0_34, %c18, %c0_35] : memref<1x332x8xbf16, #tpu.memory_space<vmem>>, vector<1x288x8xbf16>
    %28 = vector.shape_cast %27 : vector<1x288x8xbf16> to vector<288x8xbf16>
    %c3 = arith.constant 3 : index
    %c0_36 = arith.constant 0 : index
    %c0_37 = arith.constant 0 : index
    %29 = vector.load %arg3[%c3, %c0_36, %c0_37] : memref<9x8x8xbf16, #tpu.memory_space<vmem>>, vector<1x8x8xbf16>
    %30 = vector.shape_cast %29 : vector<1x8x8xbf16> to vector<8x8xbf16>
    %cst_38 = arith.constant dense<0.000000e+00> : vector<288x8xf32>
    %31 = tpu.matmul %28, %30, %cst_38 {dimension_numbers = #tpu.dot_dimension_numbers<[1], [0], [0], [1], [0, 0, 1, 1], [], []>} : vector<288x8xbf16>, vector<8x8xbf16>, vector<288x8xf32> -> vector<288x8xf32>
    %32 = arith.addf %26, %31 : vector<288x8xf32>
    %c0_39 = arith.constant 0 : index
    %c0_40 = arith.constant 0 : index
    %33 = vector.load %arg7[%c0_39, %c0_40] : memref<288x8xf32, #tpu.memory_space<vmem>>, vector<288x8xf32>
    tpu.vector_store %arg7[%c0_39, %c0_40], %32 {strides = array<i32>} : memref<288x8xf32, #tpu.memory_space<vmem>>, vector<288x8xf32>,
    %c0_41 = arith.constant 0 : index
    %c0_42 = arith.constant 0 : index
    %34 = vector.load %arg7[%c0_41, %c0_42] : memref<288x8xf32, #tpu.memory_space<vmem>>, vector<288x8xf32>
    %c0_43 = arith.constant 0 : index
    %c19 = arith.constant 19 : index
    %c0_44 = arith.constant 0 : index
    %35 = vector.load %arg2[%c0_43, %c19, %c0_44] : memref<1x332x8xbf16, #tpu.memory_space<vmem>>, vector<1x288x8xbf16>
    %36 = vector.shape_cast %35 : vector<1x288x8xbf16> to vector<288x8xbf16>
    %c4 = arith.constant 4 : index
    %c0_45 = arith.constant 0 : index
    %c0_46 = arith.constant 0 : index
    %37 = vector.load %arg3[%c4, %c0_45, %c0_46] : memref<9x8x8xbf16, #tpu.memory_space<vmem>>, vector<1x8x8xbf16>
    %38 = vector.shape_cast %37 : vector<1x8x8xbf16> to vector<8x8xbf16>
    %cst_47 = arith.constant dense<0.000000e+00> : vector<288x8xf32>
    %39 = tpu.matmul %36, %38, %cst_47 {dimension_numbers = #tpu.dot_dimension_numbers<[1], [0], [0], [1], [0, 0, 1, 1], [], []>} : vector<288x8xbf16>, vector<8x8xbf16>, vector<288x8xf32> -> vector<288x8xf32>
    %40 = arith.addf %34, %39 : vector<288x8xf32>
    %c0_48 = arith.constant 0 : index
    %c0_49 = arith.constant 0 : index
    %41 = vector.load %arg7[%c0_48, %c0_49] : memref<288x8xf32, #tpu.memory_space<vmem>>, vector<288x8xf32>
    tpu.vector_store %arg7[%c0_48, %c0_49], %40 {strides = array<i32>} : memref<288x8xf32, #tpu.memory_space<vmem>>, vector<288x8xf32>,
    %c0_50 = arith.constant 0 : index
    %c0_51 = arith.constant 0 : index
    %42 = vector.load %arg7[%c0_50, %c0_51] : memref<288x8xf32, #tpu.memory_space<vmem>>, vector<288x8xf32>
    %c0_52 = arith.constant 0 : index
    %c20 = arith.constant 20 : index
    %c0_53 = arith.constant 0 : index
    %43 = vector.load %arg2[%c0_52, %c20, %c0_53] : memref<1x332x8xbf16, #tpu.memory_space<vmem>>, vector<1x288x8xbf16>
    %44 = vector.shape_cast %43 : vector<1x288x8xbf16> to vector<288x8xbf16>
    %c5 = arith.constant 5 : index
    %c0_54 = arith.constant 0 : index
    %c0_55 = arith.constant 0 : index
    %45 = vector.load %arg3[%c5, %c0_54, %c0_55] : memref<9x8x8xbf16, #tpu.memory_space<vmem>>, vector<1x8x8xbf16>
    %46 = vector.shape_cast %45 : vector<1x8x8xbf16> to vector<8x8xbf16>
    %cst_56 = arith.constant dense<0.000000e+00> : vector<288x8xf32>
    %47 = tpu.matmul %44, %46, %cst_56 {dimension_numbers = #tpu.dot_dimension_numbers<[1], [0], [0], [1], [0, 0, 1, 1], [], []>} : vector<288x8xbf16>, vector<8x8xbf16>, vector<288x8xf32> -> vector<288x8xf32>
    %48 = arith.addf %42, %47 : vector<288x8xf32>
    %c0_57 = arith.constant 0 : index
    %c0_58 = arith.constant 0 : index
    %49 = vector.load %arg7[%c0_57, %c0_58] : memref<288x8xf32, #tpu.memory_space<vmem>>, vector<288x8xf32>
    tpu.vector_store %arg7[%c0_57, %c0_58], %48 {strides = array<i32>} : memref<288x8xf32, #tpu.memory_space<vmem>>, vector<288x8xf32>,
    %c0_59 = arith.constant 0 : index
    %c0_60 = arith.constant 0 : index
    %50 = vector.load %arg7[%c0_59, %c0_60] : memref<288x8xf32, #tpu.memory_space<vmem>>, vector<288x8xf32>
    %c0_61 = arith.constant 0 : index
    %c36 = arith.constant 36 : index
    %c0_62 = arith.constant 0 : index
    %51 = vector.load %arg2[%c0_61, %c36, %c0_62] : memref<1x332x8xbf16, #tpu.memory_space<vmem>>, vector<1x288x8xbf16>
    %52 = vector.shape_cast %51 : vector<1x288x8xbf16> to vector<288x8xbf16>
    %c6 = arith.constant 6 : index
    %c0_63 = arith.constant 0 : index
    %c0_64 = arith.constant 0 : index
    %53 = vector.load %arg3[%c6, %c0_63, %c0_64] : memref<9x8x8xbf16, #tpu.memory_space<vmem>>, vector<1x8x8xbf16>
    %54 = vector.shape_cast %53 : vector<1x8x8xbf16> to vector<8x8xbf16>
    %cst_65 = arith.constant dense<0.000000e+00> : vector<288x8xf32>
    %55 = tpu.matmul %52, %54, %cst_65 {dimension_numbers = #tpu.dot_dimension_numbers<[1], [0], [0], [1], [0, 0, 1, 1], [], []>} : vector<288x8xbf16>, vector<8x8xbf16>, vector<288x8xf32> -> vector<288x8xf32>
    %56 = arith.addf %50, %55 : vector<288x8xf32>
    %c0_66 = arith.constant 0 : index
    %c0_67 = arith.constant 0 : index
    %57 = vector.load %arg7[%c0_66, %c0_67] : memref<288x8xf32, #tpu.memory_space<vmem>>, vector<288x8xf32>
    tpu.vector_store %arg7[%c0_66, %c0_67], %56 {strides = array<i32>} : memref<288x8xf32, #tpu.memory_space<vmem>>, vector<288x8xf32>,
    %c0_68 = arith.constant 0 : index
    %c0_69 = arith.constant 0 : index
    %58 = vector.load %arg7[%c0_68, %c0_69] : memref<288x8xf32, #tpu.memory_space<vmem>>, vector<288x8xf32>
    %c0_70 = arith.constant 0 : index
    %c37 = arith.constant 37 : index
    %c0_71 = arith.constant 0 : index
    %59 = vector.load %arg2[%c0_70, %c37, %c0_71] : memref<1x332x8xbf16, #tpu.memory_space<vmem>>, vector<1x288x8xbf16>
    %60 = vector.shape_cast %59 : vector<1x288x8xbf16> to vector<288x8xbf16>
    %c7 = arith.constant 7 : index
    %c0_72 = arith.constant 0 : index
    %c0_73 = arith.constant 0 : index
    %61 = vector.load %arg3[%c7, %c0_72, %c0_73] : memref<9x8x8xbf16, #tpu.memory_space<vmem>>, vector<1x8x8xbf16>
    %62 = vector.shape_cast %61 : vector<1x8x8xbf16> to vector<8x8xbf16>
    %cst_74 = arith.constant dense<0.000000e+00> : vector<288x8xf32>
    %63 = tpu.matmul %60, %62, %cst_74 {dimension_numbers = #tpu.dot_dimension_numbers<[1], [0], [0], [1], [0, 0, 1, 1], [], []>} : vector<288x8xbf16>, vector<8x8xbf16>, vector<288x8xf32> -> vector<288x8xf32>
    %64 = arith.addf %58, %63 : vector<288x8xf32>
    %c0_75 = arith.constant 0 : index
    %c0_76 = arith.constant 0 : index
    %65 = vector.load %arg7[%c0_75, %c0_76] : memref<288x8xf32, #tpu.memory_space<vmem>>, vector<288x8xf32>
    tpu.vector_store %arg7[%c0_75, %c0_76], %64 {strides = array<i32>} : memref<288x8xf32, #tpu.memory_space<vmem>>, vector<288x8xf32>,
    %c0_77 = arith.constant 0 : index
    %c0_78 = arith.constant 0 : index
    %66 = vector.load %arg7[%c0_77, %c0_78] : memref<288x8xf32, #tpu.memory_space<vmem>>, vector<288x8xf32>
    %c0_79 = arith.constant 0 : index
    %c38 = arith.constant 38 : index
    %c0_80 = arith.constant 0 : index
    %67 = vector.load %arg2[%c0_79, %c38, %c0_80] : memref<1x332x8xbf16, #tpu.memory_space<vmem>>, vector<1x288x8xbf16>
    %68 = vector.shape_cast %67 : vector<1x288x8xbf16> to vector<288x8xbf16>
    %c8 = arith.constant 8 : index
    %c0_81 = arith.constant 0 : index
    %c0_82 = arith.constant 0 : index
    %69 = vector.load %arg3[%c8, %c0_81, %c0_82] : memref<9x8x8xbf16, #tpu.memory_space<vmem>>, vector<1x8x8xbf16>
    %70 = vector.shape_cast %69 : vector<1x8x8xbf16> to vector<8x8xbf16>
    %cst_83 = arith.constant dense<0.000000e+00> : vector<288x8xf32>
    %71 = tpu.matmul %68, %70, %cst_83 {dimension_numbers = #tpu.dot_dimension_numbers<[1], [0], [0], [1], [0, 0, 1, 1], [], []>} : vector<288x8xbf16>, vector<8x8xbf16>, vector<288x8xf32> -> vector<288x8xf32>
    %72 = arith.addf %66, %71 : vector<288x8xf32>
    %c0_84 = arith.constant 0 : index
    %c0_85 = arith.constant 0 : index
    %73 = vector.load %arg7[%c0_84, %c0_85] : memref<288x8xf32, #tpu.memory_space<vmem>>, vector<288x8xf32>
    tpu.vector_store %arg7[%c0_84, %c0_85], %72 {strides = array<i32>} : memref<288x8xf32, #tpu.memory_space<vmem>>, vector<288x8xf32>,
    %c0_86 = arith.constant 0 : index
    %c0_87 = arith.constant 0 : index
    %74 = vector.load %arg7[%c0_86, %c0_87] : memref<288x8xf32, #tpu.memory_space<vmem>>, vector<288x8xf32>
    %c0_88 = arith.constant 0 : index
    %c0_89 = arith.constant 0 : index
    %75 = vector.load %arg1[%c0_88, %c0_89] : memref<288x1xf32, #tpu.memory_space<vmem>>, vector<288x1xf32>
    %76 = vector.broadcast %75 : vector<288x1xf32> to vector<288x8xf32>
    %77 = arith.mulf %74, %76 : vector<288x8xf32>
    %78 = arith.truncf %77 : vector<288x8xf32> to vector<288x8xbf16>
    %c0_90 = arith.constant 0 : index
    %c0_91 = arith.constant 0 : index
    %c0_92 = arith.constant 0 : index
    %79 = vector.load %arg4[%c0_90, %c0_91, %c0_92] : memref<1x288x8xbf16, #tpu.memory_space<vmem>>, vector<1x288x8xbf16>
    %80 = vector.shape_cast %79 : vector<1x288x8xbf16> to vector<288x8xbf16>
    %81 = vector.shape_cast %78 : vector<288x8xbf16> to vector<1x288x8xbf16>
    tpu.vector_store %arg4[%c0_90, %c0_91, %c0_92], %81 {strides = array<i32>} : memref<1x288x8xbf16, #tpu.memory_space<vmem>>, vector<1x288x8xbf16>,
    %cst_93 = arith.constant dense<0.000000e+00> : vector<8xf32>
    %82 = vector.multi_reduction <add>, %77, %cst_93 [0] : vector<288x8xf32> to vector<8xf32>
    %83 = vector.shape_cast %82 : vector<8xf32> to vector<1x8xf32>
    %c0_94 = arith.constant 0 : index
    %c0_95 = arith.constant 0 : index
    %c0_96 = arith.constant 0 : index
    %84 = vector.load %arg5[%c0_94, %c0_95, %c0_96] : memref<1x1x8xf32, #tpu.memory_space<vmem>>, vector<1x1x8xf32>
    %85 = vector.shape_cast %84 : vector<1x1x8xf32> to vector<1x8xf32>
    %86 = vector.shape_cast %83 : vector<1x8xf32> to vector<1x1x8xf32>
    tpu.vector_store %arg5[%c0_94, %c0_95, %c0_96], %86 {strides = array<i32>} : memref<1x1x8xf32, #tpu.memory_space<vmem>>, vector<1x1x8xf32>,
    %87 = arith.mulf %77, %77 : vector<288x8xf32>
    %cst_97 = arith.constant dense<0.000000e+00> : vector<8xf32>
    %88 = vector.multi_reduction <add>, %87, %cst_97 [0] : vector<288x8xf32> to vector<8xf32>
    %89 = vector.shape_cast %88 : vector<8xf32> to vector<1x8xf32>
    %c0_98 = arith.constant 0 : index
    %c0_99 = arith.constant 0 : index
    %c0_100 = arith.constant 0 : index
    %90 = vector.load %arg6[%c0_98, %c0_99, %c0_100] : memref<1x1x8xf32, #tpu.memory_space<vmem>>, vector<1x1x8xf32>
    %91 = vector.shape_cast %90 : vector<1x1x8xf32> to vector<1x8xf32>
    %92 = vector.shape_cast %89 : vector<1x8xf32> to vector<1x1x8xf32>
    tpu.vector_store %arg6[%c0_98, %c0_99, %c0_100], %92 {strides = array<i32>} : memref<1x1x8xf32, #tpu.memory_space<vmem>>, vector<1x1x8xf32>,
    return
  }
  func.func @transform_0(%arg0: i32) -> (i32, i32) {
    %c0_i32 = arith.constant 0 : i32
    %c0_i32_0 = arith.constant 0 : i32
    %c0_i32_1 = arith.constant 0 : i32
    return %c0_i32, %c0_i32_0 : i32, i32
  }
  func.func @transform_1(%arg0: i32) -> (i32, i32, i32) {
    %c0_i32 = arith.constant 0 : i32
    %c0_i32_0 = arith.constant 0 : i32
    %c0_i32_1 = arith.constant 0 : i32
    return %arg0, %c0_i32, %c0_i32_0 : i32, i32, i32
  }
  func.func @transform_2(%arg0: i32) -> (i32, i32, i32) {
    %c0_i32 = arith.constant 0 : i32
    %c0_i32_0 = arith.constant 0 : i32
    %c0_i32_1 = arith.constant 0 : i32
    %c0_i32_2 = arith.constant 0 : i32
    return %c0_i32, %c0_i32_0, %c0_i32_1 : i32, i32, i32
  }
  func.func @transform_3(%arg0: i32) -> (i32, i32, i32) {
    %c0_i32 = arith.constant 0 : i32
    %c0_i32_0 = arith.constant 0 : i32
    %c0_i32_1 = arith.constant 0 : i32
    return %arg0, %c0_i32, %c0_i32_0 : i32, i32, i32
  }
  func.func @transform_4(%arg0: i32) -> (i32, i32, i32) {
    %c0_i32 = arith.constant 0 : i32
    %c0_i32_0 = arith.constant 0 : i32
    %c0_i32_1 = arith.constant 0 : i32
    return %arg0, %c0_i32, %c0_i32_0 : i32, i32, i32
  }
  func.func @transform_5(%arg0: i32) -> (i32, i32, i32) {
    %c0_i32 = arith.constant 0 : i32
    %c0_i32_0 = arith.constant 0 : i32
    %c0_i32_1 = arith.constant 0 : i32
    return %arg0, %c0_i32, %c0_i32_0 : i32, i32, i32
  }
}

module attributes {stable_mosaic.version = 11 : i64} {
  func.func @_conv3x3_bn_stats_kernel(%arg0: i32, %arg1: memref<288x1xf32, #tpu.memory_space<vmem>>, %arg2: memref<1x288x8xbf16, #tpu.memory_space<vmem>>, %arg3: memref<1x8xf32, #tpu.memory_space<vmem>>, %arg4: memref<1x8xf32, #tpu.memory_space<vmem>>, %arg5: memref<9x8x8xbf16, #tpu.memory_space<vmem>>, %arg6: memref<1x288x8xbf16, #tpu.memory_space<vmem>>, %arg7: memref<1x1x8xf32, #tpu.memory_space<vmem>>, %arg8: memref<1x1x8xf32, #tpu.memory_space<vmem>>, %arg9: memref<332x8xbf16, #tpu.memory_space<vmem>>, %arg10: memref<288x8xf32, #tpu.memory_space<vmem>>) attributes {dimension_semantics = [#tpu.dimension_semantics<parallel>], iteration_bounds = array<i64: 2>, scalar_prefetch = 0 : i64, scratch_operands = 2 : i64, tpu.core_type = #tpu.core_type<tc>, window_params = [{pipeline_mode = #tpu.pipeline_mode<synchronous>, transform_indices = @transform_0, window_bounds = array<i64: 288, 1>}, {transform_indices = @transform_1, window_bounds = array<i64: 1, 288, 8>}, {pipeline_mode = #tpu.pipeline_mode<synchronous>, transform_indices = @transform_2, window_bounds = array<i64: 1, 8>}, {pipeline_mode = #tpu.pipeline_mode<synchronous>, transform_indices = @transform_3, window_bounds = array<i64: 1, 8>}, {pipeline_mode = #tpu.pipeline_mode<synchronous>, transform_indices = @transform_4, window_bounds = array<i64: 9, 8, 8>}, {transform_indices = @transform_5, window_bounds = array<i64: 1, 288, 8>}, {transform_indices = @transform_6, window_bounds = array<i64: 1, 1, 8>}, {transform_indices = @transform_7, window_bounds = array<i64: 1, 1, 8>}]} {
    %c0 = arith.constant 0 : index
    %c0_0 = arith.constant 0 : index
    %c0_1 = arith.constant 0 : index
    %0 = vector.load %arg2[%c0, %c0_0, %c0_1] : memref<1x288x8xbf16, #tpu.memory_space<vmem>>, vector<1x288x8xbf16>
    %1 = vector.shape_cast %0 : vector<1x288x8xbf16> to vector<288x8xbf16>
    %2 = arith.extf %1 : vector<288x8xbf16> to vector<288x8xf32>
    %c0_2 = arith.constant 0 : index
    %c0_3 = arith.constant 0 : index
    %3 = vector.load %arg3[%c0_2, %c0_3] : memref<1x8xf32, #tpu.memory_space<vmem>>, vector<1x8xf32>
    %4 = vector.broadcast %3 : vector<1x8xf32> to vector<288x8xf32>
    %5 = arith.mulf %2, %4 : vector<288x8xf32>
    %c0_4 = arith.constant 0 : index
    %c0_5 = arith.constant 0 : index
    %6 = vector.load %arg4[%c0_4, %c0_5] : memref<1x8xf32, #tpu.memory_space<vmem>>, vector<1x8xf32>
    %7 = vector.broadcast %6 : vector<1x8xf32> to vector<288x8xf32>
    %8 = arith.addf %5, %7 : vector<288x8xf32>
    %cst = arith.constant 5.100000e-01 : f32
    %9 = vector.broadcast %cst : f32 to vector<288x8xf32>
    %10 = arith.mulf %9, %8 : vector<288x8xf32>
    %11 = arith.mulf %8, %8 : vector<288x8xf32>
    %cst_6 = arith.constant 1.42108547E-14 : f32
    %12 = vector.broadcast %cst_6 : f32 to vector<288x8xf32>
    %13 = arith.addf %11, %12 : vector<288x8xf32>
    %14 = math.sqrt %13 : vector<288x8xf32>
    %cst_7 = arith.constant 4.900000e-01 : f32
    %15 = vector.broadcast %cst_7 : f32 to vector<288x8xf32>
    %16 = arith.mulf %15, %14 : vector<288x8xf32>
    %17 = arith.addf %10, %16 : vector<288x8xf32>
    %cst_8 = arith.constant 5.8412553E-8 : f32
    %18 = vector.broadcast %cst_8 : f32 to vector<288x8xf32>
    %19 = arith.subf %17, %18 : vector<288x8xf32>
    %c0_9 = arith.constant 0 : index
    %c0_10 = arith.constant 0 : index
    %20 = vector.load %arg1[%c0_9, %c0_10] : memref<288x1xf32, #tpu.memory_space<vmem>>, vector<288x1xf32>
    %21 = vector.broadcast %20 : vector<288x1xf32> to vector<288x8xf32>
    %22 = arith.mulf %19, %21 : vector<288x8xf32>
    %cst_11 = arith.constant 0.000000e+00 : bf16
    %23 = vector.broadcast %cst_11 : bf16 to vector<19x8xbf16>
    %c0_12 = arith.constant 0 : index
    %c0_13 = arith.constant 0 : index
    %24 = vector.load %arg9[%c0_12, %c0_13] : memref<332x8xbf16, #tpu.memory_space<vmem>>, vector<19x8xbf16>
    tpu.vector_store %arg9[%c0_12, %c0_13], %23 {strides = array<i32>} : memref<332x8xbf16, #tpu.memory_space<vmem>>, vector<19x8xbf16>,
    %cst_14 = arith.constant 0.000000e+00 : bf16
    %25 = vector.broadcast %cst_14 : bf16 to vector<25x8xbf16>
    %c307 = arith.constant 307 : index
    %c0_15 = arith.constant 0 : index
    %26 = vector.load %arg9[%c307, %c0_15] : memref<332x8xbf16, #tpu.memory_space<vmem>>, vector<25x8xbf16>
    tpu.vector_store %arg9[%c307, %c0_15], %25 {strides = array<i32>} : memref<332x8xbf16, #tpu.memory_space<vmem>>, vector<25x8xbf16>,
    %27 = arith.truncf %22 : vector<288x8xf32> to vector<288x8xbf16>
    %c19 = arith.constant 19 : index
    %c0_16 = arith.constant 0 : index
    %28 = vector.load %arg9[%c19, %c0_16] : memref<332x8xbf16, #tpu.memory_space<vmem>>, vector<288x8xbf16>
    tpu.vector_store %arg9[%c19, %c0_16], %27 {strides = array<i32>} : memref<332x8xbf16, #tpu.memory_space<vmem>>, vector<288x8xbf16>,
    %cst_17 = arith.constant 0.000000e+00 : f32
    %29 = vector.broadcast %cst_17 : f32 to vector<288x8xf32>
    %c0_18 = arith.constant 0 : index
    %c0_19 = arith.constant 0 : index
    %30 = vector.load %arg10[%c0_18, %c0_19] : memref<288x8xf32, #tpu.memory_space<vmem>>, vector<288x8xf32>
    tpu.vector_store %arg10[%c0_18, %c0_19], %29 {strides = array<i32>} : memref<288x8xf32, #tpu.memory_space<vmem>>, vector<288x8xf32>,
    %c0_20 = arith.constant 0 : index
    %c0_21 = arith.constant 0 : index
    %31 = vector.load %arg10[%c0_20, %c0_21] : memref<288x8xf32, #tpu.memory_space<vmem>>, vector<288x8xf32>
    %c0_22 = arith.constant 0 : index
    %c0_23 = arith.constant 0 : index
    %32 = vector.load %arg9[%c0_22, %c0_23] : memref<332x8xbf16, #tpu.memory_space<vmem>>, vector<288x8xbf16>
    %c0_24 = arith.constant 0 : index
    %c0_25 = arith.constant 0 : index
    %c0_26 = arith.constant 0 : index
    %33 = vector.load %arg5[%c0_24, %c0_25, %c0_26] : memref<9x8x8xbf16, #tpu.memory_space<vmem>>, vector<1x8x8xbf16>
    %34 = vector.shape_cast %33 : vector<1x8x8xbf16> to vector<8x8xbf16>
    %cst_27 = arith.constant dense<0.000000e+00> : vector<288x8xf32>
    %35 = tpu.matmul %32, %34, %cst_27 {dimension_numbers = #tpu.dot_dimension_numbers<[1], [0], [0], [1], [0, 0, 1, 1], [], []>} : vector<288x8xbf16>, vector<8x8xbf16>, vector<288x8xf32> -> vector<288x8xf32>
    %36 = arith.addf %31, %35 : vector<288x8xf32>
    %c0_28 = arith.constant 0 : index
    %c0_29 = arith.constant 0 : index
    %37 = vector.load %arg10[%c0_28, %c0_29] : memref<288x8xf32, #tpu.memory_space<vmem>>, vector<288x8xf32>
    tpu.vector_store %arg10[%c0_28, %c0_29], %36 {strides = array<i32>} : memref<288x8xf32, #tpu.memory_space<vmem>>, vector<288x8xf32>,
    %c0_30 = arith.constant 0 : index
    %c0_31 = arith.constant 0 : index
    %38 = vector.load %arg10[%c0_30, %c0_31] : memref<288x8xf32, #tpu.memory_space<vmem>>, vector<288x8xf32>
    %c1 = arith.constant 1 : index
    %c0_32 = arith.constant 0 : index
    %39 = vector.load %arg9[%c1, %c0_32] : memref<332x8xbf16, #tpu.memory_space<vmem>>, vector<288x8xbf16>
    %c1_33 = arith.constant 1 : index
    %c0_34 = arith.constant 0 : index
    %c0_35 = arith.constant 0 : index
    %40 = vector.load %arg5[%c1_33, %c0_34, %c0_35] : memref<9x8x8xbf16, #tpu.memory_space<vmem>>, vector<1x8x8xbf16>
    %41 = vector.shape_cast %40 : vector<1x8x8xbf16> to vector<8x8xbf16>
    %cst_36 = arith.constant dense<0.000000e+00> : vector<288x8xf32>
    %42 = tpu.matmul %39, %41, %cst_36 {dimension_numbers = #tpu.dot_dimension_numbers<[1], [0], [0], [1], [0, 0, 1, 1], [], []>} : vector<288x8xbf16>, vector<8x8xbf16>, vector<288x8xf32> -> vector<288x8xf32>
    %43 = arith.addf %38, %42 : vector<288x8xf32>
    %c0_37 = arith.constant 0 : index
    %c0_38 = arith.constant 0 : index
    %44 = vector.load %arg10[%c0_37, %c0_38] : memref<288x8xf32, #tpu.memory_space<vmem>>, vector<288x8xf32>
    tpu.vector_store %arg10[%c0_37, %c0_38], %43 {strides = array<i32>} : memref<288x8xf32, #tpu.memory_space<vmem>>, vector<288x8xf32>,
    %c0_39 = arith.constant 0 : index
    %c0_40 = arith.constant 0 : index
    %45 = vector.load %arg10[%c0_39, %c0_40] : memref<288x8xf32, #tpu.memory_space<vmem>>, vector<288x8xf32>
    %c2 = arith.constant 2 : index
    %c0_41 = arith.constant 0 : index
    %46 = vector.load %arg9[%c2, %c0_41] : memref<332x8xbf16, #tpu.memory_space<vmem>>, vector<288x8xbf16>
    %c2_42 = arith.constant 2 : index
    %c0_43 = arith.constant 0 : index
    %c0_44 = arith.constant 0 : index
    %47 = vector.load %arg5[%c2_42, %c0_43, %c0_44] : memref<9x8x8xbf16, #tpu.memory_space<vmem>>, vector<1x8x8xbf16>
    %48 = vector.shape_cast %47 : vector<1x8x8xbf16> to vector<8x8xbf16>
    %cst_45 = arith.constant dense<0.000000e+00> : vector<288x8xf32>
    %49 = tpu.matmul %46, %48, %cst_45 {dimension_numbers = #tpu.dot_dimension_numbers<[1], [0], [0], [1], [0, 0, 1, 1], [], []>} : vector<288x8xbf16>, vector<8x8xbf16>, vector<288x8xf32> -> vector<288x8xf32>
    %50 = arith.addf %45, %49 : vector<288x8xf32>
    %c0_46 = arith.constant 0 : index
    %c0_47 = arith.constant 0 : index
    %51 = vector.load %arg10[%c0_46, %c0_47] : memref<288x8xf32, #tpu.memory_space<vmem>>, vector<288x8xf32>
    tpu.vector_store %arg10[%c0_46, %c0_47], %50 {strides = array<i32>} : memref<288x8xf32, #tpu.memory_space<vmem>>, vector<288x8xf32>,
    %c0_48 = arith.constant 0 : index
    %c0_49 = arith.constant 0 : index
    %52 = vector.load %arg10[%c0_48, %c0_49] : memref<288x8xf32, #tpu.memory_space<vmem>>, vector<288x8xf32>
    %c18 = arith.constant 18 : index
    %c0_50 = arith.constant 0 : index
    %53 = vector.load %arg9[%c18, %c0_50] : memref<332x8xbf16, #tpu.memory_space<vmem>>, vector<288x8xbf16>
    %c3 = arith.constant 3 : index
    %c0_51 = arith.constant 0 : index
    %c0_52 = arith.constant 0 : index
    %54 = vector.load %arg5[%c3, %c0_51, %c0_52] : memref<9x8x8xbf16, #tpu.memory_space<vmem>>, vector<1x8x8xbf16>
    %55 = vector.shape_cast %54 : vector<1x8x8xbf16> to vector<8x8xbf16>
    %cst_53 = arith.constant dense<0.000000e+00> : vector<288x8xf32>
    %56 = tpu.matmul %53, %55, %cst_53 {dimension_numbers = #tpu.dot_dimension_numbers<[1], [0], [0], [1], [0, 0, 1, 1], [], []>} : vector<288x8xbf16>, vector<8x8xbf16>, vector<288x8xf32> -> vector<288x8xf32>
    %57 = arith.addf %52, %56 : vector<288x8xf32>
    %c0_54 = arith.constant 0 : index
    %c0_55 = arith.constant 0 : index
    %58 = vector.load %arg10[%c0_54, %c0_55] : memref<288x8xf32, #tpu.memory_space<vmem>>, vector<288x8xf32>
    tpu.vector_store %arg10[%c0_54, %c0_55], %57 {strides = array<i32>} : memref<288x8xf32, #tpu.memory_space<vmem>>, vector<288x8xf32>,
    %c0_56 = arith.constant 0 : index
    %c0_57 = arith.constant 0 : index
    %59 = vector.load %arg10[%c0_56, %c0_57] : memref<288x8xf32, #tpu.memory_space<vmem>>, vector<288x8xf32>
    %c19_58 = arith.constant 19 : index
    %c0_59 = arith.constant 0 : index
    %60 = vector.load %arg9[%c19_58, %c0_59] : memref<332x8xbf16, #tpu.memory_space<vmem>>, vector<288x8xbf16>
    %c4 = arith.constant 4 : index
    %c0_60 = arith.constant 0 : index
    %c0_61 = arith.constant 0 : index
    %61 = vector.load %arg5[%c4, %c0_60, %c0_61] : memref<9x8x8xbf16, #tpu.memory_space<vmem>>, vector<1x8x8xbf16>
    %62 = vector.shape_cast %61 : vector<1x8x8xbf16> to vector<8x8xbf16>
    %cst_62 = arith.constant dense<0.000000e+00> : vector<288x8xf32>
    %63 = tpu.matmul %60, %62, %cst_62 {dimension_numbers = #tpu.dot_dimension_numbers<[1], [0], [0], [1], [0, 0, 1, 1], [], []>} : vector<288x8xbf16>, vector<8x8xbf16>, vector<288x8xf32> -> vector<288x8xf32>
    %64 = arith.addf %59, %63 : vector<288x8xf32>
    %c0_63 = arith.constant 0 : index
    %c0_64 = arith.constant 0 : index
    %65 = vector.load %arg10[%c0_63, %c0_64] : memref<288x8xf32, #tpu.memory_space<vmem>>, vector<288x8xf32>
    tpu.vector_store %arg10[%c0_63, %c0_64], %64 {strides = array<i32>} : memref<288x8xf32, #tpu.memory_space<vmem>>, vector<288x8xf32>,
    %c0_65 = arith.constant 0 : index
    %c0_66 = arith.constant 0 : index
    %66 = vector.load %arg10[%c0_65, %c0_66] : memref<288x8xf32, #tpu.memory_space<vmem>>, vector<288x8xf32>
    %c20 = arith.constant 20 : index
    %c0_67 = arith.constant 0 : index
    %67 = vector.load %arg9[%c20, %c0_67] : memref<332x8xbf16, #tpu.memory_space<vmem>>, vector<288x8xbf16>
    %c5 = arith.constant 5 : index
    %c0_68 = arith.constant 0 : index
    %c0_69 = arith.constant 0 : index
    %68 = vector.load %arg5[%c5, %c0_68, %c0_69] : memref<9x8x8xbf16, #tpu.memory_space<vmem>>, vector<1x8x8xbf16>
    %69 = vector.shape_cast %68 : vector<1x8x8xbf16> to vector<8x8xbf16>
    %cst_70 = arith.constant dense<0.000000e+00> : vector<288x8xf32>
    %70 = tpu.matmul %67, %69, %cst_70 {dimension_numbers = #tpu.dot_dimension_numbers<[1], [0], [0], [1], [0, 0, 1, 1], [], []>} : vector<288x8xbf16>, vector<8x8xbf16>, vector<288x8xf32> -> vector<288x8xf32>
    %71 = arith.addf %66, %70 : vector<288x8xf32>
    %c0_71 = arith.constant 0 : index
    %c0_72 = arith.constant 0 : index
    %72 = vector.load %arg10[%c0_71, %c0_72] : memref<288x8xf32, #tpu.memory_space<vmem>>, vector<288x8xf32>
    tpu.vector_store %arg10[%c0_71, %c0_72], %71 {strides = array<i32>} : memref<288x8xf32, #tpu.memory_space<vmem>>, vector<288x8xf32>,
    %c0_73 = arith.constant 0 : index
    %c0_74 = arith.constant 0 : index
    %73 = vector.load %arg10[%c0_73, %c0_74] : memref<288x8xf32, #tpu.memory_space<vmem>>, vector<288x8xf32>
    %c36 = arith.constant 36 : index
    %c0_75 = arith.constant 0 : index
    %74 = vector.load %arg9[%c36, %c0_75] : memref<332x8xbf16, #tpu.memory_space<vmem>>, vector<288x8xbf16>
    %c6 = arith.constant 6 : index
    %c0_76 = arith.constant 0 : index
    %c0_77 = arith.constant 0 : index
    %75 = vector.load %arg5[%c6, %c0_76, %c0_77] : memref<9x8x8xbf16, #tpu.memory_space<vmem>>, vector<1x8x8xbf16>
    %76 = vector.shape_cast %75 : vector<1x8x8xbf16> to vector<8x8xbf16>
    %cst_78 = arith.constant dense<0.000000e+00> : vector<288x8xf32>
    %77 = tpu.matmul %74, %76, %cst_78 {dimension_numbers = #tpu.dot_dimension_numbers<[1], [0], [0], [1], [0, 0, 1, 1], [], []>} : vector<288x8xbf16>, vector<8x8xbf16>, vector<288x8xf32> -> vector<288x8xf32>
    %78 = arith.addf %73, %77 : vector<288x8xf32>
    %c0_79 = arith.constant 0 : index
    %c0_80 = arith.constant 0 : index
    %79 = vector.load %arg10[%c0_79, %c0_80] : memref<288x8xf32, #tpu.memory_space<vmem>>, vector<288x8xf32>
    tpu.vector_store %arg10[%c0_79, %c0_80], %78 {strides = array<i32>} : memref<288x8xf32, #tpu.memory_space<vmem>>, vector<288x8xf32>,
    %c0_81 = arith.constant 0 : index
    %c0_82 = arith.constant 0 : index
    %80 = vector.load %arg10[%c0_81, %c0_82] : memref<288x8xf32, #tpu.memory_space<vmem>>, vector<288x8xf32>
    %c37 = arith.constant 37 : index
    %c0_83 = arith.constant 0 : index
    %81 = vector.load %arg9[%c37, %c0_83] : memref<332x8xbf16, #tpu.memory_space<vmem>>, vector<288x8xbf16>
    %c7 = arith.constant 7 : index
    %c0_84 = arith.constant 0 : index
    %c0_85 = arith.constant 0 : index
    %82 = vector.load %arg5[%c7, %c0_84, %c0_85] : memref<9x8x8xbf16, #tpu.memory_space<vmem>>, vector<1x8x8xbf16>
    %83 = vector.shape_cast %82 : vector<1x8x8xbf16> to vector<8x8xbf16>
    %cst_86 = arith.constant dense<0.000000e+00> : vector<288x8xf32>
    %84 = tpu.matmul %81, %83, %cst_86 {dimension_numbers = #tpu.dot_dimension_numbers<[1], [0], [0], [1], [0, 0, 1, 1], [], []>} : vector<288x8xbf16>, vector<8x8xbf16>, vector<288x8xf32> -> vector<288x8xf32>
    %85 = arith.addf %80, %84 : vector<288x8xf32>
    %c0_87 = arith.constant 0 : index
    %c0_88 = arith.constant 0 : index
    %86 = vector.load %arg10[%c0_87, %c0_88] : memref<288x8xf32, #tpu.memory_space<vmem>>, vector<288x8xf32>
    tpu.vector_store %arg10[%c0_87, %c0_88], %85 {strides = array<i32>} : memref<288x8xf32, #tpu.memory_space<vmem>>, vector<288x8xf32>,
    %c0_89 = arith.constant 0 : index
    %c0_90 = arith.constant 0 : index
    %87 = vector.load %arg10[%c0_89, %c0_90] : memref<288x8xf32, #tpu.memory_space<vmem>>, vector<288x8xf32>
    %c38 = arith.constant 38 : index
    %c0_91 = arith.constant 0 : index
    %88 = vector.load %arg9[%c38, %c0_91] : memref<332x8xbf16, #tpu.memory_space<vmem>>, vector<288x8xbf16>
    %c8 = arith.constant 8 : index
    %c0_92 = arith.constant 0 : index
    %c0_93 = arith.constant 0 : index
    %89 = vector.load %arg5[%c8, %c0_92, %c0_93] : memref<9x8x8xbf16, #tpu.memory_space<vmem>>, vector<1x8x8xbf16>
    %90 = vector.shape_cast %89 : vector<1x8x8xbf16> to vector<8x8xbf16>
    %cst_94 = arith.constant dense<0.000000e+00> : vector<288x8xf32>
    %91 = tpu.matmul %88, %90, %cst_94 {dimension_numbers = #tpu.dot_dimension_numbers<[1], [0], [0], [1], [0, 0, 1, 1], [], []>} : vector<288x8xbf16>, vector<8x8xbf16>, vector<288x8xf32> -> vector<288x8xf32>
    %92 = arith.addf %87, %91 : vector<288x8xf32>
    %c0_95 = arith.constant 0 : index
    %c0_96 = arith.constant 0 : index
    %93 = vector.load %arg10[%c0_95, %c0_96] : memref<288x8xf32, #tpu.memory_space<vmem>>, vector<288x8xf32>
    tpu.vector_store %arg10[%c0_95, %c0_96], %92 {strides = array<i32>} : memref<288x8xf32, #tpu.memory_space<vmem>>, vector<288x8xf32>,
    %c0_97 = arith.constant 0 : index
    %c0_98 = arith.constant 0 : index
    %94 = vector.load %arg10[%c0_97, %c0_98] : memref<288x8xf32, #tpu.memory_space<vmem>>, vector<288x8xf32>
    %c0_99 = arith.constant 0 : index
    %c0_100 = arith.constant 0 : index
    %95 = vector.load %arg1[%c0_99, %c0_100] : memref<288x1xf32, #tpu.memory_space<vmem>>, vector<288x1xf32>
    %96 = vector.broadcast %95 : vector<288x1xf32> to vector<288x8xf32>
    %97 = arith.mulf %94, %96 : vector<288x8xf32>
    %98 = arith.truncf %97 : vector<288x8xf32> to vector<288x8xbf16>
    %c0_101 = arith.constant 0 : index
    %c0_102 = arith.constant 0 : index
    %c0_103 = arith.constant 0 : index
    %99 = vector.load %arg6[%c0_101, %c0_102, %c0_103] : memref<1x288x8xbf16, #tpu.memory_space<vmem>>, vector<1x288x8xbf16>
    %100 = vector.shape_cast %99 : vector<1x288x8xbf16> to vector<288x8xbf16>
    %101 = vector.shape_cast %98 : vector<288x8xbf16> to vector<1x288x8xbf16>
    tpu.vector_store %arg6[%c0_101, %c0_102, %c0_103], %101 {strides = array<i32>} : memref<1x288x8xbf16, #tpu.memory_space<vmem>>, vector<1x288x8xbf16>,
    %cst_104 = arith.constant dense<0.000000e+00> : vector<8xf32>
    %102 = vector.multi_reduction <add>, %97, %cst_104 [0] : vector<288x8xf32> to vector<8xf32>
    %103 = vector.shape_cast %102 : vector<8xf32> to vector<1x8xf32>
    %c0_105 = arith.constant 0 : index
    %c0_106 = arith.constant 0 : index
    %c0_107 = arith.constant 0 : index
    %104 = vector.load %arg7[%c0_105, %c0_106, %c0_107] : memref<1x1x8xf32, #tpu.memory_space<vmem>>, vector<1x1x8xf32>
    %105 = vector.shape_cast %104 : vector<1x1x8xf32> to vector<1x8xf32>
    %106 = vector.shape_cast %103 : vector<1x8xf32> to vector<1x1x8xf32>
    tpu.vector_store %arg7[%c0_105, %c0_106, %c0_107], %106 {strides = array<i32>} : memref<1x1x8xf32, #tpu.memory_space<vmem>>, vector<1x1x8xf32>,
    %107 = arith.mulf %97, %97 : vector<288x8xf32>
    %cst_108 = arith.constant dense<0.000000e+00> : vector<8xf32>
    %108 = vector.multi_reduction <add>, %107, %cst_108 [0] : vector<288x8xf32> to vector<8xf32>
    %109 = vector.shape_cast %108 : vector<8xf32> to vector<1x8xf32>
    %c0_109 = arith.constant 0 : index
    %c0_110 = arith.constant 0 : index
    %c0_111 = arith.constant 0 : index
    %110 = vector.load %arg8[%c0_109, %c0_110, %c0_111] : memref<1x1x8xf32, #tpu.memory_space<vmem>>, vector<1x1x8xf32>
    %111 = vector.shape_cast %110 : vector<1x1x8xf32> to vector<1x8xf32>
    %112 = vector.shape_cast %109 : vector<1x8xf32> to vector<1x1x8xf32>
    tpu.vector_store %arg8[%c0_109, %c0_110, %c0_111], %112 {strides = array<i32>} : memref<1x1x8xf32, #tpu.memory_space<vmem>>, vector<1x1x8xf32>,
    return
  }
  func.func @transform_0(%arg0: i32) -> (i32, i32) {
    %c0_i32 = arith.constant 0 : i32
    %c0_i32_0 = arith.constant 0 : i32
    %c0_i32_1 = arith.constant 0 : i32
    return %c0_i32, %c0_i32_0 : i32, i32
  }
  func.func @transform_1(%arg0: i32) -> (i32, i32, i32) {
    %c0_i32 = arith.constant 0 : i32
    %c0_i32_0 = arith.constant 0 : i32
    %c0_i32_1 = arith.constant 0 : i32
    return %arg0, %c0_i32, %c0_i32_0 : i32, i32, i32
  }
  func.func @transform_2(%arg0: i32) -> (i32, i32) {
    %c0_i32 = arith.constant 0 : i32
    %c0_i32_0 = arith.constant 0 : i32
    %c0_i32_1 = arith.constant 0 : i32
    return %c0_i32, %c0_i32_0 : i32, i32
  }
  func.func @transform_3(%arg0: i32) -> (i32, i32) {
    %c0_i32 = arith.constant 0 : i32
    %c0_i32_0 = arith.constant 0 : i32
    %c0_i32_1 = arith.constant 0 : i32
    return %c0_i32, %c0_i32_0 : i32, i32
  }
  func.func @transform_4(%arg0: i32) -> (i32, i32, i32) {
    %c0_i32 = arith.constant 0 : i32
    %c0_i32_0 = arith.constant 0 : i32
    %c0_i32_1 = arith.constant 0 : i32
    %c0_i32_2 = arith.constant 0 : i32
    return %c0_i32, %c0_i32_0, %c0_i32_1 : i32, i32, i32
  }
  func.func @transform_5(%arg0: i32) -> (i32, i32, i32) {
    %c0_i32 = arith.constant 0 : i32
    %c0_i32_0 = arith.constant 0 : i32
    %c0_i32_1 = arith.constant 0 : i32
    return %arg0, %c0_i32, %c0_i32_0 : i32, i32, i32
  }
  func.func @transform_6(%arg0: i32) -> (i32, i32, i32) {
    %c0_i32 = arith.constant 0 : i32
    %c0_i32_0 = arith.constant 0 : i32
    %c0_i32_1 = arith.constant 0 : i32
    return %arg0, %c0_i32, %c0_i32_0 : i32, i32, i32
  }
  func.func @transform_7(%arg0: i32) -> (i32, i32, i32) {
    %c0_i32 = arith.constant 0 : i32
    %c0_i32_0 = arith.constant 0 : i32
    %c0_i32_1 = arith.constant 0 : i32
    return %arg0, %c0_i32, %c0_i32_0 : i32, i32, i32
  }
}

</mosaic_0001>

<bundles_post_ra>
// kernel: basic_block_forward.5
= control target key start
LH: loop header
LB: loop body
LE: loop exit
PB: predicated region body
PF: predicated region fallthrough
CT: control target
= control target key end

     0   :  { %s241_s0 = inlined_call_operand.vmem [shape: bf16[36,128], index: 0, kind: input, shape index: {}]   ;;  %s242_s1 = inlined_call_operand.vmem [shape: f32[1,128], index: 1, kind: input, shape index: {}]   ;;  %s243_s2 = inlined_call_operand.vmem [shape: f32[1,128], index: 2, kind: input, shape index: {}]   ;;  %s244_s3 = inlined_call_operand.vmem [shape: bf16[36,128], index: 3, kind: input, shape index: {}]   ;;  %s245_s4 = inlined_call_operand.vmem [shape: f32[36,128], index: 4, kind: output, shape index: {}]  }
   0x1   :  { %v148_v0 = vld [vmem:[%s241_s0] sm:$0xff]   ;;  %v163_v5 = vld [vmem:[%s241_s0 + $0x8] sm:$0xff]   ;;  %v21_v10 = vld [vmem:[%s241_s0 + $0x10] sm:$0x3] }
   0x2   :  { %v140_v1 = vld [vmem:[%s242_s1] ss:$0 sm:$0xff]  ;;  %v149_v2 = vunpack.c.l.bf16 %v148_v0  ;;  %v150_v4 = vunpack.c.h.bf16 %v148_v0  ;;  %v164_v6 = vld [vmem:[%s244_s3 + $0x8] sm:$0xff]   ;;  %v153_v9 = vunpack.c.l.bf16 %v163_v5  ;;  %v154_v14 = vunpack.c.h.bf16 %v163_v5  ;;  %v55_v21 = vld [vmem:[%s244_s3 + $0x10] sm:$0x3] }
   0x3   :  { %v156_v3 = vld [vmem:[%s244_s3] sm:$0xff]   ;;  %v161_v16 = vunpack.c.l.bf16 %v164_v6  ;;  %v26_v17 = vunpack.c.l.bf16 %v21_v10  ;;  %v162_v23 = vunpack.c.h.bf16 %v164_v6  ;;  %v60_v30 = vunpack.c.l.bf16 %v55_v21 }
   0x4   :  { %v141_v7 = vld [vmem:[%s243_s2] ss:$0 sm:$0xff]  ;;  %v157_v8 = vunpack.c.l.bf16 %v156_v3  ;;  %v34_v11 = vmul.f32 %v149_v2, %v140_v1  ;;  %v35_v12 = vmul.f32 %v150_v4, %v140_v1  ;;  %v158_v13 = vunpack.c.h.bf16 %v156_v3 }
   0x5   :  { %v36_v15 = vmul.f32 %v153_v9, %v140_v1  ;;  %v37_v20 = vmul.f32 %v154_v14, %v140_v1  ;;  %v38_v24 = vmul.f32 %v140_v1, %v26_v17 }
   0x6   :  { %v46_v18 = vadd.f32 %v141_v7, %v34_v11  ;;  %v47_v19 = vadd.f32 %v141_v7, %v35_v12 }
   0x7   :  { %v48_v22 = vadd.f32 %v141_v7, %v36_v15  ;;  %v49_v27 = vadd.f32 %v141_v7, %v37_v20  ;;  %v50_v29 = vadd.f32 %v141_v7, %v38_v24 }
   0x8   :  { %v61_v25 = vadd.f32 %v157_v8, %v46_v18  ;;  %v62_v26 = vadd.f32 %v158_v13, %v47_v19 }
   0x9   :  { %v63_v28 = vadd.f32 %v161_v16, %v48_v22  ;;  %v64_v34 = vadd.f32 %v162_v23, %v49_v27  ;;  %v65_v39 = vadd.f32 %v60_v30, %v50_v29 }
   0xa   :  { %v71_v31 = vmul.f32 %v61_v25, %v61_v25  ;;  %v72_v32 = vmul.f32 %v62_v26, %v62_v26  ;;  %v66_v44 = vmul.f32 0.51, %v61_v25  ;;  %v67_v53 = vmul.f32 0.51, %v62_v26 }
   0xb   :  { %v73_v33 = vmul.f32 %v63_v28, %v63_v28  ;;  %v74_v38 = vmul.f32 %v64_v34, %v64_v34  ;;  %v75_v41 = vmul.f32 %v65_v39, %v65_v39  ;;  %v68_v57 = vmul.f32 0.51, %v63_v28 }
   0xc   :  { %v76_v35 = vadd.f32 1.4210855e-14, %v71_v31  ;;  %v77_v36 = vadd.f32 1.4210855e-14, %v72_v32  ;;  %v69_v4 = vmul.f32 0.51, %v64_v34  ;;  %v70_v16 = vmul.f32 0.51, %v65_v39 }
   0xd   :  { %v78_v37 = vadd.f32 1.4210855e-14, %v73_v33  ;;  %v79_v40 = vadd.f32 1.4210855e-14, %v74_v38  ;;  %v80_v42 = vadd.f32 1.4210855e-14, %v75_v41 }
   0xe   :  { %165 = vrsqrt.f32 %v76_v35  ;;  %vm83_vm0 = vcmp.eq.f32.partialorder %v76_v35, inf  ;;  %v86_v45 = vand.u32 2147483648, %v76_v35  ;;  %vm85_vm1 = vcmp.eq.f32.partialorder %v76_v35, 0.0 }
   0xf   :  { %167 = vrsqrt.f32 %v77_v36  ;;  %vm90_vm2 = vcmp.eq.f32.partialorder %v77_v36, inf  ;;  %v93_v48 = vand.u32 2147483648, %v77_v36  ;;  %vm92_vm3 = vcmp.eq.f32.partialorder %v77_v36, 0.0 }
  0x10   :  { %169 = vrsqrt.f32 %v78_v37  ;;  %vm97_vm4 = vcmp.eq.f32.partialorder %v78_v37, inf  ;;  %v100_v51 = vand.u32 2147483648, %v78_v37  ;;  %vm99_vm5 = vcmp.eq.f32.partialorder %v78_v37, 0.0 }
  0x11   :  { %171 = vrsqrt.f32 %v79_v40  ;;  %vm104_vm6 = vcmp.eq.f32.partialorder %v79_v40, inf  ;;  %v107_v62 = vand.u32 2147483648, %v79_v40  ;;  %vm106_vm7 = vcmp.eq.f32.partialorder %v79_v40, 0.0 }
  0x12   :  { %173 = vrsqrt.f32 %v80_v42  ;;  %vm111_vm8 = vcmp.eq.f32.partialorder %v80_v42, inf  ;;  %vm113_vm9 = vcmp.eq.f32.partialorder %v80_v42, 0.0  ;;  %v114_v8 = vand.u32 2147483648, %v80_v42 }
  0x18   :  { %v166_v43 = vpop.eup %165 }
  0x19   :  { %v168_v46 = vpop.eup %167  ;;  %v82_v47 = vmul.f32 %v166_v43, %v76_v35 }
  0x1a   :  { %v170_v49 = vpop.eup %169  ;;  %v89_v50 = vmul.f32 %v168_v46, %v77_v36 }
  0x1b   :  { %v84_v52 = vsel %vm83_vm0, %v76_v35, %v82_v47  ;;  %v96_v54 = vmul.f32 %v170_v49, %v78_v37  ;;  %v172_v58 = vpop.eup %171 }
  0x1c   :  { %v87_v55 = vsel %vm85_vm1, %v86_v45, %v84_v52  ;;  %v91_v56 = vsel %vm90_vm2, %v77_v36, %v89_v50  ;;  %v103_v1 = vmul.f32 %v172_v58, %v79_v40  ;;  %v174_v5 = vpop.eup %173 }
  0x1d   :  { %v116_v59 = vmul.f32 0.49, %v87_v55  ;;  %v94_v60 = vsel %vm92_vm3, %v93_v48, %v91_v56  ;;  %v98_v61 = vsel %vm97_vm4, %v78_v37, %v96_v54  ;;  %v110_v12 = vmul.f32 %v174_v5, %v80_v42 }
  0x1e   :  { %v117_v63 = vmul.f32 0.49, %v94_v60  ;;  %v101_v0 = vsel %vm99_vm5, %v100_v51, %v98_v61  ;;  %v105_v7 = vsel %vm104_vm6, %v79_v40, %v103_v1 }
  0x1f   :  { %v121_v2 = vadd.f32 %v116_v59, %v66_v44  ;;  %v118_v3 = vmul.f32 0.49, %v101_v0  ;;  %v108_v11 = vsel %vm106_vm7, %v107_v62, %v105_v7  ;;  %v112_v17 = vsel %vm111_vm8, %v80_v42, %v110_v12 }
  0x20   :  { %v122_v6 = vadd.f32 %v117_v63, %v67_v53  ;;  %v119_v14 = vmul.f32 0.49, %v108_v11  ;;  %v115_v19 = vsel %vm113_vm9, %v114_v8, %v112_v17 }
  0x21   :  { %v142_v9 = vadd.f32 -5.8412553e-08, %v121_v2  ;;  %v123_v10 = vadd.f32 %v118_v3, %v68_v57  ;;  %v120_v20 = vmul.f32 0.49, %v115_v19 }
  0x22   :  { %v143_v13 = vadd.f32 -5.8412553e-08, %v122_v6  ;;  %v124_v18 = vadd.f32 %v119_v14, %v69_v4 }
  0x23   :  { %131 = vst [vmem:[%s245_s4] sm:$0xff] %v142_v9  ;;  %v144_v15 = vadd.f32 -5.8412553e-08, %v123_v10  ;;  %v125_v22 = vadd.f32 %v120_v20, %v70_v16 }
  0x24   :  { %132 = vst [vmem:[%s245_s4 + $0x8] sm:$0xff] %v143_v13  ;;  %v145_v21 = vadd.f32 -5.8412553e-08, %v124_v18 }
  0x25   :  { %133 = vst [vmem:[%s245_s4 + $0x10] sm:$0xff] %v144_v15  ;;  %v146_v23 = vadd.f32 -5.8412553e-08, %v125_v22 }
  0x26   :  { %134 = vst [vmem:[%s245_s4 + $0x18] sm:$0xff] %v145_v21 }
  0x27   :  { %135 = vst [vmem:[%s245_s4 + $0x20] sm:$0xf] %v146_v23 }

// kernel: basic_block_forward.3
= control target key start
LH: loop header
LB: loop body
LE: loop exit
PB: predicated region body
PF: predicated region fallthrough
CT: control target
= control target key end

     0   :  { %s7158_s18 = smov 0   ;;  %s8752_s0 = inlined_call_operand.vmem [shape: f32[288,1], index: 0, kind: input, shape index: {}]   ;;  %s8753_s1 = inlined_call_operand.vmem [shape: bf16[2,332,8], index: 1, kind: input, shape index: {}]   ;;  %s8754_s2 = inlined_call_operand.vmem [shape: bf16[9,8,8], index: 2, kind: input, shape index: {}]   ;;  %s8755_s3 = inlined_call_operand.vmem [shape: bf16[2,288,8], index: 3, kind: output, shape index: {0}]   ;;  %s8756_s4 = inlined_call_operand.vmem [shape: f32[2,1,8], index: 4, kind: output, shape index: {1}]   ;;  %s8757_s5 = inlined_call_operand.vmem [shape: f32[2,1,8], index: 5, kind: output, shape index: {2}]  }
   0x1 LB: > { %s5988_s19 = sadd.s32 4294967295, %s7124_s18   ;;  %p5992_p0 = scmp.ge.s32.totalorder %s7124_s18, 1  ;;  %s7124_s18 = sphi %s7158_s18, %s16_s18  }
   0x2   : > { %p192_p1 = scmp.lt.s32.totalorder %s7124_s18, 3 }
   0x4   : > { %p193_p2 = pnand %p5992_p0, %p192_p1 }
   0x5   : > { %v352_v0 = vld [vmem:[%s8754_s2] sm:$0xf] (!%p193_p2)  ;;  %vm497_vm0 = vcmask (!%p193_p2), 1043456   ;;  %p226_p3 = scmp.lt.s32.totalorder (!%p193_p2), %s5988_s19, 1  ;;  %v6031_v2 = vld [vmem:[%s8754_s2 + $0x4] sm:$0xf] (!%p193_p2) }
   0x6   : > { %196 = sbr.rel (%p193_p2) target bundleno = 603 (0x25b), region = 32  ;;  %6925 = vmatprep.subr.msk.bf16.mxu1 (!%p193_p2), %vm497_vm0, %v352_v0  ;;  %6924 = vmatprep.subr.msk.bf16.mxu0 (!%p193_p2), %vm497_vm0, %v352_v0  ;;  %v499_v1 = vsel (!%p193_p2), %vm497_vm0, %v352_v0, 0  ;;  %v6069_v3 = vld [vmem:[%s8754_s2 + $0x8] sm:$0xf] (!%p193_p2)  ;;  %vm243_vm1 = vcmask (!%p193_p2), 64512   ;;  %v1122_v10 = vsel (!%p193_p2), %vm497_vm0, %v6031_v2, 0 }
   0x7   : > { %6923 = vmatpush3.bf16.msra.mxu1 (!%p193_p2), %v499_v1  ;;  %6581 = vmatpush3.bf16.msra.mxu0 (!%p193_p2), %v499_v1  ;;  %v1634_v7 = vsel (!%p193_p2), %vm497_vm0, %v6069_v3, 0  ;;  %v7196_v8 = vld [vmem:[%s8754_s2 + $0xc] sm:$0xf] (!%p193_p2)  ;;  %v7204_v11 = vld [vmem:[%s8754_s2 + $0x10] sm:$0xf] (!%p193_p2)  ;;  %vm1541_vm3 = vcmask (!%p193_p2), 1046528  }
   0x8   : > { %6926 = vmatprep.subr.msk.bf16.mxu1 (!%p193_p2), %vm497_vm0, %v6031_v2  ;;  %6927 = vmatprep.subr.msk.bf16.mxu0 (!%p193_p2), %vm497_vm0, %v6069_v3  ;;  %vm918_vm2 = vsmask.f32 (!%p193_p2), 7424  ;;  %v7256_v57 = vld [vmem:[%s8754_s2 + $0x14] sm:$0xf] (!%p193_p2)  ;;  %v2145_v58 = vsel (!%p193_p2), %vm497_vm0, %v7196_v8, 0  ;;  %vm3209_vm5 = vcmask (!%p193_p2), 1045504  }
   0x9   : > { %vm2564_vm4 = vsmask.f32 (!%p193_p2), 6400  ;;  %vm4232_vm6 = vsmask.f32 (!%p193_p2), 5376  ;;  %vm4877_vm7 = vcmask (!%p193_p2), 1044480   ;;  %vm5653_vm8 = vcmask (!%p193_p2), 60416  }
   0xa   : > { %vm5767_vm9 = vcmask (!%p193_p2), 57344  }
   0xd   : > { %s8759_s19 = smov (!%p226_p3, %s5988_s19), 1 }
   0xe   : > { %s6934_s26 = smul.u32 168, %s8759_s19  ;;  %s238_s6 = scalar_lea.vmem %s8756_s4, %s8759_s19 }
   0xf   : > { %s241_s9 = scalar_lea.vmem %s8757_s5, %s8759_s19 }
  0x10   : > { %s7186_s29 = scalar_lea.vmem %s8753_s1, %s6934_s26 }
  0x11   : > { %v6948_v4 = vld [vmem:[%s7186_s29] sm:$0xff]   ;;  %v6949_v5 = vld [vmem:[%s7186_s29 + $0x50] sm:$0xff]   ;;  %v6950_v6 = vld [vmem:[%s7186_s29 + $0x8] sm:$0xff]  }
  0x12   : > { %6582 = vmatprep.mubr.msk.bf16.mxu0 %vm243_vm1, %v6948_v4  ;;  %6602 = vmatprep.mubr.msk.bf16.mxu1 %vm243_vm1, %v6949_v5  ;;  %v6951_v9 = vld [vmem:[%s7186_s29 + $0x58] sm:$0xff]   ;;  %v6952_v12 = vld [vmem:[%s7186_s29 + $0x10] sm:$0xff]   ;;  %v6953_v13 = vld [vmem:[%s7186_s29 + $0x60] sm:$0xff]  }
  0x13   : > { %6583 = vmatmul.mubr.msk.bf16.vlgmr.msra.gmra.mrb[0].mxu0 %vm243_vm1, %v6950_v6  ;;  %6603 = vmatmul.mubr.msk.bf16.vlgmr.msra.gmra.mrb[0].mxu1 %vm243_vm1, %v6951_v9  ;;  %v6954_v14 = vld [vmem:[%s7186_s29 + $0x18] sm:$0xff]   ;;  %v6955_v15 = vld [vmem:[%s7186_s29 + $0x68] sm:$0xff]   ;;  %v6956_v16 = vld [vmem:[%s7186_s29 + $0x20] sm:$0xff]  }
  0x14   : > { %6657 = vmatpush3.bf16.msra.mxu0 %v1634_v7  ;;  %6619 = vmatpush3.bf16.msra.mxu1 %v1122_v10  ;;  %v6957_v17 = vld [vmem:[%s7186_s29 + $0x70] sm:$0xff]   ;;  %v6958_v18 = vld [vmem:[%s7186_s29 + $0x28] sm:$0xff]   ;;  %v6959_v19 = vld [vmem:[%s7186_s29 + $0x78] sm:$0xff]  }
  0x15   : > { %6586 = vmatprep.mubr.msk.bf16.mxu0 %vm243_vm1, %v6952_v12  ;;  %6606 = vmatprep.mubr.msk.bf16.mxu1 %vm243_vm1, %v6953_v13  ;;  %v6960_v20 = vld [vmem:[%s7186_s29 + $0x30] sm:$0xff]   ;;  %v6961_v21 = vld [vmem:[%s7186_s29 + $0x80] sm:$0xff]   ;;  %v6966_v23 = vld [vmem:[%s7186_s29 + $0x8] sm:$0xff]  }
  0x16   : > { %6928 = vmatprep.subr.msk.bf16.mxu1 %vm497_vm0, %v7196_v8  ;;  %6929 = vmatprep.subr.msk.bf16.mxu0 %vm497_vm0, %v7204_v11  ;;  %v6965_v22 = vld [vmem:[%s7186_s29] sm:$0xff]   ;;  %v927_v26 = vshll.u32 %v6966_v23, 16  ;;  %v6968_v27 = vld [vmem:[%s7186_s29 + $0x10] sm:$0xff]   ;;  %v6962_v28 = vld [vmem:[%s7186_s29 + $0x38] sm:$0xff]   ;;  %v931_v35 = vshrl.u32 %v6966_v23, 16  ;;  %v2790_v8 = vsel %vm497_vm0, %v7204_v11, 0 }
  0x17   : > { %v920_v24 = vshrl.u32 %v6965_v22, 16  ;;  %v922_v25 = vshll.u32 %v6965_v22, 16  ;;  %v6969_v31 = vld [vmem:[%s7186_s29 + $0x18] sm:$0xff]   ;;  %v6963_v32 = vld [vmem:[%s7186_s29 + $0x88] sm:$0xff]   ;;  %v6964_v34 = vld [vmem:[%s7186_s29 + $0x40] sm:$0xff]   ;;  %v935_v36 = vshll.u32 %v6968_v27, 16 }
  0x18   : > { %v929_v30 = vrot.slane %v927_v26, 1  ;;  %v6971_v37 = vld [vmem:[%s7186_s29 + $0x8] sm:$0xff]   ;;  %v6970_v38 = vld [vmem:[%s7186_s29] sm:$0xfe]   ;;  %v939_v40 = vshrl.u32 %v6968_v27, 16  ;;  %v943_v41 = vshll.u32 %v6969_v31, 16 }
  0x19   : > { %v924_v29 = vrot.slane %v922_v25, 1  ;;  %v6972_v42 = vld [vmem:[%s7186_s29 + $0x20] sm:$0xff]   ;;  %v937_v43 = vrot.slane %v935_v36, 1  ;;  %v1542_v45 = vrot.slane %v6970_v38, 1  ;;  %v1543_v46 = vrot.slane %v6971_v37, 1  ;;  %v6974_v49 = vld [vmem:[%s7186_s29 + $0x28] sm:$0xff]  }
  0x1a   : > { %v933_v44 = vor.u32 %v931_v35, %v929_v30  ;;  %v945_v48 = vrot.slane %v943_v41, 1  ;;  %v6967_v50 = vld [vmem:[%s7186_s29 + $0x48] sm:$0xff]   ;;  %v951_v51 = vshll.u32 %v6972_v42, 16  ;;  %v6973_v52 = vld [vmem:[%s7186_s29 + $0x10] sm:$0xff]   ;;  %v947_v55 = vshrl.u32 %v6969_v31, 16  ;;  %v6975_v56 = vld [vmem:[%s7186_s29 + $0x18] sm:$0xff]  }
  0x1b   : > { %6587 = vmatmul.mubr.msk.bf16.gmra.mrb[4].mxu0 %vm243_vm1, %v6954_v14  ;;  %6607 = vmatmul.mubr.msk.bf16.gmra.mrb[4].mxu1 %vm243_vm1, %v6955_v15  ;;  %v925_v33 = vor.u32 %v924_v29, %v920_v24  ;;  %v941_v47 = vor.u32 %v939_v40, %v937_v43  ;;  %v1544_v54 = vsel %vm1541_vm3, %v1542_v45, %v1543_v46  ;;  %v955_v60 = vshrl.u32 %v6972_v42, 16  ;;  %v6976_v0 = vld [vmem:[%s7186_s29 + $0x30] sm:$0xff]   ;;  %v6978_v5 = vld [vmem:[%s7186_s29 + $0x38] sm:$0xff]   ;;  %v6977_v6 = vld [vmem:[%s7186_s29 + $0x20] sm:$0xff]  }
  0x1c   : > { %6590 = vmatprep.mubr.msk.bf16.mxu0 %vm243_vm1, %v6956_v16  ;;  %6610 = vmatprep.mubr.msk.bf16.mxu1 %vm243_vm1, %v6957_v17  ;;  %v938_v53 = vsel %vm918_vm2, %v933_v44, %v937_v43  ;;  %v959_v61 = vshll.u32 %v6974_v49, 16  ;;  %v953_v62 = vrot.slane %v951_v51, 1  ;;  %v1545_v63 = vrot.slane %v6973_v52, 1  ;;  %v6979_v13 = vld [vmem:[%s7186_s29 + $0x28] sm:$0xff]   ;;  %v7278_v14 = vld [vmem:[%s8754_s2 + $0x18] sm:$0xf] }
  0x1d   : > { %v930_v39 = vsel %vm918_vm2, %v925_v33, %v929_v30  ;;  %v946_v59 = vsel %vm918_vm2, %v941_v47, %v945_v48  ;;  %v949_v1 = vor.u32 %v947_v55, %v945_v48  ;;  %v1547_v2 = vrot.slane %v6975_v56, 1  ;;  %v6982_v25 = vld [vmem:[%s7186_s29 + $0x48] sm:$0xff]   ;;  %v6981_v29 = vld [vmem:[%s7186_s29 + $0x30] sm:$0xff]   ;;  %v6983_v33 = vld [vmem:[%s7186_s29 + $0x38] sm:$0xff]  }
  0x1e   : > { %v957_v3 = vor.u32 %v955_v60, %v953_v62  ;;  %v961_v4 = vrot.slane %v959_v61, 1  ;;  %v1546_v7 = vsel %vm1541_vm3, %v1543_v46, %v1545_v63  ;;  %v967_v9 = vshll.u32 %v6976_v0, 16  ;;  %v6984_v36 = vld [vmem:[%s7186_s29 + $0x50] sm:$0xff]   ;;  %v6986_v44 = vld [vmem:[%s7186_s29 + $0x58] sm:$0xff]   ;;  %v6985_v45 = vld [vmem:[%s7186_s29 + $0x40] sm:$0xff]  }
  0x1f   : > { %v954_v10 = vsel %vm918_vm2, %v949_v1, %v953_v62  ;;  %v963_v12 = vshrl.u32 %v6974_v49, 16  ;;  %v1548_v16 = vsel %vm1541_vm3, %v1545_v63, %v1547_v2  ;;  %v971_v17 = vshrl.u32 %v6976_v0, 16  ;;  %v6987_v48 = vld [vmem:[%s7186_s29 + $0x48] sm:$0xff]   ;;  %v6988_v56 = vld [vmem:[%s7186_s29 + $0x60] sm:$0xff]   ;;  %v6989_v63 = vld [vmem:[%s7186_s29 + $0x50] sm:$0xff]  }
  0x20   : > { %v962_v15 = vsel %vm918_vm2, %v957_v3, %v961_v4  ;;  %v1549_v11 = vrot.slane %v6977_v6, 1  ;;  %v1551_v22 = vrot.slane %v6979_v13, 1  ;;  %v979_v27 = vshrl.u32 %v6978_v5, 16  ;;  %v6990_v60 = vld [vmem:[%s7186_s29 + $0x68] sm:$0xff]  }
  0x21   : > { %v991_v35 = vshll.u32 %v6982_v25, 16  ;;  %v1553_v38 = vrot.slane %v6981_v29, 1  ;;  %v1555_v40 = vrot.slane %v6983_v33, 1  ;;  %v999_v43 = vshll.u32 %v6984_v36, 16 }
  0x22   : > { %v1550_v26 = vsel %vm1541_vm3, %v1547_v2, %v1549_v11  ;;  %v1552_v31 = vsel %vm1541_vm3, %v1549_v11, %v1551_v22  ;;  %v995_v47 = vshrl.u32 %v6982_v25, 16  ;;  %v1557_v55 = vrot.slane %v6985_v45, 1 }
  0x23   : > { %6591 = vmatmul.mubr.msk.bf16.gmra.mrb[8].mxu0 %vm243_vm1, %v6958_v18  ;;  %6611 = vmatmul.mubr.msk.bf16.gmra.mrb[8].mxu1 %vm243_vm1, %v6959_v19  ;;  %v975_v18 = vshll.u32 %v6978_v5, 16  ;;  %v969_v19 = vrot.slane %v967_v9, 1  ;;  %v993_v42 = vrot.slane %v991_v35, 1  ;;  %v1554_v46 = vsel %vm1541_vm3, %v1551_v22, %v1553_v38  ;;  %v7349_v35 = vld [vmem:[%s7186_s29 + $0x88] sm:$0xff]  }
  0x24   : > { %6594 = vmatprep.mubr.msk.bf16.mxu0 %vm243_vm1, %v6960_v20  ;;  %6614 = vmatprep.mubr.msk.bf16.mxu1 %vm243_vm1, %v6961_v21  ;;  %v6980_v20 = vld [vmem:[%s7186_s29 + $0x40] sm:$0xff]   ;;  %v965_v21 = vor.u32 %v963_v12, %v961_v4  ;;  %v1001_v52 = vrot.slane %v999_v43, 1  ;;  %v1558_v1 = vsel %vm1541_vm3, %v1555_v40, %v1557_v55  ;;  %v1015_v2 = vshll.u32 %v6988_v56, 16  ;;  %v6992_v12 = vld [vmem:[%s7186_s29 + $0x70] sm:$0xff]   ;;  %v6999_v43 = vld [vmem:[%s7186_s29 + $0x78] sm:$0xff]  }
  0x25   : > { %v973_v23 = vor.u32 %v971_v17, %v969_v19  ;;  %v977_v24 = vrot.slane %v975_v18, 1  ;;  %v1011_v4 = vshrl.u32 %v6986_v44, 16  ;;  %v1019_v5 = vshrl.u32 %v6988_v56, 16  ;;  %v7326_v18 = vld [vmem:[%s7186_s29 + $0x78] sm:$0xff]   ;;  %v7002_v56 = vld [vmem:[%s7186_s29 + $0x88] sm:$0xff]  }
  0x26   : > { %v970_v30 = vsel %vm918_vm2, %v965_v21, %v969_v19  ;;  %v1023_v6 = vshll.u32 %v6990_v60, 16  ;;  %v1561_v9 = vrot.slane %v6989_v63, 1  ;;  %v1031_v19 = vshll.u32 %v6992_v12, 16 }
  0x28   : > { %v1025_v17 = vrot.slane %v1023_v6, 1  ;;  %v1575_v6 = vrot.slane %v7002_v56, 1  ;;  %v7454_v56 = vld [vmem:[%s8754_s2 + $0x1c] sm:$0xf] }
  0x2b   : > { %6595 = vmatmul.mubr.msk.bf16.gmra.mrb[12].mxu0 %vm243_vm1, %v6962_v28  ;;  %6615 = vmatmul.mubr.msk.bf16.gmra.mrb[12].mxu1 %vm243_vm1, %v6963_v32  ;;  %v983_v28 = vshll.u32 %v6980_v20, 16  ;;  %v987_v32 = vshrl.u32 %v6980_v20, 16  ;;  %v7330_v20 = vld [vmem:[%s7186_s29 + $0x60] sm:$0xff]  }
  0x2c   : > { %6598 = vmatprep.mubr.msk.bf16.mxu0 %vm243_vm1, %v6964_v34  ;;  %6620 = vmatprep.mubr.msk.bf16.mxu1 %vm243_vm1, %v930_v39  ;;  %v978_v34 = vsel %vm918_vm2, %v973_v23, %v977_v24  ;;  %v981_v39 = vor.u32 %v979_v27, %v977_v24  ;;  %v1027_v23 = vshrl.u32 %v6990_v60, 16  ;;  %v7335_v24 = vld [vmem:[%s7186_s29 + $0x68] sm:$0xff]   ;;  %v1039_v27 = vshll.u32 %v7326_v18, 16 }
  0x2d   : > { %v985_v37 = vrot.slane %v983_v28, 1  ;;  %v1033_v28 = vrot.slane %v1031_v19, 1  ;;  %v1565_v29 = vrot.slane %v7330_v20, 1  ;;  %v7007_v19 = vld [vmem:[%s7186_s29 + $0x20] sm:$0xff]   ;;  %v7011_v20 = vld [vmem:[%s7186_s29 + $0x18] sm:$0xff]  }
  0x2f   : > { %v989_v41 = vor.u32 %v987_v32, %v985_v37  ;;  %v986_v49 = vsel %vm918_vm2, %v981_v39, %v985_v37  ;;  %v1567_v32 = vrot.slane %v7335_v24, 1  ;;  %v7126_v39 = vmov 0.0  }
  0x30   : > { %246 = vst.msk [vmem:[#allocation2 + $0x10] sm:$0xff] %vm243_vm1, %v7126_v39  ;;  %244 = vst.msk [vmem:[#allocation2] sm:$0xff] %vm243_vm1, %v7126_v39 }
  0x31   : > { %v994_v51 = vsel %vm918_vm2, %v989_v41, %v993_v42  ;;  %245 = vst.msk [vmem:[#allocation2 + $0x8] sm:$0xff] %vm243_vm1, %v7126_v39  ;;  %247 = vst.msk [vmem:[#allocation2 + $0x18] sm:$0xff] %vm243_vm1, %v7126_v39  ;;  %v1568_v41 = vsel %vm1541_vm3, %v1565_v29, %v1567_v32 }
  0x32   : > { %248 = vst.msk [vmem:[#allocation2 + $0x20] sm:$0xff] %vm243_vm1, %v7126_v39  ;;  %249 = vst.msk [vmem:[#allocation2 + $0x28] sm:$0xff] %vm243_vm1, %v7126_v39 }
  0x33   : > { %6599 = vmatmul.mubr.msk.bf16.gmra.mrb[16].mxu0 %vm243_vm1, %v6967_v50  ;;  %6621 = vmatmul.mubr.msk.bf16.vlgmr.msra.gmra.mrb[16].mxu1 %vm243_vm1, %v938_v53  ;;  %v1556_v50 = vsel %vm1541_vm3, %v1553_v38, %v1555_v40  ;;  %v1003_v53 = vshrl.u32 %v6984_v36, 16  ;;  %v7354_v38 = vld [vmem:[%s7186_s29 + $0x70] sm:$0xff]   ;;  %250 = vst.msk [vmem:[#allocation2 + $0x30] sm:$0xff] %vm243_vm1, %v7126_v39  ;;  %251 = vst.msk [vmem:[#allocation2 + $0x38] sm:$0xff] %vm243_vm1, %v7126_v39 }
  0x34   : > { %6658 = vmatprep.mubr.msk.bf16.mxu0 %vm243_vm1, %v1544_v54  ;;  %6695 = vmatpush3.bf16.msra.mxu1 %v2145_v58  ;;  %v1007_v54 = vshll.u32 %v6986_v44, 16  ;;  %v997_v58 = vor.u32 %v995_v47, %v993_v42  ;;  %252 = vst.msk [vmem:[#allocation2 + $0x40] sm:$0xff] %vm243_vm1, %v7126_v39  ;;  %253 = vst.msk [vmem:[#allocation2 + $0x48] sm:$0xff] %vm243_vm1, %v7126_v39  ;;  %v1043_v42 = vshrl.u32 %v7326_v18, 16 }
  0x35   : > { %6624 = vmatprep.mubr.msk.bf16.mxu1 %vm243_vm1, %v946_v59  ;;  %6930 = vmatprep.subr.msk.bf16.mxu1 %vm497_vm0, %v7256_v57  ;;  %v1559_v59 = vrot.slane %v6987_v48, 1  ;;  %v1005_v61 = vor.u32 %v1003_v53, %v1001_v52  ;;  %254 = vst.msk [vmem:[#allocation2 + $0x50] sm:$0xff] %vm243_vm1, %v7126_v39  ;;  %255 = vst.msk [vmem:[#allocation2 + $0x58] sm:$0xff] %vm243_vm1, %v7126_v39  ;;  %v7000_v47 = vld [vmem:[%s7186_s29 + $0x90] ss:$0 sps:$4 sm:$0x11]  }
  0x36   : > { %v1009_v62 = vrot.slane %v1007_v54, 1  ;;  %v1002_v0 = vsel %vm918_vm2, %v997_v58, %v1001_v52  ;;  %256 = vst.msk [vmem:[#allocation2 + $0x60] sm:$0xff] %vm243_vm1, %v7126_v39  ;;  %257 = vst.msk [vmem:[#allocation2 + $0x68] sm:$0xff] %vm243_vm1, %v7126_v39  ;;  %v1059_v54 = vshrl.u32 %v7349_v35, 16  ;;  %v1063_v58 = vshll.u32 %v7000_v47, 16 }
  0x37   : > { %v1560_v3 = vsel %vm1541_vm3, %v1557_v55, %v1559_v59  ;;  %v1562_v11 = vsel %vm1541_vm3, %v1559_v59, %v1561_v9  ;;  %258 = vst.msk [vmem:[#allocation2 + $0x70] sm:$0xff] %vm243_vm1, %v7126_v39  ;;  %259 = vst.msk [vmem:[#allocation2 + $0x78] sm:$0xff] %vm243_vm1, %v7126_v39  ;;  %v7001_v55 = vld [vmem:[%s7186_s29 + $0x80] sm:$0xff]   ;;  %v7009_v59 = vld [vmem:[%s7186_s29 + $0x10] sm:$0xff]  }
  0x38   : > { %v1013_v13 = vor.u32 %v1011_v4, %v1009_v62  ;;  %260 = vst.msk [vmem:[#allocation2 + $0x80] sm:$0xff] %vm243_vm1, %v7126_v39  ;;  %261 = vst.msk [vmem:[#allocation2 + $0x88] sm:$0xff] %vm243_vm1, %v7126_v39 }
  0x39   : > { %262 = vst.msk [vmem:[#allocation2 + $0x90] sm:$0xff] %vm243_vm1, %v7126_v39  ;;  %263 = vst.msk [vmem:[#allocation2 + $0x98] sm:$0xff] %vm243_vm1, %v7126_v39 }
  0x3a   : > { %264 = vst.msk [vmem:[#allocation2 + $0xa0] sm:$0xff] %vm243_vm1, %v7126_v39  ;;  %265 = vst.msk [vmem:[#allocation2 + $0xa8] sm:$0xff] %vm243_vm1, %v7126_v39 }
  0x3b   : > { %6659 = vmatmul.mubr.msk.bf16.vlgmr.msra.gmra.mrb[20].mxu0 %vm243_vm1, %v1546_v7  ;;  %6625 = vmatmul.mubr.msk.bf16.gmra.mrb[20].mxu1 %vm243_vm1, %v954_v10  ;;  %v6991_v7 = vld [vmem:[%s7186_s29 + $0x58] sm:$0xff]   ;;  %v1017_v10 = vrot.slane %v1015_v2, 1  ;;  %266 = vst.msk [vmem:[#allocation2 + $0xb0] sm:$0xff] %vm243_vm1, %v7126_v39  ;;  %267 = vst.msk [vmem:[#allocation2 + $0xb8] sm:$0xff] %vm243_vm1, %v7126_v39  ;;  %v1573_v2 = vrot.slane %v7001_v55, 1 }
  0x3c   : > { %6733 = vmatpush3.bf16.msra.mxu0 %v2790_v8  ;;  %6628 = vmatprep.mubr.msk.bf16.mxu1 %vm243_vm1, %v962_v15  ;;  %v1010_v8 = vsel %vm918_vm2, %v1005_v61, %v1009_v62  ;;  %v1563_v15 = vrot.slane %v6991_v7, 1  ;;  %268 = vst.msk [vmem:[#allocation2 + $0xc0] sm:$0xff] %vm243_vm1, %v7126_v39  ;;  %269 = vst.msk [vmem:[#allocation2 + $0xc8] sm:$0xff] %vm243_vm1, %v7126_v39  ;;  %v7008_v61 = vld [vmem:[%s7186_s29 + $0x8] sm:$0xfe]  }
  0x3d   : > { %6662 = vmatprep.mubr.msk.bf16.mxu0 %vm243_vm1, %v1548_v16  ;;  %6931 = vmatprep.subr.msk.bf16.mxu0 %vm497_vm0, %v7278_v14  ;;  %v1021_v16 = vor.u32 %v1019_v5, %v1017_v10  ;;  %v1018_v21 = vsel %vm918_vm2, %v1013_v13, %v1017_v10  ;;  %270 = vst.msk [vmem:[#allocation2 + $0xd0] sm:$0xff] %vm243_vm1, %v7126_v39  ;;  %271 = vst.msk [vmem:[#allocation2 + $0xd8] sm:$0xff] %vm243_vm1, %v7126_v39  ;;  %v1065_v5 = vrot.slane %v1063_v58, 1 }
  0x3e   : > { %v1564_v22 = vsel %vm1541_vm3, %v1561_v9, %v1563_v15  ;;  %v1566_v36 = vsel %vm1541_vm3, %v1563_v15, %v1565_v29  ;;  %272 = vst.msk [vmem:[#allocation2 + $0xe0] sm:$0xff] %vm243_vm1, %v7126_v39  ;;  %273 = vst.msk [vmem:[#allocation2 + $0xe8] sm:$0xff] %vm243_vm1, %v7126_v39  ;;  %v2566_v7 = vshrl.u32 %v7008_v61, 16  ;;  %v2574_v9 = vshrl.u32 %v7009_v59, 16 }
  0x3f   : > { %v1026_v25 = vsel %vm918_vm2, %v1021_v16, %v1025_v17  ;;  %274 = vst.msk [vmem:[#allocation2 + $0xf0] sm:$0xff] %vm243_vm1, %v7126_v39  ;;  %275 = vst.msk [vmem:[#allocation2 + $0xf8] sm:$0xff] %vm243_vm1, %v7126_v39  ;;  %v2577_v10 = vshll.u32 %v7009_v59, 16  ;;  %v7005_v15 = vld [vmem:[%s7186_s29 + $0x90] ss:$0 sps:$4 sm:$0x11]  }
  0x40   : > { %276 = vst.msk [vmem:[#allocation2 + $0x100] sm:$0xff] %vm243_vm1, %v7126_v39  ;;  %277 = vst.msk [vmem:[#allocation2 + $0x108] sm:$0xff] %vm243_vm1, %v7126_v39  ;;  %v7006_v16 = vld [vmem:[%s7186_s29 + $0x18] sm:$0xff]   ;;  %v2586_v29 = vshll.u32 %v7011_v20, 16  ;;  %v3813_v58 = vsel %vm497_vm0, %v7278_v14, 0 }
  0x41   : > { %278 = vst.msk [vmem:[#allocation2 + $0x110] sm:$0xff] %vm243_vm1, %v7126_v39  ;;  %279 = vst.msk [vmem:[#allocation2 + $0x118] sm:$0xff] %vm243_vm1, %v7126_v39  ;;  %v2579_v24 = vrot.slane %v2577_v10, 2 }
  0x43   : > { %6663 = vmatmul.mubr.msk.bf16.gmra.mrb[24].mxu0 %vm243_vm1, %v1550_v26  ;;  %6629 = vmatmul.mubr.msk.bf16.gmra.mrb[24].mxu1 %vm243_vm1, %v970_v30  ;;  %v1035_v26 = vshrl.u32 %v6992_v12, 16  ;;  %v7344_v30 = vld [vmem:[%s7186_s29 + $0x80] sm:$0xff]  }
  0x44   : > { %6666 = vmatprep.mubr.msk.bf16.mxu0 %vm243_vm1, %v1552_v31  ;;  %6632 = vmatprep.mubr.msk.bf16.mxu1 %vm243_vm1, %v978_v34  ;;  %v1029_v31 = vor.u32 %v1027_v23, %v1025_v17  ;;  %v1041_v34 = vrot.slane %v1039_v27, 1  ;;  %v1047_v37 = vshll.u32 %v7344_v30, 16  ;;  %v1051_v45 = vshrl.u32 %v7344_v30, 16 }
  0x45   : > { %v1037_v33 = vor.u32 %v1035_v26, %v1033_v28  ;;  %v2576_v23 = vrot.slane %v2574_v9, 1  ;;  %v7013_v26 = vld [vmem:[%s7186_s29 + $0x20] sm:$0xff]   ;;  %v1577_v27 = vrot.slane %v7005_v15, 1  ;;  %v2056_v30 = vrot.slane %v7006_v16, 1  ;;  %v7018_v16 = vld [vmem:[%s7186_s29 + $0x48] sm:$0xff]  }
  0x46   : > { %v1034_v40 = vsel %vm918_vm2, %v1029_v31, %v1033_v28  ;;  %v1049_v48 = vrot.slane %v1047_v37, 1  ;;  %v2583_v28 = vshrl.u32 %v7011_v20, 16 }
  0x47   : > { %v1042_v44 = vsel %vm918_vm2, %v1037_v33, %v1041_v34  ;;  %v2058_v33 = vrot.slane %v7007_v19, 1  ;;  %v1578_v37 = vsel %vm1541_vm3, %v1575_v6, %v1577_v27  ;;  %v7020_v27 = vld [vmem:[%s7186_s29 + $0x50] sm:$0xff]  }
  0x48   : > { %v1053_v52 = vor.u32 %v1051_v45, %v1049_v48  ;;  %v2585_v39 = vrot.slane %v2583_v28, 1  ;;  %v7017_v45 = vld [vmem:[%s7186_s29 + $0x30] sm:$0xff]  }
  0x4b   : > { %6667 = vmatmul.mubr.msk.bf16.gmra.mrb[28].mxu0 %vm243_vm1, %v1554_v46  ;;  %6633 = vmatmul.mubr.msk.bf16.gmra.mrb[28].mxu1 %vm243_vm1, %v986_v49  ;;  %v1055_v46 = vshll.u32 %v7349_v35, 16  ;;  %v1569_v49 = vrot.slane %v7354_v38, 1  ;;  %v2595_v35 = vshll.u32 %v7013_v26, 16  ;;  %v7010_v38 = vld [vmem:[%s7186_s29 + $0x28] sm:$0xff]  }
  0x4c   : > { %6670 = vmatprep.mubr.msk.bf16.mxu0 %vm243_vm1, %v1556_v50  ;;  %6636 = vmatprep.mubr.msk.bf16.mxu1 %vm243_vm1, %v994_v51  ;;  %v1045_v50 = vor.u32 %v1043_v42, %v1041_v34  ;;  %v1571_v51 = vrot.slane %v6999_v43, 1  ;;  %v2592_v34 = vshrl.u32 %v7013_v26, 16  ;;  %v3302_v43 = vsel %vm497_vm0, %v7256_v57, 0 }
  0x4d   : > { %v1057_v53 = vrot.slane %v1055_v46, 1  ;;  %v1570_v60 = vsel %vm1541_vm3, %v1567_v32, %v1569_v49  ;;  %v2580_v32 = vor.u32 %v2579_v24, %v2576_v23  ;;  %v2059_v46 = vsel %vm1541_vm3, %v2056_v30, %v2058_v33 }
  0x4e   : > { %v1050_v62 = vsel %vm918_vm2, %v1045_v50, %v1049_v48  ;;  %v1572_v63 = vsel %vm1541_vm3, %v1569_v49, %v1571_v51  ;;  %v1574_v18 = vsel %vm1541_vm3, %v1571_v51, %v1573_v2  ;;  %v2594_v47 = vrot.slane %v2592_v34, 1 }
  0x4f   : > { %v1061_v4 = vor.u32 %v1059_v54, %v1057_v53  ;;  %v2597_v48 = vrot.slane %v2595_v35, 2  ;;  %v2060_v57 = vrot.slane %v7010_v38, 1  ;;  %v2070_v35 = vrot.slane %v7020_v27, 1  ;;  %v7027_v38 = vld [vmem:[%s7186_s29 + $0x58] sm:$0xff]  }
  0x51   : > { %v1066_v17 = vsel %vm918_vm2, %v1061_v4, %v1065_v5  ;;  %v2598_v55 = vor.u32 %v2597_v48, %v2594_v47  ;;  %v7024_v47 = vld [vmem:[%s7186_s29 + $0x60] sm:$0xff]   ;;  %v2655_v48 = vshrl.u32 %v7027_v38, 16 }
  0x53   : > { %6671 = vmatmul.mubr.msk.bf16.gmra.mrb[32].mxu0 %vm243_vm1, %v1558_v1  ;;  %6637 = vmatmul.mubr.msk.bf16.gmra.mrb[32].mxu1 %vm243_vm1, %v1002_v0  ;;  %v7003_v0 = vld [vmem:[%s7186_s29 + $0x8] sm:$0xfe]   ;;  %v1058_v1 = vsel %vm918_vm2, %v1053_v52, %v1057_v53  ;;  %v2610_v52 = vshrl.u32 %v7017_v45, 16  ;;  %v2613_v53 = vshll.u32 %v7017_v45, 16 }
  0x54   : > { %6674 = vmatprep.mubr.msk.bf16.mxu0 %vm243_vm1, %v1560_v3  ;;  %6640 = vmatprep.mubr.msk.bf16.mxu1 %vm243_vm1, %v1010_v8  ;;  %v7004_v3 = vld [vmem:[%s7186_s29 + $0x10] sm:$0xff]   ;;  %v2569_v8 = vshll.u32 %v7008_v61, 16  ;;  %v2053_v12 = vrot.slane %v7003_v0, 1  ;;  %v2061_v0 = vsel %vm1541_vm3, %v2058_v33, %v2060_v57 }
  0x55   : > { %v2054_v13 = vrot.slane %v7004_v3, 1  ;;  %v2612_v3 = vrot.slane %v2610_v52, 1  ;;  %v2615_v4 = vrot.slane %v2613_v53, 2 }
  0x57   : > { %v2057_v42 = vsel %vm1541_vm3, %v2054_v13, %v2056_v30 }
  0x5b   : > { %6675 = vmatmul.mubr.msk.bf16.gmra.mrb[36].mxu0 %vm243_vm1, %v1562_v11  ;;  %6641 = vmatmul.mubr.msk.bf16.gmra.mrb[36].mxu1 %vm243_vm1, %v1018_v21  ;;  %v1576_v11 = vsel %vm1541_vm3, %v1573_v2, %v1575_v6  ;;  %v2568_v21 = vrot.slane %v2566_v7, 1  ;;  %v7016_v2 = vld [vmem:[%s7186_s29 + $0x40] sm:$0xff]  }
  0x5c   : > { %6678 = vmatprep.mubr.msk.bf16.mxu0 %vm243_vm1, %v1564_v22  ;;  %6644 = vmatprep.mubr.msk.bf16.mxu1 %vm243_vm1, %v1026_v25  ;;  %v2571_v22 = vrot.slane %v2569_v8, 2  ;;  %v2055_v25 = vsel %vm1541_vm3, %v2053_v12, %v2054_v13  ;;  %v2616_v12 = vor.u32 %v2615_v4, %v2612_v3  ;;  %v2066_v15 = vrot.slane %v7016_v2, 1  ;;  %v7033_v2 = vld [vmem:[%s7186_s29 + $0x70] sm:$0xff]  }
  0x5d   : > { %v7028_v4 = vld [vmem:[%s7186_s29 + $0x70] sm:$0xff]  }
  0x5e   : > { %v2572_v31 = vor.u32 %v2571_v22, %v2568_v21 }
  0x63   : > { %6679 = vmatmul.mubr.msk.bf16.gmra.mrb[40].mxu0 %vm243_vm1, %v1566_v36  ;;  %6645 = vmatmul.mubr.msk.bf16.gmra.mrb[40].mxu1 %vm243_vm1, %v1034_v40  ;;  %v7015_v36 = vld [vmem:[%s7186_s29 + $0x28] sm:$0xff]   ;;  %v2588_v40 = vrot.slane %v2586_v29, 2  ;;  %v2068_v29 = vrot.slane %v7018_v16, 1 }
  0x64   : > { %6682 = vmatprep.mubr.msk.bf16.mxu0 %vm243_vm1, %v1568_v41  ;;  %6648 = vmatprep.mubr.msk.bf16.mxu1 %vm243_vm1, %v1042_v44  ;;  %v7012_v41 = vld [vmem:[%s7186_s29 + $0x30] sm:$0xff]   ;;  %v2581_v44 = vsel %vm2564_vm4, %v2572_v31, %v2580_v32  ;;  %v2601_v49 = vshrl.u32 %v7015_v36, 16  ;;  %v2604_v51 = vshll.u32 %v7015_v36, 16  ;;  %v7022_v36 = vld [vmem:[%s7186_s29 + $0x58] sm:$0xff]  }
  0x65   : > { %v2589_v50 = vor.u32 %v2588_v40, %v2585_v39  ;;  %v2062_v54 = vrot.slane %v7012_v41, 1  ;;  %v7029_v41 = vld [vmem:[%s7186_s29 + $0x60] sm:$0xff]  }
  0x66   : > { %v2603_v59 = vrot.slane %v2601_v49, 1  ;;  %v2658_v49 = vshll.u32 %v7027_v38, 16  ;;  %v2667_v53 = vshll.u32 %v7029_v41, 16 }
  0x67   : > { %v2590_v61 = vsel %vm2564_vm4, %v2580_v32, %v2589_v50  ;;  %v2063_v5 = vsel %vm1541_vm3, %v2060_v57, %v2062_v54  ;;  %v2599_v14 = vsel %vm2564_vm4, %v2589_v50, %v2598_v55  ;;  %v2072_v57 = vrot.slane %v7022_v36, 1  ;;  %v7034_v36 = vld [vmem:[%s7186_s29 + $0x88] sm:$0xff]  }
  0x6b   : > { %6683 = vmatmul.mubr.msk.bf16.gmra.mrb[44].mxu0 %vm243_vm1, %v1570_v60  ;;  %6649 = vmatmul.mubr.msk.bf16.gmra.mrb[44].mxu1 %vm243_vm1, %v1050_v62  ;;  %v7019_v60 = vld [vmem:[%s7186_s29 + $0x38] sm:$0xff]   ;;  %v2606_v62 = vrot.slane %v2604_v51, 2  ;;  %v2664_v51 = vshrl.u32 %v7029_v41, 16 }
  0x6c   : > { %6686 = vmatprep.mubr.msk.bf16.mxu0 %vm243_vm1, %v1572_v63  ;;  %6652 = vmatprep.mubr.msk.bf16.mxu1 %vm243_vm1, %v1058_v1  ;;  %v7021_v63 = vld [vmem:[%s7186_s29 + $0x40] sm:$0xff]   ;;  %v7014_v1 = vld [vmem:[%s7186_s29 + $0x38] sm:$0xff]   ;;  %v2619_v6 = vshrl.u32 %v7019_v60, 16  ;;  %v2622_v8 = vshll.u32 %v7019_v60, 16 }
  0x6d   : > { %v2607_v7 = vor.u32 %v2606_v62, %v2603_v59  ;;  %v2628_v9 = vshrl.u32 %v7021_v63, 16  ;;  %v2064_v10 = vrot.slane %v7014_v1, 1  ;;  %v2631_v13 = vshll.u32 %v7021_v63, 16  ;;  %v7031_v62 = vld [vmem:[%s7186_s29 + $0x68] sm:$0xff]  }
  0x6e   : > { %v2624_v20 = vrot.slane %v2622_v8, 2  ;;  %v2660_v59 = vrot.slane %v2658_v49, 2  ;;  %v2073_v63 = vsel %vm1541_vm3, %v2070_v35, %v2072_v57  ;;  %v2669_v1 = vrot.slane %v2667_v53, 2  ;;  %v7043_v53 = vld [vmem:[%s7186_s29 + $0x98] ss:$0 sps:$4 sm:$0x33]  }
  0x6f   : > { %v2608_v19 = vsel %vm2564_vm4, %v2598_v55, %v2607_v7  ;;  %v2630_v21 = vrot.slane %v2628_v9, 1  ;;  %v2065_v22 = vsel %vm1541_vm3, %v2062_v54, %v2064_v10  ;;  %v2617_v23 = vsel %vm2564_vm4, %v2607_v7, %v2616_v12  ;;  %v7026_v55 = vld [vmem:[%s7186_s29 + $0x68] sm:$0xff]  }
  0x70   : > { %v2633_v24 = vrot.slane %v2631_v13, 2  ;;  %v2067_v26 = vsel %vm1541_vm3, %v2064_v10, %v2066_v15  ;;  %v2074_v54 = vrot.slane %v7024_v47, 1  ;;  %v2676_v7 = vshll.u32 %v7031_v62, 16  ;;  %v7030_v13 = vld [vmem:[%s7186_s29 + $0x78] sm:$0xff]  }
  0x71   : > { %v2682_v9 = vshrl.u32 %v7033_v2, 16  ;;  %v2685_v10 = vshll.u32 %v7033_v2, 16 }
  0x72   : > { %v2634_v32 = vor.u32 %v2633_v24, %v2630_v21  ;;  %v2075_v3 = vsel %vm1541_vm3, %v2072_v57, %v2074_v54 }
  0x73   : > { %6687 = vmatmul.mubr.msk.bf16.gmra.mrb[48].mxu0 %vm243_vm1, %v1574_v18  ;;  %6653 = vmatmul.mubr.msk.bf16.gmra.mrb[48].mxu1 %vm243_vm1, %v1066_v17  ;;  %v7476_v17 = vld [vmem:[%s8754_s2 + $0x20] sm:$0xf]  ;;  %v2621_v18 = vrot.slane %v2619_v6, 1  ;;  %v2673_v6 = vshrl.u32 %v7031_v62, 16  ;;  %v2684_v21 = vrot.slane %v2682_v9, 1 }
  0x74   : > { %6690 = vmatprep.mubr.msk.bf16.mxu0 %vm243_vm1, %v1576_v11  ;;  %6696 = vmatprep.mubr.msk.bf16.mxu1 %vm243_vm1, %v2055_v25  ;;  %v7023_v11 = vld [vmem:[%s7186_s29 + $0x48] sm:$0xff]   ;;  %v7025_v25 = vld [vmem:[%s7186_s29 + $0x50] sm:$0xff]  }
  0x75   : > { %v2637_v28 = vshrl.u32 %v7023_v11, 16  ;;  %v2625_v30 = vor.u32 %v2624_v20, %v2621_v18  ;;  %v2640_v31 = vshll.u32 %v7023_v11, 16  ;;  %v2646_v33 = vshrl.u32 %v7025_v25, 16  ;;  %v7035_v11 = vld [vmem:[%s7186_s29 + $0x78] sm:$0xff]  }
  0x76   : > { %v2649_v34 = vshll.u32 %v7025_v25, 16  ;;  %v2675_v16 = vrot.slane %v2673_v6, 1  ;;  %v2678_v18 = vrot.slane %v2676_v7, 2  ;;  %v7032_v25 = vld [vmem:[%s7186_s29 + $0x80] sm:$0xff]  }
  0x77   : > { %v2626_v39 = vsel %vm2564_vm4, %v2616_v12, %v2625_v30  ;;  %v2642_v40 = vrot.slane %v2640_v31, 2  ;;  %v2078_v12 = vrot.slane %v7028_v4, 1 }
  0x78   : > { %v2651_v45 = vrot.slane %v2649_v34, 2  ;;  %v2679_v27 = vor.u32 %v2678_v18, %v2675_v16  ;;  %v7039_v34 = vld [vmem:[%s7186_s29 + $0x88] sm:$0xff]  }
  0x79   : > { %v2712_v47 = vshll.u32 %v7039_v34, 16 }
  0x7b   : > { %6691 = vmatmul.mubr.msk.bf16.gmra.mrb[52].mxu0 %vm243_vm1, %v1578_v37  ;;  %6697 = vmatmul.mubr.msk.bf16.vlgmr.msra.gmra.mrb[52].mxu1 %vm243_vm1, %v2057_v42  ;;  %v2639_v37 = vrot.slane %v2637_v28, 1  ;;  %v2069_v42 = vsel %vm1541_vm3, %v2066_v15, %v2068_v29  ;;  %v2691_v28 = vshrl.u32 %v7035_v11, 16 }
  0x7c   : > { %6734 = vmatprep.mubr.msk.bf16.mxu0 %vm243_vm1, %v2581_v44  ;;  %6771 = vmatpush3.bf16.msra.mxu1 %v3302_v43  ;;  %v2635_v43 = vsel %vm2564_vm4, %v2625_v30, %v2634_v32  ;;  %v2648_v44 = vrot.slane %v2646_v33, 1  ;;  %v2082_v33 = vrot.slane %v7032_v25, 1 }
  0x7d   : > { %6700 = vmatprep.mubr.msk.bf16.mxu1 %vm243_vm1, %v2059_v46  ;;  %6932 = vmatprep.subr.msk.bf16.mxu1 %vm497_vm0, %v7454_v56  ;;  %v2071_v46 = vsel %vm1541_vm3, %v2068_v29, %v2070_v35  ;;  %v2643_v50 = vor.u32 %v2642_v40, %v2639_v37  ;;  %v2694_v29 = vshll.u32 %v7035_v11, 16  ;;  %v2693_v37 = vrot.slane %v2691_v28, 1  ;;  %v7046_v11 = vld [vmem:[%s7186_s29 + $0x10] sm:$0xfc]   ;;  %v7048_v28 = vld [vmem:[%s7186_s29 + $0x28] sm:$0xff]  }
  0x7e   : > { %v2652_v52 = vor.u32 %v2651_v45, %v2648_v44  ;;  %v7036_v45 = vld [vmem:[%s7186_s29 + $0x90] sm:$0xff]  }
  0x7f   : > { %v2644_v60 = vsel %vm2564_vm4, %v2634_v32, %v2643_v50  ;;  %v2696_v38 = vrot.slane %v2694_v29, 2  ;;  %v7049_v29 = vld [vmem:[%s7186_s29 + $0x20] sm:$0xff]  }
  0x81   : > { %v2697_v49 = vor.u32 %v2696_v38, %v2693_v37  ;;  %v3217_v37 = vrot.slane %v7048_v28, 2  ;;  %v5269_v28 = vld [vmem:[%s8752_s0 + $0x60] sm:$0xff] }
  0x83   : > { %6735 = vmatmul.mubr.msk.bf16.vlgmr.msra.gmra.mrb[56].mxu0 %vm243_vm1, %v2590_v61  ;;  %6701 = vmatmul.mubr.msk.bf16.gmra.mrb[56].mxu1 %vm243_vm1, %v2061_v0  ;;  %v2666_v61 = vrot.slane %v2664_v51, 1  ;;  %v2653_v0 = vsel %vm2564_vm4, %v2643_v50, %v2652_v52 }
  0x84   : > { %6809 = vmatpush3.bf16.msra.mxu0 %v3813_v58  ;;  %6704 = vmatprep.mubr.msk.bf16.mxu1 %vm243_vm1, %v2063_v5  ;;  %v2657_v58 = vrot.slane %v2655_v48, 1  ;;  %v2076_v5 = vrot.slane %v7026_v55, 1  ;;  %v2084_v48 = vrot.slane %v7034_v36, 1  ;;  %v3724_v36 = vrot.slane %v7049_v29, 2 }
  0x85   : > { %6738 = vmatprep.mubr.msk.bf16.mxu0 %vm243_vm1, %v2599_v14  ;;  %6933 = vmatprep.subr.msk.bf16.mxu0 %vm497_vm0, %v7476_v17  ;;  %v2670_v8 = vor.u32 %v2669_v1, %v2666_v61  ;;  %v7041_v61 = vld [vmem:[%s7186_s29 + $0x8] sm:$0xfc]  }
  0x86   : > { %v2661_v14 = vor.u32 %v2660_v59, %v2657_v58  ;;  %v2079_v24 = vsel %vm1541_vm3, %v2076_v5, %v2078_v12  ;;  %v2714_v58 = vrot.slane %v2712_v47, 2  ;;  %v7127_v59 = vmov 0   ;;  %v7054_v47 = vld [vmem:[%s7186_s29 + $0x40] sm:$0xff]  }
  0x87   : > { %v2680_v35 = vsel %vm2564_vm4, %v2670_v8, %v2679_v27  ;;  %6946 = vset.pattern.permute.xlu0 %v7127_v59  ;;  %6947 = vset.pattern.permute.xlu1 %v7127_v59  ;;  %v2085_v62 = vsel %vm1541_vm3, %v2082_v33, %v2084_v48 }
  0x88   : > { %v2662_v15 = vsel %vm2564_vm4, %v2652_v52, %v2661_v14  ;;  %v2671_v20 = vsel %vm2564_vm4, %v2661_v14, %v2670_v8  ;;  %v2086_v52 = vrot.slane %v7036_v45, 1  ;;  %v2730_v14 = vshll.u32 %v7043_v53, 16 }
  0x89   : > { %v3210_v8 = vrot.slane %v7041_v61, 2  ;;  %v7056_v61 = vld [vmem:[%s7186_s29 + $0x48] sm:$0xff]  }
  0x8a   : > { %v2087_v2 = vsel %vm1541_vm3, %v2084_v48, %v2086_v52  ;;  %v5257_v48 = vld [vmem:[%s8752_s0] sm:$0xff] }
  0x8b   : > { %6739 = vmatmul.mubr.msk.bf16.gmra.mrb[60].mxu0 %vm243_vm1, %v2608_v19  ;;  %6705 = vmatmul.mubr.msk.bf16.gmra.mrb[60].mxu1 %vm243_vm1, %v2065_v22  ;;  %v2077_v19 = vsel %vm1541_vm3, %v2074_v54, %v2076_v5  ;;  %v2687_v22 = vrot.slane %v2685_v10, 2  ;;  %v7038_v54 = vld [vmem:[%s7186_s29 + $0x98] ss:$0 sps:$4 sm:$0x11]   ;;  %v2727_v5 = vshrl.u32 %v7043_v53, 16  ;;  %v7057_v53 = vld [vmem:[%s7186_s29 + $0x40] sm:$0xff]  }
  0x8c   : > { %6742 = vmatprep.mubr.msk.bf16.mxu0 %vm243_vm1, %v2617_v23  ;;  %6708 = vmatprep.mubr.msk.bf16.mxu1 %vm243_vm1, %v2067_v26  ;;  %v7037_v23 = vld [vmem:[%s7186_s29 + $0x80] sm:$0xff]   ;;  %v2080_v26 = vrot.slane %v7030_v13, 1  ;;  %v2088_v6 = vrot.slane %v7038_v54, 1  ;;  %v2732_v13 = vrot.slane %v2730_v14, 2 }
  0x8d   : > { %v2688_v30 = vor.u32 %v2687_v22, %v2684_v21  ;;  %v2700_v31 = vshrl.u32 %v7037_v23, 16  ;;  %v2703_v32 = vshll.u32 %v7037_v23, 16  ;;  %v7045_v21 = vld [vmem:[%s7186_s29 + $0x20] sm:$0xff]   ;;  %5295 = vperm.xlu0 %6946, %v5257_v48   ;;  %v303_v48 = vld [vmem:[#allocation2 + $0xb8] sm:$0xff] }
  0x8e   : > { %v2083_v44 = vsel %vm1541_vm3, %v2080_v26, %v2082_v33  ;;  %v2089_v16 = vsel %vm1541_vm3, %v2086_v52, %v2088_v6  ;;  %v4458_v33 = vsel %vm497_vm0, %v7454_v56, 0  ;;  %v3223_v52 = vrot.slane %v7054_v47, 2  ;;  %v7061_v6 = vld [vmem:[%s7186_s29 + $0x50] sm:$0xff]  }
  0x8f   : > { %v2689_v40 = vsel %vm2564_vm4, %v2679_v27, %v2688_v30  ;;  %v2702_v41 = vrot.slane %v2700_v31, 1 }
  0x93   : > { %6743 = vmatmul.mubr.msk.bf16.gmra.mrb[64].mxu0 %vm243_vm1, %v2626_v39  ;;  %6709 = vmatmul.mubr.msk.bf16.gmra.mrb[64].mxu1 %vm243_vm1, %v2069_v42  ;;  %v2081_v39 = vsel %vm1541_vm3, %v2078_v12, %v2080_v26  ;;  %v2705_v42 = vrot.slane %v2703_v32, 2  ;;  %v2729_v12 = vrot.slane %v2727_v5, 1  ;;  %v3215_v26 = vrot.slane %v7045_v21, 2  ;;  %v7050_v32 = vld [vmem:[%s7186_s29 + $0x30] sm:$0xff]  }
  0x94   : > { %6746 = vmatprep.mubr.msk.bf16.mxu0 %vm243_vm1, %v2635_v43  ;;  %6712 = vmatprep.mubr.msk.bf16.mxu1 %vm243_vm1, %v2071_v46  ;;  %v7040_v43 = vld [vmem:[%s7186_s29 + $0x90] sm:$0xff]   ;;  %v2709_v46 = vshrl.u32 %v7039_v34, 16  ;;  %v3219_v38 = vrot.slane %v7050_v32, 2 }
  0x95   : > { %v2706_v50 = vor.u32 %v2705_v42, %v2702_v41  ;;  %v2718_v51 = vshrl.u32 %v7040_v43, 16  ;;  %v2721_v57 = vshll.u32 %v7040_v43, 16  ;;  %v2733_v22 = vor.u32 %v2732_v13, %v2729_v12  ;;  %v7053_v41 = vld [vmem:[%s7186_s29 + $0x30] sm:$0xff]   ;;  %v5265_v12 = vld [vmem:[%s8752_s0 + $0x40] sm:$0xff] }
  0x96   : > { %v2711_v55 = vrot.slane %v2709_v46, 1  ;;  %v3218_v42 = vsel %vm3209_vm5, %v3215_v26, %v3217_v37  ;;  %v4970_v43 = vsel %vm497_vm0, %v7476_v17, 0  ;;  %v3220_v45 = vsel %vm3209_vm5, %v3217_v37, %v3219_v38  ;;  %v5271_v37 = vld [vmem:[%s8752_s0 + $0x70] sm:$0xff] }
  0x97   : > { %v2723_v1 = vrot.slane %v2721_v57, 2  ;;  %v3728_v17 = vrot.slane %v7053_v41, 2 }
  0x98   : > { %v2715_v4 = vor.u32 %v2714_v58, %v2711_v55  ;;  %v5260_v55 = vld [vmem:[%s8752_s0 + $0x18] sm:$0xff]  ;;  %v5261_v58 = vld [vmem:[%s8752_s0 + $0x20] sm:$0xff] }
  0x9a   : > { %v2716_v10 = vsel %vm2564_vm4, %v2706_v50, %v2715_v4 }
  0x9b   : > { %6747 = vmatmul.mubr.msk.bf16.gmra.mrb[68].mxu0 %vm243_vm1, %v2644_v60  ;;  %6713 = vmatmul.mubr.msk.bf16.gmra.mrb[68].mxu1 %vm243_vm1, %v2073_v63  ;;  %v2698_v60 = vsel %vm2564_vm4, %v2688_v30, %v2697_v49  ;;  %v2707_v63 = vsel %vm2564_vm4, %v2697_v49, %v2706_v50  ;;  %v5259_v49 = vld [vmem:[%s8752_s0 + $0x10] sm:$0xff]  ;;  %v5258_v50 = vld [vmem:[%s8752_s0 + $0x8] sm:$0xff] }
  0x9c   : > { %6750 = vmatprep.mubr.msk.bf16.mxu0 %vm243_vm1, %v2653_v0  ;;  %6716 = vmatprep.mubr.msk.bf16.mxu1 %vm243_vm1, %v2075_v3  ;;  %v2720_v0 = vrot.slane %v2718_v51, 1  ;;  %v7042_v3 = vld [vmem:[%s7186_s29 + $0x10] sm:$0xff]  }
  0x9d   : > { %v3211_v9 = vrot.slane %v7042_v3, 2  ;;  %5305 = vperm.xlu1 %6947, %v5259_v49   ;;  %5300 = vperm.xlu0 %6946, %v5258_v50   ;;  %v5263_v3 = vld [vmem:[%s8752_s0 + $0x30] sm:$0xff]  ;;  %v281_v49 = vld [vmem:[#allocation2 + $0x8] sm:$0xff] }
  0x9e   : > { %v2724_v7 = vor.u32 %v2723_v1, %v2720_v0  ;;  %v7058_v0 = vld [vmem:[%s7186_s29 + $0x50] sm:$0xff]   ;;  %v5262_v1 = vld [vmem:[%s8752_s0 + $0x28] sm:$0xff] }
  0x9f   : > { %v3227_v14 = vrot.slane %v7058_v0, 2 }
  0xa0   : > { %v2725_v18 = vsel %vm2564_vm4, %v2715_v4, %v2724_v7  ;;  %v2734_v27 = vsel %vm2564_vm4, %v2724_v7, %v2733_v22  ;;  %v3225_v4 = vrot.slane %v7056_v61, 2  ;;  %v7060_v7 = vld [vmem:[%s7186_s29 + $0x58] sm:$0xff]  }
  0xa1   : > { %5310 = vperm.xlu1 %6947, %v5260_v55   ;;  %5315 = vperm.xlu0 %6946, %v5261_v58   ;;  %v3229_v21 = vrot.slane %v7060_v7, 2  ;;  %v7689_v55 = vld [vmem:[%s7186_s29 + $0x70] sm:$0xff]   ;;  %v5273_v58 = vld [vmem:[%s8752_s0 + $0x80] sm:$0xff] }
  0xa2   : > { %v3226_v13 = vsel %vm3209_vm5, %v3223_v52, %v3225_v4 }
  0xa3   : > { %6751 = vmatmul.mubr.msk.bf16.gmra.mrb[72].mxu0 %vm243_vm1, %v2662_v15  ;;  %6717 = vmatmul.mubr.msk.bf16.gmra.mrb[72].mxu1 %vm243_vm1, %v2077_v19  ;;  %v7044_v15 = vld [vmem:[%s7186_s29 + $0x18] sm:$0xff]   ;;  %v3230_v29 = vsel %vm3209_vm5, %v3227_v14, %v3229_v21 }
  0xa4   : > { %6754 = vmatprep.mubr.msk.bf16.mxu0 %vm243_vm1, %v2671_v20  ;;  %6720 = vmatprep.mubr.msk.bf16.mxu1 %vm243_vm1, %v2079_v24  ;;  %v7047_v19 = vld [vmem:[%s7186_s29 + $0x18] sm:$0xff]   ;;  %v3212_v20 = vsel %vm3209_vm5, %v3210_v8, %v3211_v9  ;;  %v3213_v23 = vrot.slane %v7044_v15, 2  ;;  %v3721_v24 = vrot.slane %v7046_v11, 2  ;;  %v5266_v11 = vld [vmem:[%s8752_s0 + $0x48] sm:$0xff] }
  0xa5   : > { %v3722_v25 = vrot.slane %v7047_v19, 2  ;;  %5320 = vperm.xlu1 %6947, %v5262_v1   ;;  %5325 = vperm.xlu0 %6946, %v5263_v3   ;;  %v5264_v8 = vld [vmem:[%s8752_s0 + $0x38] sm:$0xff]  ;;  %v3736_v19 = vrot.slane %v7061_v6, 2  ;;  %v7711_v6 = vld [vmem:[%s7186_s29 + $0x80] sm:$0xff]  }
  0xa6   : > { %v3214_v30 = vsel %vm3209_vm5, %v3211_v9, %v3213_v23  ;;  %v3216_v34 = vsel %vm3209_vm5, %v3213_v23, %v3215_v26  ;;  %v7064_v26 = vld [vmem:[%s7186_s29 + $0x68] sm:$0xff]   ;;  %v7700_v1 = vld [vmem:[%s7186_s29 + $0x78] sm:$0xff]  }
  0xa7   : > { %v3723_v31 = vsel %vm3209_vm5, %v3721_v24, %v3722_v25  ;;  %v3725_v56 = vsel %vm3209_vm5, %v3722_v25, %v3724_v36  ;;  %v5268_v24 = vld [vmem:[%s8752_s0 + $0x58] sm:$0xff] }
  0xa9   : > { %5330 = vperm.xlu1 %6947, %v5264_v8   ;;  %5335 = vperm.xlu0 %6946, %v5265_v12   ;;  %v5274_v8 = vld [vmem:[%s8752_s0 + $0x88] sm:$0xff]  ;;  %v3744_v12 = vrot.slane %v7689_v55, 2  ;;  %v308_v55 = vld [vmem:[#allocation2 + $0xe0] sm:$0xff] }
  0xab   : > { %6755 = vmatmul.mubr.msk.bf16.gmra.mrb[76].mxu0 %vm243_vm1, %v2680_v35  ;;  %6721 = vmatmul.mubr.msk.bf16.gmra.mrb[76].mxu1 %vm243_vm1, %v2081_v39  ;;  %v7051_v35 = vld [vmem:[%s7186_s29 + $0x28] sm:$0xff]  }
  0xac   : > { %6758 = vmatprep.mubr.msk.bf16.mxu0 %vm243_vm1, %v2689_v40  ;;  %6724 = vmatprep.mubr.msk.bf16.mxu1 %vm243_vm1, %v2083_v44  ;;  %v3726_v39 = vrot.slane %v7051_v35, 2  ;;  %v7052_v40 = vld [vmem:[%s7186_s29 + $0x38] sm:$0xff]   ;;  %v282_v35 = vld [vmem:[#allocation2 + $0x10] sm:$0xff] }
  0xad   : > { %v7055_v44 = vld [vmem:[%s7186_s29 + $0x38] sm:$0xff]   ;;  %v3221_v51 = vrot.slane %v7052_v40, 2  ;;  %5340 = vperm.xlu1 %6947, %v5266_v11   ;;  %v3237_v11 = vrot.slane %v7700_v1, 2 }
  0xae   : > { %v3727_v46 = vsel %vm3209_vm5, %v3724_v36, %v3726_v39  ;;  %v3730_v57 = vrot.slane %v7055_v44, 2  ;;  %v3729_v54 = vsel %vm3209_vm5, %v3726_v39, %v3728_v17  ;;  %v280_v39 = vld [vmem:[#allocation2] sm:$0xff] }
  0xaf   : > { %v3222_v59 = vsel %vm3209_vm5, %v3219_v38, %v3221_v51  ;;  %v302_v38 = vld [vmem:[#allocation2 + $0xb0] sm:$0xff] }
  0xb1   : > { %5350 = vperm.xlu1 %6947, %v5268_v24   ;;  %v3239_v24 = vrot.slane %v7711_v6, 2 }
  0xb3   : > { %6759 = vmatmul.mubr.msk.bf16.gmra.mrb[80].mxu0 %vm243_vm1, %v2698_v60  ;;  %6725 = vmatmul.mubr.msk.bf16.gmra.mrb[80].mxu1 %vm243_vm1, %v2085_v62  ;;  %v3731_v60 = vsel %vm3209_vm5, %v3728_v17, %v3730_v57  ;;  %v7059_v62 = vld [vmem:[%s7186_s29 + $0x48] sm:$0xff]   ;;  %v5272_v17 = vld [vmem:[%s8752_s0 + $0x78] sm:$0xff] }
  0xb4   : > { %6762 = vmatprep.mubr.msk.bf16.mxu0 %vm243_vm1, %v2707_v63  ;;  %6728 = vmatprep.mubr.msk.bf16.mxu1 %vm243_vm1, %v2087_v2  ;;  %v3224_v63 = vsel %vm3209_vm5, %v3221_v51, %v3223_v52  ;;  %v3732_v2 = vrot.slane %v7057_v53, 2  ;;  %v3734_v5 = vrot.slane %v7059_v62, 2  ;;  %v301_v53 = vld [vmem:[#allocation2 + $0xa8] sm:$0xff] }
  0xb6   : > { %v3733_v9 = vsel %vm3209_vm5, %v3730_v57, %v3732_v2  ;;  %v3735_v15 = vsel %vm3209_vm5, %v3732_v2, %v3734_v5  ;;  %v3737_v25 = vsel %vm3209_vm5, %v3734_v5, %v3736_v19  ;;  %v7703_v2 = vld [vmem:[%s7186_s29 + $0x78] sm:$0xff]  }
  0xbb   : > { %6763 = vmatmul.mubr.msk.bf16.gmra.mrb[84].mxu0 %vm243_vm1, %v2716_v10  ;;  %6729 = vmatmul.mubr.msk.bf16.gmra.mrb[84].mxu1 %vm243_vm1, %v2089_v16  ;;  %v7631_v10 = vld [vmem:[%s7186_s29 + $0x58] sm:$0xff]   ;;  %v3228_v16 = vsel %vm3209_vm5, %v3225_v4, %v3227_v14 }
  0xbc   : > { %6766 = vmatprep.mubr.msk.bf16.mxu0 %vm243_vm1, %v2725_v18  ;;  %6772 = vmatprep.mubr.msk.bf16.mxu1 %vm243_vm1, %v3212_v20  ;;  %v7640_v18 = vld [vmem:[%s7186_s29 + $0x60] sm:$0xff]   ;;  %v5267_v20 = vld [vmem:[%s8752_s0 + $0x50] sm:$0xff]  ;;  %v3738_v22 = vrot.slane %v7631_v10, 2 }
  0xbd   : > { %v3231_v23 = vrot.slane %v7640_v18, 2  ;;  %5345 = vperm.xlu0 %6946, %v5267_v20   ;;  %v306_v10 = vld [vmem:[#allocation2 + $0xd0] sm:$0xff]  ;;  %v287_v18 = vld [vmem:[#allocation2 + $0x38] sm:$0xff] }
  0xbf   : > { %v3232_v32 = vsel %vm3209_vm5, %v3229_v21, %v3231_v23  ;;  %v307_v21 = vld [vmem:[#allocation2 + $0xd8] sm:$0xff] }
  0xc1   : > { %5355 = vperm.xlu0 %6946, %v5269_v28   ;;  %v7733_v28 = vld [vmem:[%s7186_s29 + $0x88] sm:$0xff]  }
  0xc3   : > { %6767 = vmatmul.mubr.msk.bf16.gmra.mrb[88].mxu0 %vm243_vm1, %v2734_v27  ;;  %6773 = vmatmul.mubr.msk.bf16.vlgmr.msra.gmra.mrb[88].mxu1 %vm243_vm1, %v3214_v30  ;;  %v7065_v27 = vld [vmem:[%s7186_s29 + $0x60] sm:$0xff]   ;;  %v3739_v30 = vsel %vm3209_vm5, %v3736_v19, %v3738_v22  ;;  %v3746_v19 = vrot.slane %v7703_v2, 2 }
  0xc4   : > { %6810 = vmatprep.mubr.msk.bf16.mxu0 %vm243_vm1, %v3723_v31  ;;  %6847 = vmatpush3.bf16.msra.mxu1 %v4458_v33  ;;  %v7666_v31 = vld [vmem:[%s7186_s29 + $0x68] sm:$0xff]   ;;  %v7670_v33 = vld [vmem:[%s7186_s29 + $0x70] sm:$0xff]   ;;  %v3740_v36 = vrot.slane %v7065_v27, 2 }
  0xc5   : > { %6776 = vmatprep.mubr.msk.bf16.mxu1 %vm243_vm1, %v3216_v34  ;;  %v5270_v34 = vld [vmem:[%s8752_s0 + $0x68] sm:$0xff]  ;;  %v3742_v40 = vrot.slane %v7666_v31, 2  ;;  %v3235_v44 = vrot.slane %v7670_v33, 2  ;;  %5365 = vperm.xlu0 %6946, %v5271_v37   ;;  %v7769_v33 = vld [vmem:[%s7186_s29 + $0x18] sm:$0xff]  }
  0xc6   : > { %5360 = vperm.xlu1 %6947, %v5270_v34  }
  0xc7   : > { %v3743_v0 = vsel %vm3209_vm5, %v3740_v36, %v3742_v40  ;;  %v3745_v37 = vsel %vm3209_vm5, %v3742_v40, %v3744_v12  ;;  %v3238_v31 = vsel %vm3209_vm5, %v3235_v44, %v3237_v11  ;;  %v3747_v40 = vsel %vm3209_vm5, %v3744_v12, %v3746_v19 }
  0xc9   : > { %5375 = vperm.xlu0 %6946, %v5273_v58  }
  0xca   : > { %5370 = vperm.xlu1 %6947, %v5272_v17   ;;  %v3240_v17 = vsel %vm3209_vm5, %v3237_v11, %v3239_v24 }
  0xcb   : > { %6811 = vmatmul.mubr.msk.bf16.vlgmr.msra.gmra.mrb[92].mxu0 %vm243_vm1, %v3725_v56  ;;  %6777 = vmatmul.mubr.msk.bf16.gmra.mrb[92].mxu1 %vm243_vm1, %v3218_v42  ;;  %v3233_v56 = vrot.slane %v7064_v26, 2  ;;  %v300_v42 = vld [vmem:[#allocation2 + $0xa0] sm:$0xff] }
  0xcc   : > { %6885 = vmatpush3.bf16.msra.mxu0 %v4970_v43  ;;  %6780 = vmatprep.mubr.msk.bf16.mxu1 %vm243_vm1, %v3220_v45  ;;  %v283_v43 = vld [vmem:[#allocation2 + $0x18] sm:$0xff] }
  0xcd   : > { %6814 = vmatprep.mubr.msk.bf16.mxu0 %vm243_vm1, %v3727_v46  ;;  %v3236_v14 = vsel %vm3209_vm5, %v3233_v56, %v3235_v44 }
  0xce   : > { %5380 = vperm.xlu1 %6947, %v5274_v8  }
  0xd3   : > { %6815 = vmatmul.mubr.msk.bf16.gmra.mrb[96].mxu0 %vm243_vm1, %v3729_v54  ;;  %6781 = vmatmul.mubr.msk.bf16.gmra.mrb[96].mxu1 %vm243_vm1, %v3222_v59  ;;  %v3741_v54 = vsel %vm3209_vm5, %v3738_v22, %v3740_v36  ;;  %v285_v22 = vld [vmem:[#allocation2 + $0x28] sm:$0xff] }
  0xd4   : > { %6818 = vmatprep.mubr.msk.bf16.mxu0 %vm243_vm1, %v3731_v60  ;;  %6784 = vmatprep.mubr.msk.bf16.mxu1 %vm243_vm1, %v3224_v63  ;;  %v3234_v63 = vsel %vm3209_vm5, %v3231_v23, %v3233_v56  ;;  %v305_v23 = vld [vmem:[#allocation2 + $0xc8] sm:$0xff]  ;;  %v5277_v56 = vld [vmem:[%s8752_s0 + $0xa0] sm:$0xff] }
  0xdb   : > { %6819 = vmatmul.mubr.msk.bf16.gmra.mrb[100].mxu0 %vm243_vm1, %v3733_v9  ;;  %6785 = vmatmul.mubr.msk.bf16.gmra.mrb[100].mxu1 %vm243_vm1, %v3226_v13  ;;  %v286_v9 = vld [vmem:[#allocation2 + $0x30] sm:$0xff] }
  0xdc   : > { %6822 = vmatprep.mubr.msk.bf16.mxu0 %vm243_vm1, %v3735_v15  ;;  %6788 = vmatprep.mubr.msk.bf16.mxu1 %vm243_vm1, %v3228_v16  ;;  %v5275_v13 = vld [vmem:[%s8752_s0 + $0x90] sm:$0xff]  ;;  %v284_v15 = vld [vmem:[#allocation2 + $0x20] sm:$0xff] }
  0xdd   : > { %v304_v16 = vld [vmem:[#allocation2 + $0xc0] sm:$0xff]  ;;  %5385 = vperm.xlu0 %6946, %v5275_v13   ;;  %v7804_v13 = vld [vmem:[%s7186_s29 + $0x90] sm:$0xff]  }
  0xe1   : > { %5395 = vperm.xlu0 %6946, %v5277_v56  }
  0xe3   : > { %6823 = vmatmul.mubr.msk.bf16.gmra.mrb[104].mxu0 %vm243_vm1, %v3737_v25  ;;  %6789 = vmatmul.mubr.msk.bf16.gmra.mrb[104].mxu1 %vm243_vm1, %v3230_v29  ;;  %v7736_v29 = vld [vmem:[%s7186_s29 + $0x80] sm:$0xff]  }
  0xe4   : > { %6826 = vmatprep.mubr.msk.bf16.mxu0 %vm243_vm1, %v3739_v30  ;;  %6792 = vmatprep.mubr.msk.bf16.mxu1 %vm243_vm1, %v3232_v32  ;;  %v5276_v30 = vld [vmem:[%s8752_s0 + $0x98] sm:$0xff] }
  0xe5   : > { %5390 = vperm.xlu1 %6947, %v5276_v30   ;;  %v7830_v30 = vld [vmem:[%s7186_s29 + $0x28] sm:$0xff]  }
  0xe6   : > { %v6584_v41 = vpop.f32.mrb[0].mxu0  ;;  %v6604_v46 = vpop.f32.mrb[0].mxu1 }
  0xe7   : > { %v680_v45 = vadd.f32 %v6584_v41, %v282_v35  ;;  %v535_v47 = vpop.f32.mrb[1].mxu0  ;;  %v700_v50 = vadd.f32 %v6604_v46, %v302_v38  ;;  %v615_v57 = vpop.f32.mrb[1].mxu1  ;;  %v7745_v38 = vld [vmem:[%s7186_s29 + $0x90] sm:$0xff]  }
  0xe8   : > { %v678_v51 = vadd.f32 %v535_v47, %v280_v39  ;;  %v6585_v52 = vpop.f32.mrb[2].mxu0  ;;  %v698_v59 = vadd.f32 %v615_v57, %v300_v42  ;;  %v6605_v61 = vpop.f32.mrb[2].mxu1  ;;  %v7748_v39 = vld [vmem:[%s7186_s29 + $0x88] sm:$0xff]   ;;  %v7761_v46 = vld [vmem:[%s7186_s29 + $0x10] sm:$0xfc]   ;;  %v3241_v57 = vrot.slane %v7733_v28, 2 }
  0xe9   : > { %716 = vst.msk [vmem:[#allocation2 + $0x10] sm:$0xff] %vm243_vm1, %v680_v45  ;;  %v681_v60 = vadd.f32 %v6585_v52, %v283_v43  ;;  %v538_v62 = vpop.f32.mrb[3].mxu0  ;;  %736 = vst.msk [vmem:[#allocation2 + $0xb0] sm:$0xff] %vm243_vm1, %v700_v50  ;;  %v701_v3 = vadd.f32 %v6605_v61, %v303_v48  ;;  %v618_v5 = vpop.f32.mrb[3].mxu1  ;;  %v290_v50 = vld [vmem:[#allocation2 + $0x50] sm:$0xff]  ;;  %v3748_v52 = vrot.slane %v7736_v29, 2 }
  0xea   : > { %714 = vst.msk [vmem:[#allocation2] sm:$0xff] %vm243_vm1, %v678_v51  ;;  %v679_v4 = vadd.f32 %v538_v62, %v281_v49  ;;  %734 = vst.msk [vmem:[#allocation2 + $0xa0] sm:$0xff] %vm243_vm1, %v698_v59  ;;  %v699_v7 = vadd.f32 %v618_v5, %v301_v53  ;;  %v310_v51 = vld [vmem:[#allocation2 + $0xf0] sm:$0xff]  ;;  %v5278_v53 = vld [vmem:[%s8752_s0 + $0xa8] sm:$0xff]  ;;  %v3243_v58 = vrot.slane %v7745_v38, 2  ;;  %v3750_v59 = vrot.slane %v7748_v39, 2 }
  0xeb   : > { %717 = vst.msk [vmem:[#allocation2 + $0x18] sm:$0xff] %vm243_vm1, %v681_v60  ;;  %6827 = vmatmul.mubr.msk.bf16.gmra.mrb[108].mxu0 %vm243_vm1, %v3741_v54  ;;  %737 = vst.msk [vmem:[#allocation2 + $0xb8] sm:$0xff] %vm243_vm1, %v701_v3  ;;  %6793 = vmatmul.mubr.msk.bf16.gmra.mrb[108].mxu1 %vm243_vm1, %v3234_v63  ;;  %v288_v54 = vld [vmem:[#allocation2 + $0x40] sm:$0xff]  ;;  %v5279_v60 = vld [vmem:[%s8752_s0 + $0xb0] sm:$0xff]  ;;  %v4237_v1 = vshll.u32 %v7761_v46, 16  ;;  %v4242_v5 = vshrl.u32 %v7769_v33, 16  ;;  %v3749_v12 = vsel %vm3209_vm5, %v3746_v19, %v3748_v52 }
  0xec   : > { %715 = vst.msk [vmem:[#allocation2 + $0x8] sm:$0xff] %vm243_vm1, %v679_v4  ;;  %6830 = vmatprep.mubr.msk.bf16.mxu0 %vm243_vm1, %v3743_v0  ;;  %735 = vst.msk [vmem:[#allocation2 + $0xa8] sm:$0xff] %vm243_vm1, %v699_v7  ;;  %6796 = vmatprep.mubr.msk.bf16.mxu1 %vm243_vm1, %v3236_v14  ;;  %v291_v61 = vld [vmem:[#allocation2 + $0x58] sm:$0xff]  ;;  %v289_v63 = vld [vmem:[#allocation2 + $0x48] sm:$0xff]  ;;  %v4234_v0 = vshrl.u32 %v7761_v46, 16  ;;  %v4245_v14 = vshll.u32 %v7769_v33, 16  ;;  %v3244_v2 = vsel %vm3209_vm5, %v3241_v57, %v3243_v58 }
  0xed   : > { %v311_v62 = vld [vmem:[#allocation2 + $0xf8] sm:$0xff]  ;;  %5400 = vperm.xlu1 %6947, %v5278_v53   ;;  %5405 = vperm.xlu0 %6946, %v5279_v60   ;;  %v3751_v19 = vsel %vm3209_vm5, %v3748_v52, %v3750_v59  ;;  %v7827_v29 = vrot.slane %v4237_v1, 3  ;;  %v293_v52 = vld [vmem:[#allocation2 + $0x68] sm:$0xff] }
  0xee   : > { %v6588_v20 = vpop.f32.mrb[4].mxu0  ;;  %v6608_v26 = vpop.f32.mrb[4].mxu1  ;;  %v7793_v4 = vld [vmem:[%s7186_s29 + $0x98] ss:$0 sps:$4 sm:$0x33]   ;;  %v7825_v28 = vrot.slane %v4234_v0, 2 }
  0xef   : > { %v684_v25 = vadd.f32 %v6588_v20, %v286_v9  ;;  %v551_v27 = vpop.f32.mrb[5].mxu0  ;;  %v704_v32 = vadd.f32 %v6608_v26, %v306_v10  ;;  %v631_v35 = vpop.f32.mrb[5].mxu1  ;;  %v3242_v10 = vsel %vm3209_vm5, %v3239_v24, %v3241_v57  ;;  %v295_v33 = vld [vmem:[#allocation2 + $0x78] sm:$0xff] }
  0xf0   : > { %v682_v34 = vadd.f32 %v551_v27, %v284_v15  ;;  %v6589_v36 = vpop.f32.mrb[6].mxu0  ;;  %v702_v41 = vadd.f32 %v631_v35, %v304_v16  ;;  %v6609_v43 = vpop.f32.mrb[6].mxu1  ;;  %v7807_v15 = vld [vmem:[%s7186_s29 + $0x98] sm:$0xff]   ;;  %v4240_v53 = vor.u32 %v7827_v29, %v7825_v28 }
  0xf1   : > { %720 = vst.msk [vmem:[#allocation2 + $0x30] sm:$0xff] %vm243_vm1, %v684_v25  ;;  %v685_v42 = vadd.f32 %v6589_v36, %v287_v18  ;;  %v554_v45 = vpop.f32.mrb[7].mxu0  ;;  %740 = vst.msk [vmem:[#allocation2 + $0xd0] sm:$0xff] %vm243_vm1, %v704_v32  ;;  %v705_v47 = vadd.f32 %v6609_v43, %v307_v21  ;;  %v634_v49 = vpop.f32.mrb[7].mxu1  ;;  %v5280_v16 = vld [vmem:[%s8752_s0 + $0xb8] sm:$0xff]  ;;  %v309_v21 = vld [vmem:[#allocation2 + $0xe8] sm:$0xff] }
  0xf2   : > { %718 = vst.msk [vmem:[#allocation2 + $0x20] sm:$0xff] %vm243_vm1, %v682_v34  ;;  %v683_v48 = vadd.f32 %v554_v45, %v285_v22  ;;  %738 = vst.msk [vmem:[#allocation2 + $0xc0] sm:$0xff] %vm243_vm1, %v702_v41  ;;  %v703_v44 = vadd.f32 %v634_v49, %v305_v23  ;;  %v7819_v22 = vld [vmem:[%s7186_s29 + $0x20] sm:$0xff]   ;;  %v4244_v36 = vrot.slane %v4242_v5, 2  ;;  %5410 = vperm.xlu1 %6947, %v5280_v16   ;;  %v3245_v41 = vrot.slane %v7793_v4, 2  ;;  %v5282_v45 = vld [vmem:[%s8752_s0 + $0xc8] sm:$0xff] }
  0xf3   : > { %721 = vst.msk [vmem:[#allocation2 + $0x38] sm:$0xff] %vm243_vm1, %v685_v42  ;;  %6831 = vmatmul.mubr.msk.bf16.gmra.mrb[112].mxu0 %vm243_vm1, %v3745_v37  ;;  %741 = vst.msk [vmem:[#allocation2 + $0xd8] sm:$0xff] %vm243_vm1, %v705_v47  ;;  %6797 = vmatmul.mubr.msk.bf16.gmra.mrb[112].mxu1 %vm243_vm1, %v3238_v31  ;;  %v5281_v23 = vld [vmem:[%s8752_s0 + $0xc0] sm:$0xff]  ;;  %v4247_v37 = vrot.slane %v4245_v14, 3  ;;  %v3752_v42 = vrot.slane %v7804_v13, 2  ;;  %v3754_v43 = vrot.slane %v7807_v15, 2 }
  0xf4   : > { %719 = vst.msk [vmem:[#allocation2 + $0x28] sm:$0xff] %vm243_vm1, %v683_v48  ;;  %6834 = vmatprep.mubr.msk.bf16.mxu0 %vm243_vm1, %v3747_v40  ;;  %739 = vst.msk [vmem:[#allocation2 + $0xc8] sm:$0xff] %vm243_vm1, %v703_v44  ;;  %6800 = vmatprep.mubr.msk.bf16.mxu1 %vm243_vm1, %v3240_v17  ;;  %v294_v31 = vld [vmem:[#allocation2 + $0x70] sm:$0xff]  ;;  %v4251_v46 = vshrl.u32 %v7819_v22, 16  ;;  %v4254_v47 = vshll.u32 %v7819_v22, 16  ;;  %v292_v49 = vld [vmem:[#allocation2 + $0x60] sm:$0xff]  ;;  %v3246_v0 = vsel %vm3209_vm5, %v3243_v58, %v3245_v41 }
  0xf5   : > { %5415 = vperm.xlu0 %6946, %v5281_v23   ;;  %v314_v40 = vld [vmem:[#allocation2 + $0x110] sm:$0xff]  ;;  %v312_v17 = vld [vmem:[#allocation2 + $0x100] sm:$0xff]  ;;  %v4260_v44 = vshrl.u32 %v7830_v30, 16  ;;  %v315_v57 = vld [vmem:[#allocation2 + $0x118] sm:$0xff]  ;;  %v3753_v1 = vsel %vm3209_vm5, %v3750_v59, %v3752_v42 }
  0xf6   : > { %v6592_v3 = vpop.f32.mrb[8].mxu0  ;;  %v6612_v8 = vpop.f32.mrb[8].mxu1  ;;  %v5283_v48 = vld [vmem:[%s8752_s0 + $0xd0] sm:$0xff]  ;;  %5420 = vperm.xlu1 %6947, %v5282_v45   ;;  %v5284_v5 = vld [vmem:[%s8752_s0 + $0xd8] sm:$0xff]  ;;  %v4256_v39 = vrot.slane %v4254_v47, 3  ;;  %v5285_v59 = vld [vmem:[%s8752_s0 + $0xe0] sm:$0xff] }
  0xf7   : > { %v688_v7 = vadd.f32 %v6592_v3, %v290_v50  ;;  %v567_v9 = vpop.f32.mrb[9].mxu0  ;;  %v708_v18 = vadd.f32 %v6612_v8, %v310_v51  ;;  %v647_v6 = vpop.f32.mrb[9].mxu1  ;;  %v4263_v50 = vshll.u32 %v7830_v30, 16  ;;  %v3755_v3 = vsel %vm3209_vm5, %v3752_v42, %v3754_v43  ;;  %v7873_v4 = vld [vmem:[%s7186_s29 + $0x30] sm:$0xff]   ;;  %v7893_v22 = vld [vmem:[%s7186_s29 + $0x38] sm:$0xff]   ;;  %v297_v41 = vld [vmem:[#allocation2 + $0x88] sm:$0xff] }
  0xf8   : > { %v686_v11 = vadd.f32 %v567_v9, %v288_v54  ;;  %v6593_v20 = vpop.f32.mrb[10].mxu0  ;;  %v706_v24 = vadd.f32 %v647_v6, %v308_v55  ;;  %v6613_v26 = vpop.f32.mrb[10].mxu1  ;;  %v7858_v54 = vor.u32 %v4247_v37, %v4244_v36  ;;  %v7861_v55 = vld [vmem:[%s7186_s29 + $0xa0] ss:$0 sps:$4 sm:$0x33]   ;;  %v4253_v8 = vrot.slane %v4251_v46, 2 }
  0xf9   : > { %724 = vst.msk [vmem:[#allocation2 + $0x50] sm:$0xff] %vm243_vm1, %v688_v7  ;;  %v689_v25 = vadd.f32 %v6593_v20, %v291_v61  ;;  %v570_v27 = vpop.f32.mrb[11].mxu0  ;;  %744 = vst.msk [vmem:[#allocation2 + $0xf0] sm:$0xff] %vm243_vm1, %v708_v18  ;;  %v709_v32 = vadd.f32 %v6613_v26, %v311_v62  ;;  %v650_v35 = vpop.f32.mrb[11].mxu1  ;;  %5425 = vperm.xlu0 %6946, %v5283_v48   ;;  %v7879_v9 = vld [vmem:[%s7186_s29 + $0x18] sm:$0xff]   ;;  %v4262_v18 = vrot.slane %v4260_v44, 2 }
  0xfa   : > { %722 = vst.msk [vmem:[#allocation2 + $0x40] sm:$0xff] %vm243_vm1, %v686_v11  ;;  %v687_v34 = vadd.f32 %v570_v27, %v289_v63  ;;  %742 = vst.msk [vmem:[#allocation2 + $0xe0] sm:$0xff] %vm243_vm1, %v706_v24  ;;  %v707_v56 = vadd.f32 %v650_v35, %v309_v21  ;;  %v313_v63 = vld [vmem:[#allocation2 + $0x108] sm:$0xff]  ;;  %v4265_v11 = vrot.slane %v4263_v50, 3  ;;  %v7886_v6 = vld [vmem:[%s7186_s29 + $0x10] sm:$0xf8]   ;;  %5430 = vperm.xlu1 %6947, %v5284_v5  }
  0xfb   : > { %725 = vst.msk [vmem:[#allocation2 + $0x58] sm:$0xff] %vm243_vm1, %v689_v25  ;;  %6835 = vmatmul.mubr.msk.bf16.gmra.mrb[116].mxu0 %vm243_vm1, %v3749_v12  ;;  %745 = vst.msk [vmem:[#allocation2 + $0xf8] sm:$0xff] %vm243_vm1, %v709_v32  ;;  %6801 = vmatmul.mubr.msk.bf16.gmra.mrb[116].mxu1 %vm243_vm1, %v3242_v10  ;;  %v3756_v24 = vrot.slane %v7861_v55, 2  ;;  %v4269_v25 = vshrl.u32 %v7873_v4, 16  ;;  %v5286_v26 = vld [vmem:[%s8752_s0 + $0xe8] sm:$0xff]  ;;  %v298_v27 = vld [vmem:[#allocation2 + $0x90] sm:$0xff]  ;;  %v4257_v28 = vor.u32 %v4256_v39, %v4253_v8 }
  0xfc   : > { %723 = vst.msk [vmem:[#allocation2 + $0x48] sm:$0xff] %vm243_vm1, %v687_v34  ;;  %6838 = vmatprep.mubr.msk.bf16.mxu0 %vm243_vm1, %v3751_v19  ;;  %743 = vst.msk [vmem:[#allocation2 + $0xe8] sm:$0xff] %vm243_vm1, %v707_v56  ;;  %6804 = vmatprep.mubr.msk.bf16.mxu1 %vm243_vm1, %v3244_v2  ;;  %v4249_v19 = vsel %vm4232_vm6, %v4240_v53, %v7858_v54  ;;  %v4272_v29 = vshll.u32 %v7873_v4, 16  ;;  %v5287_v30 = vld [vmem:[%s8752_s0 + $0xf0] sm:$0xff]  ;;  %v296_v32 = vld [vmem:[#allocation2 + $0x80] sm:$0xff]  ;;  %v7913_v34 = vor.u32 %v4265_v11, %v4262_v18 }
  0xfd   : > { %5435 = vperm.xlu0 %6946, %v5285_v59   ;;  %v4878_v35 = vrot.slane %v7886_v6, 3  ;;  %v4879_v36 = vrot.slane %v7879_v9, 3  ;;  %v299_v56 = vld [vmem:[#allocation2 + $0x98] sm:$0xff]  ;;  %v4278_v42 = vshrl.u32 %v7893_v22, 16  ;;  %v4281_v45 = vshll.u32 %v7893_v22, 16  ;;  %v5289_v55 = vld [vmem:[%s8752_s0 + $0x100] sm:$0xff] }
  0xfe   : > { %v6596_v51 = vpop.f32.mrb[12].mxu0  ;;  %v6616_v61 = vpop.f32.mrb[12].mxu1  ;;  %5440 = vperm.xlu1 %6947, %v5286_v26   ;;  %v3757_v48 = vsel %vm3209_vm5, %v3754_v43, %v3756_v24  ;;  %v4258_v15 = vsel %vm4232_vm6, %v7858_v54, %v4257_v28  ;;  %v4274_v53 = vrot.slane %v4272_v29, 3  ;;  %v7090_v43 = vld [vmem:[%s7186_s29 + $0x40] sm:$0xff]   ;;  %v7092_v4 = vld [vmem:[%s7186_s29 + $0x48] sm:$0xff]   ;;  %v5291_v18 = vld [vmem:[%s8752_s0 + $0x110] sm:$0xff] }
  0xff   : > { %v692_v60 = vadd.f32 %v6596_v51, %v294_v31  ;;  %v583_v62 = vpop.f32.mrb[13].mxu0  ;;  %v712_v14 = vadd.f32 %v6616_v61, %v314_v40  ;;  %v663_v7 = vpop.f32.mrb[13].mxu1  ;;  %v752_v40 = vld [vmem:[#allocation2 + $0x10] sm:$0xff]  ;;  %v750_v51 = vld [vmem:[#allocation2] sm:$0xff]  ;;  %v4880_v54 = vsel %vm4877_vm7, %v4878_v35, %v4879_v36  ;;  %v4283_v8 = vrot.slane %v4281_v45, 3  ;;  %v7972_v26 = vld [vmem:[%s7186_s29 + $0x38] sm:$0xff]  }
 0x100   : > { %v690_v38 = vadd.f32 %v583_v62, %v292_v49  ;;  %v6597_v58 = vpop.f32.mrb[14].mxu0  ;;  %v710_v10 = vadd.f32 %v663_v7, %v312_v17  ;;  %v6617_v13 = vpop.f32.mrb[14].mxu1  ;;  %v4271_v49 = vrot.slane %v4269_v25, 2  ;;  %v7923_v17 = vld [vmem:[%s7186_s29 + $0x20] sm:$0xff]   ;;  %v753_v62 = vld [vmem:[#allocation2 + $0x18] sm:$0xff]  ;;  %v4296_v6 = vshrl.u32 %v7092_v4, 16 }
 0x101   : > { %728 = vst.msk [vmem:[#allocation2 + $0x70] sm:$0xff] %vm243_vm1, %v692_v60  ;;  %v693_v12 = vadd.f32 %v6597_v58, %v295_v33  ;;  %v586_v16 = vpop.f32.mrb[15].mxu0  ;;  %748 = vst.msk [vmem:[#allocation2 + $0x110] sm:$0xff] %vm243_vm1, %v712_v14  ;;  %v713_v20 = vadd.f32 %v6617_v13, %v315_v57  ;;  %v666_v2 = vpop.f32.mrb[15].mxu1  ;;  %5445 = vperm.xlu0 %6946, %v5287_v30   ;;  %v5288_v33 = vld [vmem:[%s8752_s0 + $0xf8] sm:$0xff]  ;;  %v4280_v58 = vrot.slane %v4278_v42, 2 }
 0x102   : > { %726 = vst.msk [vmem:[#allocation2 + $0x60] sm:$0xff] %vm243_vm1, %v690_v38  ;;  %v691_v21 = vadd.f32 %v586_v16, %v293_v52  ;;  %746 = vst.msk [vmem:[#allocation2 + $0x100] sm:$0xff] %vm243_vm1, %v710_v10  ;;  %v711_v23 = vadd.f32 %v666_v2, %v313_v63  ;;  %v751_v38 = vld [vmem:[#allocation2 + $0x8] sm:$0xff]  ;;  %5450 = vperm.xlu1 %6947, %v5288_v33   ;;  %v4881_v59 = vrot.slane %v7923_v17, 3  ;;  %v4287_v13 = vshrl.u32 %v7090_v43, 16  ;;  %v756_v22 = vld [vmem:[#allocation2 + $0x30] sm:$0xff] }
 0x103   : > { %729 = vst.msk [vmem:[#allocation2 + $0x78] sm:$0xff] %vm243_vm1, %v693_v12  ;;  %6839 = vmatmul.mubr.msk.bf16.gmra.mrb[120].mxu0 %vm243_vm1, %v3753_v1  ;;  %749 = vst.msk [vmem:[#allocation2 + $0x118] sm:$0xff] %vm243_vm1, %v713_v20  ;;  %6805 = vmatmul.mubr.msk.bf16.gmra.mrb[120].mxu1 %vm243_vm1, %v3246_v0  ;;  %v4267_v1 = vsel %vm4232_vm6, %v4257_v28, %v7913_v34  ;;  %v5290_v10 = vld [vmem:[%s8752_s0 + $0x108] sm:$0xff]  ;;  %v4275_v12 = vor.u32 %v4274_v53, %v4271_v49  ;;  %v4290_v16 = vshll.u32 %v7090_v43, 16  ;;  %v754_v29 = vld [vmem:[#allocation2 + $0x20] sm:$0xff] }
 0x104   : > { %727 = vst.msk [vmem:[#allocation2 + $0x68] sm:$0xff] %vm243_vm1, %v691_v21  ;;  %6842 = vmatprep.mubr.msk.bf16.mxu0 %vm243_vm1, %v3755_v3  ;;  %747 = vst.msk [vmem:[#allocation2 + $0x108] sm:$0xff] %vm243_vm1, %v711_v23  ;;  %6848 = vmatprep.mubr.msk.bf16.mxu1 %vm243_vm1, %v4249_v19  ;;  %v7941_v3 = vld [vmem:[%s7186_s29 + $0x28] sm:$0xff]   ;;  %v4299_v20 = vshll.u32 %v7092_v4, 16  ;;  %v7963_v2 = vor.u32 %v4283_v8, %v4280_v58  ;;  %v7966_v19 = vld [vmem:[%s7186_s29 + $0x30] sm:$0xff]   ;;  %v4882_v25 = vsel %vm4877_vm7, %v4879_v36, %v4881_v59 }
 0x105   : > { %5455 = vperm.xlu0 %6946, %v5289_v55   ;;  %v4883_v11 = vrot.slane %v7941_v3, 3  ;;  %v4276_v35 = vsel %vm4232_vm6, %v7913_v34, %v4275_v12  ;;  %v757_v42 = vld [vmem:[#allocation2 + $0x38] sm:$0xff]  ;;  %v755_v17 = vld [vmem:[#allocation2 + $0x28] sm:$0xff]  ;;  %v4885_v43 = vrot.slane %v7966_v19, 3  ;;  %v8006_v58 = vld [vmem:[%s7186_s29 + $0x60] sm:$0xff]  }
 0x106   : > { %v6600_v37 = vpop.f32.mrb[16].mxu0  ;;  %v6622_v46 = vpop.f32.mrb[16].mxu1  ;;  %5460 = vperm.xlu1 %6947, %v5290_v10  }
 0x107   : > { %v696_v31 = vadd.f32 %v6600_v37, %v298_v27  ;;  %v599_v47 = vpop.f32.mrb[17].mxu0  ;;  %v1303_v44 = vadd.f32 %v6622_v46, %v752_v40  ;;  %v1158_v57 = vpop.f32.mrb[17].mxu1  ;;  %v5292_v27 = vld [vmem:[%s8752_s0 + $0x118] sm:$0xff]  ;;  %v4289_v37 = vrot.slane %v4287_v13, 2  ;;  %v4884_v40 = vsel %vm4877_vm7, %v4881_v59, %v4883_v11 }
 0x108   : > { %v694_v50 = vadd.f32 %v599_v47, %v296_v32  ;;  %v6601_v52 = vpop.f32.mrb[18].mxu0  ;;  %v1301_v60 = vadd.f32 %v1158_v57, %v750_v51  ;;  %v6623_v63 = vpop.f32.mrb[18].mxu1  ;;  %v4298_v46 = vrot.slane %v4296_v6, 2  ;;  %v4301_v47 = vrot.slane %v4299_v20, 3 }
 0x109   : > { %732 = vst.msk [vmem:[#allocation2 + $0x90] sm:$0xff] %vm243_vm1, %v696_v31  ;;  %v697_v61 = vadd.f32 %v6601_v52, %v299_v56  ;;  %v602_v0 = vpop.f32.mrb[19].mxu0  ;;  %1339 = vst.msk [vmem:[#allocation2 + $0x10] sm:$0xff] %vm243_vm1, %v1303_v44  ;;  %v1304_v5 = vadd.f32 %v6623_v63, %v753_v62  ;;  %v1161_v7 = vpop.f32.mrb[19].mxu1  ;;  %5465 = vperm.xlu0 %6946, %v5291_v18   ;;  %v4292_v56 = vrot.slane %v4290_v16, 3  ;;  %v8012_v18 = vld [vmem:[%s7186_s29 + $0x48] sm:$0xff]  }
 0x10a   : > { %730 = vst.msk [vmem:[#allocation2 + $0x80] sm:$0xff] %vm243_vm1, %v694_v50  ;;  %v695_v14 = vadd.f32 %v602_v0, %v297_v41  ;;  %1337 = vst.msk [vmem:[#allocation2] sm:$0xff] %vm243_vm1, %v1301_v60  ;;  %v1302_v39 = vadd.f32 %v1161_v7, %v751_v38  ;;  %v7094_v41 = vld [vmem:[%s7186_s29 + $0x50] sm:$0xff]   ;;  %v4285_v44 = vsel %vm4232_vm6, %v4275_v12, %v7963_v2  ;;  %v7096_v50 = vld [vmem:[%s7186_s29 + $0x58] sm:$0xff]   ;;  %5470 = vperm.xlu1 %6947, %v5292_v27  }
 0x10b   : > { %733 = vst.msk [vmem:[#allocation2 + $0x98] sm:$0xff] %vm243_vm1, %v697_v61  ;;  %6843 = vmatmul.mubr.msk.bf16.gmra.mrb[124].mxu0 %vm243_vm1, %v3757_v48  ;;  %1340 = vst.msk [vmem:[#allocation2 + $0x18] sm:$0xff] %vm243_vm1, %v1304_v5  ;;  %6849 = vmatmul.mubr.msk.bf16.vlgmr.msra.gmra.mrb[124].mxu1 %vm243_vm1, %v4258_v15  ;;  %v4305_v55 = vshrl.u32 %v7094_v41, 16  ;;  %v4308_v60 = vshll.u32 %v7094_v41, 16  ;;  %v4293_v62 = vor.u32 %v4292_v56, %v4289_v37  ;;  %v4887_v0 = vrot.slane %v7972_v26, 3  ;;  %v760_v5 = vld [vmem:[#allocation2 + $0x50] sm:$0xff] }
 0x10c   : > { %731 = vst.msk [vmem:[#allocation2 + $0x88] sm:$0xff] %vm243_vm1, %v695_v14  ;;  %6886 = vmatprep.mubr.msk.bf16.mxu0 %vm243_vm1, %v4880_v54  ;;  %1338 = vst.msk [vmem:[#allocation2 + $0x8] sm:$0xff] %vm243_vm1, %v1302_v39  ;;  %6852 = vmatprep.mubr.msk.bf16.mxu1 %vm243_vm1, %v4267_v1  ;;  %v7997_v63 = vor.u32 %v4301_v47, %v4298_v46  ;;  %v4314_v54 = vshrl.u32 %v7096_v50, 16  ;;  %v4317_v4 = vshll.u32 %v7096_v50, 16  ;;  %v8003_v7 = vld [vmem:[%s7186_s29 + $0x40] sm:$0xff]   ;;  %v4323_v41 = vshrl.u32 %v8006_v58, 16 }
 0x10d   : > { %v758_v39 = vld [vmem:[#allocation2 + $0x40] sm:$0xff]  ;;  %v4886_v12 = vsel %vm4877_vm7, %v4883_v11, %v4885_v43  ;;  %v4307_v13 = vrot.slane %v4305_v55, 2  ;;  %v4310_v16 = vrot.slane %v4308_v60, 3  ;;  %v4888_v3 = vsel %vm4877_vm7, %v4885_v43, %v4887_v0  ;;  %v7100_v11 = vld [vmem:[%s7186_s29 + $0x68] sm:$0xff]  }
 0x10e   : > { %v6660_v21 = vpop.f32.mrb[20].mxu0  ;;  %v6626_v23 = vpop.f32.mrb[20].mxu1  ;;  %v4891_v46 = vrot.slane %v8012_v18, 3  ;;  %v4332_v47 = vshrl.u32 %v7100_v11, 16  ;;  %v4325_v50 = vrot.slane %v4323_v41, 2 }
 0x10f   : > { %v1670_v24 = vpop.f32.mrb[21].mxu0  ;;  %v1307_v28 = vadd.f32 %v6626_v23, %v756_v22  ;;  %v1174_v30 = vpop.f32.mrb[21].mxu1  ;;  %v4294_v23 = vsel %vm4232_vm6, %v7963_v2, %v4293_v62 }
 0x110   : > { %v6661_v32 = vpop.f32.mrb[22].mxu0  ;;  %v1375_v9 = vld [vmem:[#allocation2 + $0x10] sm:$0xff]  ;;  %v1305_v36 = vadd.f32 %v1174_v30, %v754_v29  ;;  %v6627_v45 = vpop.f32.mrb[22].mxu1  ;;  %v759_v29 = vld [vmem:[#allocation2 + $0x48] sm:$0xff] }
 0x111   : > { %v1673_v31 = vpop.f32.mrb[23].mxu0  ;;  %1343 = vst.msk [vmem:[#allocation2 + $0x30] sm:$0xff] %vm243_vm1, %v1307_v28  ;;  %v1815_v48 = vadd.f32 %v6660_v21, %v1375_v9  ;;  %v1373_v49 = vld [vmem:[#allocation2] sm:$0xff]  ;;  %v1308_v34 = vadd.f32 %v6627_v45, %v757_v42  ;;  %v1177_v33 = vpop.f32.mrb[23].mxu1  ;;  %v761_v21 = vld [vmem:[#allocation2 + $0x58] sm:$0xff]  ;;  %v4311_v42 = vor.u32 %v4310_v16, %v4307_v13  ;;  %v4889_v45 = vrot.slane %v8003_v7, 3 }
 0x112   : > { %1341 = vst.msk [vmem:[#allocation2 + $0x20] sm:$0xff] %vm243_vm1, %v1305_v36  ;;  %v1813_v51 = vadd.f32 %v1670_v24, %v1373_v49  ;;  %v1376_v57 = vld [vmem:[#allocation2 + $0x18] sm:$0xff]  ;;  %v1306_v52 = vadd.f32 %v1177_v33, %v755_v17  ;;  %v4303_v24 = vsel %vm4232_vm6, %v4293_v62, %v7997_v63  ;;  %v764_v17 = vld [vmem:[#allocation2 + $0x70] sm:$0xff]  ;;  %v4334_v7 = vrot.slane %v4332_v47, 2 }
 0x113   : > { %6887 = vmatmul.mubr.msk.bf16.vlgmr.msra.gmra.mrb[128].mxu0 %vm243_vm1, %v4882_v25  ;;  %1851 = vst.msk [vmem:[#allocation2 + $0x10] sm:$0xff] %vm243_vm1, %v1815_v48  ;;  %1344 = vst.msk [vmem:[#allocation2 + $0x38] sm:$0xff] %vm243_vm1, %v1308_v34  ;;  %v1816_v15 = vadd.f32 %v6661_v32, %v1376_v57  ;;  %v1374_v53 = vld [vmem:[#allocation2 + $0x8] sm:$0xff]  ;;  %6853 = vmatmul.mubr.msk.bf16.gmra.mrb[128].mxu1 %vm243_vm1, %v4276_v35  ;;  %v4316_v32 = vrot.slane %v4314_v54, 2  ;;  %v4319_v35 = vrot.slane %v4317_v4, 3  ;;  %v4335_v48 = vshll.u32 %v7100_v11, 16 }
 0x114   : > { %6890 = vmatprep.mubr.msk.bf16.mxu0 %vm243_vm1, %v4884_v40  ;;  %1849 = vst.msk [vmem:[#allocation2] sm:$0xff] %vm243_vm1, %v1813_v51  ;;  %1342 = vst.msk [vmem:[#allocation2 + $0x28] sm:$0xff] %vm243_vm1, %v1306_v52  ;;  %v1814_v61 = vadd.f32 %v1673_v31, %v1374_v53  ;;  %6856 = vmatprep.mubr.msk.bf16.mxu1 %vm243_vm1, %v4285_v44  ;;  %v4326_v31 = vshll.u32 %v8006_v58, 16  ;;  %v8041_v51 = vld [vmem:[%s7186_s29 + $0x50] sm:$0xff]   ;;  %v762_v52 = vld [vmem:[#allocation2 + $0x60] sm:$0xff]  ;;  %v4312_v43 = vsel %vm4232_vm6, %v7997_v63, %v4311_v42 }
 0x115   : > { %1852 = vst.msk [vmem:[#allocation2 + $0x18] sm:$0xff] %vm243_vm1, %v1816_v15  ;;  %v8037_v34 = vor.u32 %v4319_v35, %v4316_v32  ;;  %v4890_v55 = vsel %vm4877_vm7, %v4887_v0, %v4889_v45  ;;  %v7102_v62 = vld [vmem:[%s7186_s29 + $0x70] sm:$0xff]   ;;  %v765_v4 = vld [vmem:[#allocation2 + $0x78] sm:$0xff]  ;;  %v4337_v63 = vrot.slane %v4335_v48, 3  ;;  %v8075_v35 = vld [vmem:[%s7186_s29 + $0x60] sm:$0xff]  }
 0x116   : > { %v6664_v1 = vpop.f32.mrb[24].mxu0  ;;  %1850 = vst.msk [vmem:[#allocation2 + $0x8] sm:$0xff] %vm243_vm1, %v1814_v61  ;;  %v6630_v14 = vpop.f32.mrb[24].mxu1  ;;  %v4328_v60 = vrot.slane %v4326_v31, 3  ;;  %v8049_v61 = vld [vmem:[%s7186_s29 + $0x58] sm:$0xff]   ;;  %v8084_v31 = vld [vmem:[%s7186_s29 + $0x68] sm:$0xff]  }
 0x117   : > { %v1686_v38 = vpop.f32.mrb[25].mxu0  ;;  %v1311_v8 = vadd.f32 %v6630_v14, %v760_v5  ;;  %v1190_v59 = vpop.f32.mrb[25].mxu1  ;;  %v4895_v11 = vrot.slane %v8049_v61, 3  ;;  %v769_v48 = vld [vmem:[#allocation2 + $0x98] sm:$0xff] }
 0x118   : > { %v6665_v10 = vpop.f32.mrb[26].mxu0  ;;  %v1379_v6 = vld [vmem:[#allocation2 + $0x30] sm:$0xff]  ;;  %v1309_v20 = vadd.f32 %v1190_v59, %v758_v39  ;;  %v6631_v19 = vpop.f32.mrb[26].mxu1  ;;  %v4321_v59 = vsel %vm4232_vm6, %v4311_v42, %v8037_v34 }
 0x119   : > { %v1689_v22 = vpop.f32.mrb[27].mxu0  ;;  %1347 = vst.msk [vmem:[#allocation2 + $0x50] sm:$0xff] %vm243_vm1, %v1311_v8  ;;  %v1819_v25 = vadd.f32 %v6664_v1, %v1379_v6  ;;  %v1377_v27 = vld [vmem:[#allocation2 + $0x20] sm:$0xff]  ;;  %v1312_v28 = vadd.f32 %v6631_v19, %v761_v21  ;;  %v1193_v30 = vpop.f32.mrb[27].mxu1  ;;  %v763_v8 = vld [vmem:[#allocation2 + $0x68] sm:$0xff]  ;;  %v4893_v21 = vrot.slane %v8041_v51, 3 }
 0x11a   : > { %1345 = vst.msk [vmem:[#allocation2 + $0x40] sm:$0xff] %vm243_vm1, %v1309_v20  ;;  %v1817_v2 = vadd.f32 %v1686_v38, %v1377_v27  ;;  %v1380_v37 = vld [vmem:[#allocation2 + $0x38] sm:$0xff]  ;;  %v1310_v56 = vadd.f32 %v1193_v30, %v759_v29  ;;  %v4892_v38 = vsel %vm4877_vm7, %v4889_v45, %v4891_v46  ;;  %v4341_v19 = vshrl.u32 %v7102_v62, 16  ;;  %v768_v29 = vld [vmem:[#allocation2 + $0x90] sm:$0xff] }
 0x11b   : > { %6891 = vmatmul.mubr.msk.bf16.gmra.mrb[132].mxu0 %vm243_vm1, %v4886_v12  ;;  %1855 = vst.msk [vmem:[#allocation2 + $0x30] sm:$0xff] %vm243_vm1, %v1819_v25  ;;  %1348 = vst.msk [vmem:[#allocation2 + $0x58] sm:$0xff] %vm243_vm1, %v1312_v28  ;;  %v1820_v9 = vadd.f32 %v6665_v10, %v1380_v37  ;;  %v1378_v36 = vld [vmem:[#allocation2 + $0x28] sm:$0xff]  ;;  %6857 = vmatmul.mubr.msk.bf16.gmra.mrb[132].mxu1 %vm243_vm1, %v4294_v23  ;;  %v7104_v10 = vld [vmem:[%s7186_s29 + $0x78] sm:$0xff]   ;;  %v4896_v18 = vsel %vm4877_vm7, %v4893_v21, %v4895_v11 }
 0x11c   : > { %6894 = vmatprep.mubr.msk.bf16.mxu0 %vm243_vm1, %v4888_v3  ;;  %1853 = vst.msk [vmem:[#allocation2 + $0x20] sm:$0xff] %vm243_vm1, %v1817_v2  ;;  %1346 = vst.msk [vmem:[#allocation2 + $0x48] sm:$0xff] %vm243_vm1, %v1310_v56  ;;  %v1818_v40 = vadd.f32 %v1689_v22, %v1378_v36  ;;  %6860 = vmatprep.mubr.msk.bf16.mxu1 %vm243_vm1, %v4303_v24  ;;  %v4344_v22 = vshll.u32 %v7102_v62, 16  ;;  %v4329_v24 = vor.u32 %v4328_v60, %v4325_v50  ;;  %v8078_v2 = vld [vmem:[%s7186_s29 + $0x80] sm:$0xff]  }
 0x11d   : > { %1856 = vst.msk [vmem:[#allocation2 + $0x38] sm:$0xff] %vm243_vm1, %v1820_v9  ;;  %v8069_v3 = vor.u32 %v4337_v63, %v4334_v7  ;;  %v4350_v27 = vshrl.u32 %v7104_v10, 16  ;;  %v4353_v28 = vshll.u32 %v7104_v10, 16  ;;  %v766_v56 = vld [vmem:[#allocation2 + $0x80] sm:$0xff]  ;;  %v4894_v36 = vsel %vm4877_vm7, %v4891_v46, %v4893_v21  ;;  %v7108_v46 = vld [vmem:[%s7186_s29 + $0x88] sm:$0xff]  }
 0x11e   : > { %v6668_v49 = vpop.f32.mrb[28].mxu0  ;;  %1854 = vst.msk [vmem:[#allocation2 + $0x28] sm:$0xff] %vm243_vm1, %v1818_v40  ;;  %v6634_v33 = vpop.f32.mrb[28].mxu1  ;;  %v4343_v42 = vrot.slane %v4341_v19, 2  ;;  %v4346_v45 = vrot.slane %v4344_v22, 3  ;;  %v4359_v62 = vshrl.u32 %v8078_v2, 16 }
 0x11f   : > { %v1702_v44 = vpop.f32.mrb[29].mxu0  ;;  %v1315_v57 = vadd.f32 %v6634_v33, %v764_v17  ;;  %v1206_v15 = vpop.f32.mrb[29].mxu1  ;;  %v4330_v33 = vsel %vm4232_vm6, %v8037_v34, %v4329_v24  ;;  %v4899_v7 = vrot.slane %v8084_v31, 3  ;;  %v4368_v63 = vshrl.u32 %v7108_v46, 16 }
 0x120   : > { %v6669_v53 = vpop.f32.mrb[30].mxu0  ;;  %v1383_v1 = vld [vmem:[#allocation2 + $0x50] sm:$0xff]  ;;  %v1313_v54 = vadd.f32 %v1206_v15, %v762_v52  ;;  %v6635_v5 = vpop.f32.mrb[30].mxu1  ;;  %v767_v52 = vld [vmem:[#allocation2 + $0x88] sm:$0xff]  ;;  %v4361_v10 = vrot.slane %v4359_v62, 2 }
 0x121   : > { %v1705_v14 = vpop.f32.mrb[31].mxu0  ;;  %1351 = vst.msk [vmem:[#allocation2 + $0x70] sm:$0xff] %vm243_vm1, %v1315_v57  ;;  %v1823_v26 = vadd.f32 %v6668_v49, %v1383_v1  ;;  %v1381_v0 = vld [vmem:[#allocation2 + $0x40] sm:$0xff]  ;;  %v1316_v58 = vadd.f32 %v6635_v5, %v765_v4  ;;  %v1209_v39 = vpop.f32.mrb[31].mxu1  ;;  %v4347_v4 = vor.u32 %v4346_v45, %v4343_v42  ;;  %v4897_v5 = vrot.slane %v8075_v35, 3 }
 0x122   : > { %1349 = vst.msk [vmem:[#allocation2 + $0x60] sm:$0xff] %vm243_vm1, %v1313_v54  ;;  %v1821_v12 = vadd.f32 %v1702_v44, %v1381_v0  ;;  %v1384_v13 = vld [vmem:[#allocation2 + $0x58] sm:$0xff]  ;;  %v1314_v16 = vadd.f32 %v1209_v39, %v763_v8  ;;  %v4339_v44 = vsel %vm4232_vm6, %v4329_v24, %v8069_v3  ;;  %v772_v8 = vld [vmem:[#allocation2 + $0xb0] sm:$0xff] }
 0x123   : > { %6895 = vmatmul.mubr.msk.bf16.gmra.mrb[136].mxu0 %vm243_vm1, %v4890_v55  ;;  %1859 = vst.msk [vmem:[#allocation2 + $0x50] sm:$0xff] %vm243_vm1, %v1823_v26  ;;  %1352 = vst.msk [vmem:[#allocation2 + $0x78] sm:$0xff] %vm243_vm1, %v1316_v58  ;;  %v1824_v6 = vadd.f32 %v6669_v53, %v1384_v13  ;;  %v1382_v20 = vld [vmem:[#allocation2 + $0x48] sm:$0xff]  ;;  %6861 = vmatmul.mubr.msk.bf16.gmra.mrb[136].mxu1 %vm243_vm1, %v4312_v43  ;;  %v4352_v53 = vrot.slane %v4350_v27, 2  ;;  %v4355_v43 = vrot.slane %v4353_v28, 3  ;;  %v4371_v26 = vshll.u32 %v7108_v46, 16 }
 0x124   : > { %6898 = vmatprep.mubr.msk.bf16.mxu0 %vm243_vm1, %v4892_v38  ;;  %1857 = vst.msk [vmem:[#allocation2 + $0x40] sm:$0xff] %vm243_vm1, %v1821_v12  ;;  %1350 = vst.msk [vmem:[#allocation2 + $0x68] sm:$0xff] %vm243_vm1, %v1314_v16  ;;  %v1822_v23 = vadd.f32 %v1705_v14, %v1382_v20  ;;  %6864 = vmatprep.mubr.msk.bf16.mxu1 %vm243_vm1, %v4321_v59  ;;  %v4362_v14 = vshll.u32 %v8078_v2, 16  ;;  %v8113_v12 = vld [vmem:[%s7186_s29 + $0x70] sm:$0xff]   ;;  %v770_v16 = vld [vmem:[#allocation2 + $0xa0] sm:$0xff]  ;;  %v4348_v21 = vsel %vm4232_vm6, %v8069_v3, %v4347_v4 }
 0x125   : > { %1860 = vst.msk [vmem:[#allocation2 + $0x58] sm:$0xff] %vm243_vm1, %v1824_v6  ;;  %v8109_v58 = vor.u32 %v4355_v43, %v4352_v53  ;;  %v4898_v19 = vsel %vm4877_vm7, %v4895_v11, %v4897_v5  ;;  %v8124_v24 = vld [vmem:[%s7186_s29 + $0x90] sm:$0xff]   ;;  %v773_v28 = vld [vmem:[#allocation2 + $0xb8] sm:$0xff]  ;;  %v4370_v3 = vrot.slane %v4368_v63, 2  ;;  %v4373_v35 = vrot.slane %v4371_v26, 3  ;;  %v7111_v43 = vld [vmem:[%s7186_s29 + $0x80] sm:$0xff]  }
 0x126   : > { %v6672_v25 = vpop.f32.mrb[32].mxu0  ;;  %1858 = vst.msk [vmem:[#allocation2 + $0x48] sm:$0xff] %vm243_vm1, %v1822_v23  ;;  %v6638_v30 = vpop.f32.mrb[32].mxu1  ;;  %v4364_v22 = vrot.slane %v4362_v14, 3  ;;  %v8121_v23 = vld [vmem:[%s7186_s29 + $0x78] sm:$0xff]   ;;  %v4380_v46 = vshll.u32 %v8124_v24, 16 }
 0x127   : > { %v1718_v32 = vpop.f32.mrb[33].mxu0  ;;  %v1319_v37 = vadd.f32 %v6638_v30, %v768_v29  ;;  %v1222_v41 = vpop.f32.mrb[33].mxu1  ;;  %v7114_v14 = vld [vmem:[%s7186_s29 + $0xa0] ss:$0 sps:$4 sm:$0x77]   ;;  %v777_v26 = vld [vmem:[#allocation2 + $0xd8] sm:$0xff] }
 0x128   : > { %v6673_v9 = vpop.f32.mrb[34].mxu0  ;;  %v1387_v40 = vld [vmem:[#allocation2 + $0x70] sm:$0xff]  ;;  %v1317_v47 = vadd.f32 %v1222_v41, %v766_v56  ;;  %v6639_v49 = vpop.f32.mrb[34].mxu1  ;;  %v4357_v41 = vsel %vm4232_vm6, %v4347_v4, %v8109_v58 }
 0x129   : > { %v1721_v17 = vpop.f32.mrb[35].mxu0  ;;  %1355 = vst.msk [vmem:[#allocation2 + $0x90] sm:$0xff] %vm243_vm1, %v1319_v37  ;;  %v1827_v50 = vadd.f32 %v6672_v25, %v1387_v40  ;;  %v1385_v51 = vld [vmem:[#allocation2 + $0x60] sm:$0xff]  ;;  %v1320_v57 = vadd.f32 %v6639_v49, %v769_v48  ;;  %v1225_v15 = vpop.f32.mrb[35].mxu1  ;;  %v771_v37 = vld [vmem:[#allocation2 + $0xa8] sm:$0xff]  ;;  %v4365_v48 = vor.u32 %v4364_v22, %v4361_v10  ;;  %v4901_v49 = vrot.slane %v8113_v12, 3 }
 0x12a   : > { %1353 = vst.msk [vmem:[#allocation2 + $0x80] sm:$0xff] %vm243_vm1, %v1317_v47  ;;  %v1825_v34 = vadd.f32 %v1718_v32, %v1385_v51  ;;  %v1388_v55 = vld [vmem:[#allocation2 + $0x78] sm:$0xff]  ;;  %v1318_v60 = vadd.f32 %v1225_v15, %v767_v52  ;;  %v4900_v32 = vsel %vm4877_vm7, %v4897_v5, %v4899_v7  ;;  %v776_v52 = vld [vmem:[#allocation2 + $0xd0] sm:$0xff]  ;;  %v4382_v10 = vrot.slane %v4380_v46, 3  ;;  %v775_v12 = vld [vmem:[#allocation2 + $0xc8] sm:$0xff] }
 0x12b   : > { %6899 = vmatmul.mubr.msk.bf16.gmra.mrb[140].mxu0 %vm243_vm1, %v4894_v36  ;;  %1863 = vst.msk [vmem:[#allocation2 + $0x70] sm:$0xff] %vm243_vm1, %v1827_v50  ;;  %1356 = vst.msk [vmem:[#allocation2 + $0x98] sm:$0xff] %vm243_vm1, %v1320_v57  ;;  %v1828_v1 = vadd.f32 %v6673_v9, %v1388_v55  ;;  %v1386_v54 = vld [vmem:[#allocation2 + $0x68] sm:$0xff]  ;;  %6865 = vmatmul.mubr.msk.bf16.gmra.mrb[140].mxu1 %vm243_vm1, %v4330_v33  ;;  %v7112_v9 = vld [vmem:[%s7186_s29 + $0x98] sm:$0xff]   ;;  %v4902_v4 = vsel %vm4877_vm7, %v4899_v7, %v4901_v49 }
 0x12c   : > { %6902 = vmatprep.mubr.msk.bf16.mxu0 %vm243_vm1, %v4896_v18  ;;  %1861 = vst.msk [vmem:[#allocation2 + $0x60] sm:$0xff] %vm243_vm1, %v1825_v34  ;;  %1354 = vst.msk [vmem:[#allocation2 + $0x88] sm:$0xff] %vm243_vm1, %v1318_v60  ;;  %v1826_v38 = vadd.f32 %v1721_v17, %v1386_v54  ;;  %6868 = vmatprep.mubr.msk.bf16.mxu1 %vm243_vm1, %v4339_v44  ;;  %v4903_v17 = vrot.slane %v8121_v23, 3  ;;  %v8144_v44 = vor.u32 %v4373_v35, %v4370_v3  ;;  %v8152_v34 = vld [vmem:[%s7186_s29 + $0x88] sm:$0xff]   ;;  %v774_v60 = vld [vmem:[#allocation2 + $0xc0] sm:$0xff] }
 0x12d   : > { %1864 = vst.msk [vmem:[#allocation2 + $0x78] sm:$0xff] %vm243_vm1, %v1828_v1  ;;  %v4377_v18 = vshrl.u32 %v8124_v24, 16  ;;  %v4386_v51 = vshrl.u32 %v7112_v9, 16  ;;  %v4389_v57 = vshll.u32 %v7112_v9, 16  ;;  %v4366_v54 = vsel %vm4232_vm6, %v8109_v58, %v4365_v48 }
 0x12e   : > { %v6676_v0 = vpop.f32.mrb[36].mxu0  ;;  %1862 = vst.msk [vmem:[#allocation2 + $0x68] sm:$0xff] %vm243_vm1, %v1826_v38  ;;  %v6642_v39 = vpop.f32.mrb[36].mxu1  ;;  %v4904_v5 = vsel %vm4877_vm7, %v4901_v49, %v4903_v17  ;;  %v781_v49 = vld [vmem:[#allocation2 + $0xf8] sm:$0xff] }
 0x12f   : > { %v1734_v59 = vpop.f32.mrb[37].mxu0  ;;  %v1323_v13 = vadd.f32 %v6642_v39, %v772_v8  ;;  %v1238_v6 = vpop.f32.mrb[37].mxu1  ;;  %v4375_v39 = vsel %vm4232_vm6, %v4365_v48, %v8144_v44 }
 0x130   : > { %v6677_v20 = vpop.f32.mrb[38].mxu0  ;;  %v1391_v25 = vld [vmem:[#allocation2 + $0x90] sm:$0xff]  ;;  %v1321_v27 = vadd.f32 %v1238_v6, %v770_v16  ;;  %v6643_v29 = vpop.f32.mrb[38].mxu1  ;;  %v4388_v16 = vrot.slane %v4386_v51, 2  ;;  %v4391_v6 = vrot.slane %v4389_v57, 3 }
 0x131   : > { %v1737_v30 = vpop.f32.mrb[39].mxu0  ;;  %1359 = vst.msk [vmem:[#allocation2 + $0xb0] sm:$0xff] %vm243_vm1, %v1323_v13  ;;  %v1831_v61 = vadd.f32 %v6676_v0, %v1391_v25  ;;  %v1389_v11 = vld [vmem:[#allocation2 + $0x80] sm:$0xff]  ;;  %v1324_v2 = vadd.f32 %v6643_v29, %v773_v28  ;;  %v1241_v56 = vpop.f32.mrb[39].mxu1  ;;  %v4905_v25 = vrot.slane %v7111_v43, 3 }
 0x132   : > { %1357 = vst.msk [vmem:[#allocation2 + $0xa0] sm:$0xff] %vm243_vm1, %v1321_v27  ;;  %v1829_v36 = vadd.f32 %v1734_v59, %v1389_v11  ;;  %v1392_v42 = vld [vmem:[#allocation2 + $0x98] sm:$0xff]  ;;  %v1322_v45 = vadd.f32 %v1241_v56, %v771_v37  ;;  %v4379_v59 = vrot.slane %v4377_v18, 2  ;;  %v4907_v27 = vrot.slane %v8152_v34, 3  ;;  %v778_v56 = vld [vmem:[#allocation2 + $0xe0] sm:$0xff] }
 0x133   : > { %6903 = vmatmul.mubr.msk.bf16.gmra.mrb[144].mxu0 %vm243_vm1, %v4898_v19  ;;  %1867 = vst.msk [vmem:[#allocation2 + $0x90] sm:$0xff] %vm243_vm1, %v1831_v61  ;;  %1360 = vst.msk [vmem:[#allocation2 + $0xb8] sm:$0xff] %vm243_vm1, %v1324_v2  ;;  %v1832_v40 = vadd.f32 %v6677_v20, %v1392_v42  ;;  %v1390_v47 = vld [vmem:[#allocation2 + $0x88] sm:$0xff]  ;;  %6869 = vmatmul.mubr.msk.bf16.gmra.mrb[144].mxu1 %vm243_vm1, %v4348_v21  ;;  %v8177_v35 = vor.u32 %v4391_v6, %v4388_v16  ;;  %v780_v61 = vld [vmem:[#allocation2 + $0xf0] sm:$0xff] }
 0x134   : > { %6906 = vmatprep.mubr.msk.bf16.mxu0 %vm243_vm1, %v4900_v32  ;;  %1865 = vst.msk [vmem:[#allocation2 + $0x80] sm:$0xff] %vm243_vm1, %v1829_v36  ;;  %1358 = vst.msk [vmem:[#allocation2 + $0xa8] sm:$0xff] %vm243_vm1, %v1322_v45  ;;  %v1830_v33 = vadd.f32 %v1737_v30, %v1390_v47  ;;  %6872 = vmatprep.mubr.msk.bf16.mxu1 %vm243_vm1, %v4357_v41  ;;  %v4383_v29 = vor.u32 %v4382_v10, %v4379_v59  ;;  %v4395_v30 = vshrl.u32 %v7114_v14, 16  ;;  %v7115_v45 = vld [vmem:[%s7186_s29 + $0x90] sm:$0xff]  }
 0x135   : > { %1868 = vst.msk [vmem:[#allocation2 + $0x98] sm:$0xff] %vm243_vm1, %v1832_v40  ;;  %v4398_v32 = vshll.u32 %v7114_v14, 16  ;;  %v4906_v36 = vsel %vm4877_vm7, %v4903_v17, %v4905_v25  ;;  %v4908_v42 = vsel %vm4877_vm7, %v4905_v25, %v4907_v27  ;;  %v8188_v40 = vld [vmem:[%s7186_s29 + $0x98] sm:$0xff]  }
 0x136   : > { %v6680_v50 = vpop.f32.mrb[40].mxu0  ;;  %1866 = vst.msk [vmem:[#allocation2 + $0x88] sm:$0xff] %vm243_vm1, %v1830_v33  ;;  %v6646_v15 = vpop.f32.mrb[40].mxu1  ;;  %v4384_v46 = vsel %vm4232_vm6, %v8144_v44, %v4383_v29 }
 0x137   : > { %v1750_v53 = vpop.f32.mrb[41].mxu0  ;;  %v1327_v55 = vadd.f32 %v6646_v15, %v776_v52  ;;  %v1254_v62 = vpop.f32.mrb[41].mxu1  ;;  %v4400_v51 = vrot.slane %v4398_v32, 3  ;;  %v779_v52 = vld [vmem:[#allocation2 + $0xe8] sm:$0xff] }
 0x138   : > { %v6681_v1 = vpop.f32.mrb[42].mxu0  ;;  %v1395_v38 = vld [vmem:[#allocation2 + $0xb0] sm:$0xff]  ;;  %v1325_v63 = vadd.f32 %v1254_v62, %v774_v60  ;;  %v6647_v0 = vpop.f32.mrb[42].mxu1 }
 0x139   : > { %v1753_v8 = vpop.f32.mrb[43].mxu0  ;;  %1363 = vst.msk [vmem:[#allocation2 + $0xd0] sm:$0xff] %vm243_vm1, %v1327_v55  ;;  %v1835_v31 = vadd.f32 %v6680_v50, %v1395_v38  ;;  %v1393_v58 = vld [vmem:[#allocation2 + $0xa0] sm:$0xff]  ;;  %v1328_v7 = vadd.f32 %v6647_v0, %v777_v26  ;;  %v1257_v13 = vpop.f32.mrb[43].mxu1  ;;  %v4397_v50 = vrot.slane %v4395_v30, 2  ;;  %v784_v38 = vld [vmem:[#allocation2 + $0x110] sm:$0xff] }
 0x13a   : > { %1361 = vst.msk [vmem:[#allocation2 + $0xc0] sm:$0xff] %vm243_vm1, %v1325_v63  ;;  %v1833_v20 = vadd.f32 %v1750_v53, %v1393_v58  ;;  %v1396_v21 = vld [vmem:[#allocation2 + $0xb8] sm:$0xff]  ;;  %v1326_v19 = vadd.f32 %v1257_v13, %v775_v12  ;;  %v4393_v53 = vsel %vm4232_vm6, %v4383_v29, %v8177_v35 }
 0x13b   : > { %6907 = vmatmul.mubr.msk.bf16.gmra.mrb[148].mxu0 %vm243_vm1, %v4902_v4  ;;  %1871 = vst.msk [vmem:[#allocation2 + $0xb0] sm:$0xff] %vm243_vm1, %v1835_v31  ;;  %1364 = vst.msk [vmem:[#allocation2 + $0xd8] sm:$0xff] %vm243_vm1, %v1328_v7  ;;  %v1836_v22 = vadd.f32 %v6681_v1, %v1396_v21  ;;  %v1394_v24 = vld [vmem:[#allocation2 + $0xa8] sm:$0xff]  ;;  %6873 = vmatmul.mubr.msk.bf16.gmra.mrb[148].mxu1 %vm243_vm1, %v4366_v54  ;;  %v4909_v1 = vrot.slane %v7115_v45, 3  ;;  %v4401_v4 = vor.u32 %v4400_v51, %v4397_v50  ;;  %v785_v12 = vld [vmem:[#allocation2 + $0x118] sm:$0xff] }
 0x13c   : > { %6910 = vmatprep.mubr.msk.bf16.mxu0 %vm243_vm1, %v4904_v5  ;;  %1869 = vst.msk [vmem:[#allocation2 + $0xa0] sm:$0xff] %vm243_vm1, %v1833_v20  ;;  %1362 = vst.msk [vmem:[#allocation2 + $0xc8] sm:$0xff] %vm243_vm1, %v1326_v19  ;;  %v1834_v28 = vadd.f32 %v1753_v8, %v1394_v24  ;;  %6876 = vmatprep.mubr.msk.bf16.mxu1 %vm243_vm1, %v4375_v39  ;;  %v4911_v5 = vrot.slane %v8188_v40, 3  ;;  %v782_v8 = vld [vmem:[#allocation2 + $0x100] sm:$0xff]  ;;  %v783_v24 = vld [vmem:[#allocation2 + $0x108] sm:$0xff] }
 0x13d   : > { %1872 = vst.msk [vmem:[#allocation2 + $0xb8] sm:$0xff] %vm243_vm1, %v1836_v22  ;;  %v4910_v10 = vsel %vm4877_vm7, %v4907_v27, %v4909_v1  ;;  %v7117_v31 = vld [vmem:[%s7186_s29 + $0xa0] ss:$0 sps:$4 sm:$0x77]   ;;  %v4402_v6 = vsel %vm4232_vm6, %v8177_v35, %v4401_v4  ;;  %v1888_v40 = vld [vmem:[#allocation2 + $0x18] sm:$0xff]  ;;  %s6935_s29 = smul.u32 144, %s8759_s19 }
 0x13e   : > { %v6684_v3 = vpop.f32.mrb[44].mxu0  ;;  %1870 = vst.msk [vmem:[#allocation2 + $0xa8] sm:$0xff] %vm243_vm1, %v1834_v28  ;;  %v6650_v11 = vpop.f32.mrb[44].mxu1  ;;  %v4912_v20 = vsel %vm4877_vm7, %v4909_v1, %v4911_v5  ;;  %v4913_v32 = vrot.slane %v7117_v31, 3 }
 0x13f   : > { %v1766_v2 = vpop.f32.mrb[45].mxu0  ;;  %v1331_v37 = vadd.f32 %v6650_v11, %v780_v61  ;;  %v1270_v41 = vpop.f32.mrb[45].mxu1  ;;  %v1887_v61 = vld [vmem:[#allocation2 + $0x10] sm:$0xff]  ;;  %s8426_s27 = scalar_lea.vmem %s8755_s3, %s6935_s29 }
 0x140   : > { %v6685_v9 = vpop.f32.mrb[46].mxu0  ;;  %v1399_v47 = vld [vmem:[#allocation2 + $0xd0] sm:$0xff]  ;;  %v1329_v48 = vadd.f32 %v1270_v41, %v778_v56  ;;  %v6651_v33 = vpop.f32.mrb[46].mxu1  ;;  %v1885_v56 = vld [vmem:[#allocation2] sm:$0xff] }
 0x141   : > { %v1769_v18 = vpop.f32.mrb[47].mxu0  ;;  %1367 = vst.msk [vmem:[#allocation2 + $0xf0] sm:$0xff] %vm243_vm1, %v1331_v37  ;;  %v1839_v23 = vadd.f32 %v6684_v3, %v1399_v47  ;;  %v1397_v17 = vld [vmem:[#allocation2 + $0xc0] sm:$0xff]  ;;  %v1332_v57 = vadd.f32 %v6651_v33, %v781_v49  ;;  %v1273_v15 = vpop.f32.mrb[47].mxu1 }
 0x142   : > { %1365 = vst.msk [vmem:[#allocation2 + $0xe0] sm:$0xff] %vm243_vm1, %v1329_v48  ;;  %v1837_v43 = vadd.f32 %v1766_v2, %v1397_v17  ;;  %v1400_v55 = vld [vmem:[#allocation2 + $0xd8] sm:$0xff]  ;;  %v1330_v60 = vadd.f32 %v1273_v15, %v779_v52 }
 0x143   : > { %6911 = vmatmul.mubr.msk.bf16.gmra.mrb[152].mxu0 %vm243_vm1, %v4906_v36  ;;  %1875 = vst.msk [vmem:[#allocation2 + $0xd0] sm:$0xff] %vm243_vm1, %v1839_v23  ;;  %1368 = vst.msk [vmem:[#allocation2 + $0xf8] sm:$0xff] %vm243_vm1, %v1332_v57  ;;  %v1840_v44 = vadd.f32 %v6685_v9, %v1400_v55  ;;  %v1398_v62 = vld [vmem:[#allocation2 + $0xc8] sm:$0xff]  ;;  %6877 = vmatmul.mubr.msk.bf16.gmra.mrb[152].mxu1 %vm243_vm1, %v4384_v46  ;;  %v4914_v36 = vsel %vm4877_vm7, %v4911_v5, %v4913_v32 }
 0x144   : > { %6914 = vmatprep.mubr.msk.bf16.mxu0 %vm243_vm1, %v4908_v42  ;;  %1873 = vst.msk [vmem:[#allocation2 + $0xc0] sm:$0xff] %vm243_vm1, %v1837_v43  ;;  %1366 = vst.msk [vmem:[#allocation2 + $0xe8] sm:$0xff] %vm243_vm1, %v1330_v60  ;;  %v1838_v54 = vadd.f32 %v1769_v18, %v1398_v62  ;;  %6880 = vmatprep.mubr.msk.bf16.mxu1 %vm243_vm1, %v4393_v53  ;;  %v1886_v46 = vld [vmem:[#allocation2 + $0x8] sm:$0xff]  ;;  %v1891_v43 = vld [vmem:[#allocation2 + $0x30] sm:$0xff] }
 0x145   : > { %1876 = vst.msk [vmem:[#allocation2 + $0xd8] sm:$0xff] %vm243_vm1, %v1840_v44  ;;  %v1889_v62 = vld [vmem:[#allocation2 + $0x20] sm:$0xff] }
 0x146   : > { %v6688_v14 = vpop.f32.mrb[48].mxu0  ;;  %1874 = vst.msk [vmem:[#allocation2 + $0xc8] sm:$0xff] %vm243_vm1, %v1838_v54  ;;  %v6654_v63 = vpop.f32.mrb[48].mxu1 }
 0x147   : > { %v1782_v26 = vpop.f32.mrb[49].mxu0  ;;  %v1335_v0 = vadd.f32 %v6654_v63, %v784_v38  ;;  %v1286_v39 = vpop.f32.mrb[49].mxu1 }
 0x148   : > { %v6689_v59 = vpop.f32.mrb[50].mxu0  ;;  %v1403_v58 = vld [vmem:[#allocation2 + $0xf0] sm:$0xff]  ;;  %v1333_v7 = vadd.f32 %v1286_v39, %v782_v8  ;;  %v6655_v13 = vpop.f32.mrb[50].mxu1  ;;  %v1890_v39 = vld [vmem:[#allocation2 + $0x28] sm:$0xff] }
 0x149   : > { %v1785_v16 = vpop.f32.mrb[51].mxu0  ;;  %1371 = vst.msk [vmem:[#allocation2 + $0x110] sm:$0xff] %vm243_vm1, %v1335_v0  ;;  %v1843_v21 = vadd.f32 %v6688_v14, %v1403_v58  ;;  %v1401_v19 = vld [vmem:[#allocation2 + $0xe0] sm:$0xff]  ;;  %v1336_v22 = vadd.f32 %v6655_v13, %v785_v12  ;;  %v1289_v34 = vpop.f32.mrb[51].mxu1  ;;  %v1892_v14 = vld [vmem:[#allocation2 + $0x38] sm:$0xff] }
 0x14a   : > { %1369 = vst.msk [vmem:[#allocation2 + $0x100] sm:$0xff] %vm243_vm1, %v1333_v7  ;;  %v1841_v25 = vadd.f32 %v1782_v26, %v1401_v19  ;;  %v1404_v27 = vld [vmem:[#allocation2 + $0xf8] sm:$0xff]  ;;  %v1334_v28 = vadd.f32 %v1289_v34, %v783_v24 }
 0x14b   : > { %6915 = vmatmul.mubr.msk.bf16.gmra.mrb[156].mxu0 %vm243_vm1, %v4910_v10  ;;  %1879 = vst.msk [vmem:[#allocation2 + $0xf0] sm:$0xff] %vm243_vm1, %v1843_v21  ;;  %1372 = vst.msk [vmem:[#allocation2 + $0x118] sm:$0xff] %vm243_vm1, %v1336_v22  ;;  %v1844_v29 = vadd.f32 %v6689_v59, %v1404_v27  ;;  %v1402_v30 = vld [vmem:[#allocation2 + $0xe8] sm:$0xff]  ;;  %6881 = vmatmul.mubr.msk.bf16.gmra.mrb[156].mxu1 %vm243_vm1, %v4402_v6  ;;  %v1895_v6 = vld [vmem:[#allocation2 + $0x50] sm:$0xff] }
 0x14c   : > { %6918 = vmatprep.mubr.msk.bf16.mxu0 %vm243_vm1, %v4912_v20  ;;  %1877 = vst.msk [vmem:[#allocation2 + $0xe0] sm:$0xff] %vm243_vm1, %v1841_v25  ;;  %1370 = vst.msk [vmem:[#allocation2 + $0x108] sm:$0xff] %vm243_vm1, %v1334_v28  ;;  %v1842_v3 = vadd.f32 %v1785_v16, %v1402_v30  ;;  %v1893_v22 = vld [vmem:[#allocation2 + $0x40] sm:$0xff]  ;;  %v1896_v28 = vld [vmem:[#allocation2 + $0x58] sm:$0xff] }
 0x14d   : > { %1880 = vst.msk [vmem:[#allocation2 + $0xf8] sm:$0xff] %vm243_vm1, %v1844_v29 }
 0x14e   : > { %v6692_v35 = vpop.f32.mrb[52].mxu0  ;;  %1878 = vst.msk [vmem:[#allocation2 + $0xe8] sm:$0xff] %vm243_vm1, %v1842_v3  ;;  %v6698_v11 = vpop.f32.mrb[52].mxu1 }
 0x14f   : > { %v1798_v2 = vpop.f32.mrb[53].mxu0  ;;  %v2326_v37 = vadd.f32 %v6698_v11, %v1887_v61  ;;  %v2181_v41 = vpop.f32.mrb[53].mxu1  ;;  %v1894_v61 = vld [vmem:[#allocation2 + $0x48] sm:$0xff] }
 0x150   : > { %v6693_v9 = vpop.f32.mrb[54].mxu0  ;;  %v1407_v42 = vld [vmem:[#allocation2 + $0x110] sm:$0xff]  ;;  %v2324_v45 = vadd.f32 %v2181_v41, %v1885_v56  ;;  %v6699_v47 = vpop.f32.mrb[54].mxu1 }
 0x151   : > { %v1801_v48 = vpop.f32.mrb[55].mxu0  ;;  %v1847_v49 = vadd.f32 %v6692_v35, %v1407_v42  ;;  %2362 = vst.msk [vmem:[#allocation2 + $0x10] sm:$0xff] %vm243_vm1, %v2326_v37  ;;  %v1405_v33 = vld [vmem:[#allocation2 + $0x100] sm:$0xff]  ;;  %v2327_v18 = vadd.f32 %v6699_v47, %v1888_v40  ;;  %v2184_v50 = vpop.f32.mrb[55].mxu1 }
 0x152   : > { %v1845_v51 = vadd.f32 %v1798_v2, %v1405_v33  ;;  %2360 = vst.msk [vmem:[#allocation2] sm:$0xff] %vm243_vm1, %v2324_v45  ;;  %v1408_v23 = vld [vmem:[#allocation2 + $0x118] sm:$0xff]  ;;  %v2325_v17 = vadd.f32 %v2184_v50, %v1886_v46  ;;  %v1899_v45 = vld [vmem:[#allocation2 + $0x70] sm:$0xff] }
 0x153   : > { %6919 = vmatmul.mubr.msk.bf16.gmra.mrb[160].mxu0 %vm243_vm1, %v4914_v36  ;;  %1883 = vst.msk [vmem:[#allocation2 + $0x110] sm:$0xff] %vm243_vm1, %v1847_v49  ;;  %v1848_v57 = vadd.f32 %v6693_v9, %v1408_v23  ;;  %2363 = vst.msk [vmem:[#allocation2 + $0x18] sm:$0xff] %vm243_vm1, %v2327_v18  ;;  %v1406_v52 = vld [vmem:[#allocation2 + $0x108] sm:$0xff]  ;;  %v1897_v49 = vld [vmem:[#allocation2 + $0x60] sm:$0xff] }
 0x154   : > { %1881 = vst.msk [vmem:[#allocation2 + $0x100] sm:$0xff] %vm243_vm1, %v1845_v51  ;;  %v1846_v15 = vadd.f32 %v1801_v48, %v1406_v52  ;;  %2361 = vst.msk [vmem:[#allocation2 + $0x8] sm:$0xff] %vm243_vm1, %v2325_v17  ;;  %v1900_v51 = vld [vmem:[#allocation2 + $0x78] sm:$0xff] }
 0x155   : > { %1884 = vst.msk [vmem:[#allocation2 + $0x118] sm:$0xff] %vm243_vm1, %v1848_v57 }
 0x156   : > { %v6736_v53 = vpop.f32.mrb[56].mxu0  ;;  %1882 = vst.msk [vmem:[#allocation2 + $0x108] sm:$0xff] %vm243_vm1, %v1846_v15  ;;  %v6702_v55 = vpop.f32.mrb[56].mxu1 }
 0x157   : > { %v2826_v60 = vpop.f32.mrb[57].mxu0  ;;  %v2330_v44 = vadd.f32 %v6702_v55, %v1891_v43  ;;  %v2197_v1 = vpop.f32.mrb[57].mxu1 }
 0x158   : > { %v6737_v54 = vpop.f32.mrb[58].mxu0  ;;  %v2398_v4 = vld [vmem:[#allocation2 + $0x10] sm:$0xff]  ;;  %v2328_v5 = vadd.f32 %v2197_v1, %v1889_v62  ;;  %v6703_v38 = vpop.f32.mrb[58].mxu1 }
 0x159   : > { %v2829_v63 = vpop.f32.mrb[59].mxu0  ;;  %2366 = vst.msk [vmem:[#allocation2 + $0x30] sm:$0xff] %vm243_vm1, %v2330_v44  ;;  %v2971_v26 = vadd.f32 %v6736_v53, %v2398_v4  ;;  %v2396_v0 = vld [vmem:[#allocation2] sm:$0xff]  ;;  %v2331_v8 = vadd.f32 %v6703_v38, %v1892_v14  ;;  %v2200_v59 = vpop.f32.mrb[59].mxu1  ;;  %v1898_v53 = vld [vmem:[#allocation2 + $0x68] sm:$0xff] }
 0x15a   : > { %2364 = vst.msk [vmem:[#allocation2 + $0x20] sm:$0xff] %vm243_vm1, %v2328_v5  ;;  %v2969_v10 = vadd.f32 %v2826_v60, %v2396_v0  ;;  %v2399_v31 = vld [vmem:[#allocation2 + $0x18] sm:$0xff]  ;;  %v2329_v58 = vadd.f32 %v2200_v59, %v1890_v39  ;;  %v1903_v5 = vld [vmem:[#allocation2 + $0x90] sm:$0xff] }
 0x15b   : > { %3007 = vst.msk [vmem:[#allocation2 + $0x10] sm:$0xff] %vm243_vm1, %v2971_v26  ;;  %2367 = vst.msk [vmem:[#allocation2 + $0x38] sm:$0xff] %vm243_vm1, %v2331_v8  ;;  %v2972_v7 = vadd.f32 %v6737_v54, %v2399_v31  ;;  %v2397_v12 = vld [vmem:[#allocation2 + $0x8] sm:$0xff]  ;;  %v1901_v26 = vld [vmem:[#allocation2 + $0x80] sm:$0xff] }
 0x15c   : > { %3005 = vst.msk [vmem:[#allocation2] sm:$0xff] %vm243_vm1, %v2969_v10  ;;  %2365 = vst.msk [vmem:[#allocation2 + $0x28] sm:$0xff] %vm243_vm1, %v2329_v58  ;;  %v2970_v13 = vadd.f32 %v2829_v63, %v2397_v12  ;;  %v1904_v10 = vld [vmem:[#allocation2 + $0x98] sm:$0xff] }
 0x15d   : > { %3008 = vst.msk [vmem:[#allocation2 + $0x18] sm:$0xff] %vm243_vm1, %v2972_v7 }
 0x15e   : > { %v6740_v16 = vpop.f32.mrb[60].mxu0  ;;  %3006 = vst.msk [vmem:[#allocation2 + $0x8] sm:$0xff] %vm243_vm1, %v2970_v13  ;;  %v6706_v20 = vpop.f32.mrb[60].mxu1 }
 0x15f   : > { %v2842_v21 = vpop.f32.mrb[61].mxu0  ;;  %v2334_v19 = vadd.f32 %v6706_v20, %v1895_v6  ;;  %v2213_v24 = vpop.f32.mrb[61].mxu1 }
 0x160   : > { %v6741_v34 = vpop.f32.mrb[62].mxu0  ;;  %v2402_v25 = vld [vmem:[#allocation2 + $0x30] sm:$0xff]  ;;  %v2332_v27 = vadd.f32 %v2213_v24, %v1893_v22  ;;  %v6707_v29 = vpop.f32.mrb[62].mxu1 }
 0x161   : > { %v2845_v30 = vpop.f32.mrb[63].mxu0  ;;  %2370 = vst.msk [vmem:[#allocation2 + $0x50] sm:$0xff] %vm243_vm1, %v2334_v19  ;;  %v2975_v32 = vadd.f32 %v6740_v16, %v2402_v25  ;;  %v2400_v3 = vld [vmem:[#allocation2 + $0x20] sm:$0xff]  ;;  %v2335_v35 = vadd.f32 %v6707_v29, %v1896_v28  ;;  %v2216_v11 = vpop.f32.mrb[63].mxu1  ;;  %v1902_v16 = vld [vmem:[#allocation2 + $0x88] sm:$0xff] }
 0x162   : > { %2368 = vst.msk [vmem:[#allocation2 + $0x40] sm:$0xff] %vm243_vm1, %v2332_v27  ;;  %v2973_v2 = vadd.f32 %v2842_v21, %v2400_v3  ;;  %v2403_v37 = vld [vmem:[#allocation2 + $0x38] sm:$0xff]  ;;  %v2333_v56 = vadd.f32 %v2216_v11, %v1894_v61  ;;  %v1907_v27 = vld [vmem:[#allocation2 + $0xb0] sm:$0xff] }
 0x163   : > { %3011 = vst.msk [vmem:[#allocation2 + $0x30] sm:$0xff] %vm243_vm1, %v2975_v32  ;;  %2371 = vst.msk [vmem:[#allocation2 + $0x58] sm:$0xff] %vm243_vm1, %v2335_v35  ;;  %v2976_v41 = vadd.f32 %v6741_v34, %v2403_v37  ;;  %v2401_v9 = vld [vmem:[#allocation2 + $0x28] sm:$0xff]  ;;  %v1905_v32 = vld [vmem:[#allocation2 + $0xa0] sm:$0xff] }
 0x164   : > { %3009 = vst.msk [vmem:[#allocation2 + $0x20] sm:$0xff] %vm243_vm1, %v2973_v2  ;;  %2369 = vst.msk [vmem:[#allocation2 + $0x48] sm:$0xff] %vm243_vm1, %v2333_v56  ;;  %v2974_v36 = vadd.f32 %v2845_v30, %v2401_v9  ;;  %v1908_v2 = vld [vmem:[#allocation2 + $0xb8] sm:$0xff] }
 0x165   : > { %3012 = vst.msk [vmem:[#allocation2 + $0x38] sm:$0xff] %vm243_vm1, %v2976_v41 }
 0x166   : > { %v6744_v42 = vpop.f32.mrb[64].mxu0  ;;  %3010 = vst.msk [vmem:[#allocation2 + $0x28] sm:$0xff] %vm243_vm1, %v2974_v36  ;;  %v6710_v40 = vpop.f32.mrb[64].mxu1 }
 0x167   : > { %v2858_v47 = vpop.f32.mrb[65].mxu0  ;;  %v2338_v48 = vadd.f32 %v6710_v40, %v1899_v45  ;;  %v2229_v33 = vpop.f32.mrb[65].mxu1 }
 0x168   : > { %v6745_v18 = vpop.f32.mrb[66].mxu0  ;;  %v2406_v46 = vld [vmem:[#allocation2 + $0x50] sm:$0xff]  ;;  %v2336_v50 = vadd.f32 %v2229_v33, %v1897_v49  ;;  %v6711_v23 = vpop.f32.mrb[66].mxu1 }
 0x169   : > { %v2861_v17 = vpop.f32.mrb[67].mxu0  ;;  %2374 = vst.msk [vmem:[#allocation2 + $0x70] sm:$0xff] %vm243_vm1, %v2338_v48  ;;  %v2979_v57 = vadd.f32 %v6744_v42, %v2406_v46  ;;  %v2404_v52 = vld [vmem:[#allocation2 + $0x40] sm:$0xff]  ;;  %v2339_v15 = vadd.f32 %v6711_v23, %v1900_v51  ;;  %v2232_v43 = vpop.f32.mrb[67].mxu1  ;;  %v1906_v42 = vld [vmem:[#allocation2 + $0xa8] sm:$0xff] }
 0x16a   : > { %2372 = vst.msk [vmem:[#allocation2 + $0x60] sm:$0xff] %vm243_vm1, %v2336_v50  ;;  %v2977_v55 = vadd.f32 %v2858_v47, %v2404_v52  ;;  %v2407_v60 = vld [vmem:[#allocation2 + $0x58] sm:$0xff]  ;;  %v2337_v44 = vadd.f32 %v2232_v43, %v1898_v53  ;;  %v1911_v50 = vld [vmem:[#allocation2 + $0xd0] sm:$0xff] }
 0x16b   : > { %3015 = vst.msk [vmem:[#allocation2 + $0x50] sm:$0xff] %vm243_vm1, %v2979_v57  ;;  %2375 = vst.msk [vmem:[#allocation2 + $0x78] sm:$0xff] %vm243_vm1, %v2339_v15  ;;  %v2980_v62 = vadd.f32 %v6745_v18, %v2407_v60  ;;  %v2405_v1 = vld [vmem:[#allocation2 + $0x48] sm:$0xff]  ;;  %v1909_v57 = vld [vmem:[#allocation2 + $0xc0] sm:$0xff] }
 0x16c   : > { %3013 = vst.msk [vmem:[#allocation2 + $0x40] sm:$0xff] %vm243_vm1, %v2977_v55  ;;  %2373 = vst.msk [vmem:[#allocation2 + $0x68] sm:$0xff] %vm243_vm1, %v2337_v44  ;;  %v2978_v54 = vadd.f32 %v2861_v17, %v2405_v1  ;;  %v1912_v55 = vld [vmem:[#allocation2 + $0xd8] sm:$0xff] }
 0x16d   : > { %3016 = vst.msk [vmem:[#allocation2 + $0x58] sm:$0xff] %vm243_vm1, %v2980_v62 }
 0x16e   : > { %v6748_v4 = vpop.f32.mrb[68].mxu0  ;;  %3014 = vst.msk [vmem:[#allocation2 + $0x48] sm:$0xff] %vm243_vm1, %v2978_v54  ;;  %v6714_v14 = vpop.f32.mrb[68].mxu1 }
 0x16f   : > { %v2874_v38 = vpop.f32.mrb[69].mxu0  ;;  %v2342_v63 = vadd.f32 %v6714_v14, %v1903_v5  ;;  %v2245_v0 = vpop.f32.mrb[69].mxu1 }
 0x170   : > { %v6749_v8 = vpop.f32.mrb[70].mxu0  ;;  %v2410_v39 = vld [vmem:[#allocation2 + $0x70] sm:$0xff]  ;;  %v2340_v59 = vadd.f32 %v2245_v0, %v1901_v26  ;;  %v6715_v31 = vpop.f32.mrb[70].mxu1 }
 0x171   : > { %v2877_v58 = vpop.f32.mrb[71].mxu0  ;;  %2378 = vst.msk [vmem:[#allocation2 + $0x90] sm:$0xff] %vm243_vm1, %v2342_v63  ;;  %v2983_v7 = vadd.f32 %v6748_v4, %v2410_v39  ;;  %v2408_v12 = vld [vmem:[#allocation2 + $0x60] sm:$0xff]  ;;  %v2343_v13 = vadd.f32 %v6715_v31, %v1904_v10  ;;  %v2248_v6 = vpop.f32.mrb[71].mxu1  ;;  %v1910_v4 = vld [vmem:[#allocation2 + $0xc8] sm:$0xff] }
 0x172   : > { %2376 = vst.msk [vmem:[#allocation2 + $0x80] sm:$0xff] %vm243_vm1, %v2340_v59  ;;  %v2981_v20 = vadd.f32 %v2874_v38, %v2408_v12  ;;  %v2411_v21 = vld [vmem:[#allocation2 + $0x78] sm:$0xff]  ;;  %v2341_v19 = vadd.f32 %v2248_v6, %v1902_v16  ;;  %v1915_v59 = vld [vmem:[#allocation2 + $0xf0] sm:$0xff] }
 0x173   : > { %3019 = vst.msk [vmem:[#allocation2 + $0x70] sm:$0xff] %vm243_vm1, %v2983_v7  ;;  %2379 = vst.msk [vmem:[#allocation2 + $0x98] sm:$0xff] %vm243_vm1, %v2343_v13  ;;  %v2984_v22 = vadd.f32 %v6749_v8, %v2411_v21  ;;  %v2409_v24 = vld [vmem:[#allocation2 + $0x68] sm:$0xff]  ;;  %v1913_v7 = vld [vmem:[#allocation2 + $0xe0] sm:$0xff] }
 0x174   : > { %3017 = vst.msk [vmem:[#allocation2 + $0x60] sm:$0xff] %vm243_vm1, %v2981_v20  ;;  %2377 = vst.msk [vmem:[#allocation2 + $0x88] sm:$0xff] %vm243_vm1, %v2341_v19  ;;  %v2982_v34 = vadd.f32 %v2877_v58, %v2409_v24  ;;  %v1916_v20 = vld [vmem:[#allocation2 + $0xf8] sm:$0xff] }
 0x175   : > { %3020 = vst.msk [vmem:[#allocation2 + $0x78] sm:$0xff] %vm243_vm1, %v2984_v22 }
 0x176   : > { %v6752_v25 = vpop.f32.mrb[72].mxu0  ;;  %3018 = vst.msk [vmem:[#allocation2 + $0x68] sm:$0xff] %vm243_vm1, %v2982_v34  ;;  %v6718_v28 = vpop.f32.mrb[72].mxu1 }
 0x177   : > { %v2890_v29 = vpop.f32.mrb[73].mxu0  ;;  %v2346_v30 = vadd.f32 %v6718_v28, %v1907_v27  ;;  %v2261_v3 = vpop.f32.mrb[73].mxu1 }
 0x178   : > { %v6753_v35 = vpop.f32.mrb[74].mxu0  ;;  %v2414_v61 = vld [vmem:[#allocation2 + $0x90] sm:$0xff]  ;;  %v2344_v11 = vadd.f32 %v2261_v3, %v1905_v32  ;;  %v6719_v37 = vpop.f32.mrb[74].mxu1 }
 0x179   : > { %v2893_v56 = vpop.f32.mrb[75].mxu0  ;;  %2382 = vst.msk [vmem:[#allocation2 + $0xb0] sm:$0xff] %vm243_vm1, %v2346_v30  ;;  %v2987_v41 = vadd.f32 %v6752_v25, %v2414_v61  ;;  %v2412_v9 = vld [vmem:[#allocation2 + $0x80] sm:$0xff]  ;;  %v2347_v36 = vadd.f32 %v6719_v37, %v1908_v2  ;;  %v2264_v45 = vpop.f32.mrb[75].mxu1  ;;  %v1914_v25 = vld [vmem:[#allocation2 + $0xe8] sm:$0xff] }
 0x17a   : > { %2380 = vst.msk [vmem:[#allocation2 + $0xa0] sm:$0xff] %vm243_vm1, %v2344_v11  ;;  %v2985_v40 = vadd.f32 %v2890_v29, %v2412_v9  ;;  %v2415_v47 = vld [vmem:[#allocation2 + $0x98] sm:$0xff]  ;;  %v2345_v48 = vadd.f32 %v2264_v45, %v1906_v42  ;;  %v1919_v11 = vld [vmem:[#allocation2 + $0x110] sm:$0xff] }
 0x17b   : > { %3023 = vst.msk [vmem:[#allocation2 + $0x90] sm:$0xff] %vm243_vm1, %v2987_v41  ;;  %2383 = vst.msk [vmem:[#allocation2 + $0xb8] sm:$0xff] %vm243_vm1, %v2347_v36  ;;  %v2988_v49 = vadd.f32 %v6753_v35, %v2415_v47  ;;  %v2413_v33 = vld [vmem:[#allocation2 + $0x88] sm:$0xff]  ;;  %v1917_v41 = vld [vmem:[#allocation2 + $0x100] sm:$0xff] }
 0x17c   : > { %3021 = vst.msk [vmem:[#allocation2 + $0x80] sm:$0xff] %vm243_vm1, %v2985_v40  ;;  %2381 = vst.msk [vmem:[#allocation2 + $0xa8] sm:$0xff] %vm243_vm1, %v2345_v48  ;;  %v2986_v18 = vadd.f32 %v2893_v56, %v2413_v33  ;;  %v1920_v40 = vld [vmem:[#allocation2 + $0x118] sm:$0xff] }
 0x17d   : > { %3024 = vst.msk [vmem:[#allocation2 + $0x98] sm:$0xff] %vm243_vm1, %v2988_v49 }
 0x17e   : > { %v6756_v46 = vpop.f32.mrb[76].mxu0  ;;  %3022 = vst.msk [vmem:[#allocation2 + $0x88] sm:$0xff] %vm243_vm1, %v2986_v18  ;;  %v6722_v51 = vpop.f32.mrb[76].mxu1 }
 0x17f   : > { %v2906_v23 = vpop.f32.mrb[77].mxu0  ;;  %v2350_v17 = vadd.f32 %v6722_v51, %v1911_v50  ;;  %v2277_v52 = vpop.f32.mrb[77].mxu1 }
 0x180   : > { %v6757_v15 = vpop.f32.mrb[78].mxu0  ;;  %v2418_v53 = vld [vmem:[#allocation2 + $0xb0] sm:$0xff]  ;;  %v2348_v43 = vadd.f32 %v2277_v52, %v1909_v57  ;;  %v6723_v60 = vpop.f32.mrb[78].mxu1 }
 0x181   : > { %v2909_v44 = vpop.f32.mrb[79].mxu0  ;;  %2386 = vst.msk [vmem:[#allocation2 + $0xd0] sm:$0xff] %vm243_vm1, %v2350_v17  ;;  %v2991_v62 = vadd.f32 %v6756_v46, %v2418_v53  ;;  %v2416_v1 = vld [vmem:[#allocation2 + $0xa0] sm:$0xff]  ;;  %v2351_v54 = vadd.f32 %v6723_v60, %v1912_v55  ;;  %v2280_v5 = vpop.f32.mrb[79].mxu1  ;;  %v1918_v46 = vld [vmem:[#allocation2 + $0x108] sm:$0xff] }
 0x182   : > { %2384 = vst.msk [vmem:[#allocation2 + $0xc0] sm:$0xff] %vm243_vm1, %v2348_v43  ;;  %v2989_v14 = vadd.f32 %v2906_v23, %v2416_v1  ;;  %v2419_v38 = vld [vmem:[#allocation2 + $0xb8] sm:$0xff]  ;;  %v2349_v63 = vadd.f32 %v2280_v5, %v1910_v4  ;;  %v3043_v43 = vld [vmem:[#allocation2 + $0x10] sm:$0xff] }
 0x183   : > { %3027 = vst.msk [vmem:[#allocation2 + $0xb0] sm:$0xff] %vm243_vm1, %v2991_v62  ;;  %2387 = vst.msk [vmem:[#allocation2 + $0xd8] sm:$0xff] %vm243_vm1, %v2351_v54  ;;  %v2992_v26 = vadd.f32 %v6757_v15, %v2419_v38  ;;  %v2417_v0 = vld [vmem:[#allocation2 + $0xa8] sm:$0xff]  ;;  %v3041_v62 = vld [vmem:[#allocation2] sm:$0xff] }
 0x184   : > { %3025 = vst.msk [vmem:[#allocation2 + $0xa0] sm:$0xff] %vm243_vm1, %v2989_v14  ;;  %2385 = vst.msk [vmem:[#allocation2 + $0xc8] sm:$0xff] %vm243_vm1, %v2349_v63  ;;  %v2990_v8 = vadd.f32 %v2909_v44, %v2417_v0  ;;  %v3044_v14 = vld [vmem:[#allocation2 + $0x18] sm:$0xff] }
 0x185   : > { %3028 = vst.msk [vmem:[#allocation2 + $0xb8] sm:$0xff] %vm243_vm1, %v2992_v26 }
 0x186   : > { %v6760_v39 = vpop.f32.mrb[80].mxu0  ;;  %3026 = vst.msk [vmem:[#allocation2 + $0xa8] sm:$0xff] %vm243_vm1, %v2990_v8  ;;  %v6726_v10 = vpop.f32.mrb[80].mxu1 }
 0x187   : > { %v2922_v31 = vpop.f32.mrb[81].mxu0  ;;  %v2354_v58 = vadd.f32 %v6726_v10, %v1915_v59  ;;  %v2293_v12 = vpop.f32.mrb[81].mxu1 }
 0x188   : > { %v6761_v13 = vpop.f32.mrb[82].mxu0  ;;  %v2422_v16 = vld [vmem:[#allocation2 + $0xd0] sm:$0xff]  ;;  %v2352_v6 = vadd.f32 %v2293_v12, %v1913_v7  ;;  %v6727_v21 = vpop.f32.mrb[82].mxu1 }
 0x189   : > { %v2925_v19 = vpop.f32.mrb[83].mxu0  ;;  %2390 = vst.msk [vmem:[#allocation2 + $0xf0] sm:$0xff] %vm243_vm1, %v2354_v58  ;;  %v2995_v22 = vadd.f32 %v6760_v39, %v2422_v16  ;;  %v2420_v24 = vld [vmem:[#allocation2 + $0xc0] sm:$0xff]  ;;  %v2355_v34 = vadd.f32 %v6727_v21, %v1916_v20  ;;  %v2296_v27 = vpop.f32.mrb[83].mxu1  ;;  %v3042_v39 = vld [vmem:[#allocation2 + $0x8] sm:$0xff] }
 0x18a   : > { %2388 = vst.msk [vmem:[#allocation2 + $0xe0] sm:$0xff] %vm243_vm1, %v2352_v6  ;;  %v2993_v28 = vadd.f32 %v2922_v31, %v2420_v24  ;;  %v2423_v29 = vld [vmem:[#allocation2 + $0xd8] sm:$0xff]  ;;  %v2353_v30 = vadd.f32 %v2296_v27, %v1914_v25  ;;  %v3047_v6 = vld [vmem:[#allocation2 + $0x30] sm:$0xff] }
 0x18b   : > { %3031 = vst.msk [vmem:[#allocation2 + $0xd0] sm:$0xff] %vm243_vm1, %v2995_v22  ;;  %2391 = vst.msk [vmem:[#allocation2 + $0xf8] sm:$0xff] %vm243_vm1, %v2355_v34  ;;  %v2996_v32 = vadd.f32 %v6761_v13, %v2423_v29  ;;  %v2421_v3 = vld [vmem:[#allocation2 + $0xc8] sm:$0xff]  ;;  %v3045_v22 = vld [vmem:[#allocation2 + $0x20] sm:$0xff] }
 0x18c   : > { %3029 = vst.msk [vmem:[#allocation2 + $0xc0] sm:$0xff] %vm243_vm1, %v2993_v28  ;;  %2389 = vst.msk [vmem:[#allocation2 + $0xe8] sm:$0xff] %vm243_vm1, %v2353_v30  ;;  %v2994_v35 = vadd.f32 %v2925_v19, %v2421_v3  ;;  %v3048_v28 = vld [vmem:[#allocation2 + $0x38] sm:$0xff] }
 0x18d   : > { %3032 = vst.msk [vmem:[#allocation2 + $0xd8] sm:$0xff] %vm243_vm1, %v2996_v32 }
 0x18e   : > { %v6764_v61 = vpop.f32.mrb[84].mxu0  ;;  %3030 = vst.msk [vmem:[#allocation2 + $0xc8] sm:$0xff] %vm243_vm1, %v2994_v35  ;;  %v6730_v2 = vpop.f32.mrb[84].mxu1 }
 0x18f   : > { %v2938_v37 = vpop.f32.mrb[85].mxu0  ;;  %v2358_v56 = vadd.f32 %v6730_v2, %v1919_v11  ;;  %v2309_v9 = vpop.f32.mrb[85].mxu1 }
 0x190   : > { %v6765_v36 = vpop.f32.mrb[86].mxu0  ;;  %v2426_v42 = vld [vmem:[#allocation2 + $0xf0] sm:$0xff]  ;;  %v2356_v45 = vadd.f32 %v2309_v9, %v1917_v41  ;;  %v6731_v47 = vpop.f32.mrb[86].mxu1 }
 0x191   : > { %v2941_v48 = vpop.f32.mrb[87].mxu0  ;;  %2394 = vst.msk [vmem:[#allocation2 + $0x110] sm:$0xff] %vm243_vm1, %v2358_v56  ;;  %v2999_v49 = vadd.f32 %v6764_v61, %v2426_v42  ;;  %v2424_v33 = vld [vmem:[#allocation2 + $0xe0] sm:$0xff]  ;;  %v2359_v18 = vadd.f32 %v6731_v47, %v1920_v40  ;;  %v2312_v50 = vpop.f32.mrb[87].mxu1  ;;  %v3046_v61 = vld [vmem:[#allocation2 + $0x28] sm:$0xff] }
 0x192   : > { %2392 = vst.msk [vmem:[#allocation2 + $0x100] sm:$0xff] %vm243_vm1, %v2356_v45  ;;  %v2997_v51 = vadd.f32 %v2938_v37, %v2424_v33  ;;  %v2427_v23 = vld [vmem:[#allocation2 + $0xf8] sm:$0xff]  ;;  %v2357_v17 = vadd.f32 %v2312_v50, %v1918_v46  ;;  %v3051_v45 = vld [vmem:[#allocation2 + $0x50] sm:$0xff] }
 0x193   : > { %3035 = vst.msk [vmem:[#allocation2 + $0xf0] sm:$0xff] %vm243_vm1, %v2999_v49  ;;  %2395 = vst.msk [vmem:[#allocation2 + $0x118] sm:$0xff] %vm243_vm1, %v2359_v18  ;;  %v3000_v57 = vadd.f32 %v6765_v36, %v2427_v23  ;;  %v2425_v52 = vld [vmem:[#allocation2 + $0xe8] sm:$0xff]  ;;  %v3049_v49 = vld [vmem:[#allocation2 + $0x40] sm:$0xff] }
 0x194   : > { %3033 = vst.msk [vmem:[#allocation2 + $0xe0] sm:$0xff] %vm243_vm1, %v2997_v51  ;;  %2393 = vst.msk [vmem:[#allocation2 + $0x108] sm:$0xff] %vm243_vm1, %v2357_v17  ;;  %v2998_v15 = vadd.f32 %v2941_v48, %v2425_v52  ;;  %v3052_v51 = vld [vmem:[#allocation2 + $0x58] sm:$0xff] }
 0x195   : > { %3036 = vst.msk [vmem:[#allocation2 + $0xf8] sm:$0xff] %vm243_vm1, %v3000_v57 }
 0x196   : > { %v6768_v53 = vpop.f32.mrb[88].mxu0  ;;  %3034 = vst.msk [vmem:[#allocation2 + $0xe8] sm:$0xff] %vm243_vm1, %v2998_v15  ;;  %v6774_v55 = vpop.f32.mrb[88].mxu1 }
 0x197   : > { %v2954_v60 = vpop.f32.mrb[89].mxu0  ;;  %v3483_v44 = vadd.f32 %v6774_v55, %v3043_v43  ;;  %v3338_v1 = vpop.f32.mrb[89].mxu1 }
 0x198   : > { %v6769_v54 = vpop.f32.mrb[90].mxu0  ;;  %v2430_v4 = vld [vmem:[#allocation2 + $0x110] sm:$0xff]  ;;  %v3481_v5 = vadd.f32 %v3338_v1, %v3041_v62  ;;  %v6775_v38 = vpop.f32.mrb[90].mxu1 }
 0x199   : > { %v2957_v63 = vpop.f32.mrb[91].mxu0  ;;  %v3003_v26 = vadd.f32 %v6768_v53, %v2430_v4  ;;  %3519 = vst.msk [vmem:[#allocation2 + $0x10] sm:$0xff] %vm243_vm1, %v3483_v44  ;;  %v2428_v0 = vld [vmem:[#allocation2 + $0x100] sm:$0xff]  ;;  %v3484_v8 = vadd.f32 %v6775_v38, %v3044_v14  ;;  %v3341_v59 = vpop.f32.mrb[91].mxu1  ;;  %v3050_v53 = vld [vmem:[#allocation2 + $0x48] sm:$0xff] }
 0x19a   : > { %v3001_v10 = vadd.f32 %v2954_v60, %v2428_v0  ;;  %3517 = vst.msk [vmem:[#allocation2] sm:$0xff] %vm243_vm1, %v3481_v5  ;;  %v2431_v31 = vld [vmem:[#allocation2 + $0x118] sm:$0xff]  ;;  %v3482_v58 = vadd.f32 %v3341_v59, %v3042_v39  ;;  %v3055_v5 = vld [vmem:[#allocation2 + $0x70] sm:$0xff] }
 0x19b   : > { %3039 = vst.msk [vmem:[#allocation2 + $0x110] sm:$0xff] %vm243_vm1, %v3003_v26  ;;  %v3004_v7 = vadd.f32 %v6769_v54, %v2431_v31  ;;  %3520 = vst.msk [vmem:[#allocation2 + $0x18] sm:$0xff] %vm243_vm1, %v3484_v8  ;;  %v2429_v12 = vld [vmem:[#allocation2 + $0x108] sm:$0xff]  ;;  %v3053_v26 = vld [vmem:[#allocation2 + $0x60] sm:$0xff] }
 0x19c   : > { %3037 = vst.msk [vmem:[#allocation2 + $0x100] sm:$0xff] %vm243_vm1, %v3001_v10  ;;  %v3002_v13 = vadd.f32 %v2957_v63, %v2429_v12  ;;  %3518 = vst.msk [vmem:[#allocation2 + $0x8] sm:$0xff] %vm243_vm1, %v3482_v58  ;;  %v3056_v10 = vld [vmem:[#allocation2 + $0x78] sm:$0xff] }
 0x19d   : > { %3040 = vst.msk [vmem:[#allocation2 + $0x118] sm:$0xff] %vm243_vm1, %v3004_v7 }
 0x19e   : > { %v6812_v16 = vpop.f32.mrb[92].mxu0  ;;  %3038 = vst.msk [vmem:[#allocation2 + $0x108] sm:$0xff] %vm243_vm1, %v3002_v13  ;;  %v6778_v20 = vpop.f32.mrb[92].mxu1 }
 0x19f   : > { %v3849_v21 = vpop.f32.mrb[93].mxu0  ;;  %v3487_v19 = vadd.f32 %v6778_v20, %v3047_v6  ;;  %v3354_v24 = vpop.f32.mrb[93].mxu1 }
 0x1a0   : > { %v6813_v34 = vpop.f32.mrb[94].mxu0  ;;  %v3555_v25 = vld [vmem:[#allocation2 + $0x10] sm:$0xff]  ;;  %v3485_v27 = vadd.f32 %v3354_v24, %v3045_v22  ;;  %v6779_v29 = vpop.f32.mrb[94].mxu1 }
 0x1a1   : > { %v3852_v30 = vpop.f32.mrb[95].mxu0  ;;  %3523 = vst.msk [vmem:[#allocation2 + $0x30] sm:$0xff] %vm243_vm1, %v3487_v19  ;;  %v3994_v32 = vadd.f32 %v6812_v16, %v3555_v25  ;;  %v3553_v3 = vld [vmem:[#allocation2] sm:$0xff]  ;;  %v3488_v35 = vadd.f32 %v6779_v29, %v3048_v28  ;;  %v3357_v11 = vpop.f32.mrb[95].mxu1  ;;  %v3054_v16 = vld [vmem:[#allocation2 + $0x68] sm:$0xff] }
 0x1a2   : > { %3521 = vst.msk [vmem:[#allocation2 + $0x20] sm:$0xff] %vm243_vm1, %v3485_v27  ;;  %v3992_v2 = vadd.f32 %v3849_v21, %v3553_v3  ;;  %v3556_v37 = vld [vmem:[#allocation2 + $0x18] sm:$0xff]  ;;  %v3486_v56 = vadd.f32 %v3357_v11, %v3046_v61  ;;  %v3059_v27 = vld [vmem:[#allocation2 + $0x90] sm:$0xff] }
 0x1a3   : > { %4030 = vst.msk [vmem:[#allocation2 + $0x10] sm:$0xff] %vm243_vm1, %v3994_v32  ;;  %3524 = vst.msk [vmem:[#allocation2 + $0x38] sm:$0xff] %vm243_vm1, %v3488_v35  ;;  %v3995_v41 = vadd.f32 %v6813_v34, %v3556_v37  ;;  %v3554_v9 = vld [vmem:[#allocation2 + $0x8] sm:$0xff]  ;;  %v3057_v32 = vld [vmem:[#allocation2 + $0x80] sm:$0xff] }
 0x1a4   : > { %4028 = vst.msk [vmem:[#allocation2] sm:$0xff] %vm243_vm1, %v3992_v2  ;;  %3522 = vst.msk [vmem:[#allocation2 + $0x28] sm:$0xff] %vm243_vm1, %v3486_v56  ;;  %v3993_v36 = vadd.f32 %v3852_v30, %v3554_v9  ;;  %v3060_v2 = vld [vmem:[#allocation2 + $0x98] sm:$0xff] }
 0x1a5   : > { %4031 = vst.msk [vmem:[#allocation2 + $0x18] sm:$0xff] %vm243_vm1, %v3995_v41 }
 0x1a6   : > { %v6816_v42 = vpop.f32.mrb[96].mxu0  ;;  %4029 = vst.msk [vmem:[#allocation2 + $0x8] sm:$0xff] %vm243_vm1, %v3993_v36  ;;  %v6782_v40 = vpop.f32.mrb[96].mxu1 }
 0x1a7   : > { %v3865_v47 = vpop.f32.mrb[97].mxu0  ;;  %v3491_v48 = vadd.f32 %v6782_v40, %v3051_v45  ;;  %v3370_v33 = vpop.f32.mrb[97].mxu1 }
 0x1a8   : > { %v6817_v18 = vpop.f32.mrb[98].mxu0  ;;  %v3559_v46 = vld [vmem:[#allocation2 + $0x30] sm:$0xff]  ;;  %v3489_v50 = vadd.f32 %v3370_v33, %v3049_v49  ;;  %v6783_v23 = vpop.f32.mrb[98].mxu1 }
 0x1a9   : > { %v3868_v17 = vpop.f32.mrb[99].mxu0  ;;  %3527 = vst.msk [vmem:[#allocation2 + $0x50] sm:$0xff] %vm243_vm1, %v3491_v48  ;;  %v3998_v57 = vadd.f32 %v6816_v42, %v3559_v46  ;;  %v3557_v52 = vld [vmem:[#allocation2 + $0x20] sm:$0xff]  ;;  %v3492_v15 = vadd.f32 %v6783_v23, %v3052_v51  ;;  %v3373_v43 = vpop.f32.mrb[99].mxu1  ;;  %v3058_v42 = vld [vmem:[#allocation2 + $0x88] sm:$0xff]  ;;  %v3063_v23 = vld [vmem:[#allocation2 + $0xb0] sm:$0xff] }
 0x1aa   : > { %3525 = vst.msk [vmem:[#allocation2 + $0x40] sm:$0xff] %vm243_vm1, %v3489_v50  ;;  %v3996_v55 = vadd.f32 %v3865_v47, %v3557_v52  ;;  %v3560_v60 = vld [vmem:[#allocation2 + $0x38] sm:$0xff]  ;;  %v3490_v44 = vadd.f32 %v3373_v43, %v3050_v53  ;;  %v8339_v50 = vpop.permute.xlu1 %5305 }
 0x1ab   : > { %4034 = vst.msk [vmem:[#allocation2 + $0x30] sm:$0xff] %vm243_vm1, %v3998_v57  ;;  %3528 = vst.msk [vmem:[#allocation2 + $0x58] sm:$0xff] %vm243_vm1, %v3492_v15  ;;  %v3999_v62 = vadd.f32 %v6817_v18, %v3560_v60  ;;  %v3558_v1 = vld [vmem:[#allocation2 + $0x28] sm:$0xff]  ;;  %v8335_v18 = vpop.permute.xlu0 %5295  ;;  %v3061_v15 = vld [vmem:[#allocation2 + $0xa0] sm:$0xff] }
 0x1ac   : > { %4032 = vst.msk [vmem:[#allocation2 + $0x20] sm:$0xff] %vm243_vm1, %v3996_v55  ;;  %3526 = vst.msk [vmem:[#allocation2 + $0x48] sm:$0xff] %vm243_vm1, %v3490_v44  ;;  %v3997_v54 = vadd.f32 %v3868_v17, %v3558_v1  ;;  %v3064_v44 = vld [vmem:[#allocation2 + $0xb8] sm:$0xff] }
 0x1ad   : > { %4035 = vst.msk [vmem:[#allocation2 + $0x38] sm:$0xff] %vm243_vm1, %v3999_v62 }
 0x1ae   : > { %v6820_v4 = vpop.f32.mrb[100].mxu0  ;;  %4033 = vst.msk [vmem:[#allocation2 + $0x28] sm:$0xff] %vm243_vm1, %v3997_v54  ;;  %v6786_v14 = vpop.f32.mrb[100].mxu1 }
 0x1af   : > { %v3881_v38 = vpop.f32.mrb[101].mxu0  ;;  %v3495_v63 = vadd.f32 %v6786_v14, %v3055_v5  ;;  %v3386_v0 = vpop.f32.mrb[101].mxu1  ;;  %v3062_v14 = vld [vmem:[#allocation2 + $0xa8] sm:$0xff] }
 0x1b0   : > { %v6821_v8 = vpop.f32.mrb[102].mxu0  ;;  %v3563_v39 = vld [vmem:[#allocation2 + $0x50] sm:$0xff]  ;;  %v3493_v59 = vadd.f32 %v3386_v0, %v3053_v26  ;;  %v6787_v31 = vpop.f32.mrb[102].mxu1 }
 0x1b1   : > { %v3884_v58 = vpop.f32.mrb[103].mxu0  ;;  %3531 = vst.msk [vmem:[#allocation2 + $0x70] sm:$0xff] %vm243_vm1, %v3495_v63  ;;  %v4002_v7 = vadd.f32 %v6820_v4, %v3563_v39  ;;  %v3561_v12 = vld [vmem:[#allocation2 + $0x40] sm:$0xff]  ;;  %v3496_v13 = vadd.f32 %v6787_v31, %v3056_v10  ;;  %v3389_v6 = vpop.f32.mrb[103].mxu1 }
 0x1b2   : > { %3529 = vst.msk [vmem:[#allocation2 + $0x60] sm:$0xff] %vm243_vm1, %v3493_v59  ;;  %v4000_v20 = vadd.f32 %v3881_v38, %v3561_v12  ;;  %v3564_v21 = vld [vmem:[#allocation2 + $0x58] sm:$0xff]  ;;  %v3494_v19 = vadd.f32 %v3389_v6, %v3054_v16  ;;  %v8347_v59 = vpop.permute.xlu0 %5300  ;;  %v8351_v31 = vpop.permute.xlu1 %5310  ;;  %v3065_v6 = vld [vmem:[#allocation2 + $0xc0] sm:$0xff] }
 0x1b3   : > { %4038 = vst.msk [vmem:[#allocation2 + $0x50] sm:$0xff] %vm243_vm1, %v4002_v7  ;;  %3532 = vst.msk [vmem:[#allocation2 + $0x78] sm:$0xff] %vm243_vm1, %v3496_v13  ;;  %v4003_v22 = vadd.f32 %v6821_v8, %v3564_v21  ;;  %v3562_v24 = vld [vmem:[#allocation2 + $0x48] sm:$0xff]  ;;  %v3067_v7 = vld [vmem:[#allocation2 + $0xd0] sm:$0xff] }
 0x1b4   : > { %4036 = vst.msk [vmem:[#allocation2 + $0x40] sm:$0xff] %vm243_vm1, %v4000_v20  ;;  %3530 = vst.msk [vmem:[#allocation2 + $0x68] sm:$0xff] %vm243_vm1, %v3494_v19  ;;  %v4001_v34 = vadd.f32 %v3884_v58, %v3562_v24  ;;  %v3068_v24 = vld [vmem:[#allocation2 + $0xd8] sm:$0xff] }
 0x1b5   : > { %4039 = vst.msk [vmem:[#allocation2 + $0x58] sm:$0xff] %vm243_vm1, %v4003_v22 }
 0x1b6   : > { %v6824_v25 = vpop.f32.mrb[104].mxu0  ;;  %4037 = vst.msk [vmem:[#allocation2 + $0x48] sm:$0xff] %vm243_vm1, %v4001_v34  ;;  %v6790_v28 = vpop.f32.mrb[104].mxu1 }
 0x1b7   : > { %v3897_v29 = vpop.f32.mrb[105].mxu0  ;;  %v3499_v30 = vadd.f32 %v6790_v28, %v3059_v27  ;;  %v3402_v3 = vpop.f32.mrb[105].mxu1 }
 0x1b8   : > { %v6825_v35 = vpop.f32.mrb[106].mxu0  ;;  %v3567_v61 = vld [vmem:[#allocation2 + $0x70] sm:$0xff]  ;;  %v3497_v11 = vadd.f32 %v3402_v3, %v3057_v32  ;;  %v6791_v37 = vpop.f32.mrb[106].mxu1 }
 0x1b9   : > { %v3900_v56 = vpop.f32.mrb[107].mxu0  ;;  %3535 = vst.msk [vmem:[#allocation2 + $0x90] sm:$0xff] %vm243_vm1, %v3499_v30  ;;  %v4006_v41 = vadd.f32 %v6824_v25, %v3567_v61  ;;  %v3565_v9 = vld [vmem:[#allocation2 + $0x60] sm:$0xff]  ;;  %v3500_v36 = vadd.f32 %v6791_v37, %v3060_v2  ;;  %v3405_v45 = vpop.f32.mrb[107].mxu1  ;;  %v3066_v30 = vld [vmem:[#allocation2 + $0xc8] sm:$0xff] }
 0x1ba   : > { %3533 = vst.msk [vmem:[#allocation2 + $0x80] sm:$0xff] %vm243_vm1, %v3497_v11  ;;  %v4004_v40 = vadd.f32 %v3897_v29, %v3565_v9  ;;  %v3568_v47 = vld [vmem:[#allocation2 + $0x78] sm:$0xff]  ;;  %v3498_v48 = vadd.f32 %v3405_v45, %v3058_v42  ;;  %v8359_v37 = vpop.permute.xlu0 %5315 }
 0x1bb   : > { %4042 = vst.msk [vmem:[#allocation2 + $0x70] sm:$0xff] %vm243_vm1, %v4006_v41  ;;  %3536 = vst.msk [vmem:[#allocation2 + $0x98] sm:$0xff] %vm243_vm1, %v3500_v36  ;;  %v4007_v49 = vadd.f32 %v6825_v35, %v3568_v47  ;;  %v3566_v33 = vld [vmem:[#allocation2 + $0x68] sm:$0xff]  ;;  %v8363_v41 = vpop.permute.xlu1 %5320  ;;  %v3071_v36 = vld [vmem:[#allocation2 + $0xf0] sm:$0xff] }
 0x1bc   : > { %4040 = vst.msk [vmem:[#allocation2 + $0x60] sm:$0xff] %vm243_vm1, %v4004_v40  ;;  %3534 = vst.msk [vmem:[#allocation2 + $0x88] sm:$0xff] %vm243_vm1, %v3498_v48  ;;  %v4005_v46 = vadd.f32 %v3900_v56, %v3566_v33  ;;  %v3069_v47 = vld [vmem:[#allocation2 + $0xe0] sm:$0xff] }
 0x1bd   : > { %4043 = vst.msk [vmem:[#allocation2 + $0x78] sm:$0xff] %vm243_vm1, %v4007_v49 }
 0x1be   : > { %v6828_v51 = vpop.f32.mrb[108].mxu0  ;;  %4041 = vst.msk [vmem:[#allocation2 + $0x68] sm:$0xff] %vm243_vm1, %v4005_v46  ;;  %v6794_v17 = vpop.f32.mrb[108].mxu1 }
 0x1bf   : > { %v3913_v57 = vpop.f32.mrb[109].mxu0  ;;  %v3503_v52 = vadd.f32 %v6794_v17, %v3063_v23  ;;  %v3418_v53 = vpop.f32.mrb[109].mxu1 }
 0x1c0   : > { %v6829_v43 = vpop.f32.mrb[110].mxu0  ;;  %v3571_v55 = vld [vmem:[#allocation2 + $0x90] sm:$0xff]  ;;  %v3501_v60 = vadd.f32 %v3418_v53, %v3061_v15  ;;  %v6795_v62 = vpop.f32.mrb[110].mxu1  ;;  %v3070_v53 = vld [vmem:[#allocation2 + $0xe8] sm:$0xff] }
 0x1c1   : > { %v3916_v1 = vpop.f32.mrb[111].mxu0  ;;  %3539 = vst.msk [vmem:[#allocation2 + $0xb0] sm:$0xff] %vm243_vm1, %v3503_v52  ;;  %v4010_v54 = vadd.f32 %v6828_v51, %v3571_v55  ;;  %v3569_v4 = vld [vmem:[#allocation2 + $0x80] sm:$0xff]  ;;  %v3504_v5 = vadd.f32 %v6795_v62, %v3064_v44  ;;  %v3421_v38 = vpop.f32.mrb[111].mxu1  ;;  %v3072_v51 = vld [vmem:[#allocation2 + $0xf8] sm:$0xff] }
 0x1c2   : > { %3537 = vst.msk [vmem:[#allocation2 + $0xa0] sm:$0xff] %vm243_vm1, %v3501_v60  ;;  %v4008_v63 = vadd.f32 %v3913_v57, %v3569_v4  ;;  %v3572_v26 = vld [vmem:[#allocation2 + $0x98] sm:$0xff]  ;;  %v3502_v0 = vadd.f32 %v3421_v38, %v3062_v14  ;;  %v3075_v38 = vld [vmem:[#allocation2 + $0x110] sm:$0xff] }
 0x1c3   : > { %4046 = vst.msk [vmem:[#allocation2 + $0x90] sm:$0xff] %vm243_vm1, %v4010_v54  ;;  %3540 = vst.msk [vmem:[#allocation2 + $0xb8] sm:$0xff] %vm243_vm1, %v3504_v5  ;;  %v4011_v8 = vadd.f32 %v6829_v43, %v3572_v26  ;;  %v3570_v39 = vld [vmem:[#allocation2 + $0x88] sm:$0xff]  ;;  %v8371_v54 = vpop.permute.xlu0 %5325  ;;  %v8375_v5 = vpop.permute.xlu1 %5330 }
 0x1c4   : > { %4044 = vst.msk [vmem:[#allocation2 + $0x80] sm:$0xff] %vm243_vm1, %v4008_v63  ;;  %3538 = vst.msk [vmem:[#allocation2 + $0xa8] sm:$0xff] %vm243_vm1, %v3502_v0  ;;  %v4009_v10 = vadd.f32 %v3916_v1, %v3570_v39 }
 0x1c5   : > { %4047 = vst.msk [vmem:[#allocation2 + $0x98] sm:$0xff] %vm243_vm1, %v4011_v8  ;;  %v3073_v8 = vld [vmem:[#allocation2 + $0x100] sm:$0xff] }
 0x1c6   : > { %v6832_v58 = vpop.f32.mrb[112].mxu0  ;;  %4045 = vst.msk [vmem:[#allocation2 + $0x88] sm:$0xff] %vm243_vm1, %v4009_v10  ;;  %v6798_v12 = vpop.f32.mrb[112].mxu1 }
 0x1c7   : > { %v3929_v13 = vpop.f32.mrb[113].mxu0  ;;  %v3507_v16 = vadd.f32 %v6798_v12, %v3067_v7  ;;  %v3434_v20 = vpop.f32.mrb[113].mxu1  ;;  %v3076_v12 = vld [vmem:[#allocation2 + $0x118] sm:$0xff] }
 0x1c8   : > { %v6833_v21 = vpop.f32.mrb[114].mxu0  ;;  %v3575_v19 = vld [vmem:[#allocation2 + $0xb0] sm:$0xff]  ;;  %v3505_v22 = vadd.f32 %v3434_v20, %v3065_v6  ;;  %v6799_v34 = vpop.f32.mrb[114].mxu1 }
 0x1c9   : > { %v3932_v25 = vpop.f32.mrb[115].mxu0  ;;  %3543 = vst.msk [vmem:[#allocation2 + $0xd0] sm:$0xff] %vm243_vm1, %v3507_v16  ;;  %v4014_v27 = vadd.f32 %v6832_v58, %v3575_v19  ;;  %v3573_v28 = vld [vmem:[#allocation2 + $0xa0] sm:$0xff]  ;;  %v3508_v29 = vadd.f32 %v6799_v34, %v3068_v24  ;;  %v3437_v32 = vpop.f32.mrb[115].mxu1  ;;  %v3074_v19 = vld [vmem:[#allocation2 + $0x108] sm:$0xff] }
 0x1ca   : > { %3541 = vst.msk [vmem:[#allocation2 + $0xc0] sm:$0xff] %vm243_vm1, %v3505_v22  ;;  %v4012_v3 = vadd.f32 %v3929_v13, %v3573_v28  ;;  %v3576_v35 = vld [vmem:[#allocation2 + $0xb8] sm:$0xff]  ;;  %v3506_v61 = vadd.f32 %v3437_v32, %v3066_v30  ;;  %v8387_v32 = vpop.permute.xlu1 %5340 }
 0x1cb   : > { %4050 = vst.msk [vmem:[#allocation2 + $0xb0] sm:$0xff] %vm243_vm1, %v4014_v27  ;;  %3544 = vst.msk [vmem:[#allocation2 + $0xd8] sm:$0xff] %vm243_vm1, %v3508_v29  ;;  %v4015_v11 = vadd.f32 %v6833_v21, %v3576_v35  ;;  %v3574_v2 = vld [vmem:[#allocation2 + $0xa8] sm:$0xff]  ;;  %v8383_v29 = vpop.permute.xlu0 %5335  ;;  %v4066_v35 = vld [vmem:[#allocation2 + $0x10] sm:$0xff] }
 0x1cc   : > { %4048 = vst.msk [vmem:[#allocation2 + $0xa0] sm:$0xff] %vm243_vm1, %v4012_v3  ;;  %3542 = vst.msk [vmem:[#allocation2 + $0xc8] sm:$0xff] %vm243_vm1, %v3506_v61  ;;  %v4013_v56 = vadd.f32 %v3932_v25, %v3574_v2 }
 0x1cd   : > { %4051 = vst.msk [vmem:[#allocation2 + $0xb8] sm:$0xff] %vm243_vm1, %v4015_v11 }
 0x1ce   : > { %v6836_v9 = vpop.f32.mrb[116].mxu0  ;;  %4049 = vst.msk [vmem:[#allocation2 + $0xa8] sm:$0xff] %vm243_vm1, %v4013_v56  ;;  %v6802_v42 = vpop.f32.mrb[116].mxu1  ;;  %v4064_v56 = vld [vmem:[#allocation2] sm:$0xff] }
 0x1cf   : > { %v3945_v45 = vpop.f32.mrb[117].mxu0  ;;  %v3511_v40 = vadd.f32 %v6802_v42, %v3071_v36  ;;  %v3450_v48 = vpop.f32.mrb[117].mxu1 }
 0x1d0   : > { %v6837_v49 = vpop.f32.mrb[118].mxu0  ;;  %v3579_v33 = vld [vmem:[#allocation2 + $0xd0] sm:$0xff]  ;;  %v3509_v46 = vadd.f32 %v3450_v48, %v3069_v47  ;;  %v6803_v23 = vpop.f32.mrb[118].mxu1 }
 0x1d1   : > { %v3948_v17 = vpop.f32.mrb[119].mxu0  ;;  %3547 = vst.msk [vmem:[#allocation2 + $0xf0] sm:$0xff] %vm243_vm1, %v3511_v40  ;;  %v4018_v57 = vadd.f32 %v6836_v9, %v3579_v33  ;;  %v3577_v52 = vld [vmem:[#allocation2 + $0xc0] sm:$0xff]  ;;  %v3512_v15 = vadd.f32 %v6803_v23, %v3072_v51  ;;  %v3453_v43 = vpop.f32.mrb[119].mxu1  ;;  %v4067_v40 = vld [vmem:[#allocation2 + $0x18] sm:$0xff]  ;;  %v4065_v51 = vld [vmem:[#allocation2 + $0x8] sm:$0xff] }
 0x1d2   : > { %3545 = vst.msk [vmem:[#allocation2 + $0xe0] sm:$0xff] %vm243_vm1, %v3509_v46  ;;  %v4016_v55 = vadd.f32 %v3945_v45, %v3577_v52  ;;  %v3580_v60 = vld [vmem:[#allocation2 + $0xd8] sm:$0xff]  ;;  %v3510_v44 = vadd.f32 %v3453_v43, %v3070_v53  ;;  %v8395_v43 = vpop.permute.xlu0 %5345 }
 0x1d3   : > { %4054 = vst.msk [vmem:[#allocation2 + $0xd0] sm:$0xff] %vm243_vm1, %v4018_v57  ;;  %3548 = vst.msk [vmem:[#allocation2 + $0xf8] sm:$0xff] %vm243_vm1, %v3512_v15  ;;  %v4019_v62 = vadd.f32 %v6837_v49, %v3580_v60  ;;  %v3578_v1 = vld [vmem:[#allocation2 + $0xc8] sm:$0xff]  ;;  %v8399_v60 = vpop.permute.xlu1 %5350 }
 0x1d4   : > { %4052 = vst.msk [vmem:[#allocation2 + $0xc0] sm:$0xff] %vm243_vm1, %v4016_v55  ;;  %3546 = vst.msk [vmem:[#allocation2 + $0xe8] sm:$0xff] %vm243_vm1, %v3510_v44  ;;  %v4017_v4 = vadd.f32 %v3948_v17, %v3578_v1 }
 0x1d5   : > { %4055 = vst.msk [vmem:[#allocation2 + $0xd8] sm:$0xff] %vm243_vm1, %v4019_v62  ;;  %v4070_v62 = vld [vmem:[#allocation2 + $0x30] sm:$0xff] }
 0x1d6   : > { %v6840_v14 = vpop.f32.mrb[120].mxu0  ;;  %4053 = vst.msk [vmem:[#allocation2 + $0xc8] sm:$0xff] %vm243_vm1, %v4017_v4  ;;  %v6806_v63 = vpop.f32.mrb[120].mxu1 }
 0x1d7   : > { %v3961_v26 = vpop.f32.mrb[121].mxu0  ;;  %v3515_v0 = vadd.f32 %v6806_v63, %v3075_v38  ;;  %v3466_v39 = vpop.f32.mrb[121].mxu1  ;;  %v4068_v38 = vld [vmem:[#allocation2 + $0x20] sm:$0xff] }
 0x1d8   : > { %v6841_v10 = vpop.f32.mrb[122].mxu0  ;;  %v3583_v58 = vld [vmem:[#allocation2 + $0xf0] sm:$0xff]  ;;  %v3513_v7 = vadd.f32 %v3466_v39, %v3073_v8  ;;  %v6807_v13 = vpop.f32.mrb[122].mxu1  ;;  %v4071_v39 = vld [vmem:[#allocation2 + $0x38] sm:$0xff] }
 0x1d9   : > { %v3964_v16 = vpop.f32.mrb[123].mxu0  ;;  %3551 = vst.msk [vmem:[#allocation2 + $0x110] sm:$0xff] %vm243_vm1, %v3515_v0  ;;  %v4022_v6 = vadd.f32 %v6840_v14, %v3583_v58  ;;  %v3581_v20 = vld [vmem:[#allocation2 + $0xe0] sm:$0xff]  ;;  %v3516_v21 = vadd.f32 %v6807_v13, %v3076_v12  ;;  %v3469_v22 = vpop.f32.mrb[123].mxu1 }
 0x1da   : > { %3549 = vst.msk [vmem:[#allocation2 + $0x100] sm:$0xff] %vm243_vm1, %v3513_v7  ;;  %v4020_v24 = vadd.f32 %v3961_v26, %v3581_v20  ;;  %v3584_v34 = vld [vmem:[#allocation2 + $0xf8] sm:$0xff]  ;;  %v3514_v25 = vadd.f32 %v3469_v22, %v3074_v19 }
 0x1db   : > { %4058 = vst.msk [vmem:[#allocation2 + $0xf0] sm:$0xff] %vm243_vm1, %v4022_v6  ;;  %3552 = vst.msk [vmem:[#allocation2 + $0x118] sm:$0xff] %vm243_vm1, %v3516_v21  ;;  %v4023_v27 = vadd.f32 %v6841_v10, %v3584_v34  ;;  %v3582_v28 = vld [vmem:[#allocation2 + $0xe8] sm:$0xff]  ;;  %v8407_v34 = vpop.permute.xlu0 %5355 }
 0x1dc   : > { %4056 = vst.msk [vmem:[#allocation2 + $0xe0] sm:$0xff] %vm243_vm1, %v4020_v24  ;;  %3550 = vst.msk [vmem:[#allocation2 + $0x108] sm:$0xff] %vm243_vm1, %v3514_v25  ;;  %v4021_v30 = vadd.f32 %v3964_v16, %v3582_v28  ;;  %v4069_v16 = vld [vmem:[#allocation2 + $0x28] sm:$0xff] }
 0x1dd   : > { %4059 = vst.msk [vmem:[#allocation2 + $0xf8] sm:$0xff] %vm243_vm1, %v4023_v27  ;;  %v8411_v27 = vpop.permute.xlu1 %5360 }
 0x1de   : > { %v6844_v3 = vpop.f32.mrb[124].mxu0  ;;  %4057 = vst.msk [vmem:[#allocation2 + $0xe8] sm:$0xff] %vm243_vm1, %v4021_v30  ;;  %v6850_v61 = vpop.f32.mrb[124].mxu1  ;;  %v4074_v30 = vld [vmem:[#allocation2 + $0x50] sm:$0xff] }
 0x1df   : > { %v3977_v11 = vpop.f32.mrb[125].mxu0  ;;  %v4639_v2 = vadd.f32 %v6850_v61, %v4066_v35  ;;  %v4494_v9 = vpop.f32.mrb[125].mxu1 }
 0x1e0   : > { %v6845_v36 = vpop.f32.mrb[126].mxu0  ;;  %v3587_v42 = vld [vmem:[#allocation2 + $0x110] sm:$0xff]  ;;  %v4637_v45 = vadd.f32 %v4494_v9, %v4064_v56  ;;  %v6851_v47 = vpop.f32.mrb[126].mxu1 }
 0x1e1   : > { %v3980_v48 = vpop.f32.mrb[127].mxu0  ;;  %v4026_v49 = vadd.f32 %v6844_v3, %v3587_v42  ;;  %4675 = vst.msk [vmem:[#allocation2 + $0x10] sm:$0xff] %vm243_vm1, %v4639_v2  ;;  %v3585_v33 = vld [vmem:[#allocation2 + $0x100] sm:$0xff]  ;;  %v4640_v46 = vadd.f32 %v6851_v47, %v4067_v40  ;;  %v4497_v23 = vpop.f32.mrb[127].mxu1  ;;  %v4075_v42 = vld [vmem:[#allocation2 + $0x58] sm:$0xff] }
 0x1e2   : > { %v4024_v17 = vadd.f32 %v3977_v11, %v3585_v33  ;;  %4673 = vst.msk [vmem:[#allocation2] sm:$0xff] %vm243_vm1, %v4637_v45  ;;  %v3588_v57 = vld [vmem:[#allocation2 + $0x118] sm:$0xff]  ;;  %v4638_v52 = vadd.f32 %v4497_v23, %v4065_v51  ;;  %v4072_v11 = vld [vmem:[#allocation2 + $0x40] sm:$0xff]  ;;  %v4073_v33 = vld [vmem:[#allocation2 + $0x48] sm:$0xff] }
 0x1e3   : > { %4062 = vst.msk [vmem:[#allocation2 + $0x110] sm:$0xff] %vm243_vm1, %v4026_v49  ;;  %v4027_v15 = vadd.f32 %v6845_v36, %v3588_v57  ;;  %4676 = vst.msk [vmem:[#allocation2 + $0x18] sm:$0xff] %vm243_vm1, %v4640_v46  ;;  %v3586_v53 = vld [vmem:[#allocation2 + $0x108] sm:$0xff] }
 0x1e4   : > { %4060 = vst.msk [vmem:[#allocation2 + $0x100] sm:$0xff] %vm243_vm1, %v4024_v17  ;;  %v4025_v55 = vadd.f32 %v3980_v48, %v3586_v53  ;;  %4674 = vst.msk [vmem:[#allocation2 + $0x8] sm:$0xff] %vm243_vm1, %v4638_v52 }
 0x1e5   : > { %4063 = vst.msk [vmem:[#allocation2 + $0x118] sm:$0xff] %vm243_vm1, %v4027_v15 }
 0x1e6   : > { %v6888_v44 = vpop.f32.mrb[128].mxu0  ;;  %4061 = vst.msk [vmem:[#allocation2 + $0x108] sm:$0xff] %vm243_vm1, %v4025_v55  ;;  %v6854_v1 = vpop.f32.mrb[128].mxu1 }
 0x1e7   : > { %v5006_v4 = vpop.f32.mrb[129].mxu0  ;;  %v4643_v14 = vadd.f32 %v6854_v1, %v4070_v62  ;;  %v4510_v63 = vpop.f32.mrb[129].mxu1 }
 0x1e8   : > { %v6889_v26 = vpop.f32.mrb[130].mxu0  ;;  %v4711_v0 = vld [vmem:[#allocation2 + $0x10] sm:$0xff]  ;;  %v4641_v8 = vadd.f32 %v4510_v63, %v4068_v38  ;;  %v6855_v10 = vpop.f32.mrb[130].mxu1 }
 0x1e9   : > { %v5009_v58 = vpop.f32.mrb[131].mxu0  ;;  %4679 = vst.msk [vmem:[#allocation2 + $0x30] sm:$0xff] %vm243_vm1, %v4643_v14  ;;  %v5151_v7 = vadd.f32 %v6888_v44, %v4711_v0  ;;  %v4709_v12 = vld [vmem:[#allocation2] sm:$0xff]  ;;  %v4644_v13 = vadd.f32 %v6855_v10, %v4071_v39  ;;  %v4513_v6 = vpop.f32.mrb[131].mxu1 }
 0x1ea   : > { %4677 = vst.msk [vmem:[#allocation2 + $0x20] sm:$0xff] %vm243_vm1, %v4641_v8  ;;  %v5149_v20 = vadd.f32 %v5006_v4, %v4709_v12  ;;  %v4712_v21 = vld [vmem:[#allocation2 + $0x18] sm:$0xff]  ;;  %v4642_v19 = vadd.f32 %v4513_v6, %v4069_v16  ;;  %v8421_v44 = vpop.permute.xlu0 %5365  ;;  %v8431_v4 = vpop.permute.xlu1 %5370 }
 0x1eb   : > { %5187 = vst.msk [vmem:[#allocation2 + $0x10] sm:$0xff] %vm243_vm1, %v5151_v7  ;;  %4680 = vst.msk [vmem:[#allocation2 + $0x38] sm:$0xff] %vm243_vm1, %v4644_v13  ;;  %v5152_v22 = vadd.f32 %v6889_v26, %v4712_v21  ;;  %v4710_v24 = vld [vmem:[#allocation2 + $0x8] sm:$0xff] }
 0x1ec   : > { %5185 = vst.msk [vmem:[#allocation2] sm:$0xff] %vm243_vm1, %v5149_v20  ;;  %4678 = vst.msk [vmem:[#allocation2 + $0x28] sm:$0xff] %vm243_vm1, %v4642_v19  ;;  %v5150_v25 = vadd.f32 %v5009_v58, %v4710_v24  ;;  %v4078_v19 = vld [vmem:[#allocation2 + $0x70] sm:$0xff] }
 0x1ed   : > { %5188 = vst.msk [vmem:[#allocation2 + $0x18] sm:$0xff] %vm243_vm1, %v5152_v22 }
 0x1ee   : > { %v6892_v28 = vpop.f32.mrb[132].mxu0  ;;  %5186 = vst.msk [vmem:[#allocation2 + $0x8] sm:$0xff] %vm243_vm1, %v5150_v25  ;;  %v6858_v3 = vpop.f32.mrb[132].mxu1 }
 0x1ef   : > { %v5022_v35 = vpop.f32.mrb[133].mxu0  ;;  %v4647_v61 = vadd.f32 %v6858_v3, %v4074_v30  ;;  %v4526_v2 = vpop.f32.mrb[133].mxu1 }
 0x1f0   : > { %v6893_v56 = vpop.f32.mrb[134].mxu0  ;;  %v4715_v9 = vld [vmem:[#allocation2 + $0x30] sm:$0xff]  ;;  %v4645_v36 = vadd.f32 %v4526_v2, %v4072_v11  ;;  %v6859_v45 = vpop.f32.mrb[134].mxu1  ;;  %v4079_v2 = vld [vmem:[#allocation2 + $0x78] sm:$0xff] }
 0x1f1   : > { %v5025_v40 = vpop.f32.mrb[135].mxu0  ;;  %4683 = vst.msk [vmem:[#allocation2 + $0x50] sm:$0xff] %vm243_vm1, %v4647_v61  ;;  %v5155_v47 = vadd.f32 %v6892_v28, %v4715_v9  ;;  %v4713_v48 = vld [vmem:[#allocation2 + $0x20] sm:$0xff]  ;;  %v4648_v49 = vadd.f32 %v6859_v45, %v4075_v42  ;;  %v4529_v46 = vpop.f32.mrb[135].mxu1 }
 0x1f2   : > { %v5223_v51 = vld [vmem:[#allocation2 + $0x10] sm:$0xff]  ;;  %4681 = vst.msk [vmem:[#allocation2 + $0x40] sm:$0xff] %vm243_vm1, %v4645_v36  ;;  %v5153_v23 = vadd.f32 %v5022_v35, %v4713_v48  ;;  %v4716_v17 = vld [vmem:[#allocation2 + $0x38] sm:$0xff]  ;;  %v4646_v57 = vadd.f32 %v4529_v46, %v4073_v33  ;;  %v4076_v61 = vld [vmem:[#allocation2 + $0x60] sm:$0xff] }
 0x1f3   : > { %v5475_v52 = vmul.f32 %v8339_v50, %v5223_v51  ;;  %v5221_v15 = vld [vmem:[#allocation2] sm:$0xff]  ;;  %5191 = vst.msk [vmem:[#allocation2 + $0x30] sm:$0xff] %vm243_vm1, %v5155_v47  ;;  %4684 = vst.msk [vmem:[#allocation2 + $0x58] sm:$0xff] %vm243_vm1, %v4648_v49  ;;  %v5156_v53 = vadd.f32 %v6893_v56, %v4716_v17  ;;  %v4714_v55 = vld [vmem:[#allocation2 + $0x28] sm:$0xff] }
 0x1f4   : > { %v5473_v62 = vmul.f32 %v8335_v18, %v5221_v15  ;;  %v5224_v1 = vld [vmem:[#allocation2 + $0x18] sm:$0xff]  ;;  %5189 = vst.msk [vmem:[#allocation2 + $0x20] sm:$0xff] %vm243_vm1, %v5153_v23  ;;  %4682 = vst.msk [vmem:[#allocation2 + $0x48] sm:$0xff] %vm243_vm1, %v4646_v57  ;;  %v5154_v50 = vadd.f32 %v5025_v40, %v4714_v55  ;;  %v4077_v23 = vld [vmem:[#allocation2 + $0x68] sm:$0xff]  ;;  %v8453_v57 = vpop.permute.xlu0 %5375 }
 0x1f5   : > { %v6375_v14 = vpack.c.bf16 %v5475_v52, %v5475_v52  ;;  %v5476_v38 = vmul.f32 %v8351_v31, %v5224_v1  ;;  %v5222_v63 = vld [vmem:[#allocation2 + $0x8] sm:$0xff]  ;;  %5192 = vst.msk [vmem:[#allocation2 + $0x38] sm:$0xff] %vm243_vm1, %v5156_v53  ;;  %v5693_v58 = vsel %vm243_vm1, %v5475_v52, 0.0  ;;  %v5771_v7 = vmul.f32 %v5475_v52, %v5475_v52 }
 0x1f6   : > { %v6896_v26 = vpop.f32.mrb[136].mxu0  ;;  %v6373_v0 = vpack.c.bf16 %v5473_v62, %v5473_v62  ;;  %v5769_v8 = vmul.f32 %v5473_v62, %v5473_v62  ;;  %v5474_v18 = vmul.f32 %v8347_v59, %v5222_v63  ;;  %5190 = vst.msk [vmem:[#allocation2 + $0x28] sm:$0xff] %vm243_vm1, %v5154_v50  ;;  %v6862_v39 = vpop.f32.mrb[136].mxu1  ;;  %v5690_v31 = vsel %vm243_vm1, %v5473_v62, 0.0 }
 0x1f7   : > { %v5038_v10 = vpop.f32.mrb[137].mxu0  ;;  %5656 = vst.msk [vmem:[%s8426_s27 + $0x8] sm:$0xf] %vm5653_vm8, %v6375_v14  ;;  %v6376_v12 = vpack.c.bf16 %v5476_v38, %v5476_v38  ;;  %v4542_v13 = vpop.f32.mrb[137].mxu1  ;;  %v5772_v6 = vmul.f32 %v5476_v38, %v5476_v38  ;;  %v4651_v3 = vadd.f32 %v6862_v39, %v4078_v19  ;;  %v5808_v52 = vsel %vm243_vm1, %v5771_v7, 0.0 }
 0x1f8   : > { %v6897_v16 = vpop.f32.mrb[138].mxu0  ;;  %5654 = vst.msk [vmem:[%s8426_s27] sm:$0xf] %vm5653_vm8, %v6373_v0  ;;  %v6374_v20 = vpack.c.bf16 %v5474_v18, %v5474_v18  ;;  %v5691_v59 = vsel %vm243_vm1, %v5474_v18, 0.0  ;;  %v5770_v21 = vmul.f32 %v5474_v18, %v5474_v18  ;;  %v4719_v22 = vld [vmem:[#allocation2 + $0x50] sm:$0xff]  ;;  %v6863_v24 = vpop.f32.mrb[138].mxu1  ;;  %v4649_v42 = vadd.f32 %v4542_v13, %v4076_v61 }
 0x1f9   : > { %v5041_v25 = vpop.f32.mrb[139].mxu0  ;;  %v5805_v28 = vsel %vm243_vm1, %v5769_v8, 0.0  ;;  %5657 = vst.msk [vmem:[%s8426_s27 + $0xc] sm:$0xf] %vm5653_vm8, %v6376_v12  ;;  %v5692_v30 = vadd.f32 %v5691_v59, %v5690_v31  ;;  %v5159_v35 = vadd.f32 %v6896_v26, %v4719_v22  ;;  %v4717_v11 = vld [vmem:[#allocation2 + $0x40] sm:$0xff]  ;;  %v4545_v56 = vpop.f32.mrb[139].mxu1  ;;  %v4652_v40 = vadd.f32 %v6863_v24, %v4079_v2 }
 0x1fa   : > { %5655 = vst.msk [vmem:[%s8426_s27 + $0x4] sm:$0xf] %vm5653_vm8, %v6374_v20  ;;  %v5806_v9 = vsel %vm243_vm1, %v5770_v21, 0.0  ;;  %v5227_v36 = vld [vmem:[#allocation2 + $0x30] sm:$0xff]  ;;  %v5157_v45 = vadd.f32 %v5038_v10, %v4717_v11  ;;  %v4720_v47 = vld [vmem:[#allocation2 + $0x58] sm:$0xff]  ;;  %v8460_v62 = vpop.permute.xlu1 %5380  ;;  %v5695_v1 = vsel %vm243_vm1, %v5476_v38, 0.0 }
 0x1fb   : > { %v5694_v48 = vadd.f32 %v5693_v58, %v5692_v30  ;;  %v5807_v49 = vadd.f32 %v5806_v9, %v5805_v28  ;;  %v5479_v33 = vmul.f32 %v8371_v54, %v5227_v36  ;;  %v5225_v46 = vld [vmem:[#allocation2 + $0x20] sm:$0xff]  ;;  %4687 = vst.msk [vmem:[#allocation2 + $0x70] sm:$0xff] %vm243_vm1, %v4651_v3  ;;  %5195 = vst.msk [vmem:[#allocation2 + $0x50] sm:$0xff] %vm243_vm1, %v5159_v35  ;;  %v4718_v17 = vld [vmem:[#allocation2 + $0x48] sm:$0xff]  ;;  %v5810_v50 = vsel %vm243_vm1, %v5772_v6, 0.0 }
 0x1fc   : > { %v5160_v51 = vadd.f32 %v6897_v16, %v4720_v47  ;;  %v5477_v15 = vmul.f32 %v8359_v37, %v5225_v46  ;;  %v5228_v53 = vld [vmem:[#allocation2 + $0x38] sm:$0xff]  ;;  %4685 = vst.msk [vmem:[#allocation2 + $0x60] sm:$0xff] %vm243_vm1, %v4649_v42  ;;  %5193 = vst.msk [vmem:[#allocation2 + $0x40] sm:$0xff] %vm243_vm1, %v5157_v45  ;;  %v4650_v54 = vadd.f32 %v4545_v56, %v4077_v23  ;;  %v4082_v13 = vld [vmem:[#allocation2 + $0x90] sm:$0xff]  ;;  %v8483_v46 = vpop.permute.xlu0 %5385 }
 0x1fd   : > { %4688 = vst.msk [vmem:[#allocation2 + $0x78] sm:$0xff] %vm243_vm1, %v4652_v40  ;;  %v5158_v55 = vadd.f32 %v5041_v25, %v4718_v17  ;;  %v5809_v14 = vadd.f32 %v5808_v52, %v5807_v49  ;;  %v6379_v63 = vpack.c.bf16 %v5479_v33, %v5479_v33  ;;  %v5226_v26 = vld [vmem:[#allocation2 + $0x28] sm:$0xff]  ;;  %v5696_v8 = vadd.f32 %v5695_v1, %v5694_v48  ;;  %v4080_v16 = vld [vmem:[#allocation2 + $0x80] sm:$0xff] }
 0x1fe   : > { %5196 = vst.msk [vmem:[#allocation2 + $0x58] sm:$0xff] %vm243_vm1, %v5160_v51  ;;  %v6900_v37 = vpop.f32.mrb[140].mxu0  ;;  %v6377_v0 = vpack.c.bf16 %v5477_v15, %v5477_v15  ;;  %v5697_v18 = vsel %vm243_vm1, %v5477_v15, 0.0  ;;  %v5773_v39 = vmul.f32 %v5477_v15, %v5477_v15  ;;  %4686 = vst.msk [vmem:[#allocation2 + $0x68] sm:$0xff] %vm243_vm1, %v4650_v54  ;;  %v6866_v10 = vpop.f32.mrb[140].mxu1  ;;  %v5775_v58 = vmul.f32 %v5479_v33, %v5479_v33 }
 0x1ff   : > { %5194 = vst.msk [vmem:[#allocation2 + $0x48] sm:$0xff] %vm243_vm1, %v5158_v55  ;;  %v5054_v38 = vpop.f32.mrb[141].mxu0  ;;  %v5811_v7 = vadd.f32 %v5810_v50, %v5809_v14  ;;  %v5480_v31 = vmul.f32 %v8375_v5, %v5228_v53  ;;  %v5478_v12 = vmul.f32 %v8363_v41, %v5226_v26  ;;  %v4558_v6 = vpop.f32.mrb[141].mxu1  ;;  %v5698_v59 = vadd.f32 %v5697_v18, %v5696_v8  ;;  %v4083_v41 = vld [vmem:[#allocation2 + $0x98] sm:$0xff] }
 0x200   : > { %5660 = vst.msk [vmem:[%s8426_s27 + $0x18] sm:$0xf] %vm5653_vm8, %v6379_v63  ;;  %v6901_v20 = vpop.f32.mrb[142].mxu0  ;;  %5658 = vst.msk [vmem:[%s8426_s27 + $0x10] sm:$0xf] %vm5653_vm8, %v6377_v0  ;;  %v5812_v21 = vsel %vm243_vm1, %v5773_v39, 0.0  ;;  %v4655_v19 = vadd.f32 %v6866_v10, %v4082_v13  ;;  %v4653_v22 = vadd.f32 %v4558_v6, %v4080_v16  ;;  %v8490_v53 = vpop.permute.xlu1 %5390 }
 0x201   : > { %v6867_v24 = vpop.f32.mrb[142].mxu1  ;;  %v5057_v25 = vpop.f32.mrb[143].mxu0  ;;  %v5701_v28 = vsel %vm243_vm1, %v5479_v33, 0.0  ;;  %v5813_v30 = vadd.f32 %v5812_v21, %v5811_v7  ;;  %v6380_v5 = vpack.c.bf16 %v5480_v31, %v5480_v31  ;;  %v5776_v3 = vmul.f32 %v5480_v31, %v5480_v31  ;;  %v4081_v7 = vld [vmem:[#allocation2 + $0x88] sm:$0xff] }
 0x202   : > { %v4561_v35 = vpop.f32.mrb[143].mxu1  ;;  %v6378_v61 = vpack.c.bf16 %v5478_v12, %v5478_v12  ;;  %v5699_v11 = vsel %vm243_vm1, %v5478_v12, 0.0  ;;  %v5774_v2 = vmul.f32 %v5478_v12, %v5478_v12  ;;  %v5231_v56 = vld [vmem:[#allocation2 + $0x50] sm:$0xff]  ;;  %4691 = vst.msk [vmem:[#allocation2 + $0x90] sm:$0xff] %vm243_vm1, %v4655_v19  ;;  %4689 = vst.msk [vmem:[#allocation2 + $0x80] sm:$0xff] %vm243_vm1, %v4653_v22  ;;  %v4656_v36 = vadd.f32 %v6867_v24, %v4083_v41 }
 0x203   : > { %v4723_v9 = vld [vmem:[#allocation2 + $0x70] sm:$0xff]  ;;  %v5816_v42 = vsel %vm243_vm1, %v5775_v58, 0.0  ;;  %5661 = vst.msk [vmem:[%s8426_s27 + $0x1c] sm:$0xf] %vm5653_vm8, %v6380_v5  ;;  %v5700_v45 = vadd.f32 %v5699_v11, %v5698_v59  ;;  %v5483_v40 = vmul.f32 %v8395_v43, %v5231_v56  ;;  %v5229_v47 = vld [vmem:[#allocation2 + $0x40] sm:$0xff]  ;;  %v5703_v43 = vsel %vm243_vm1, %v5480_v31, 0.0 }
 0x204   : > { %v5163_v48 = vadd.f32 %v6900_v37, %v4723_v9  ;;  %v4721_v49 = vld [vmem:[#allocation2 + $0x60] sm:$0xff]  ;;  %v4724_v33 = vld [vmem:[#allocation2 + $0x78] sm:$0xff]  ;;  %5659 = vst.msk [vmem:[%s8426_s27 + $0x14] sm:$0xf] %vm5653_vm8, %v6378_v61  ;;  %v5814_v51 = vsel %vm243_vm1, %v5774_v2, 0.0  ;;  %v5481_v23 = vmul.f32 %v8383_v29, %v5229_v47  ;;  %v5818_v29 = vsel %vm243_vm1, %v5776_v3, 0.0 }
 0x205   : > { %v5232_v17 = vld [vmem:[#allocation2 + $0x58] sm:$0xff]  ;;  %v5161_v52 = vadd.f32 %v5054_v38, %v4721_v49  ;;  %4692 = vst.msk [vmem:[#allocation2 + $0x98] sm:$0xff] %vm243_vm1, %v4656_v36  ;;  %v5164_v15 = vadd.f32 %v6901_v20, %v4724_v33  ;;  %v5702_v54 = vadd.f32 %v5701_v28, %v5700_v45  ;;  %v5815_v55 = vadd.f32 %v5814_v51, %v5813_v30  ;;  %v4722_v14 = vld [vmem:[#allocation2 + $0x68] sm:$0xff]  ;;  %v4084_v9 = vld [vmem:[#allocation2 + $0xa0] sm:$0xff]  ;;  %v8519_v51 = vpop.permute.xlu1 %5400 }
 0x206   : > { %v6383_v1 = vpack.c.bf16 %v5483_v40, %v5483_v40  ;;  %v5230_v50 = vld [vmem:[#allocation2 + $0x48] sm:$0xff]  ;;  %5199 = vst.msk [vmem:[#allocation2 + $0x70] sm:$0xff] %vm243_vm1, %v5163_v48  ;;  %v6904_v63 = vpop.f32.mrb[144].mxu0  ;;  %v6381_v26 = vpack.c.bf16 %v5481_v23, %v5481_v23  ;;  %v5705_v37 = vsel %vm243_vm1, %v5481_v23, 0.0  ;;  %v5777_v0 = vmul.f32 %v5481_v23, %v5481_v23  ;;  %v6870_v8 = vpop.f32.mrb[144].mxu1  ;;  %v4087_v33 = vld [vmem:[#allocation2 + $0xb8] sm:$0xff] }
 0x207   : > { %5197 = vst.msk [vmem:[#allocation2 + $0x60] sm:$0xff] %vm243_vm1, %v5161_v52  ;;  %5200 = vst.msk [vmem:[#allocation2 + $0x78] sm:$0xff] %vm243_vm1, %v5164_v15  ;;  %v5070_v18 = vpop.f32.mrb[145].mxu0  ;;  %v5817_v39 = vadd.f32 %v5816_v42, %v5815_v55  ;;  %v5704_v10 = vadd.f32 %v5703_v43, %v5702_v54  ;;  %v5484_v38 = vmul.f32 %v8399_v60, %v5232_v17  ;;  %v4574_v31 = vpop.f32.mrb[145].mxu1  ;;  %v5709_v19 = vsel %vm243_vm1, %v5483_v40, 0.0  ;;  %v4085_v55 = vld [vmem:[#allocation2 + $0xa8] sm:$0xff] }
 0x208   : > { %5664 = vst.msk [vmem:[%s8426_s27 + $0x28] sm:$0xf] %vm5653_vm8, %v6383_v1  ;;  %v5482_v58 = vmul.f32 %v8387_v32, %v5230_v50  ;;  %v6905_v12 = vpop.f32.mrb[146].mxu0  ;;  %v5779_v13 = vmul.f32 %v5483_v40, %v5483_v40  ;;  %5662 = vst.msk [vmem:[%s8426_s27 + $0x20] sm:$0xf] %vm5653_vm8, %v6381_v26  ;;  %v5820_v16 = vsel %vm243_vm1, %v5777_v0, 0.0  ;;  %v4654_v6 = vadd.f32 %v4561_v35, %v4081_v7  ;;  %v8513_v42 = vpop.permute.xlu0 %5395 }
 0x209   : > { %v5162_v20 = vadd.f32 %v5057_v25, %v4722_v14  ;;  %v6871_v59 = vpop.f32.mrb[146].mxu1  ;;  %v8505_v21 = vpop.f32.mrb[147].mxu0  ;;  %v5706_v22 = vadd.f32 %v5705_v37, %v5704_v10  ;;  %v5819_v60 = vadd.f32 %v5818_v29, %v5817_v39  ;;  %v6384_v24 = vpack.c.bf16 %v5484_v38, %v5484_v38  ;;  %v4727_v32 = vld [vmem:[#allocation2 + $0x90] sm:$0xff]  ;;  %v4725_v28 = vld [vmem:[#allocation2 + $0x80] sm:$0xff] }
 0x20a   : > { %v4577_v30 = vpop.f32.mrb[147].mxu1  ;;  %v5780_v5 = vmul.f32 %v5484_v38, %v5484_v38  ;;  %v6382_v3 = vpack.c.bf16 %v5482_v58, %v5482_v58  ;;  %v5707_v41 = vsel %vm243_vm1, %v5482_v58, 0.0  ;;  %v5778_v61 = vmul.f32 %v5482_v58, %v5482_v58  ;;  %4690 = vst.msk [vmem:[#allocation2 + $0x88] sm:$0xff] %vm243_vm1, %v4654_v6  ;;  %v4086_v25 = vld [vmem:[#allocation2 + $0xb0] sm:$0xff] }
 0x20b   : > { %5198 = vst.msk [vmem:[#allocation2 + $0x68] sm:$0xff] %vm243_vm1, %v5162_v20  ;;  %v5821_v35 = vadd.f32 %v5820_v16, %v5819_v60  ;;  %v5708_v11 = vadd.f32 %v5707_v41, %v5706_v22  ;;  %v4659_v2 = vadd.f32 %v6870_v8, %v4086_v25  ;;  %v5167_v56 = vadd.f32 %v6904_v63, %v4727_v32  ;;  %v4090_v32 = vld [vmem:[#allocation2 + $0xd0] sm:$0xff] }
 0x20c   : > { %5665 = vst.msk [vmem:[%s8426_s27 + $0x2c] sm:$0xf] %vm5653_vm8, %v6384_v24  ;;  %v4728_v36 = vld [vmem:[#allocation2 + $0x98] sm:$0xff]  ;;  %v5824_v45 = vsel %vm243_vm1, %v5779_v13, 0.0  ;;  %5663 = vst.msk [vmem:[%s8426_s27 + $0x24] sm:$0xf] %vm5653_vm8, %v6382_v3  ;;  %v4657_v48 = vadd.f32 %v4574_v31, %v4084_v9  ;;  %v5165_v49 = vadd.f32 %v5070_v18, %v4725_v28  ;;  %v4660_v54 = vadd.f32 %v6871_v59, %v4087_v33 }
 0x20d   : > { %v5822_v40 = vsel %vm243_vm1, %v5778_v61, 0.0  ;;  %v5235_v47 = vld [vmem:[#allocation2 + $0x70] sm:$0xff]  ;;  %v5710_v23 = vadd.f32 %v5709_v19, %v5708_v11  ;;  %4695 = vst.msk [vmem:[#allocation2 + $0xb0] sm:$0xff] %vm243_vm1, %v4659_v2  ;;  %5203 = vst.msk [vmem:[#allocation2 + $0x90] sm:$0xff] %vm243_vm1, %v5167_v56  ;;  %v5168_v63 = vadd.f32 %v6905_v12, %v4728_v36  ;;  %v5711_v37 = vsel %vm243_vm1, %v5484_v38, 0.0  ;;  %v4088_v28 = vld [vmem:[#allocation2 + $0xc0] sm:$0xff]  ;;  %v8552_v61 = vpop.permute.xlu0 %5405  ;;  %v8557_v36 = vpop.permute.xlu1 %5410 }
 0x20e   : > { %v5823_v17 = vadd.f32 %v5822_v40, %v5821_v35  ;;  %v5487_v52 = vmul.f32 %v8421_v44, %v5235_v47  ;;  %v5233_v15 = vld [vmem:[#allocation2 + $0x60] sm:$0xff]  ;;  %v5236_v43 = vld [vmem:[#allocation2 + $0x78] sm:$0xff]  ;;  %v6908_v1 = vpop.f32.mrb[148].mxu0  ;;  %4693 = vst.msk [vmem:[#allocation2 + $0xa0] sm:$0xff] %vm243_vm1, %v4657_v48  ;;  %5201 = vst.msk [vmem:[#allocation2 + $0x80] sm:$0xff] %vm243_vm1, %v5165_v49  ;;  %v4658_v44 = vadd.f32 %v4577_v30, %v4085_v55  ;;  %v6874_v29 = vpop.f32.mrb[148].mxu1 }
 0x20f   : > { %v5485_v50 = vmul.f32 %v8407_v34, %v5233_v15  ;;  %v8526_v14 = vmul.f32 %v8431_v4, %v5236_v43  ;;  %v5086_v26 = vpop.f32.mrb[149].mxu0  ;;  %v5826_v0 = vsel %vm243_vm1, %v5780_v5, 0.0  ;;  %4696 = vst.msk [vmem:[#allocation2 + $0xb8] sm:$0xff] %vm243_vm1, %v4660_v54  ;;  %v4590_v34 = vpop.f32.mrb[149].mxu1  ;;  %v5712_v10 = vadd.f32 %v5711_v37, %v5710_v23  ;;  %5204 = vst.msk [vmem:[#allocation2 + $0x98] sm:$0xff] %vm243_vm1, %v5168_v63  ;;  %v4091_v9 = vld [vmem:[#allocation2 + $0xd8] sm:$0xff] }
 0x210   : > { %v5825_v8 = vadd.f32 %v5824_v45, %v5823_v17  ;;  %v6387_v18 = vpack.c.bf16 %v5487_v52, %v5487_v52  ;;  %v8533_v4 = vpop.f32.mrb[150].mxu0  ;;  %4694 = vst.msk [vmem:[#allocation2 + $0xa8] sm:$0xff] %vm243_vm1, %v4658_v44  ;;  %v6875_v38 = vpop.f32.mrb[150].mxu1  ;;  %v5717_v12 = vsel %vm243_vm1, %v5487_v52, 0.0  ;;  %v5783_v19 = vmul.f32 %v5487_v52, %v5487_v52  ;;  %v4089_v33 = vld [vmem:[#allocation2 + $0xc8] sm:$0xff] }
 0x211   : > { %v6385_v39 = vpack.c.bf16 %v5485_v50, %v5485_v50  ;;  %v5713_v58 = vsel %vm243_vm1, %v5485_v50, 0.0  ;;  %v5781_v7 = vmul.f32 %v5485_v50, %v5485_v50  ;;  %v8538_v31 = vpop.f32.mrb[151].mxu0  ;;  %v6388_v16 = vpack.c.bf16 %v8526_v14, %v8526_v14  ;;  %v4726_v20 = vld [vmem:[#allocation2 + $0x88] sm:$0xff]  ;;  %v4593_v59 = vpop.f32.mrb[151].mxu1 }
 0x212   : > { %5668 = vst.msk [vmem:[%s8426_s27 + $0x38] sm:$0xf] %vm5653_vm8, %v6387_v18  ;;  %v5827_v13 = vadd.f32 %v5826_v0, %v5825_v8  ;;  %v5234_v6 = vld [vmem:[#allocation2 + $0x68] sm:$0xff]  ;;  %v5714_v22 = vadd.f32 %v5713_v58, %v5712_v10  ;;  %v5166_v5 = vadd.f32 %v8505_v21, %v4726_v20  ;;  %v4663_v3 = vadd.f32 %v6874_v29, %v4090_v32 }
 0x213   : > { %5666 = vst.msk [vmem:[%s8426_s27 + $0x30] sm:$0xf] %vm5653_vm8, %v6385_v39  ;;  %v5828_v60 = vsel %vm243_vm1, %v5781_v7, 0.0  ;;  %v5486_v24 = vmul.f32 %v8411_v27, %v5234_v6  ;;  %5669 = vst.msk [vmem:[%s8426_s27 + $0x3c] sm:$0xf] %vm5653_vm8, %v6388_v16  ;;  %v4661_v41 = vadd.f32 %v4590_v34, %v4088_v28  ;;  %v5784_v25 = vmul.f32 %v8526_v14, %v8526_v14 }
 0x214   : > { %v5829_v30 = vadd.f32 %v5828_v60, %v5827_v13  ;;  %v5239_v27 = vld [vmem:[#allocation2 + $0x90] sm:$0xff]  ;;  %5202 = vst.msk [vmem:[#allocation2 + $0x88] sm:$0xff] %vm243_vm1, %v5166_v5  ;;  %4699 = vst.msk [vmem:[#allocation2 + $0xd0] sm:$0xff] %vm243_vm1, %v4663_v3  ;;  %v4664_v49 = vadd.f32 %v6875_v38, %v4091_v9  ;;  %v4662_v43 = vadd.f32 %v4593_v59, %v4089_v33  ;;  %v5832_v50 = vsel %vm243_vm1, %v5783_v19, 0.0  ;;  %v8591_v59 = vpop.permute.xlu0 %5415  ;;  %v4095_v60 = vld [vmem:[#allocation2 + $0xf8] sm:$0xff] }
 0x215   : > { %v6386_v35 = vpack.c.bf16 %v5486_v24, %v5486_v24  ;;  %v5715_v11 = vsel %vm243_vm1, %v5486_v24, 0.0  ;;  %v5782_v2 = vmul.f32 %v5486_v24, %v5486_v24  ;;  %v4731_v56 = vld [vmem:[#allocation2 + $0xb0] sm:$0xff]  ;;  %v8560_v21 = vmul.f32 %v8483_v46, %v5239_v27  ;;  %v5237_v40 = vld [vmem:[#allocation2 + $0x80] sm:$0xff]  ;;  %4697 = vst.msk [vmem:[#allocation2 + $0xc0] sm:$0xff] %vm243_vm1, %v4661_v41  ;;  %v4093_v24 = vld [vmem:[#allocation2 + $0xe8] sm:$0xff] }
 0x216   : > { %v5716_v45 = vadd.f32 %v5715_v11, %v5714_v22  ;;  %v5171_v47 = vadd.f32 %v6908_v1, %v4731_v56  ;;  %v4729_v48 = vld [vmem:[#allocation2 + $0xa0] sm:$0xff]  ;;  %v6912_v23 = vpop.f32.mrb[152].mxu0  ;;  %v5489_v52 = vmul.f32 %v8453_v57, %v5237_v40  ;;  %v4732_v15 = vld [vmem:[#allocation2 + $0xb8] sm:$0xff]  ;;  %v6878_v54 = vpop.f32.mrb[152].mxu1  ;;  %4700 = vst.msk [vmem:[#allocation2 + $0xd8] sm:$0xff] %vm243_vm1, %v4664_v49  ;;  %v5719_v0 = vsel %vm243_vm1, %v8526_v14, 0.0 }
 0x217   : > { %5667 = vst.msk [vmem:[%s8426_s27 + $0x34] sm:$0xf] %vm5653_vm8, %v6386_v35  ;;  %v5830_v17 = vsel %vm243_vm1, %v5782_v2, 0.0  ;;  %v5169_v46 = vadd.f32 %v5086_v26, %v4729_v48  ;;  %v5102_v55 = vpop.f32.mrb[153].mxu0  ;;  %v6391_v44 = vpack.c.bf16 %v8560_v21, %v8560_v21  ;;  %v5240_v29 = vld [vmem:[#allocation2 + $0x98] sm:$0xff]  ;;  %v4730_v37 = vld [vmem:[#allocation2 + $0xa8] sm:$0xff]  ;;  %v5172_v14 = vadd.f32 %v8533_v4, %v4732_v15 }
 0x218   : > { %v5718_v1 = vadd.f32 %v5717_v12, %v5716_v45  ;;  %v5831_v63 = vadd.f32 %v5830_v17, %v5829_v30  ;;  %5207 = vst.msk [vmem:[#allocation2 + $0xb0] sm:$0xff] %vm243_vm1, %v5171_v47  ;;  %v4606_v57 = vpop.f32.mrb[153].mxu1  ;;  %v8574_v26 = vpop.f32.mrb[154].mxu0  ;;  %v6389_v8 = vpack.c.bf16 %v5489_v52, %v5489_v52  ;;  %v5721_v18 = vsel %vm243_vm1, %v5489_v52, 0.0  ;;  %4698 = vst.msk [vmem:[#allocation2 + $0xc8] sm:$0xff] %vm243_vm1, %v4662_v43  ;;  %v4094_v12 = vld [vmem:[#allocation2 + $0xf0] sm:$0xff] }
 0x219   : > { %v5785_v34 = vmul.f32 %v5489_v52, %v5489_v52  ;;  %5205 = vst.msk [vmem:[#allocation2 + $0xa0] sm:$0xff] %vm243_vm1, %v5169_v46  ;;  %v6879_v39 = vpop.f32.mrb[154].mxu1  ;;  %v5105_v10 = vpop.f32.mrb[155].mxu0  ;;  %v8584_v38 = vmul.f32 %v8490_v53, %v5240_v29  ;;  %v5834_v16 = vsel %vm243_vm1, %v5784_v25, 0.0  ;;  %v5170_v6 = vadd.f32 %v8538_v31, %v4730_v37  ;;  %5208 = vst.msk [vmem:[#allocation2 + $0xb8] sm:$0xff] %vm243_vm1, %v5172_v14  ;;  %v4092_v4 = vld [vmem:[#allocation2 + $0xe0] sm:$0xff] }
 0x21a   : > { %v5833_v58 = vadd.f32 %v5832_v50, %v5831_v63  ;;  %5672 = vst.msk [vmem:[%s8426_s27 + $0x48] sm:$0xf] %vm5653_vm8, %v6391_v44  ;;  %v5720_v7 = vadd.f32 %v5719_v0, %v5718_v1  ;;  %v4609_v13 = vpop.f32.mrb[155].mxu1  ;;  %5670 = vst.msk [vmem:[%s8426_s27 + $0x40] sm:$0xf] %vm5653_vm8, %v6389_v8  ;;  %v4667_v20 = vadd.f32 %v6878_v54, %v4094_v12  ;;  %v8599_v25 = vpop.permute.xlu1 %5420  ;;  %v5725_v9 = vsel %vm243_vm1, %v8560_v21, 0.0 }
 0x21b   : > { %v5836_v22 = vsel %vm243_vm1, %v5785_v34, 0.0  ;;  %v6392_v53 = vpack.c.bf16 %v8584_v38, %v8584_v38  ;;  %v5238_v28 = vld [vmem:[#allocation2 + $0x88] sm:$0xff]  ;;  %5206 = vst.msk [vmem:[#allocation2 + $0xa8] sm:$0xff] %vm243_vm1, %v5170_v6  ;;  %v4735_v31 = vld [vmem:[#allocation2 + $0xd0] sm:$0xff]  ;;  %v4665_v30 = vadd.f32 %v4606_v57, %v4092_v4  ;;  %v4668_v3 = vadd.f32 %v6879_v39, %v4095_v60 }
 0x21c   : > { %v5835_v19 = vadd.f32 %v5834_v16, %v5833_v58  ;;  %v5722_v32 = vadd.f32 %v5721_v18, %v5720_v7  ;;  %4703 = vst.msk [vmem:[#allocation2 + $0xf0] sm:$0xff] %vm243_vm1, %v4667_v20  ;;  %v4733_v5 = vld [vmem:[#allocation2 + $0xc0] sm:$0xff]  ;;  %v4666_v41 = vadd.f32 %v4609_v13, %v4093_v24  ;;  %v5787_v35 = vmul.f32 %v8560_v21, %v8560_v21  ;;  %v4098_v39 = vld [vmem:[#allocation2 + $0x110] sm:$0xff] }
 0x21d   : > { %5673 = vst.msk [vmem:[%s8426_s27 + $0x4c] sm:$0xf] %vm5653_vm8, %v6392_v53  ;;  %v5490_v11 = vmul.f32 %v8460_v62, %v5238_v28  ;;  %v5175_v2 = vadd.f32 %v6912_v23, %v4735_v31  ;;  %v5173_v27 = vadd.f32 %v5102_v55, %v4733_v5  ;;  %v4736_v47 = vld [vmem:[#allocation2 + $0xd8] sm:$0xff]  ;;  %v5788_v29 = vmul.f32 %v8584_v38, %v8584_v38 }
 0x21e   : > { %v6916_v56 = vpop.f32.mrb[156].mxu0  ;;  %v5837_v45 = vadd.f32 %v5836_v22, %v5835_v19  ;;  %4701 = vst.msk [vmem:[#allocation2 + $0xe0] sm:$0xff] %vm243_vm1, %v4665_v30  ;;  %4704 = vst.msk [vmem:[#allocation2 + $0xf8] sm:$0xff] %vm243_vm1, %v4668_v3  ;;  %v6882_v48 = vpop.f32.mrb[156].mxu1  ;;  %v5176_v55 = vadd.f32 %v8574_v26, %v4736_v47  ;;  %v5840_v44 = vsel %vm243_vm1, %v5787_v35, 0.0  ;;  %v5727_v26 = vsel %vm243_vm1, %v8584_v38, 0.0 }
 0x21f   : > { %v5243_v40 = vld [vmem:[#allocation2 + $0xb0] sm:$0xff]  ;;  %4702 = vst.msk [vmem:[#allocation2 + $0xe8] sm:$0xff] %vm243_vm1, %v4666_v41  ;;  %v8611_v49 = vpop.f32.mrb[157].mxu0  ;;  %v6390_v33 = vpack.c.bf16 %v5490_v11, %v5490_v11  ;;  %v5723_v62 = vsel %vm243_vm1, %v5490_v11, 0.0  ;;  %v5786_v23 = vmul.f32 %v5490_v11, %v5490_v11  ;;  %5211 = vst.msk [vmem:[#allocation2 + $0xd0] sm:$0xff] %vm243_vm1, %v5175_v2  ;;  %v4734_v52 = vld [vmem:[#allocation2 + $0xc8] sm:$0xff]  ;;  %v4671_v12 = vadd.f32 %v6882_v48, %v4098_v39  ;;  %v5431_v24 = vpop.permute.xlu1 %5430 }
 0x220   : > { %v5495_v17 = vmul.f32 %v8552_v61, %v5243_v40  ;;  %v5241_v21 = vld [vmem:[#allocation2 + $0xa0] sm:$0xff]  ;;  %5209 = vst.msk [vmem:[#allocation2 + $0xc0] sm:$0xff] %vm243_vm1, %v5173_v27  ;;  %v4622_v46 = vpop.f32.mrb[157].mxu1  ;;  %v8617_v15 = vpop.f32.mrb[158].mxu0  ;;  %v5724_v43 = vadd.f32 %v5723_v62, %v5722_v32  ;;  %v5174_v50 = vadd.f32 %v5105_v10, %v4734_v52  ;;  %v5244_v34 = vld [vmem:[#allocation2 + $0xb8] sm:$0xff]  ;;  %5212 = vst.msk [vmem:[#allocation2 + $0xd8] sm:$0xff] %vm243_vm1, %v5176_v55 }
 0x221   : > { %v5493_v54 = vmul.f32 %v8513_v42, %v5241_v21  ;;  %v8621_v1 = vpop.f32.mrb[158].mxu1  ;;  %v8623_v63 = vpop.f32.mrb[159].mxu0  ;;  %5671 = vst.msk [vmem:[%s8426_s27 + $0x44] sm:$0xf] %vm5653_vm8, %v6390_v33  ;;  %v5838_v37 = vsel %vm243_vm1, %v5786_v23, 0.0  ;;  %v5496_v7 = vmul.f32 %v8557_v36, %v5244_v34  ;;  %v5842_v19 = vsel %vm243_vm1, %v5788_v29, 0.0 }
 0x222   : > { %v5426_v61 = vpop.permute.xlu0 %5425  ;;  %v6395_v57 = vpack.c.bf16 %v5495_v17, %v5495_v17  ;;  %v8631_v42 = vpop.f32.mrb[159].mxu1  ;;  %v5726_v0 = vadd.f32 %v5725_v9, %v5724_v43  ;;  %v5839_v8 = vadd.f32 %v5838_v37, %v5837_v45  ;;  %5210 = vst.msk [vmem:[#allocation2 + $0xc8] sm:$0xff] %vm243_vm1, %v5174_v50  ;;  %v5242_v14 = vld [vmem:[#allocation2 + $0xa8] sm:$0xff]  ;;  %v5791_v22 = vmul.f32 %v5495_v17, %v5495_v17  ;;  %v4099_v37 = vld [vmem:[#allocation2 + $0x118] sm:$0xff] }
 0x223   : > { %v6393_v18 = vpack.c.bf16 %v5493_v54, %v5493_v54  ;;  %v5729_v10 = vsel %vm243_vm1, %v5493_v54, 0.0  ;;  %v5789_v58 = vmul.f32 %v5493_v54, %v5493_v54  ;;  %v4739_v38 = vld [vmem:[#allocation2 + $0xf0] sm:$0xff]  ;;  %v5494_v6 = vmul.f32 %v8519_v51, %v5242_v14  ;;  %4707 = vst.msk [vmem:[#allocation2 + $0x110] sm:$0xff] %vm243_vm1, %v4671_v12 }
 0x224   : > { %5676 = vst.msk [vmem:[%s8426_s27 + $0x58] sm:$0xf] %vm5653_vm8, %v6395_v57  ;;  %v5841_v13 = vadd.f32 %v5840_v44, %v5839_v8  ;;  %v5728_v16 = vadd.f32 %v5727_v26, %v5726_v0  ;;  %v5179_v20 = vadd.f32 %v6916_v56, %v4739_v38  ;;  %v6396_v4 = vpack.c.bf16 %v5496_v7, %v5496_v7  ;;  %v4096_v56 = vld [vmem:[#allocation2 + $0x100] sm:$0xff] }
 0x225   : > { %5674 = vst.msk [vmem:[%s8426_s27 + $0x50] sm:$0xf] %vm5653_vm8, %v6393_v18  ;;  %v5844_v53 = vsel %vm243_vm1, %v5789_v58, 0.0  ;;  %v4737_v36 = vld [vmem:[#allocation2 + $0xe0] sm:$0xff]  ;;  %v6394_v31 = vpack.c.bf16 %v5494_v6, %v5494_v6  ;;  %v5731_v51 = vsel %vm243_vm1, %v5494_v6, 0.0  ;;  %v5733_v35 = vsel %vm243_vm1, %v5495_v17, 0.0  ;;  %v8679_v18 = vpop.permute.xlu1 %5440 }
 0x226   : > { %v8647_v60 = vpop.f32.mrb[160].mxu0  ;;  %v5730_v32 = vadd.f32 %v5729_v10, %v5728_v16  ;;  %v5843_v28 = vadd.f32 %v5842_v19, %v5841_v13  ;;  %v5247_v30 = vld [vmem:[#allocation2 + $0xd0] sm:$0xff]  ;;  %5215 = vst.msk [vmem:[#allocation2 + $0xf0] sm:$0xff] %vm243_vm1, %v5179_v20  ;;  %v8653_v41 = vpop.permute.xlu0 %5435  ;;  %v5790_v11 = vmul.f32 %v5494_v6, %v5494_v6  ;;  %v4669_v47 = vadd.f32 %v4622_v46, %v4096_v56  ;;  %v4740_v43 = vld [vmem:[#allocation2 + $0xf8] sm:$0xff] }
 0x227   : > { %v5245_v5 = vld [vmem:[#allocation2 + $0xc0] sm:$0xff]  ;;  %v8651_v3 = vpop.f32.mrb[161].mxu0  ;;  %5677 = vst.msk [vmem:[%s8426_s27 + $0x5c] sm:$0xf] %vm5653_vm8, %v6396_v4  ;;  %v5499_v2 = vmul.f32 %v5426_v61, %v5247_v30  ;;  %5675 = vst.msk [vmem:[%s8426_s27 + $0x54] sm:$0xf] %vm5653_vm8, %v6394_v31  ;;  %v5177_v48 = vadd.f32 %v8611_v49, %v4737_v36  ;;  %v5792_v23 = vmul.f32 %v5496_v7, %v5496_v7 }
 0x228   : > { %v5497_v27 = vmul.f32 %v8591_v59, %v5245_v5  ;;  %v8659_v9 = vpop.f32.mrb[162].mxu0  ;;  %v5845_v45 = vadd.f32 %v5844_v53, %v5843_v28  ;;  %v5732_v40 = vadd.f32 %v5731_v51, %v5730_v32  ;;  %v5848_v62 = vsel %vm243_vm1, %v5791_v22, 0.0  ;;  %v5248_v59 = vld [vmem:[#allocation2 + $0xd8] sm:$0xff]  ;;  %4705 = vst.msk [vmem:[#allocation2 + $0x100] sm:$0xff] %vm243_vm1, %v4669_v47 }
 0x229   : > { %v8664_v33 = vpop.f32.mrb[163].mxu0  ;;  %v5846_v17 = vsel %vm243_vm1, %v5790_v11, 0.0  ;;  %v6399_v21 = vpack.c.bf16 %v5499_v2, %v5499_v2  ;;  %v5246_v52 = vld [vmem:[#allocation2 + $0xc8] sm:$0xff]  ;;  %v5735_v54 = vsel %vm243_vm1, %v5496_v7, 0.0  ;;  %5213 = vst.msk [vmem:[#allocation2 + $0xe0] sm:$0xff] %vm243_vm1, %v5177_v48  ;;  %v5500_v44 = vmul.f32 %v5431_v24, %v5248_v59 }
 0x22a   : > { %v5734_v55 = vadd.f32 %v5733_v35, %v5732_v40  ;;  %v5847_v50 = vadd.f32 %v5846_v17, %v5845_v45  ;;  %v6397_v46 = vpack.c.bf16 %v5497_v27, %v5497_v27  ;;  %v5737_v49 = vsel %vm243_vm1, %v5497_v27, 0.0  ;;  %v5446_v34 = vpop.permute.xlu0 %5445  ;;  %v4743_v14 = vld [vmem:[#allocation2 + $0x110] sm:$0xff] }
 0x22b   : > { %5680 = vst.msk [vmem:[%s8426_s27 + $0x68] sm:$0xf] %vm5653_vm8, %v6399_v21  ;;  %v5793_v61 = vmul.f32 %v5497_v27, %v5497_v27  ;;  %v5498_v29 = vmul.f32 %v8599_v25, %v5246_v52  ;;  %v4672_v0 = vadd.f32 %v8621_v1, %v4099_v37  ;;  %v5180_v8 = vadd.f32 %v8617_v15, %v4740_v43  ;;  %v4738_v25 = vld [vmem:[#allocation2 + $0xe8] sm:$0xff] }
 0x22c   : > { %v5849_v57 = vadd.f32 %v5848_v62, %v5847_v50  ;;  %5678 = vst.msk [vmem:[%s8426_s27 + $0x60] sm:$0xf] %vm5653_vm8, %v6397_v46  ;;  %v5736_v26 = vadd.f32 %v5735_v54, %v5734_v55  ;;  %v5850_v39 = vsel %vm243_vm1, %v5792_v23, 0.0  ;;  %v6400_v58 = vpack.c.bf16 %v5500_v44, %v5500_v44  ;;  %v4097_v15 = vld [vmem:[#allocation2 + $0x108] sm:$0xff] }
 0x22d   : > { %v5852_v10 = vsel %vm243_vm1, %v5793_v61, 0.0  ;;  %v5251_v7 = vld [vmem:[#allocation2 + $0xf0] sm:$0xff]  ;;  %v6398_v13 = vpack.c.bf16 %v5498_v29, %v5498_v29  ;;  %v5739_v1 = vsel %vm243_vm1, %v5498_v29, 0.0  ;;  %4708 = vst.msk [vmem:[#allocation2 + $0x118] sm:$0xff] %vm243_vm1, %v4672_v0  ;;  %5216 = vst.msk [vmem:[#allocation2 + $0xf8] sm:$0xff] %vm243_vm1, %v5180_v8  ;;  %v5795_v16 = vmul.f32 %v5499_v2, %v5499_v2 }
 0x22e   : > { %v5738_v12 = vadd.f32 %v5737_v49, %v5736_v26  ;;  %v5851_v38 = vadd.f32 %v5850_v39, %v5849_v57  ;;  %5681 = vst.msk [vmem:[%s8426_s27 + $0x6c] sm:$0xf] %vm5653_vm8, %v6400_v58  ;;  %v5794_v6 = vmul.f32 %v5498_v29, %v5498_v29  ;;  %v5503_v20 = vmul.f32 %v5446_v34, %v5251_v7  ;;  %v5456_v11 = vpop.permute.xlu0 %5455 }
 0x22f   : > { %v4670_v19 = vadd.f32 %v8631_v42, %v4097_v15  ;;  %5679 = vst.msk [vmem:[%s8426_s27 + $0x64] sm:$0xf] %vm5653_vm8, %v6398_v13  ;;  %v5178_v4 = vadd.f32 %v8623_v63, %v4738_v25  ;;  %v5183_v36 = vadd.f32 %v8647_v60, %v4743_v14  ;;  %v5741_v24 = vsel %vm243_vm1, %v5499_v2, 0.0  ;;  %v4741_v30 = vld [vmem:[#allocation2 + $0x100] sm:$0xff]  ;;  %v5451_v60 = vpop.permute.xlu1 %5450 }
 0x230   : > { %v5853_v22 = vadd.f32 %v5852_v10, %v5851_v38  ;;  %v5740_v53 = vadd.f32 %v5739_v1, %v5738_v12  ;;  %v5796_v32 = vmul.f32 %v5500_v44, %v5500_v44  ;;  %v5854_v28 = vsel %vm243_vm1, %v5794_v6, 0.0  ;;  %v5249_v51 = vld [vmem:[#allocation2 + $0xe0] sm:$0xff] }
 0x231   : > { %v6403_v31 = vpack.c.bf16 %v5503_v20, %v5503_v20  ;;  %4706 = vst.msk [vmem:[#allocation2 + $0x108] sm:$0xff] %vm243_vm1, %v4670_v19  ;;  %v5501_v35 = vmul.f32 %v8653_v41, %v5249_v51  ;;  %5214 = vst.msk [vmem:[#allocation2 + $0xe8] sm:$0xff] %vm243_vm1, %v5178_v4  ;;  %v5181_v63 = vadd.f32 %v8651_v3, %v4741_v30  ;;  %v5856_v2 = vsel %vm243_vm1, %v5795_v16, 0.0 }
 0x232   : > { %v5742_v42 = vadd.f32 %v5741_v24, %v5740_v53  ;;  %v5855_v5 = vadd.f32 %v5854_v28, %v5853_v22  ;;  %5219 = vst.msk [vmem:[#allocation2 + $0x110] sm:$0xff] %vm243_vm1, %v5183_v36  ;;  %v5743_v27 = vsel %vm243_vm1, %v5500_v44, 0.0  ;;  %v5858_v62 = vsel %vm243_vm1, %v5796_v32, 0.0  ;;  %v5466_v55 = vpop.permute.xlu0 %5465 }
 0x233   : > { %5684 = vst.msk [vmem:[%s8426_s27 + $0x78] sm:$0xf] %vm5653_vm8, %v6403_v31  ;;  %v6401_v45 = vpack.c.bf16 %v5501_v35, %v5501_v35  ;;  %v5797_v40 = vmul.f32 %v5501_v35, %v5501_v35  ;;  %v5745_v3 = vsel %vm243_vm1, %v5501_v35, 0.0  ;;  %v5461_v54 = vpop.permute.xlu1 %5460  ;;  %v5799_v29 = vmul.f32 %v5503_v20, %v5503_v20 }
 0x234   : > { %v5857_v56 = vadd.f32 %v5856_v2, %v5855_v5  ;;  %5217 = vst.msk [vmem:[#allocation2 + $0x100] sm:$0xff] %vm243_vm1, %v5181_v63  ;;  %v5744_v41 = vadd.f32 %v5743_v27, %v5742_v42  ;;  %v5252_v47 = vld [vmem:[#allocation2 + $0xf8] sm:$0xff] }
 0x235   : > { %v4744_v48 = vld [vmem:[#allocation2 + $0x118] sm:$0xff]  ;;  %5682 = vst.msk [vmem:[%s8426_s27 + $0x70] sm:$0xf] %vm5653_vm8, %v6401_v45  ;;  %v5504_v23 = vmul.f32 %v5451_v60, %v5252_v47  ;;  %v5860_v59 = vsel %vm243_vm1, %v5797_v40, 0.0  ;;  %v5864_v25 = vsel %vm243_vm1, %v5799_v29, 0.0 }
 0x236   : > { %v5184_v17 = vadd.f32 %v8659_v9, %v4744_v48  ;;  %v5859_v21 = vadd.f32 %v5858_v62, %v5857_v56  ;;  %v5746_v50 = vadd.f32 %v5745_v3, %v5744_v41 }
 0x237   : > { %v6404_v52 = vpack.c.bf16 %v5504_v23, %v5504_v23  ;;  %v5800_v58 = vmul.f32 %v5504_v23, %v5504_v23  ;;  %v5471_v7 = vpop.permute.xlu1 %5470  ;;  %v5751_v1 = vsel %vm243_vm1, %v5504_v23, 0.0 }
 0x238   : > { %5220 = vst.msk [vmem:[#allocation2 + $0x118] sm:$0xff] %vm243_vm1, %v5184_v17  ;;  %v4742_v43 = vld [vmem:[#allocation2 + $0x108] sm:$0xff]  ;;  %v5861_v37 = vadd.f32 %v5860_v59, %v5859_v21 }
 0x239   : > { %v5250_v46 = vld [vmem:[#allocation2 + $0xe8] sm:$0xff]  ;;  %v5255_v49 = vld [vmem:[#allocation2 + $0x110] sm:$0xff]  ;;  %v5182_v61 = vadd.f32 %v8664_v33, %v4742_v43  ;;  %5685 = vst.msk [vmem:[%s8426_s27 + $0x7c] sm:$0xf] %vm5653_vm8, %v6404_v52  ;;  %v5749_v33 = vsel %vm243_vm1, %v5503_v20, 0.0  ;;  %v5866_v22 = vsel %vm243_vm1, %v5800_v58, 0.0 }
 0x23a   : > { %v5502_v44 = vmul.f32 %v8679_v18, %v5250_v46  ;;  %v5507_v9 = vmul.f32 %v5466_v55, %v5255_v49 }
 0x23b   : > { %v5253_v57 = vld [vmem:[#allocation2 + $0x100] sm:$0xff]  ;;  %5218 = vst.msk [vmem:[#allocation2 + $0x108] sm:$0xff] %vm243_vm1, %v5182_v61 }
 0x23c   : > { %v6402_v26 = vpack.c.bf16 %v5502_v44, %v5502_v44  ;;  %v5747_v0 = vsel %vm243_vm1, %v5502_v44, 0.0  ;;  %v5798_v8 = vmul.f32 %v5502_v44, %v5502_v44  ;;  %v6407_v34 = vpack.c.bf16 %v5507_v9, %v5507_v9 }
 0x23d   : > { %v5748_v39 = vadd.f32 %v5747_v0, %v5746_v50  ;;  %v5505_v10 = vmul.f32 %v5456_v11, %v5253_v57  ;;  %v5803_v31 = vmul.f32 %v5507_v9, %v5507_v9  ;;  %v5757_v63 = vsel %vm243_vm1, %v5507_v9, 0.0 }
 0x23e   : > { %5683 = vst.msk [vmem:[%s8426_s27 + $0x74] sm:$0xf] %vm5653_vm8, %v6402_v26  ;;  %v5862_v18 = vsel %vm243_vm1, %v5798_v8, 0.0  ;;  %5688 = vst.msk [vmem:[%s8426_s27 + $0x88] sm:$0xf] %vm5653_vm8, %v6407_v34 }
 0x23f   : > { %v5750_v14 = vadd.f32 %v5749_v33, %v5748_v39  ;;  %v5863_v12 = vadd.f32 %v5862_v18, %v5861_v37  ;;  %v6405_v38 = vpack.c.bf16 %v5505_v10, %v5505_v10  ;;  %v5256_v13 = vld [vmem:[#allocation2 + $0x118] sm:$0xff]  ;;  %v5753_v15 = vsel %vm243_vm1, %v5505_v10, 0.0 }
 0x240   : > { %v5801_v16 = vmul.f32 %v5505_v10, %v5505_v10  ;;  %v5508_v6 = vmul.f32 %v5471_v7, %v5256_v13  ;;  %v5872_v56 = vsel %vm243_vm1, %v5803_v31, 0.0 }
 0x241   : > { %v5865_v20 = vadd.f32 %v5864_v25, %v5863_v12  ;;  %5686 = vst.msk [vmem:[%s8426_s27 + $0x80] sm:$0xf] %vm5653_vm8, %v6405_v38  ;;  %v5752_v19 = vadd.f32 %v5751_v1, %v5750_v14 }
 0x242   : > { %v5868_v53 = vsel %vm243_vm1, %v5801_v16, 0.0  ;;  %v6408_v4 = vpack.c.bf16 %v5508_v6, %v5508_v6  ;;  %v5254_v36 = vld [vmem:[#allocation2 + $0x108] sm:$0xff]  ;;  %v5804_v60 = vmul.f32 %v5508_v6, %v5508_v6  ;;  %v5759_v45 = vsel %vm243_vm1, %v5508_v6, 0.0 }
 0x243   : > { %v5754_v24 = vadd.f32 %v5753_v15, %v5752_v19  ;;  %v5867_v32 = vadd.f32 %v5866_v22, %v5865_v20  ;;  %v5506_v28 = vmul.f32 %v5461_v54, %v5254_v36 }
 0x244   : > { %5689 = vst.msk [vmem:[%s8426_s27 + $0x8c] sm:$0xf] %vm5653_vm8, %v6408_v4  ;;  %v5874_v47 = vsel %vm243_vm1, %v5804_v60, 0.0 }
 0x245   : > { %v5869_v51 = vadd.f32 %v5868_v53, %v5867_v32  ;;  %v6406_v30 = vpack.c.bf16 %v5506_v28, %v5506_v28  ;;  %v5755_v42 = vsel %vm243_vm1, %v5506_v28, 0.0  ;;  %v5802_v5 = vmul.f32 %v5506_v28, %v5506_v28 }
 0x246   : > { %v5756_v35 = vadd.f32 %v5755_v42, %v5754_v24 }
 0x247   : > { %5687 = vst.msk [vmem:[%s8426_s27 + $0x84] sm:$0xf] %vm5653_vm8, %v6406_v30  ;;  %v5870_v11 = vsel %vm243_vm1, %v5802_v5, 0.0 }
 0x248   : > { %v5758_v2 = vadd.f32 %v5757_v63, %v5756_v35  ;;  %v5871_v27 = vadd.f32 %v5870_v11, %v5869_v51 }
 0x24a   : > { %v5760_v41 = vadd.f32 %v5759_v45, %v5758_v2  ;;  %v5873_v40 = vadd.f32 %v5872_v56, %v5871_v27 }
 0x24c   : > { %v5761_v48 = vrot.slane %v5760_v41, 4  ;;  %v5875_v62 = vadd.f32 %v5874_v47, %v5873_v40 }
 0x24e   : > { %v5762_v3 = vadd.f32 %v5761_v48, %v5760_v41  ;;  %v5876_v23 = vrot.slane %v5875_v62, 4 }
 0x250   : > { %v5763_v17 = vrot.slane %v5762_v3, 2  ;;  %v5877_v21 = vadd.f32 %v5876_v23, %v5875_v62 }
 0x252   : > { %v5764_v59 = vadd.f32 %v5763_v17, %v5762_v3  ;;  %v5878_v52 = vrot.slane %v5877_v21, 2 }
 0x254   : > { %v5765_v43 = vrot.slane %v5764_v59, 1  ;;  %v5879_v54 = vadd.f32 %v5878_v52, %v5877_v21 }
 0x256   : > { %v5766_v55 = vadd.f32 %v5765_v43, %v5764_v59  ;;  %v5880_v50 = vrot.slane %v5879_v54, 1 }
 0x258   : > { %5768 = vst.msk [vmem:[%s238_s6] sm:$0x1] %vm5767_vm9, %v5766_v55  ;;  %v5881_v46 = vadd.f32 %v5880_v50, %v5879_v54 }
 0x25a   : > { %5882 = vst.msk [vmem:[%s241_s9] sm:$0x1] %vm5767_vm9, %v5881_v46 }
 0x25b PF: > { %s16_s18 = sadd.s32 1, %s7124_s18  }
 0x25c   : > { %p13_p4 = scmp.ge.s32.totalorder %s16_s18, 4  }
 0x25e   :  { %15 = sbr.rel (!%p13_p4) target bundleno = 1 (0x1), region = 94 }

// kernel: basic_block_forward.4
= control target key start
LH: loop header
LB: loop body
LE: loop exit
PB: predicated region body
PF: predicated region fallthrough
CT: control target
= control target key end

     0   :  { %s8952_s24 = smov 0   ;;  %s11412_s0 = inlined_call_operand.vmem [shape: f32[288,1], index: 0, kind: input, shape index: {}]   ;;  %s11413_s1 = inlined_call_operand.vmem [shape: bf16[2,288,8], index: 1, kind: input, shape index: {}]   ;;  %s11414_s2 = inlined_call_operand.vmem [shape: f32[1,8], index: 2, kind: input, shape index: {}]   ;;  %s11415_s3 = inlined_call_operand.vmem [shape: f32[1,8], index: 3, kind: input, shape index: {}]   ;;  %s11416_s4 = inlined_call_operand.vmem [shape: bf16[9,8,8], index: 4, kind: input, shape index: {}]   ;;  %s11417_s5 = inlined_call_operand.vmem [shape: bf16[2,288,8], index: 5, kind: output, shape index: {0}]   ;;  %s11418_s6 = inlined_call_operand.vmem [shape: f32[2,1,8], index: 6, kind: output, shape index: {1}]   ;;  %s11419_s7 = inlined_call_operand.vmem [shape: f32[2,1,8], index: 7, kind: output, shape index: {2}]  }
   0x1 LB: > { %s7485_s25 = sadd.s32 4294967295, %s8908_s24   ;;  %p7489_p0 = scmp.ge.s32.totalorder %s8908_s24, 1  ;;  %s8908_s24 = sphi %s8952_s24, %s18_s24  }
   0x2   : > { %p242_p1 = scmp.lt.s32.totalorder %s8908_s24, 3 }
   0x4   : > { %p243_p2 = pnand %p7489_p0, %p242_p1 }
   0x6   : > { %246 = sbr.rel (%p243_p2) target bundleno = 818 (0x332), region = 40 }
   0xd   : > { %vm1175_vm0 = vcmask 60416   ;;  %v942_v0 = vld [vmem:[%s11412_s0 + $0x98] sm:$0xff]  ;;  %v940_v1 = vld [vmem:[%s11412_s0 + $0x88] sm:$0xff]  ;;  %p280_p3 = scmp.lt.s32.totalorder %s7485_s25, 1  ;;  %v8910_v2 = vmov 0   ;;  %v943_v3 = vld [vmem:[%s11412_s0 + $0xa0] sm:$0xff] }
   0xe   : > { %8642 = vset.pattern.permute.xlu1 %v8910_v2  ;;  %1176 = vst.msk [vmem:[#allocation2] sm:$0xf] %vm1175_vm0, %v8910_v2  ;;  %1177 = vst.msk [vmem:[#allocation2 + $0x4] sm:$0xf] %vm1175_vm0, %v8910_v2  ;;  %8641 = vset.pattern.permute.xlu0 %v8910_v2  ;;  %v941_v4 = vld [vmem:[%s11412_s0 + $0x90] sm:$0xff]  ;;  %v944_v5 = vld [vmem:[%s11412_s0 + $0xa8] sm:$0xff] }
   0xf   : > { %1190 = vst.msk [vmem:[#allocation2 + $0x9c] sm:$0xf] %vm1175_vm0, %v8910_v2  ;;  %1191 = vst.msk [vmem:[#allocation2 + $0xa0] sm:$0xf] %vm1175_vm0, %v8910_v2  ;;  %1056 = vperm.xlu1 %8642, %v942_v0   ;;  %1046 = vperm.xlu0 %8641, %v940_v1   ;;  %s11445_s25 = smov (!%p280_p3, %s7485_s25), 1  ;;  %v8985_v6 = vld [vmem:[%s11412_s0] sm:$0xff] }
  0x10   : > { %s8630_s11 = smul.u32 144, %s11445_s25  ;;  %vm1179_vm1 = vsmask.f32 1280  ;;  %vm1178_vm2 = vcmask 58368   ;;  %v945_v7 = vld [vmem:[%s11412_s0 + $0xb0] sm:$0xff]  ;;  %v9001_v8 = vld [vmem:[%s11412_s0 + $0x8] sm:$0xff]  ;;  %s292_s22 = scalar_lea.vmem %s11418_s6, %s11445_s25 }
  0x11   : > { %v9007_v10 = vld [vmem:[%s11414_s2] ss:$0 sm:$0xff]  ;;  %vm9012_vm3 = vmand %vm1178_vm2, %vm1179_vm1  ;;  %v11423_v15 = vmov 0  ;;  %v1181_v19 = vld [vmem:[#allocation2 + $0x8] sm:$0x3]  ;;  %vm1184_vm4 = vcmask 60417   ;;  %s295_s27 = scalar_lea.vmem %s11419_s7, %s11445_s25 }
  0x12   : > { %s8993_s18 = scalar_lea.vmem %s11413_s1, %s8630_s11  ;;  %v11424_v15 = vsel %vm9012_vm3, 4294967295, %v11423_v15  ;;  %v947_v21 = vld [vmem:[%s11412_s0 + $0xc0] sm:$0xff]  ;;  %v946_v22 = vld [vmem:[%s11412_s0 + $0xb8] sm:$0xff]  ;;  %v1182_v26 = vsel %vm9012_vm3, 0, %v1181_v19  ;;  %v9054_v37 = vld [vmem:[%s11412_s0 + $0x10] sm:$0xff]  ;;  %v11426_v63 = vmov 0  ;;  %s11092_s20 = scalar_lea.vmem %s11417_s5, %s8630_s11 }
  0x13   : > { %1061 = vperm.xlu1 %8642, %v943_v3   ;;  %1051 = vperm.xlu0 %8641, %v941_v4   ;;  %v8096_v9 = vld [vmem:[%s8993_s18 + $0x48] sm:$0xff]   ;;  %v8095_v12 = vld [vmem:[%s8993_s18 + $0x40] sm:$0xff]   ;;  %v8097_v13 = vld [vmem:[%s8993_s18 + $0x50] sm:$0xff]   ;;  %11425 = vst [vmem:[#allocation4_spill] sm:$0xff] %v11424_v15  ;;  %vm1185_vm5 = vsmask.f32 7942 }
  0x14   : > { %v8055_v11 = vunpack.c.h.bf16 %v8096_v9  ;;  %v8054_v14 = vunpack.c.l.bf16 %v8096_v9  ;;  %v8051_v16 = vunpack.c.h.bf16 %v8095_v12  ;;  %v8058_v17 = vunpack.c.l.bf16 %v8097_v13  ;;  %v9018_v20 = vld [vmem:[%s8993_s18] sm:$0xff]   ;;  %1183 = vst [vmem:[#allocation2 + $0x8] sm:$0x3] %v1182_v26  ;;  %v9044_v35 = vld [vmem:[%s8993_s18 + $0x58] sm:$0xff]   ;;  %v948_v51 = vld [vmem:[%s11412_s0 + $0xc8] sm:$0xff] }
  0x15   : > { %v8059_v18 = vunpack.c.h.bf16 %v8097_v13  ;;  %v9030_v24 = vld [vmem:[%s11415_s3] ss:$0 sm:$0xff]  ;;  %v8018_v32 = vunpack.c.l.bf16 %v9018_v20  ;;  %v9049_v36 = vld [vmem:[%s11412_s0 + $0x18] sm:$0xff]  ;;  %v8062_v45 = vunpack.c.l.bf16 %v9044_v35  ;;  %v8019_v56 = vunpack.c.h.bf16 %v9018_v20  ;;  %v949_v58 = vld [vmem:[%s11412_s0 + $0xd0] sm:$0xff] }
  0x16   : > { %v395_v23 = vmul.f32 %v8055_v11, %v9007_v10  ;;  %v394_v25 = vmul.f32 %v8054_v14, %v9007_v10  ;;  %v393_v27 = vmul.f32 %v8051_v16, %v9007_v10  ;;  %v396_v28 = vmul.f32 %v8058_v17, %v9007_v10  ;;  %v9062_v46 = vld [vmem:[%s8993_s18 + $0x60] sm:$0xff]   ;;  %v1187_v55 = vld [vmem:[#allocation2 + $0x98] sm:$0xe]  ;;  %v9100_v61 = vld [vmem:[%s11412_s0 + $0x28] sm:$0xff] }
  0x17   : > { %1066 = vperm.xlu1 %8642, %v944_v5   ;;  %961 = vperm.xlu0 %8641, %v8985_v6   ;;  %v397_v29 = vmul.f32 %v8059_v18, %v9007_v10  ;;  %v376_v44 = vmul.f32 %v8018_v32, %v9007_v10  ;;  %v9080_v52 = vld [vmem:[%s11412_s0 + $0x20] sm:$0xff]  ;;  %v8066_v57 = vunpack.c.l.bf16 %v9062_v46  ;;  %vm9108_vm7 = vmand %vm1184_vm4, %vm1185_vm5  ;;  %v398_v3 = vmul.f32 %v8062_v45, %v9007_v10  ;;  %v9131_v14 = vld [vmem:[%s8993_s18 + $0x8] sm:$0xff]  }
  0x18   : > { %v438_v30 = vadd.f32 %v9030_v24, %v395_v23  ;;  %v437_v31 = vadd.f32 %v9030_v24, %v394_v25  ;;  %v436_v33 = vadd.f32 %v9030_v24, %v393_v27  ;;  %v439_v34 = vadd.f32 %v9030_v24, %v396_v28  ;;  %v951_v16 = vld [vmem:[%s11412_s0 + $0xe0] sm:$0xff]  ;;  %v9139_v17 = vld [vmem:[%s11412_s0 + $0xd8] sm:$0xff] }
  0x19   : > { %v440_v40 = vadd.f32 %v9030_v24, %v397_v29  ;;  %v11427_v63 = vsel %vm9108_vm7, 4294967295, %v11426_v63  ;;  %v1188_v1 = vsel %vm9108_vm7, 0, %v1187_v55  ;;  %v419_v2 = vadd.f32 %v9030_v24, %v376_v44  ;;  %v9160_v32 = vld [vmem:[%s11412_s0 + $0x38] sm:$0xff] }
  0x1a   : > { %v510_v38 = vmul.f32 %v438_v30, %v438_v30  ;;  %v509_v39 = vmul.f32 %v437_v31, %v437_v31  ;;  %v508_v41 = vmul.f32 %v436_v33, %v436_v33  ;;  %v511_v42 = vmul.f32 %v439_v34, %v439_v34  ;;  %11428 = vst [vmem:[#allocation5_spill] sm:$0xff] %v11427_v63 }
  0x1b   : > { %1071 = vperm.xlu1 %8642, %v945_v7   ;;  %966 = vperm.xlu0 %8641, %v9001_v8   ;;  %v9066_v47 = vmul.f32 0.51, %v438_v30  ;;  %v512_v53 = vmul.f32 %v440_v40, %v440_v40  ;;  %v9084_v54 = vmul.f32 0.51, %v437_v31  ;;  %v9091_v59 = vmul.f32 0.51, %v436_v33 }
  0x1c   : > { %v9057_v43 = vadd.f32 1.4210855e-14, %v510_v38  ;;  %v9068_v48 = vadd.f32 1.4210855e-14, %v508_v41  ;;  %v9070_v49 = vadd.f32 1.4210855e-14, %v511_v42  ;;  %v9072_v50 = vadd.f32 1.4210855e-14, %v509_v39  ;;  %1189 = vst [vmem:[#allocation2 + $0x98] sm:$0xe] %v1188_v1 }
  0x1d   : > { %v9093_v60 = vmul.f32 0.51, %v439_v34  ;;  %v9104_v62 = vmul.f32 0.51, %v440_v40  ;;  %v9112_v0 = vadd.f32 1.4210855e-14, %v512_v53  ;;  %v377_v5 = vmul.f32 %v8019_v56, %v9007_v10  ;;  %v9165_v33 = vld [vmem:[%s11412_s0 + $0x30] sm:$0xff] }
  0x1e   : > { %8813 = vrsqrt.f32 %v9057_v43  ;;  %vm698_vm6 = vcmp.eq.f32.partialorder %v9057_v43, inf  ;;  %vm700_vm8 = vcmp.eq.f32.partialorder %v9057_v43, 0.0  ;;  %v701_v4 = vand.u32 2147483648, %v9057_v43 }
  0x1f   : > { %1081 = vperm.xlu1 %8642, %v947_v21   ;;  %1076 = vperm.xlu0 %8641, %v946_v22   ;;  %8815 = vrsqrt.f32 %v9068_v48  ;;  %v400_v7 = vmul.f32 %v8066_v57, %v9007_v10  ;;  %vm684_vm9 = vcmp.eq.f32.partialorder %v9068_v48, inf  ;;  %vm686_vm10 = vcmp.eq.f32.partialorder %v9068_v48, 0.0 }
  0x20   : > { %8817 = vrsqrt.f32 %v9070_v49  ;;  %v687_v9 = vand.u32 2147483648, %v9068_v48  ;;  %vm705_vm11 = vcmp.eq.f32.partialorder %v9070_v49, inf  ;;  %v491_v11 = vmul.f32 %v419_v2, %v419_v2 }
  0x21   : > { %8819 = vrsqrt.f32 %v9072_v50  ;;  %v441_v12 = vadd.f32 %v9030_v24, %v398_v3  ;;  %v420_v13 = vadd.f32 %v9030_v24, %v377_v5  ;;  %vm707_vm12 = vcmp.eq.f32.partialorder %v9070_v49, 0.0  ;;  %v9202_v3 = vld [vmem:[%s11412_s0 + $0x40] sm:$0xff] }
  0x22   : > { %8821 = vrsqrt.f32 %v9112_v0  ;;  %v708_v18 = vand.u32 2147483648, %v9070_v49  ;;  %vm691_vm13 = vcmp.eq.f32.partialorder %v9072_v50, inf  ;;  %v8063_v19 = vunpack.c.h.bf16 %v9044_v35 }
  0x23   : > { %976 = vperm.xlu1 %8642, %v9049_v36   ;;  %971 = vperm.xlu0 %8641, %v9054_v37   ;;  %vm693_vm14 = vcmp.eq.f32.partialorder %v9072_v50, 0.0  ;;  %v9146_v20 = vadd.f32 1.4210855e-14, %v491_v11  ;;  %v513_v21 = vmul.f32 %v441_v12, %v441_v12  ;;  %v443_v22 = vadd.f32 %v9030_v24, %v400_v7 }
  0x24   : > { %v694_v25 = vand.u32 2147483648, %v9072_v50  ;;  %vm712_vm15 = vcmp.eq.f32.partialorder %v9112_v0, inf  ;;  %v492_v26 = vmul.f32 %v420_v13, %v420_v13  ;;  %v8023_v27 = vunpack.c.h.bf16 %v9131_v14 }
  0x25   : > { %vm714_vm2 = vcmp.eq.f32.partialorder %v9112_v0, 0.0  ;;  %v715_v30 = vand.u32 2147483648, %v9112_v0  ;;  %8823 = vrsqrt.f32 %v9146_v20  ;;  %v9168_v35 = vmul.f32 0.51, %v419_v2  ;;  %v9197_v2 = vld [vmem:[%s11412_s0 + $0xe8] sm:$0xff] }
  0x26   : > { %v9170_v38 = vadd.f32 1.4210855e-14, %v513_v21  ;;  %v399_v39 = vmul.f32 %v8063_v19, %v9007_v10  ;;  %v9177_v44 = vadd.f32 1.4210855e-14, %v492_v26  ;;  %v515_v45 = vmul.f32 %v443_v22, %v443_v22 }
  0x27   : > { %1086 = vperm.xlu1 %8642, %v948_v51   ;;  %981 = vperm.xlu0 %8641, %v9080_v52   ;;  %v8022_v7 = vunpack.c.l.bf16 %v9131_v14  ;;  %v9211_v11 = vmul.f32 0.51, %v441_v12  ;;  %vm565_vm4 = vcmp.eq.f32.partialorder %v9146_v20, inf  ;;  %vm567_vm5 = vcmp.eq.f32.partialorder %v9146_v20, 0.0 }
  0x28   : > { %v8814_v23 = vpop.eup %8813  ;;  %8825 = vrsqrt.f32 %v9170_v38  ;;  %v9215_v19 = vadd.f32 1.4210855e-14, %v515_v45 }
  0x29   : > { %v8816_v28 = vpop.eup %8815  ;;  %v697_v29 = vmul.f32 %v8814_v23, %v9057_v43  ;;  %8827 = vrsqrt.f32 %v9177_v44 }
  0x2a   : > { %v8818_v31 = vpop.eup %8817  ;;  %v683_v34 = vmul.f32 %v8816_v28, %v9068_v48  ;;  %8829 = vrsqrt.f32 %v9215_v19 }
  0x2b   : > { %1091 = vperm.xlu1 %8642, %v949_v58   ;;  %986 = vperm.xlu0 %8641, %v9100_v61   ;;  %v8820_v40 = vpop.eup %8819  ;;  %v699_v41 = vsel %vm698_vm6, %v9057_v43, %v697_v29  ;;  %v704_v42 = vmul.f32 %v8818_v31, %v9070_v49  ;;  %v379_v58 = vmul.f32 %v8023_v27, %v9007_v10  ;;  %vm719_vm6 = vcmp.eq.f32.partialorder %v9170_v38, inf }
  0x2c   : > { %v702_v51 = vsel %vm700_vm8, %v701_v4, %v699_v41  ;;  %v685_v53 = vsel %vm684_vm9, %v9068_v48, %v683_v34  ;;  %v690_v55 = vmul.f32 %v8820_v40, %v9072_v50  ;;  %v8822_v1 = vpop.eup %8821  ;;  %vm721_vm8 = vcmp.eq.f32.partialorder %v9170_v38, 0.0  ;;  %v9266_v41 = vld [vmem:[%s11412_s0 + $0xf8] sm:$0xff] }
  0x2d   : > { %v834_v56 = vmul.f32 0.49, %v702_v51  ;;  %v688_v57 = vsel %vm686_vm10, %v687_v9, %v685_v53  ;;  %v706_v43 = vsel %vm705_vm11, %v9070_v49, %v704_v42  ;;  %v711_v9 = vmul.f32 %v8822_v1, %v9112_v0 }
  0x2e   : > { %v832_v4 = vmul.f32 0.49, %v688_v57  ;;  %v709_v48 = vsel %vm707_vm12, %v708_v18, %v706_v43  ;;  %v692_v5 = vsel %vm691_vm13, %v9072_v50, %v690_v55  ;;  %v9220_v49 = vmul.f32 0.51, %v443_v22  ;;  %v9233_v50 = vld [vmem:[%s11412_s0 + $0xf0] sm:$0xff]  ;;  %v9238_v18 = vld [vmem:[%s11412_s0 + $0x48] sm:$0xff] }
  0x2f   : > { %1101 = vperm.xlu1 %8642, %v951_v16   ;;  %1096 = vperm.xlu0 %8641, %v9139_v17   ;;  %v9213_v16 = vmul.f32 0.51, %v420_v13  ;;  %v835_v21 = vmul.f32 0.49, %v709_v48  ;;  %v695_v23 = vsel %vm693_vm14, %v694_v25, %v692_v5  ;;  %v870_v14 = vadd.f32 %v834_v56, %v9066_v47  ;;  %v8824_v26 = vpop.eup %8823  ;;  %v9282_v43 = vld [vmem:[%s8993_s18 + $0x10] sm:$0xff]  }
  0x30   : > { %v713_v12 = vsel %vm712_vm15, %v9112_v0, %v711_v9  ;;  %v442_v13 = vadd.f32 %v9030_v24, %v399_v39  ;;  %v868_v47 = vadd.f32 %v832_v4, %v9091_v59  ;;  %v568_v25 = vand.u32 2147483648, %v9146_v20  ;;  %v9304_v9 = vld [vmem:[%s11412_s0 + $0x50] sm:$0xff] }
  0x31   : > { %v716_v22 = vsel %vm714_vm2, %v715_v30, %v713_v12  ;;  %v833_v27 = vmul.f32 0.49, %v695_v23  ;;  %v871_v29 = vadd.f32 %v835_v21, %v9093_v60  ;;  %v564_v31 = vmul.f32 %v8824_v26, %v9146_v20  ;;  %v9261_v60 = vld [vmem:[%s11412_s0 + $0x100] sm:$0xff] }
  0x32   : > { %v9247_v28 = vmul.f32 0.51, %v442_v13  ;;  %v722_v59 = vand.u32 2147483648, %v9170_v38  ;;  %v9255_v0 = vadd.f32 -5.8412553e-08, %v870_v14  ;;  %v514_v34 = vmul.f32 %v442_v13, %v442_v13  ;;  %v8826_v40 = vpop.eup %8825 }
  0x33   : > { %996 = vperm.xlu1 %8642, %v9160_v32   ;;  %991 = vperm.xlu0 %8641, %v9165_v33   ;;  %v836_v30 = vmul.f32 0.49, %v716_v22  ;;  %v422_v39 = vadd.f32 %v9030_v24, %v379_v58  ;;  %v9268_v42 = vadd.f32 -5.8412553e-08, %v868_v47  ;;  %v566_v45 = vsel %vm565_vm4, %v9146_v20, %v564_v31  ;;  %v8828_v5 = vpop.eup %8827  ;;  %v9333_v31 = vld [vmem:[%s11412_s0 + $0x108] sm:$0xff] }
  0x34   : > { %vm572_vm9 = vcmp.eq.f32.partialorder %v9177_v44, inf  ;;  %v378_v51 = vmul.f32 %v8022_v7, %v9007_v10  ;;  %v869_v53 = vadd.f32 %v833_v27, %v9084_v54  ;;  %v569_v55 = vsel %vm567_vm5, %v568_v25, %v566_v45  ;;  %v9299_v7 = vld [vmem:[%s11412_s0 + $0x58] sm:$0xff]  ;;  %v8830_v26 = vpop.eup %8829 }
  0x35   : > { %v718_v56 = vmul.f32 %v8826_v40, %v9170_v38  ;;  %v9279_v57 = vadd.f32 1.4210855e-14, %v514_v34  ;;  %v9284_v58 = vadd.f32 -5.8412553e-08, %v871_v29  ;;  %vm574_vm10 = vcmp.eq.f32.partialorder %v9177_v44, 0.0 }
  0x36   : > { %v494_v1 = vmul.f32 %v422_v39, %v422_v39  ;;  %v421_v4 = vadd.f32 %v9030_v24, %v378_v51  ;;  %v872_v54 = vadd.f32 %v836_v30, %v9104_v62  ;;  %v575_v48 = vand.u32 2147483648, %v9177_v44 }
  0x37   : > { %1106 = vperm.xlu1 %8642, %v9197_v2   ;;  %1001 = vperm.xlu0 %8641, %v9202_v3   ;;  %v720_v20 = vsel %vm719_vm6, %v9170_v38, %v718_v56  ;;  %8831 = vrsqrt.f32 %v9279_v57  ;;  %v815_v62 = vmul.f32 0.49, %v569_v55  ;;  %v8067_v23 = vunpack.c.h.bf16 %v9062_v46 }
  0x38   : > { %v9306_v21 = vadd.f32 1.4210855e-14, %v494_v1  ;;  %v8026_v14 = vunpack.c.l.bf16 %v9282_v43  ;;  %v9310_v12 = vadd.f32 -5.8412553e-08, %v869_v53  ;;  %v571_v13 = vmul.f32 %v8828_v5, %v9177_v44  ;;  %v1850_v53 = vld [vmem:[%s11416_s4] sm:$0xf]  ;;  %v9365_v1 = vld [vmem:[%s11412_s0 + $0x70] sm:$0xff] }
  0x39   : > { %vm733_vm11 = vcmp.eq.f32.partialorder %v9215_v19, inf  ;;  %v493_v47 = vmul.f32 %v421_v4, %v421_v4  ;;  %v723_v22 = vsel %vm721_vm8, %v722_v59, %v720_v20  ;;  %vm735_vm12 = vcmp.eq.f32.partialorder %v9215_v19, 0.0  ;;  %v9338_v59 = vld [vmem:[%s11412_s0 + $0x60] sm:$0xff] }
  0x3a   : > { %v736_v25 = vand.u32 2147483648, %v9215_v19  ;;  %8833 = vrsqrt.f32 %v9306_v21  ;;  %v9321_v46 = vadd.f32 -5.8412553e-08, %v872_v54  ;;  %v573_v27 = vsel %vm572_vm9, %v9177_v44, %v571_v13  ;;  %v9358_v44 = vld [vmem:[%s8993_s18 + $0x68] sm:$0xff]  }
  0x3b   : > { %1111 = vperm.xlu1 %8642, %v9233_v50   ;;  %1006 = vperm.xlu0 %8641, %v9238_v18   ;;  %v9326_v29 = vmul.f32 0.51, %v422_v39  ;;  %v9328_v38 = vadd.f32 1.4210855e-14, %v493_v47  ;;  %v851_v30 = vadd.f32 %v815_v62, %v9168_v35  ;;  %v732_v34 = vmul.f32 %v8830_v26, %v9215_v19  ;;  %v9370_v54 = vld [vmem:[%s11412_s0 + $0x68] sm:$0xff]  ;;  %v8645_v47 = vld [vmem:[#allocation2] sm:$0xff]   ;;  %v9390_v26 = vld [vmem:[%s8993_s18 + $0x70] sm:$0xff]  }
  0x3c   : > { %v401_v39 = vmul.f32 %v8067_v23, %v9007_v10  ;;  %v380_v40 = vmul.f32 %v8026_v14, %v9007_v10  ;;  %v837_v45 = vmul.f32 0.49, %v723_v22  ;;  %v576_v51 = vsel %vm574_vm10, %v575_v48, %v573_v27 }
  0x3d   : > { %vm726_vm13 = vcmp.eq.f32.partialorder %v9279_v57, inf  ;;  %8835 = vrsqrt.f32 %v9328_v38  ;;  %v734_v35 = vsel %vm733_vm11, %v9215_v19, %v732_v34  ;;  %vm728_vm14 = vcmp.eq.f32.partialorder %v9279_v57, 0.0 }
  0x3e   : > { %v729_v55 = vand.u32 2147483648, %v9279_v57  ;;  %v444_v56 = vadd.f32 %v9030_v24, %v401_v39  ;;  %v737_v20 = vsel %vm735_vm12, %v736_v25, %v734_v35  ;;  %v9374_v48 = vmul.f32 0.51, %v421_v4 }
  0x3f   : > { %1121 = vperm.xlu1 %8642, %v9261_v60   ;;  %1116 = vperm.xlu0 %8641, %v9266_v41   ;;  %v9377_v5 = vadd.f32 %v9030_v24, %v380_v40  ;;  %vm1995_vm15 = vcmask 1043456   ;;  %v9379_v62 = vadd.f32 -5.8412553e-08, %v851_v30  ;;  %v816_v23 = vmul.f32 0.49, %v576_v51  ;;  %v9405_v51 = vld [vmem:[%s11412_s0 + $0x80] sm:$0xff] }
  0x40   : > { %v516_v14 = vmul.f32 %v444_v56, %v444_v56  ;;  %8621 = vmatprep.subr.msk.bf16.mxu1 %vm1995_vm15, %v1850_v53  ;;  %v1997_v13 = vsel %vm1995_vm15, %v1850_v53, 0  ;;  %8620 = vmatprep.subr.msk.bf16.mxu0 %vm1995_vm15, %v1850_v53  ;;  %v873_v4 = vadd.f32 %v837_v45, %v9211_v11  ;;  %vm586_vm2 = vcmp.eq.f32.partialorder %v9306_v21, inf  ;;  %v9410_v53 = vld [vmem:[%s11412_s0 + $0x78] sm:$0xff] }
  0x41   : > { %v8832_v19 = vpop.eup %8831  ;;  %v495_v22 = vmul.f32 %v9377_v5, %v9377_v5  ;;  %8619 = vmatpush3.bf16.msra.mxu1 %v1997_v13  ;;  %v8070_v25 = vunpack.c.l.bf16 %v9358_v44  ;;  %8277 = vmatpush3.bf16.msra.mxu0 %v1997_v13  ;;  %v839_v27 = vmul.f32 0.49, %v737_v20  ;;  %vm588_vm4 = vcmp.eq.f32.partialorder %v9306_v21, 0.0 }
  0x42   : > { %v725_v30 = vmul.f32 %v8832_v19, %v9279_v57  ;;  %v9394_v34 = vadd.f32 1.4210855e-14, %v516_v14  ;;  %v8027_v40 = vunpack.c.h.bf16 %v9282_v43  ;;  %vm1741_vm5 = vcmask 64512  }
  0x43   : > { %1016 = vperm.xlu1 %8642, %v9299_v7   ;;  %1011 = vperm.xlu0 %8641, %v9304_v9   ;;  %v9398_v11 = vadd.f32 1.4210855e-14, %v495_v22  ;;  %v402_v39 = vmul.f32 %v8070_v25, %v9007_v10  ;;  %v852_v35 = vadd.f32 %v816_v23, %v9213_v16  ;;  %v8074_v43 = vunpack.c.l.bf16 %v9390_v26  ;;  %v9445_v25 = vld [vmem:[%s11412_s0 + $0x110] sm:$0xff] }
  0x44   : > { %v8834_v45 = vpop.eup %8833  ;;  %v727_v20 = vsel %vm726_vm13, %v9279_v57, %v725_v30  ;;  %8837 = vrsqrt.f32 %v9394_v34  ;;  %8278 = vmatprep.mubr.msk.bf16.mxu0 %vm1741_vm5, %v8645_v47  ;;  %v9419_v14 = vadd.f32 -5.8412553e-08, %v873_v4  ;;  %v589_v19 = vand.u32 2147483648, %v9306_v21 }
  0x45   : > { %v585_v13 = vmul.f32 %v8834_v45, %v9306_v21  ;;  %vm579_vm6 = vcmp.eq.f32.partialorder %v9328_v38, inf  ;;  %v875_v16 = vadd.f32 %v839_v27, %v9220_v49  ;;  %v730_v23 = vsel %vm728_vm14, %v729_v55, %v727_v20  ;;  %v9440_v55 = vld [vmem:[%s11412_s0 + $0x118] sm:$0xff] }
  0x46   : > { %vm581_vm8 = vcmp.eq.f32.partialorder %v9328_v38, 0.0  ;;  %8839 = vrsqrt.f32 %v9398_v11  ;;  %v582_v4 = vand.u32 2147483648, %v9328_v38  ;;  %v445_v49 = vadd.f32 %v9030_v24, %v402_v39 }
  0x47   : > { %1126 = vperm.xlu1 %8642, %v9333_v31   ;;  %1021 = vperm.xlu0 %8641, %v9338_v59   ;;  %v8836_v22 = vpop.eup %8835  ;;  %v587_v47 = vsel %vm586_vm2, %v9306_v21, %v585_v13  ;;  %v381_v57 = vmul.f32 %v8027_v40, %v9007_v10  ;;  %v9447_v27 = vadd.f32 -5.8412553e-08, %v852_v35  ;;  %v9450_v45 = vmul.f32 0.51, %v444_v56 }
  0x48   : > { %v578_v30 = vmul.f32 %v8836_v22, %v9328_v38  ;;  %v404_v39 = vmul.f32 %v8074_v43, %v9007_v10  ;;  %v838_v20 = vmul.f32 0.49, %v730_v23  ;;  %v590_v40 = vsel %vm588_vm4, %v589_v19, %v587_v47  ;;  %v8090_v47 = vld [vmem:[%s8993_s18 + $0x18] sm:$0xff]  }
  0x49   : > { %v517_v13 = vmul.f32 %v445_v49, %v445_v49  ;;  %v424_v15 = vadd.f32 %v9030_v24, %v381_v57  ;;  %v9456_v63 = vadd.f32 -5.8412553e-08, %v875_v16  ;;  %v9462_v22 = vmul.f32 0.51, %v9377_v5 }
  0x4a   : > { %v580_v35 = vsel %vm579_vm6, %v9328_v38, %v578_v30  ;;  %v447_v56 = vadd.f32 %v9030_v24, %v404_v39  ;;  %vm740_vm9 = vcmp.eq.f32.partialorder %v9394_v34, inf  ;;  %v8071_v19 = vunpack.c.h.bf16 %v9358_v44 }
  0x4b   : > { %1031 = vperm.xlu1 %8642, %v9365_v1   ;;  %1026 = vperm.xlu0 %8641, %v9370_v54   ;;  %11429 = vst [vmem:[#allocation6_spill] sm:$0xff] %v9456_v63  ;;  %v583_v21 = vsel %vm581_vm8, %v582_v4, %v580_v35  ;;  %v9470_v43 = vadd.f32 1.4210855e-14, %v517_v13  ;;  %v818_v16 = vmul.f32 0.49, %v590_v40  ;;  %vm742_vm10 = vcmp.eq.f32.partialorder %v9394_v34, 0.0 }
  0x4c   : > { %v496_v5 = vmul.f32 %v424_v15, %v424_v15  ;;  %v519_v23 = vmul.f32 %v447_v56, %v447_v56  ;;  %v874_v57 = vadd.f32 %v838_v20, %v9247_v28  ;;  %v743_v30 = vand.u32 2147483648, %v9394_v34 }
  0x4d   : > { %vm593_vm11 = vcmp.eq.f32.partialorder %v9398_v11, inf  ;;  %8841 = vrsqrt.f32 %v9470_v43  ;;  %v817_v4 = vmul.f32 0.49, %v583_v21  ;;  %vm595_vm12 = vcmp.eq.f32.partialorder %v9398_v11, 0.0 }
  0x4e   : > { %v8838_v38 = vpop.eup %8837  ;;  %v9480_v39 = vadd.f32 1.4210855e-14, %v496_v5  ;;  %v9482_v44 = vadd.f32 1.4210855e-14, %v519_v23  ;;  %v596_v20 = vand.u32 2147483648, %v9398_v11  ;;  %v403_v40 = vmul.f32 %v8071_v19, %v9007_v10 }
  0x4f   : > { %1041 = vperm.xlu1 %8642, %v9405_v51   ;;  %1036 = vperm.xlu0 %8641, %v9410_v53   ;;  %v739_v28 = vmul.f32 %v8838_v38, %v9394_v34  ;;  %v8031_v13 = vunpack.c.h.bf16 %v8090_v47  ;;  %v854_v21 = vadd.f32 %v818_v16, %v9326_v29  ;;  %v9490_v63 = vmul.f32 0.51, %v445_v49 }
  0x50   : > { %v8840_v35 = vpop.eup %8839  ;;  %8843 = vrsqrt.f32 %v9480_v39  ;;  %v8030_v5 = vunpack.c.l.bf16 %v8090_v47  ;;  %v9493_v23 = vadd.f32 -5.8412553e-08, %v874_v57  ;;  %v853_v19 = vadd.f32 %v817_v4, %v9374_v48 }
  0x51   : > { %8845 = vrsqrt.f32 %v9482_v44  ;;  %v9503_v49 = vmul.f32 0.51, %v424_v15  ;;  %v9505_v16 = vmul.f32 0.51, %v447_v56  ;;  %v446_v38 = vadd.f32 %v9030_v24, %v403_v40 }
  0x52   : > { %v383_v48 = vmul.f32 %v8031_v13, %v9007_v10  ;;  %v9514_v4 = vadd.f32 -5.8412553e-08, %v854_v21  ;;  %vm747_vm13 = vcmp.eq.f32.partialorder %v9470_v43, inf  ;;  %vm749_vm14 = vcmp.eq.f32.partialorder %v9470_v43, 0.0 }
  0x53   : > { %1136 = vperm.xlu1 %8642, %v9440_v55   ;;  %1131 = vperm.xlu0 %8641, %v9445_v25   ;;  %v382_v15 = vmul.f32 %v8030_v5, %v9007_v10  ;;  %v518_v56 = vmul.f32 %v446_v38, %v446_v38  ;;  %vm600_vm2 = vcmp.eq.f32.partialorder %v9480_v39, inf  ;;  %vm602_vm4 = vcmp.eq.f32.partialorder %v9480_v39, 0.0 }
  0x54   : > { %v426_v40 = vadd.f32 %v9030_v24, %v383_v48  ;;  %vm761_vm6 = vcmp.eq.f32.partialorder %v9482_v44, inf  ;;  %vm763_vm8 = vcmp.eq.f32.partialorder %v9482_v44, 0.0  ;;  %v9558_v48 = vld [vmem:[%s8993_s18 + $0x78] sm:$0xff]  }
  0x55   : > { %v425_v13 = vadd.f32 %v9030_v24, %v382_v15 }
  0x57   : > { %6798 = vperm.xlu1 %8642, %v9001_v8   ;;  %6793 = vperm.xlu0 %8641, %v8985_v6   ;;  %v741_v6 = vsel %vm740_vm9, %v9394_v34, %v739_v28  ;;  %v592_v8 = vmul.f32 %v8840_v35, %v9398_v11  ;;  %v750_v34 = vand.u32 2147483648, %v9470_v43  ;;  %v9526_v28 = vadd.f32 -5.8412553e-08, %v853_v19  ;;  %v9534_v35 = vld [vmem:[%s11416_s4 + $0x4] sm:$0xf] }
  0x58   : > { %v744_v29 = vsel %vm742_vm10, %v743_v30, %v741_v6  ;;  %v8075_v30 = vunpack.c.h.bf16 %v9390_v26  ;;  %v498_v19 = vmul.f32 %v426_v40, %v426_v40  ;;  %8622 = vmatprep.subr.msk.bf16.mxu1 %vm1995_vm15, %v9534_v35 }
  0x59   : > { %v840_v47 = vmul.f32 0.49, %v744_v29  ;;  %v594_v57 = vsel %vm593_vm11, %v9398_v11, %v592_v8  ;;  %11430 = vst [vmem:[#allocation7_spill] sm:$0xff] %v9526_v28  ;;  %v8842_v11 = vpop.eup %8841  ;;  %v603_v8 = vand.u32 2147483648, %v9480_v39  ;;  %v764_v29 = vand.u32 2147483648, %v9482_v44 }
  0x5a   : > { %v746_v6 = vmul.f32 %v8842_v11, %v9470_v43 }
  0x5b   : > { %6808 = vperm.xlu1 %8642, %v9049_v36   ;;  %6803 = vperm.xlu0 %8641, %v9054_v37   ;;  %v9520_v36 = vld [vmem:[%s8993_s18 + $0x20] sm:$0xff]   ;;  %v597_v37 = vsel %vm595_vm12, %v596_v20, %v594_v57  ;;  %v876_v26 = vadd.f32 %v840_v47, %v9450_v45  ;;  %v9540_v20 = vadd.f32 1.4210855e-14, %v518_v56  ;;  %v9555_v47 = vadd.f32 1.4210855e-14, %v498_v19 }
  0x5c   : > { %v8034_v21 = vunpack.c.l.bf16 %v9520_v36  ;;  %v819_v5 = vmul.f32 0.49, %v597_v37  ;;  %v748_v45 = vsel %vm747_vm13, %v9470_v43, %v746_v6  ;;  %v497_v57 = vmul.f32 %v425_v13, %v425_v13 }
  0x5d   : > { %8847 = vrsqrt.f32 %v9540_v20  ;;  %v9562_v37 = vadd.f32 -5.8412553e-08, %v876_v26  ;;  %v751_v19 = vsel %vm749_vm14, %v750_v34, %v748_v45  ;;  %v8078_v26 = vunpack.c.l.bf16 %v9558_v48 }
  0x5e   : > { %v384_v11 = vmul.f32 %v8034_v21, %v9007_v10  ;;  %v855_v6 = vadd.f32 %v819_v5, %v9462_v22  ;;  %8849 = vrsqrt.f32 %v9555_v47  ;;  %v9583_v22 = vld [vmem:[%s11416_s4 + $0x8] sm:$0xf]  ;;  %v9590_v21 = vmul.f32 0.51, %v426_v40 }
  0x5f   : > { %6818 = vperm.xlu1 %8642, %v9100_v61   ;;  %6813 = vperm.xlu0 %8641, %v9080_v52   ;;  %v405_v52 = vmul.f32 %v8075_v30, %v9007_v10  ;;  %v8844_v61 = vpop.eup %8843  ;;  %v9565_v30 = vmul.f32 0.51, %v446_v38  ;;  %v8035_v5 = vunpack.c.h.bf16 %v9520_v36  ;;  %vm754_vm9 = vcmp.eq.f32.partialorder %v9540_v20, inf }
  0x60   : > { %v8846_v15 = vpop.eup %8845  ;;  %v599_v56 = vmul.f32 %v8844_v61, %v9480_v39  ;;  %8623 = vmatprep.subr.msk.bf16.mxu0 %vm1995_vm15, %v9583_v22  ;;  %vm756_vm10 = vcmp.eq.f32.partialorder %v9540_v20, 0.0  ;;  %v406_v61 = vmul.f32 %v8078_v26, %v9007_v10  ;;  %vm614_vm11 = vcmp.eq.f32.partialorder %v9555_v47, inf }
  0x61   : > { %v760_v28 = vmul.f32 %v8846_v15, %v9482_v44  ;;  %v448_v38 = vadd.f32 %v9030_v24, %v405_v52  ;;  %v841_v52 = vmul.f32 0.49, %v751_v19  ;;  %vm616_vm12 = vcmp.eq.f32.partialorder %v9555_v47, 0.0 }
  0x63   : > { %6828 = vperm.xlu1 %8642, %v9160_v32   ;;  %6823 = vperm.xlu0 %8641, %v9165_v33   ;;  %v601_v32 = vsel %vm600_vm2, %v9480_v39, %v599_v56  ;;  %v9576_v33 = vadd.f32 1.4210855e-14, %v497_v57  ;;  %v762_v34 = vsel %vm761_vm6, %v9482_v44, %v760_v28  ;;  %v9602_v28 = vadd.f32 -5.8412553e-08, %v855_v6 }
  0x64   : > { %v604_v43 = vsel %vm602_vm4, %v603_v8, %v601_v32  ;;  %v765_v39 = vsel %vm763_vm8, %v764_v29, %v762_v34  ;;  %v9599_v8 = vmul.f32 0.51, %v425_v13  ;;  %v757_v44 = vand.u32 2147483648, %v9540_v20 }
  0x65   : > { %8851 = vrsqrt.f32 %v9576_v33  ;;  %v820_v40 = vmul.f32 0.49, %v604_v43  ;;  %v843_v36 = vmul.f32 0.49, %v765_v39  ;;  %v385_v13 = vmul.f32 %v8035_v5, %v9007_v10 }
  0x66   : > { %v877_v29 = vadd.f32 %v841_v52, %v9490_v63  ;;  %v617_v57 = vand.u32 2147483648, %v9555_v47  ;;  %v9622_v19 = vmul.f32 0.51, %v448_v38  ;;  %v449_v32 = vadd.f32 %v9030_v24, %v406_v61 }
  0x67   : > { %6838 = vperm.xlu1 %8642, %v9238_v18   ;;  %6833 = vperm.xlu0 %8641, %v9202_v3   ;;  %v520_v18 = vmul.f32 %v448_v38, %v448_v38  ;;  %v427_v3 = vadd.f32 %v9030_v24, %v384_v11  ;;  %v8848_v45 = vpop.eup %8847  ;;  %v9619_v11 = vld [vmem:[%s8993_s18 + $0x80] sm:$0xff]   ;;  %v428_v26 = vadd.f32 %v9030_v24, %v385_v13  ;;  %vm607_vm13 = vcmp.eq.f32.partialorder %v9576_v33, inf }
  0x68   : > { %v753_v6 = vmul.f32 %v8848_v45, %v9540_v20  ;;  %v8850_v63 = vpop.eup %8849  ;;  %v521_v38 = vmul.f32 %v449_v32, %v449_v32  ;;  %v8082_v5 = vunpack.c.l.bf16 %v9619_v11  ;;  %vm609_vm14 = vcmp.eq.f32.partialorder %v9576_v33, 0.0 }
  0x69   : > { %v9616_v15 = vadd.f32 1.4210855e-14, %v520_v18  ;;  %v499_v56 = vmul.f32 %v427_v3, %v427_v3  ;;  %v613_v52 = vmul.f32 %v8850_v63, %v9555_v47  ;;  %v500_v39 = vmul.f32 %v428_v26, %v428_v26 }
  0x6a   : > { %v755_v43 = vsel %vm754_vm9, %v9540_v20, %v753_v6  ;;  %v9650_v61 = vadd.f32 1.4210855e-14, %v521_v38  ;;  %v9657_v45 = vmul.f32 0.51, %v427_v3 }
  0x6b   : > { %6848 = vperm.xlu1 %8642, %v9299_v7   ;;  %6843 = vperm.xlu0 %8641, %v9304_v9   ;;  %v856_v7 = vadd.f32 %v820_v40, %v9503_v49  ;;  %v879_v9 = vadd.f32 %v843_v36, %v9505_v16  ;;  %8853 = vrsqrt.f32 %v9616_v15  ;;  %v9633_v34 = vadd.f32 1.4210855e-14, %v499_v56 }
  0x6c   : > { %v9638_v49 = vadd.f32 -5.8412553e-08, %v877_v29  ;;  %v758_v16 = vsel %vm756_vm10, %v757_v44, %v755_v43  ;;  %v610_v40 = vand.u32 2147483648, %v9576_v33  ;;  %v8079_v36 = vunpack.c.h.bf16 %v9558_v48 }
  0x6d   : > { %8855 = vrsqrt.f32 %v9633_v34  ;;  %v9652_v20 = vadd.f32 1.4210855e-14, %v500_v39  ;;  %v9654_v44 = vadd.f32 -5.8412553e-08, %v856_v7  ;;  %v408_v29 = vmul.f32 %v8082_v5, %v9007_v10 }
  0x6e   : > { %v9662_v48 = vadd.f32 -5.8412553e-08, %v879_v9  ;;  %vm768_vm2 = vcmp.eq.f32.partialorder %v9616_v15, inf  ;;  %vm770_vm4 = vcmp.eq.f32.partialorder %v9616_v15, 0.0  ;;  %8857 = vrsqrt.f32 %v9650_v61 }
  0x6f   : > { %6858 = vperm.xlu1 %8642, %v9370_v54   ;;  %6853 = vperm.xlu0 %8641, %v9338_v59   ;;  %v8852_v18 = vpop.eup %8851  ;;  %v842_v54 = vmul.f32 0.49, %v758_v16  ;;  %v615_v59 = vsel %vm614_vm11, %v9555_v47, %v613_v52  ;;  %v771_v6 = vand.u32 2147483648, %v9616_v15  ;;  %8859 = vrsqrt.f32 %v9652_v20 }
  0x70   : > { %v606_v13 = vmul.f32 %v8852_v18, %v9576_v33  ;;  %v618_v56 = vsel %vm616_vm12, %v617_v57, %v615_v59  ;;  %vm621_vm6 = vcmp.eq.f32.partialorder %v9633_v34, inf  ;;  %v9677_v7 = vmul.f32 0.51, %v449_v32 }
  0x71   : > { %v9679_v9 = vmul.f32 0.51, %v428_v26  ;;  %vm623_vm8 = vcmp.eq.f32.partialorder %v9633_v34, 0.0  ;;  %v451_v57 = vadd.f32 %v9030_v24, %v408_v29  ;;  %v407_v63 = vmul.f32 %v8079_v36, %v9007_v10  ;;  %v8888_v29 = vld [vmem:[%s11412_s0 + $0x90] sm:$0xff] }
  0x72   : > { %v608_v3 = vsel %vm607_vm13, %v9576_v33, %v606_v13  ;;  %v822_v32 = vmul.f32 0.49, %v618_v56  ;;  %v624_v26 = vand.u32 2147483648, %v9633_v34  ;;  %vm775_vm9 = vcmp.eq.f32.partialorder %v9650_v61, inf }
  0x73   : > { %6868 = vperm.xlu1 %8642, %v9410_v53   ;;  %6863 = vperm.xlu0 %8641, %v9365_v1   ;;  %v8092_v1 = vld [vmem:[%s8993_s18 + $0x28] sm:$0xff]   ;;  %v878_v53 = vadd.f32 %v842_v54, %v9565_v30  ;;  %v611_v47 = vsel %vm609_vm14, %v610_v40, %v608_v3  ;;  %vm777_vm10 = vcmp.eq.f32.partialorder %v9650_v61, 0.0  ;;  %v523_v10 = vmul.f32 %v451_v57, %v451_v57  ;;  %v9706_v54 = vld [vmem:[%s11414_s2] ss:$0 sm:$0xff] }
  0x74   : > { %v8885_v30 = vld [vmem:[%s11412_s0 + $0x88] sm:$0xff]  ;;  %v8039_v38 = vunpack.c.h.bf16 %v8092_v1  ;;  %v8038_v33 = vunpack.c.l.bf16 %v8092_v1  ;;  %v821_v52 = vmul.f32 0.49, %v611_v47  ;;  %v778_v39 = vand.u32 2147483648, %v9650_v61 }
  0x75   : > { %v8854_v43 = vpop.eup %8853  ;;  %v9694_v16 = vadd.f32 -5.8412553e-08, %v878_v53  ;;  %v450_v40 = vadd.f32 %v9030_v24, %v407_v63  ;;  %v9701_v18 = vadd.f32 1.4210855e-14, %v523_v10  ;;  %v8887_v24 = vld [vmem:[%s11412_s0 + $0x98] sm:$0xff]  ;;  %v8083_v53 = vunpack.c.h.bf16 %v9619_v11  ;;  %v8890_v10 = vld [vmem:[%s11412_s0 + $0xa8] sm:$0xff] }
  0x76   : > { %v767_v5 = vmul.f32 %v8854_v43, %v9616_v15  ;;  %v387_v59 = vmul.f32 %v9706_v54, %v8039_v38  ;;  %v386_v13 = vmul.f32 %v9706_v54, %v8038_v33  ;;  %v858_v47 = vadd.f32 %v822_v32, %v9590_v21  ;;  %v9737_v33 = vld [vmem:[%s11415_s3] ss:$0 sm:$0xff] }
  0x77   : > { %6878 = vperm.xlu1 %8642, %v8885_v30   ;;  %6873 = vperm.xlu0 %8641, %v9405_v51   ;;  %v8856_v51 = vpop.eup %8855  ;;  %v522_v1 = vmul.f32 %v450_v40, %v450_v40  ;;  %vm628_vm11 = vcmp.eq.f32.partialorder %v9652_v20, inf  ;;  %vm630_vm12 = vcmp.eq.f32.partialorder %v9652_v20, 0.0  ;;  %8861 = vrsqrt.f32 %v9701_v18 }
  0x78   : > { %v769_v36 = vsel %vm768_vm2, %v9616_v15, %v767_v5  ;;  %v620_v3 = vmul.f32 %v8856_v51, %v9633_v34  ;;  %v8858_v63 = vpop.eup %8857  ;;  %v857_v43 = vadd.f32 %v821_v52, %v9599_v8  ;;  %v430_v8 = vadd.f32 %v9737_v33, %v387_v59  ;;  %v9741_v5 = vld [vmem:[%s8993_s18 + $0x30] sm:$0xff]  }
  0x79   : > { %v772_v56 = vsel %vm770_vm4, %v771_v6, %v769_v36  ;;  %v631_v6 = vand.u32 2147483648, %v9652_v20  ;;  %v9729_v30 = vadd.f32 1.4210855e-14, %v522_v1  ;;  %v8860_v11 = vpop.eup %8859  ;;  %v774_v32 = vmul.f32 %v8858_v63, %v9650_v61 }
  0x7a   : > { %v622_v15 = vsel %vm621_vm6, %v9633_v34, %v620_v3  ;;  %v844_v38 = vmul.f32 0.49, %v772_v56  ;;  %v8891_v34 = vld [vmem:[%s11412_s0 + $0xa0] sm:$0xff]  ;;  %v429_v52 = vadd.f32 %v9737_v33, %v386_v13  ;;  %v409_v51 = vmul.f32 %v9706_v54, %v8083_v53 }
  0x7b   : > { %6888 = vperm.xlu1 %8642, %v8887_v24   ;;  %6883 = vperm.xlu0 %8641, %v8888_v29   ;;  %v625_v21 = vsel %vm623_vm8, %v624_v26, %v622_v15  ;;  %v627_v26 = vmul.f32 %v8860_v11, %v9652_v20  ;;  %8863 = vrsqrt.f32 %v9729_v30  ;;  %v9753_v36 = vadd.f32 -5.8412553e-08, %v858_v47 }
  0x7c   : > { %v823_v59 = vmul.f32 0.49, %v625_v21  ;;  %v776_v24 = vsel %vm775_vm9, %v9650_v61, %v774_v32  ;;  %v9758_v29 = vmul.f32 0.51, %v451_v57  ;;  %v9760_v56 = vadd.f32 -5.8412553e-08, %v857_v43 }
  0x7d   : > { %v779_v3 = vsel %vm777_vm10, %v778_v39, %v776_v24  ;;  %v629_v13 = vsel %vm628_vm11, %v9652_v20, %v627_v26  ;;  %v8042_v1 = vunpack.c.l.bf16 %v9741_v5  ;;  %v880_v53 = vadd.f32 %v844_v38, %v9622_v19  ;;  %v8892_v57 = vld [vmem:[%s11412_s0 + $0xb8] sm:$0xff]  ;;  %v8893_v61 = vld [vmem:[%s11412_s0 + $0xb0] sm:$0xff]  ;;  %v8894_v26 = vld [vmem:[%s11412_s0 + $0xc8] sm:$0xff] }
  0x7e   : > { %v845_v47 = vmul.f32 0.49, %v779_v3  ;;  %v632_v63 = vsel %vm630_vm12, %v631_v6, %v629_v13  ;;  %v502_v15 = vmul.f32 %v430_v8, %v430_v8  ;;  %vm789_vm13 = vcmp.eq.f32.partialorder %v9701_v18, inf }
  0x7f   : > { %6898 = vperm.xlu1 %8642, %v8890_v10   ;;  %6893 = vperm.xlu0 %8641, %v8891_v34   ;;  %v9778_v39 = vmul.f32 0.51, %v450_v40  ;;  %v501_v19 = vmul.f32 %v429_v52, %v429_v52  ;;  %v452_v20 = vadd.f32 %v9737_v33, %v409_v51  ;;  %v859_v43 = vadd.f32 %v823_v59, %v9657_v45  ;;  %v9796_v45 = vld [vmem:[%s8993_s18 + $0x38] sm:$0xff]   ;;  %v8895_v51 = vld [vmem:[%s11412_s0 + $0xc0] sm:$0xff] }
  0x80   : > { %v824_v6 = vmul.f32 0.49, %v632_v63  ;;  %vm791_vm14 = vcmp.eq.f32.partialorder %v9701_v18, 0.0  ;;  %v9783_v11 = vadd.f32 1.4210855e-14, %v502_v15  ;;  %v792_v38 = vand.u32 2147483648, %v9701_v18 }
  0x81   : > { %vm782_vm2 = vcmp.eq.f32.partialorder %v9729_v30, inf  ;;  %v9787_v21 = vadd.f32 1.4210855e-14, %v501_v19  ;;  %v388_v40 = vmul.f32 %v9706_v54, %v8042_v1  ;;  %v8862_v32 = vpop.eup %8861  ;;  %v9790_v10 = vadd.f32 -5.8412553e-08, %v880_v53 }
  0x82   : > { %v881_v34 = vadd.f32 %v845_v47, %v9677_v7  ;;  %vm784_vm4 = vcmp.eq.f32.partialorder %v9729_v30, 0.0  ;;  %8865 = vrsqrt.f32 %v9783_v11  ;;  %v788_v59 = vmul.f32 %v8862_v32, %v9701_v18 }
  0x83   : > { %6908 = vperm.xlu1 %8642, %v8892_v57   ;;  %6903 = vperm.xlu0 %8641, %v8893_v61   ;;  %v785_v7 = vand.u32 2147483648, %v9729_v30  ;;  %8867 = vrsqrt.f32 %v9787_v21  ;;  %v524_v24 = vmul.f32 %v452_v20, %v452_v20  ;;  %v9807_v3 = vadd.f32 -5.8412553e-08, %v859_v43  ;;  %v8896_v43 = vld [vmem:[%s11412_s0 + $0xd0] sm:$0xff] }
  0x84   : > { %v860_v13 = vadd.f32 %v824_v6, %v9679_v9  ;;  %v9810_v1 = vmul.f32 0.51, %v430_v8  ;;  %v9812_v53 = vmul.f32 0.51, %v429_v52  ;;  %v790_v63 = vsel %vm789_vm13, %v9701_v18, %v788_v59 }
  0x85   : > { %v8864_v47 = vpop.eup %8863  ;;  %v431_v15 = vadd.f32 %v9737_v33, %v388_v40  ;;  %v9820_v57 = vsel %vm1995_vm15, %v9534_v35, 0  ;;  %v8046_v61 = vunpack.c.l.bf16 %v9796_v45  ;;  %v9823_v19 = vadd.f32 -5.8412553e-08, %v881_v34 }
  0x86   : > { %v793_v9 = vsel %vm791_vm14, %v792_v38, %v790_v63  ;;  %v781_v8 = vmul.f32 %v8864_v47, %v9729_v30  ;;  %v9828_v52 = vmul.f32 0.51, %v452_v20  ;;  %vm642_vm6 = vcmp.eq.f32.partialorder %v9783_v11, inf  ;;  %v8897_v63 = vld [vmem:[%s11412_s0 + $0xe0] sm:$0xff] }
  0x87   : > { %6918 = vperm.xlu1 %8642, %v8894_v26   ;;  %6913 = vperm.xlu0 %8641, %v8895_v51   ;;  %v847_v35 = vmul.f32 0.49, %v793_v9  ;;  %vm644_vm8 = vcmp.eq.f32.partialorder %v9783_v11, 0.0  ;;  %v9836_v6 = vadd.f32 1.4210855e-14, %v524_v24  ;;  %v9838_v18 = vadd.f32 -5.8412553e-08, %v860_v13 }
  0x88   : > { %v783_v20 = vsel %vm782_vm2, %v9729_v30, %v781_v8  ;;  %v503_v38 = vmul.f32 %v431_v15, %v431_v15  ;;  %vm635_vm9 = vcmp.eq.f32.partialorder %v9787_v21, inf  ;;  %v390_v34 = vmul.f32 %v9706_v54, %v8046_v61 }
  0x89   : > { %v786_v40 = vsel %vm784_vm4, %v785_v7, %v783_v20  ;;  %v883_v59 = vadd.f32 %v847_v35, %v9758_v29  ;;  %v9854_v47 = vsel %vm1995_vm15, %v9583_v22, 0  ;;  %8869 = vrsqrt.f32 %v9836_v6 }
  0x8a   : > { %v846_v24 = vmul.f32 0.49, %v786_v40  ;;  %v9850_v13 = vadd.f32 1.4210855e-14, %v503_v38  ;;  %vm1302_vm10 = vsmask.f32 5392  ;;  %v9874_v38 = vadd.f32 %v9737_v33, %v390_v34 }
  0x8b   : > { %6928 = vperm.xlu1 %8642, %v9139_v17   ;;  %6923 = vperm.xlu0 %8641, %v8896_v43   ;;  %v645_v17 = vand.u32 2147483648, %v9783_v11  ;;  %v9865_v9 = vmul.f32 0.51, %v431_v15  ;;  %vm9908_vm11 = vmor %vm1179_vm1, %vm1302_vm10  ;;  %vm637_vm1 = vcmp.eq.f32.partialorder %v9787_v21, 0.0  ;;  %vm798_vm12 = vcmp.eq.f32.partialorder %v9836_v6, 0.0 }
  0x8c   : > { %v8866_v61 = vpop.eup %8865  ;;  %v882_v22 = vadd.f32 %v846_v24, %v9778_v39  ;;  %8871 = vrsqrt.f32 %v9850_v13  ;;  %vm649_vm13 = vcmp.eq.f32.partialorder %v9850_v13, inf  ;;  %vm651_vm14 = vcmp.eq.f32.partialorder %v9850_v13, 0.0 }
  0x8d   : > { %v8868_v8 = vpop.eup %8867  ;;  %v641_v20 = vmul.f32 %v8866_v61, %v9783_v11 }
  0x8e   : > { %v1057_v26 = vpop.permute.xlu1 %1056  ;;  %v1047_v51 = vpop.permute.xlu0 %1046  ;;  %v634_v39 = vmul.f32 %v8868_v8, %v9787_v21 }
  0x8f   : > { %v1158_v30 = vmul.f32 %v9255_v0, %v1057_v26  ;;  %v1156_v7 = vmul.f32 %v9268_v42, %v1047_v51  ;;  %6938 = vperm.xlu1 %8642, %v9197_v2   ;;  %6933 = vperm.xlu0 %8641, %v8897_v63   ;;  %v9869_v42 = vld [vmem:[%s8993_s18 + $0x40] sm:$0xff]   ;;  %v9876_v51 = vadd.f32 -5.8412553e-08, %v883_v59  ;;  %v9885_v59 = vadd.f32 -5.8412553e-08, %v882_v22 }
  0x91   : > { %v7963_v43 = vpack.c.bf16 %v1158_v30, %v1158_v30  ;;  %v7961_v35 = vpack.c.bf16 %v1156_v7, %v1156_v7  ;;  %v643_v7 = vsel %vm642_vm6, %v9783_v11, %v641_v20 }
  0x92   : > { %v1062_v40 = vpop.permute.xlu1 %1061  ;;  %v1052_v26 = vpop.permute.xlu0 %1051 }
  0x93   : > { %v1494_v24 = vshrl.u32 %v7963_v43, 16  ;;  %v1497_v63 = vshll.u32 %v7963_v43, 16  ;;  %v1474_v2 = vshrl.u32 %v7961_v35, 16  ;;  %v1477_v30 = vshll.u32 %v7961_v35, 16  ;;  %6948 = vperm.xlu1 %8642, %v9266_v41   ;;  %6943 = vperm.xlu0 %8641, %v9233_v50   ;;  %v9903_v11 = vpop.eup %8869 }
  0x94   : > { %v1159_v33 = vmul.f32 %v9284_v58, %v1062_v40  ;;  %v1157_v34 = vmul.f32 %v9310_v12, %v1052_v26  ;;  %v646_v50 = vsel %vm644_vm8, %v645_v17, %v643_v7  ;;  %v9895_v58 = vsel %vm635_vm9, %v9787_v21, %v634_v39 }
  0x95   : > { %v1496_v61 = vrot.slane %v1494_v24, 6  ;;  %v1499_v8 = vrot.slane %v1497_v63, 7  ;;  %v1476_v15 = vrot.slane %v1474_v2, 6  ;;  %v1479_v43 = vrot.slane %v1477_v30, 7 }
  0x96   : > { %v7964_v29 = vpack.c.bf16 %v1159_v33, %v1159_v33  ;;  %v7962_v35 = vpack.c.bf16 %v1157_v34, %v1157_v34  ;;  %v1067_v0 = vpop.permute.xlu1 %1066  ;;  %v962_v41 = vpop.permute.xlu0 %961 }
  0x97   : > { %v1500_v12 = vor.u32 %v1499_v8, %v1496_v61  ;;  %v9897_v22 = vor.u32 %v1479_v43, %v1476_v15  ;;  %v1160_v20 = vmul.f32 %v9321_v46, %v1067_v0  ;;  %v1139_v2 = vmul.f32 %v9379_v62, %v962_v41  ;;  %6958 = vperm.xlu1 %8642, %v9333_v31   ;;  %v9913_v43 = vpop.eup %8871 }
  0x98   : > { %v1504_v40 = vshrl.u32 %v7964_v29, 16  ;;  %v1507_v26 = vshll.u32 %v7964_v29, 16  ;;  %v1484_v24 = vshrl.u32 %v7962_v35, 16  ;;  %v1487_v63 = vshll.u32 %v7962_v35, 16  ;;  %6953 = vperm.xlu0 %8641, %v9261_v60  }
  0x99   : > { %11431 = vst [vmem:[#allocation8_spill] sm:$0xff] %v9897_v22  ;;  %v1502_v17 = vrot.slane %v1500_v12, 4  ;;  %v1482_v39 = vrot.slane %v9897_v22, 4  ;;  %v7965_v30 = vpack.c.bf16 %v1160_v20, %v1160_v20  ;;  %v7944_v15 = vpack.c.bf16 %v1139_v2, %v1139_v2 }
  0x9a   : > { %v1506_v33 = vrot.slane %v1504_v40, 6  ;;  %v1509_v34 = vrot.slane %v1507_v26, 7  ;;  %v1486_v46 = vrot.slane %v1484_v24, 6  ;;  %v1489_v0 = vrot.slane %v1487_v63, 7  ;;  %v1072_v62 = vpop.permute.xlu1 %1071  ;;  %v967_v7 = vpop.permute.xlu0 %966 }
  0x9b   : > { %v1514_v60 = vshrl.u32 %v7965_v30, 16  ;;  %v1517_v29 = vshll.u32 %v7965_v30, 16  ;;  %v1305_v61 = vshrl.u32 %v7944_v15, 16  ;;  %v1308_v8 = vshll.u32 %v7944_v15, 16  ;;  %6968 = vperm.xlu1 %8642, %v9440_v55  }
  0x9c   : > { %v1510_v35 = vor.u32 %v1509_v34, %v1506_v33  ;;  %v1490_v41 = vor.u32 %v1489_v0, %v1486_v46  ;;  %v1161_v20 = vmul.f32 %v9419_v14, %v1072_v62  ;;  %v1140_v2 = vmul.f32 %v9447_v27, %v967_v7  ;;  %6963 = vperm.xlu0 %8641, %v9445_v25   ;;  %v1700_v33 = vld [vmem:[#allocation2 + $0x8] sm:$0xe] }
  0x9d   : > { %v1516_v40 = vrot.slane %v1514_v60, 6  ;;  %v1519_v26 = vrot.slane %v1517_v29, 7  ;;  %v1307_v24 = vrot.slane %v1305_v61, 6  ;;  %v1310_v63 = vrot.slane %v1308_v8, 7 }
  0x9e   : > { %v1511_v30 = vsel %vm9908_vm11, %v1502_v17, %v1510_v35  ;;  %v1512_v15 = vrot.slane %v1510_v35, 4  ;;  %v1491_v55 = vsel %vm9908_vm11, %v1482_v39, %v1490_v41  ;;  %v1492_v32 = vrot.slane %v1490_v41, 4  ;;  %v1082_v34 = vpop.permute.xlu1 %1081  ;;  %v1077_v46 = vpop.permute.xlu0 %1076  ;;  %v11434_v17 = vld [vmem:[#allocation6_spill] sm:$0xff] }
  0x9f   : > { %1722 = vst.msk [vmem:[#allocation2 + $0x58] sm:$0xf] %vm1175_vm0, %v1511_v30  ;;  %1720 = vst.msk [vmem:[#allocation2 + $0x50] sm:$0xf] %vm1175_vm0, %v1491_v55  ;;  %v1520_v14 = vor.u32 %v1519_v26, %v1516_v40  ;;  %v1311_v25 = vor.u32 %v1310_v63, %v1307_v24  ;;  %v7966_v27 = vpack.c.bf16 %v1161_v20, %v1161_v20  ;;  %v9928_v39 = vmul.f32 0.49, %v646_v50 }
  0xa0   : > { %v7945_v0 = vpack.c.bf16 %v1140_v2, %v1140_v2  ;;  %v1501_v62 = vsel %vm9908_vm11, %v1492_v32, %v1500_v12  ;;  %v1163_v7 = vmul.f32 %v11434_v17, %v1082_v34  ;;  %v1162_v60 = vmul.f32 %v9493_v23, %v1077_v46  ;;  %v11436_v63 = vld [vmem:[#allocation7_spill] sm:$0xff] }
  0xa1   : > { %1721 = vst.msk [vmem:[#allocation2 + $0x54] sm:$0xf] %vm1175_vm0, %v1501_v62  ;;  %v1521_v29 = vsel %vm9908_vm11, %v1512_v15, %v1520_v14  ;;  %v1522_v61 = vrot.slane %v1520_v14, 4  ;;  %v1312_v8 = vrot.slane %v1311_v25, 4  ;;  %v1701_v41 = vsel %vm9108_vm7, %v1311_v25, %v1700_v33 }
  0xa2   : > { %1723 = vst.msk [vmem:[#allocation2 + $0x5c] sm:$0xf] %vm1175_vm0, %v1521_v29  ;;  %1702 = vst [vmem:[#allocation2 + $0x8] sm:$0xe] %v1701_v41  ;;  %v1524_v32 = vshrl.u32 %v7966_v27, 16  ;;  %v1527_v12 = vshll.u32 %v7966_v27, 16  ;;  %v977_v23 = vpop.permute.xlu1 %976  ;;  %v972_v50 = vpop.permute.xlu0 %971  ;;  %v7968_v40 = vpack.c.bf16 %v1163_v7, %v1163_v7  ;;  %v7967_v26 = vpack.c.bf16 %v1162_v60, %v1162_v60 }
  0xa3   : > { %v1314_v20 = vshrl.u32 %v7945_v0, 16  ;;  %v1317_v2 = vshll.u32 %v7945_v0, 16  ;;  %v1142_v24 = vmul.f32 %v9514_v4, %v977_v23  ;;  %v1141_v30 = vmul.f32 %v11436_v63, %v972_v50  ;;  %v9945_v50 = vld [vmem:[%s11416_s4 + $0xc] sm:$0xf] }
  0xa4   : > { %v1526_v15 = vrot.slane %v1524_v32, 6  ;;  %v1529_v55 = vrot.slane %v1527_v12, 7  ;;  %v1544_v33 = vshrl.u32 %v7968_v40, 16  ;;  %v1547_v14 = vshll.u32 %v7968_v40, 16 }
  0xa5   : > { %v1316_v34 = vrot.slane %v1314_v20, 6  ;;  %v1319_v46 = vrot.slane %v1317_v2, 7  ;;  %v1534_v25 = vshrl.u32 %v7967_v26, 16  ;;  %v1537_v62 = vshll.u32 %v7967_v26, 16 }
  0xa6   : > { %v1530_v17 = vor.u32 %v1529_v55, %v1526_v15  ;;  %v7947_v29 = vpack.c.bf16 %v1142_v24, %v1142_v24  ;;  %v7946_v0 = vpack.c.bf16 %v1141_v30, %v1141_v30  ;;  %v1087_v35 = vpop.permute.xlu1 %1086  ;;  %v982_v41 = vpop.permute.xlu0 %981  ;;  %v1546_v7 = vrot.slane %v1544_v33, 6 }
  0xa7   : > { %v1320_v27 = vor.u32 %v1319_v46, %v1316_v34  ;;  %v1549_v60 = vrot.slane %v1547_v14, 7  ;;  %v1536_v22 = vrot.slane %v1534_v25, 6  ;;  %v1539_v4 = vrot.slane %v1537_v62, 7 }
  0xa8   : > { %v1531_v32 = vsel %vm9908_vm11, %v1522_v61, %v1530_v17  ;;  %v1532_v12 = vrot.slane %v1530_v17, 4  ;;  %v8643_v23 = vld [vmem:[#allocation2 + $0x50] sm:$0xff]   ;;  %v1334_v24 = vshrl.u32 %v7947_v29, 16  ;;  %v1337_v61 = vshll.u32 %v7947_v29, 16 }
  0xa9   : > { %v1321_v20 = vsel %vm9908_vm11, %v1312_v8, %v1320_v27  ;;  %v1322_v2 = vrot.slane %v1320_v27, 4  ;;  %1724 = vst.msk [vmem:[#allocation2 + $0x60] sm:$0xf] %vm1175_vm0, %v1531_v32  ;;  %v9949_v40 = vor.u32 %v1549_v60, %v1546_v7  ;;  %v1540_v26 = vor.u32 %v1539_v4, %v1536_v22  ;;  %v8644_v63 = vld [vmem:[#allocation2 + $0x58] sm:$0xff]   ;;  %8298 = vmatprep.mubr.msk.bf16.mxu1 %vm1741_vm5, %v8643_v23 }
  0xaa   : > { %1703 = vst.msk [vmem:[#allocation2 + $0xc] sm:$0xf] %vm1175_vm0, %v1321_v20  ;;  %v1324_v30 = vshrl.u32 %v7946_v0, 16  ;;  %v1327_v15 = vshll.u32 %v7946_v0, 16  ;;  %v1164_v8 = vmul.f32 %v9562_v37, %v1087_v35  ;;  %v1143_v55 = vmul.f32 %v9602_v28, %v982_v41  ;;  %v1092_v34 = vpop.permute.xlu1 %1091  ;;  %v987_v46 = vpop.permute.xlu0 %986  ;;  %8299 = vmatmul.mubr.msk.bf16.vlgmr.msra.gmra.mrb[0].mxu1 %vm1741_vm5, %v8644_v63 }
  0xab   : > { %v1552_v33 = vrot.slane %v9949_v40, 4  ;;  %v1541_v14 = vsel %vm9908_vm11, %v1532_v12, %v1540_v26  ;;  %v1542_v25 = vrot.slane %v1540_v26, 4  ;;  %v1336_v22 = vrot.slane %v1334_v24, 6  ;;  %8315 = vmatpush3.bf16.msra.mxu1 %v9820_v57 }
  0xac   : > { %1725 = vst.msk [vmem:[#allocation2 + $0x64] sm:$0xf] %vm1175_vm0, %v1541_v14  ;;  %v1339_v62 = vrot.slane %v1337_v61, 7  ;;  %v1326_v17 = vrot.slane %v1324_v30, 6  ;;  %v1329_v37 = vrot.slane %v1327_v15, 7  ;;  %v7969_v27 = vpack.c.bf16 %v1164_v8, %v1164_v8  ;;  %8624 = vmatprep.subr.msk.bf16.mxu1 %vm1995_vm15, %v9945_v50 }
  0xad   : > { %v1551_v28 = vsel %vm9908_vm11, %v1542_v25, %v9949_v40  ;;  %v7948_v29 = vpack.c.bf16 %v1143_v55, %v1143_v55  ;;  %v1165_v0 = vmul.f32 %v9638_v49, %v1092_v34  ;;  %v1144_v35 = vmul.f32 %v9654_v44, %v987_v46  ;;  %v7716_v49 = vld [vmem:[%s11416_s4 + $0x10] sm:$0xf] }
  0xae   : > { %1726 = vst.msk [vmem:[#allocation2 + $0x68] sm:$0xf] %vm1175_vm0, %v1551_v28  ;;  %v1340_v41 = vor.u32 %v1339_v62, %v1336_v22  ;;  %v1330_v7 = vor.u32 %v1329_v37, %v1326_v17  ;;  %v1554_v60 = vshrl.u32 %v7969_v27, 16  ;;  %v1557_v57 = vshll.u32 %v7969_v27, 16  ;;  %v1102_v4 = vpop.permute.xlu1 %1101  ;;  %v1097_v32 = vpop.permute.xlu0 %1096 }
  0xaf   : > { %v1344_v12 = vshrl.u32 %v7948_v29, 16  ;;  %v1347_v20 = vshll.u32 %v7948_v29, 16  ;;  %v7970_v23 = vpack.c.bf16 %v1165_v0, %v1165_v0  ;;  %v7949_v40 = vpack.c.bf16 %v1144_v35, %v1144_v35 }
  0xb0   : > { %v1342_v44 = vrot.slane %v1340_v41, 4  ;;  %v1331_v26 = vsel %vm9908_vm11, %v1322_v2, %v1330_v7  ;;  %v1332_v24 = vrot.slane %v1330_v7, 4  ;;  %v1556_v61 = vrot.slane %v1554_v60, 6 }
  0xb1   : > { %v8646_v63 = vld [vmem:[#allocation2 + $0x8] sm:$0xff]   ;;  %1704 = vst.msk [vmem:[#allocation2 + $0x10] sm:$0xf] %vm1175_vm0, %v1331_v26  ;;  %v1559_v30 = vrot.slane %v1557_v57, 7  ;;  %v1346_v15 = vrot.slane %v1344_v12, 6  ;;  %v1349_v8 = vrot.slane %v1347_v20, 7  ;;  %v1167_v27 = vmul.f32 %v9662_v48, %v1102_v4 }
  0xb2   : > { %v1564_v55 = vshrl.u32 %v7970_v23, 16  ;;  %v1341_v34 = vsel %vm9908_vm11, %v1332_v24, %v1340_v41  ;;  %v1567_v46 = vshll.u32 %v7970_v23, 16  ;;  %v1354_v14 = vshrl.u32 %v7949_v40, 16  ;;  %8279 = vmatmul.mubr.msk.bf16.vlgmr.msra.gmra.mrb[0].mxu0 %vm1741_vm5, %v8646_v63  ;;  %v997_v22 = vpop.permute.xlu1 %996  ;;  %v992_v62 = vpop.permute.xlu0 %991 }
  0xb3   : > { %v1357_v25 = vshll.u32 %v7949_v40, 16  ;;  %1705 = vst.msk [vmem:[#allocation2 + $0x14] sm:$0xf] %vm1175_vm0, %v1341_v34  ;;  %v1560_v2 = vor.u32 %v1559_v30, %v1556_v61  ;;  %v1350_v17 = vor.u32 %v1349_v8, %v1346_v15  ;;  %v8647_v28 = vld [vmem:[#allocation2 + $0x60] sm:$0xff]   ;;  %8353 = vmatpush3.bf16.msra.mxu0 %v9854_v47  ;;  %v1166_v41 = vmul.f32 %v9694_v16, %v1097_v32 }
  0xb4   : > { %v1566_v37 = vrot.slane %v1564_v55, 6  ;;  %v1569_v29 = vrot.slane %v1567_v46, 7  ;;  %v1356_v0 = vrot.slane %v1354_v14, 6  ;;  %8625 = vmatprep.subr.msk.bf16.mxu0 %vm1995_vm15, %v7716_v49  ;;  %8302 = vmatprep.mubr.msk.bf16.mxu1 %vm1741_vm5, %v8647_v28  ;;  %v7972_v16 = vpack.c.bf16 %v1167_v27, %v1167_v27 }
  0xb5   : > { %v1359_v35 = vrot.slane %v1357_v25, 7  ;;  %v1561_v7 = vsel %vm9908_vm11, %v1552_v33, %v1560_v2  ;;  %v1562_v60 = vrot.slane %v1560_v2, 4  ;;  %v1351_v57 = vsel %vm9908_vm11, %v1342_v44, %v1350_v17 }
  0xb6   : > { %v1352_v12 = vrot.slane %v1350_v17, 4  ;;  %1727 = vst.msk [vmem:[#allocation2 + $0x6c] sm:$0xf] %vm1175_vm0, %v1561_v7  ;;  %1706 = vst.msk [vmem:[#allocation2 + $0x18] sm:$0xf] %vm1175_vm0, %v1351_v57  ;;  %v1570_v48 = vor.u32 %v1569_v29, %v1566_v37  ;;  %v7971_v4 = vpack.c.bf16 %v1166_v41, %v1166_v41  ;;  %v1107_v32 = vpop.permute.xlu1 %1106  ;;  %v1002_v20 = vpop.permute.xlu0 %1001  ;;  %v1146_v33 = vmul.f32 %v9753_v36, %v997_v22 }
  0xb7   : > { %v9990_v47 = vor.u32 %v1359_v35, %v1356_v0  ;;  %v1145_v23 = vmul.f32 %v9760_v56, %v992_v62  ;;  %v1168_v40 = vmul.f32 %v9790_v10, %v1107_v32  ;;  %v1147_v49 = vmul.f32 %v9807_v3, %v1002_v20 }
  0xb8   : > { %v1571_v44 = vsel %vm9908_vm11, %v1562_v60, %v1570_v48  ;;  %v1572_v26 = vrot.slane %v1570_v48, 4  ;;  %v11437_v61 = vand.u32 2147483648, %v9787_v21  ;;  %v1584_v56 = vshrl.u32 %v7972_v16, 16 }
  0xb9   : > { %v1361_v24 = vsel %vm9908_vm11, %v1352_v12, %v9990_v47  ;;  %1728 = vst.msk [vmem:[#allocation2 + $0x70] sm:$0xf] %vm1175_vm0, %v1571_v44  ;;  %v1587_v10 = vshll.u32 %v7972_v16, 16  ;;  %v1574_v3 = vshrl.u32 %v7971_v4, 16  ;;  %v1577_v63 = vshll.u32 %v7971_v4, 16 }
  0xba   : > { %v10006_v36 = vsel %vm637_vm1, %v11437_v61, %v9895_v58  ;;  %1707 = vst.msk [vmem:[#allocation2 + $0x1c] sm:$0xf] %vm1175_vm0, %v1361_v24  ;;  %v7951_v30 = vpack.c.bf16 %v1146_v33, %v1146_v33  ;;  %v7950_v15 = vpack.c.bf16 %v1145_v23, %v1145_v23  ;;  %v7973_v8 = vpack.c.bf16 %v1168_v40, %v1168_v40  ;;  %v8648_v34 = vld [vmem:[#allocation2 + $0x10] sm:$0xff]   ;;  %v1112_v21 = vpop.permute.xlu1 %1111  ;;  %v1007_v0 = vpop.permute.xlu0 %1006 }
  0xbb   : > { %v7952_v55 = vpack.c.bf16 %v1147_v49, %v1147_v49  ;;  %v1586_v46 = vrot.slane %v1584_v56, 6  ;;  %v1589_v14 = vrot.slane %v1587_v10, 7  ;;  %v1576_v25 = vrot.slane %v1574_v3, 6  ;;  %8282 = vmatprep.mubr.msk.bf16.mxu0 %vm1741_vm5, %v8648_v34 }
  0xbc   : > { %v1579_v22 = vrot.slane %v1577_v63, 7  ;;  %v1374_v58 = vshrl.u32 %v7951_v30, 16  ;;  %v1377_v62 = vshll.u32 %v7951_v30, 16  ;;  %v1364_v2 = vshrl.u32 %v7950_v15, 16 }
  0xbd   : > { %v1367_v17 = vshll.u32 %v7950_v15, 16  ;;  %v1590_v37 = vor.u32 %v1589_v14, %v1586_v46  ;;  %v1594_v28 = vshrl.u32 %v7973_v8, 16  ;;  %v1597_v29 = vshll.u32 %v7973_v8, 16  ;;  %v8649_v35 = vld [vmem:[#allocation2 + $0x68] sm:$0xff]  }
  0xbe   : > { %v1580_v27 = vor.u32 %v1579_v22, %v1576_v25  ;;  %v1376_v41 = vrot.slane %v1374_v58, 6  ;;  %v1379_v7 = vrot.slane %v1377_v62, 7  ;;  %v1366_v60 = vrot.slane %v1364_v2, 6  ;;  %8303 = vmatmul.mubr.msk.bf16.gmra.mrb[4].mxu1 %vm1741_vm5, %v8649_v35 }
  0xbf   : > { %v1369_v57 = vrot.slane %v1367_v17, 7  ;;  %v1362_v12 = vrot.slane %v9990_v47, 4  ;;  %v1596_v4 = vrot.slane %v1594_v28, 6  ;;  %v1599_v33 = vrot.slane %v1597_v29, 7 }
  0xc0   : > { %v1581_v48 = vsel %vm9908_vm11, %v1572_v26, %v1580_v27  ;;  %v1582_v16 = vrot.slane %v1580_v27, 4  ;;  %v1380_v32 = vor.u32 %v1379_v7, %v1376_v41  ;;  %v1384_v23 = vshrl.u32 %v7952_v55, 16  ;;  %v1122_v26 = vpop.permute.xlu1 %1121 }
  0xc1   : > { %1729 = vst.msk [vmem:[#allocation2 + $0x74] sm:$0xf] %vm1175_vm0, %v1581_v48  ;;  %v1370_v20 = vor.u32 %v1369_v57, %v1366_v60  ;;  %v8650_v40 = vld [vmem:[#allocation2 + $0x18] sm:$0xff]   ;;  %v1387_v44 = vshll.u32 %v7952_v55, 16  ;;  %v1169_v47 = vmul.f32 %v9823_v19, %v1112_v21  ;;  %v1148_v24 = vmul.f32 %v9838_v18, %v1007_v0  ;;  %v1117_v18 = vpop.permute.xlu0 %1116 }
  0xc2   : > { %v1591_v49 = vsel %vm9908_vm11, %v1582_v16, %v1590_v37  ;;  %v1592_v61 = vrot.slane %v1590_v37, 4  ;;  %v1600_v3 = vor.u32 %v1599_v33, %v1596_v4  ;;  %8283 = vmatmul.mubr.msk.bf16.gmra.mrb[4].mxu0 %vm1741_vm5, %v8650_v40  ;;  %vm796_vm7 = vcmp.eq.f32.partialorder %v9836_v6, inf }
  0xc3   : > { %1730 = vst.msk [vmem:[#allocation2 + $0x78] sm:$0xf] %vm1175_vm0, %v1591_v49  ;;  %v1371_v56 = vsel %vm9908_vm11, %v1362_v12, %v1370_v20  ;;  %v1372_v10 = vrot.slane %v1370_v20, 4  ;;  %v1386_v63 = vrot.slane %v1384_v23, 6  ;;  %v1389_v30 = vrot.slane %v1387_v44, 7 }
  0xc4   : > { %1708 = vst.msk [vmem:[#allocation2 + $0x20] sm:$0xf] %vm1175_vm0, %v1371_v56  ;;  %v7974_v19 = vpack.c.bf16 %v1169_v47, %v1169_v47  ;;  %v7953_v15 = vpack.c.bf16 %v1148_v24, %v1148_v24  ;;  %v1382_v8 = vrot.slane %v1380_v32, 4  ;;  %v1601_v34 = vsel %vm9908_vm11, %v1592_v61, %v1600_v3  ;;  %v1017_v57 = vpop.permute.xlu1 %1016 }
  0xc5   : > { %v1381_v55 = vsel %vm9908_vm11, %v1372_v10, %v1380_v32  ;;  %v1171_v46 = vmul.f32 %v9876_v51, %v1122_v26  ;;  %1731 = vst.msk [vmem:[#allocation2 + $0x7c] sm:$0xf] %vm1175_vm0, %v1601_v34  ;;  %v1390_v14 = vor.u32 %v1389_v30, %v1386_v63  ;;  %v1170_v2 = vmul.f32 %v9885_v59, %v1117_v18  ;;  %v1012_v30 = vpop.permute.xlu0 %1011 }
  0xc6   : > { %1709 = vst.msk [vmem:[#allocation2 + $0x24] sm:$0xf] %vm1175_vm0, %v1381_v55  ;;  %v1604_v25 = vshrl.u32 %v7974_v19, 16  ;;  %v1607_v22 = vshll.u32 %v7974_v19, 16  ;;  %v1394_v21 = vshrl.u32 %v7953_v15, 16  ;;  %v1397_v58 = vshll.u32 %v7953_v15, 16 }
  0xc7   : > { %v7976_v62 = vpack.c.bf16 %v1171_v46, %v1171_v46  ;;  %v862_v17 = vadd.f32 %v9928_v39, %v9810_v1  ;;  %v1602_v37 = vrot.slane %v1600_v3, 4  ;;  %v1391_v51 = vsel %vm9908_vm11, %v1382_v8, %v1390_v14 }
  0xc8   : > { %v1606_v27 = vrot.slane %v1604_v25, 6  ;;  %v1609_v28 = vrot.slane %v1607_v22, 7  ;;  %v8651_v29 = vld [vmem:[#allocation2 + $0x70] sm:$0xff]   ;;  %1710 = vst.msk [vmem:[#allocation2 + $0x28] sm:$0xf] %vm1175_vm0, %v1391_v51  ;;  %v1396_v0 = vrot.slane %v1394_v21, 6  ;;  %v7975_v59 = vpack.c.bf16 %v1170_v2, %v1170_v2  ;;  %v1127_v2 = vpop.permute.xlu1 %1126 }
  0xc9   : > { %v1399_v35 = vrot.slane %v1397_v58, 7  ;;  %v1624_v41 = vshrl.u32 %v7976_v62, 16  ;;  %v1627_v7 = vshll.u32 %v7976_v62, 16  ;;  %v7505_v12 = vadd.f32 -5.8412553e-08, %v862_v17  ;;  %8306 = vmatprep.mubr.msk.bf16.mxu1 %vm1741_vm5, %v8651_v29 }
  0xca   : > { %v1610_v60 = vor.u32 %v1609_v28, %v1606_v27  ;;  %v825_v1 = vmul.f32 0.49, %v10006_v36  ;;  %v1392_v39 = vrot.slane %v1390_v14, 4  ;;  %v795_v16 = vmul.f32 %v9903_v11, %v9836_v6 }
  0xcb   : > { %v10044_v48 = vor.u32 %v1399_v35, %v1396_v0  ;;  %v505_v4 = vmul.f32 %v9874_v38, %v9874_v38  ;;  %v1626_v20 = vrot.slane %v1624_v41, 6  ;;  %v1614_v33 = vshrl.u32 %v7975_v59, 16 }
  0xcc   : > { %v1611_v32 = vsel %vm9908_vm11, %v1602_v37, %v1610_v60  ;;  %v1617_v23 = vshll.u32 %v7975_v59, 16  ;;  %v1629_v40 = vrot.slane %v1627_v7, 7  ;;  %v1150_v49 = vmul.f32 %v7505_v12, %v1017_v57  ;;  %v8653_v10 = vld [vmem:[#allocation2 + $0x78] sm:$0xff]  }
  0xcd   : > { %1732 = vst.msk [vmem:[#allocation2 + $0x80] sm:$0xf] %vm1175_vm0, %v1611_v32  ;;  %v1401_v36 = vsel %vm9908_vm11, %v1392_v39, %v10044_v48  ;;  %v11438_v44 = vunpack.c.h.bf16 %v9741_v5  ;;  %v8652_v47 = vld [vmem:[#allocation2 + $0x20] sm:$0xff]   ;;  %v1616_v24 = vrot.slane %v1614_v33, 6  ;;  %v861_v61 = vadd.f32 %v825_v1, %v9812_v53  ;;  %8307 = vmatmul.mubr.msk.bf16.gmra.mrb[8].mxu1 %vm1741_vm5, %v8653_v10  ;;  %v1022_v39 = vpop.permute.xlu0 %1021 }
  0xce   : > { %1711 = vst.msk [vmem:[#allocation2 + $0x2c] sm:$0xf] %vm1175_vm0, %v1401_v36  ;;  %v1619_v26 = vrot.slane %v1617_v23, 7  ;;  %v797_v56 = vsel %vm796_vm7, %v9836_v6, %v795_v16  ;;  %v1612_v3 = vrot.slane %v1610_v60, 4  ;;  %v7955_v63 = vpack.c.bf16 %v1150_v49, %v1150_v49  ;;  %8286 = vmatprep.mubr.msk.bf16.mxu0 %vm1741_vm5, %v8652_v47 }
  0xcf   : > { %v389_v11 = vmul.f32 %v9706_v54, %v11438_v44  ;;  %v11439_v19 = vand.u32 2147483648, %v9836_v6  ;;  %v648_v5 = vmul.f32 %v9913_v43, %v9850_v13  ;;  %v7504_v53 = vadd.f32 -5.8412553e-08, %v861_v61  ;;  %v10082_v43 = vld [vmem:[%s11414_s2] ss:$0 sm:$0xff] }
  0xd0   : > { %v1620_v15 = vor.u32 %v1619_v26, %v1616_v24  ;;  %v10071_v8 = vadd.f32 1.4210855e-14, %v505_v4  ;;  %v10074_v55 = vor.u32 %v1629_v40, %v1626_v20  ;;  %v1414_v34 = vshrl.u32 %v7955_v63, 16  ;;  %v8104_v24 = vld [vmem:[%s8993_s18 + $0x88] sm:$0xff]  }
  0xd1   : > { %v800_v54 = vsel %vm798_vm12, %v11439_v19, %v797_v56  ;;  %v650_v6 = vsel %vm649_vm13, %v9850_v13, %v648_v5  ;;  %v11440_v46 = vunpack.c.l.bf16 %v9869_v42  ;;  %v1149_v21 = vmul.f32 %v7504_v53, %v1012_v30  ;;  %v10099_v42 = vld [vmem:[%s11415_s3] ss:$0 sm:$0xff] }
  0xd2   : > { %v848_v18 = vmul.f32 0.49, %v800_v54  ;;  %v1621_v25 = vsel %vm9908_vm11, %v1612_v3, %v1620_v15  ;;  %v1622_v22 = vrot.slane %v1620_v15, 4  ;;  %v1417_v62 = vshll.u32 %v7955_v63, 16 }
  0xd3   : > { %v392_v14 = vmul.f32 %v10082_v43, %v11440_v46  ;;  %1733 = vst.msk [vmem:[#allocation2 + $0x84] sm:$0xf] %vm1175_vm0, %v1621_v25  ;;  %v11441_v17 = vand.u32 2147483648, %v9850_v13  ;;  %8873 = vrsqrt.f32 %v10071_v8  ;;  %v10102_v51 = vadd.f32 %v10099_v42, %v389_v11 }
  0xd4   : > { %v884_v58 = vadd.f32 %v848_v18, %v9828_v52  ;;  %v1631_v52 = vsel %vm9908_vm11, %v1622_v22, %v10074_v55  ;;  %v7954_v27 = vpack.c.bf16 %v1149_v21, %v1149_v21  ;;  %v1402_v13 = vrot.slane %v10044_v48, 4 }
  0xd5   : > { %v653_v37 = vsel %vm651_vm14, %v11441_v17, %v650_v6  ;;  %1734 = vst.msk [vmem:[#allocation2 + $0x88] sm:$0xf] %vm1175_vm0, %v1631_v52  ;;  %v10110_v0 = vmul.f32 0.51, %v9874_v38  ;;  %v8047_v35 = vunpack.c.h.bf16 %v9796_v45  ;;  %v8654_v41 = vld [vmem:[#allocation2 + $0x28] sm:$0xff]   ;;  %v1416_v12 = vrot.slane %v1414_v34, 6 }
  0xd6   : > { %v7527_v28 = vadd.f32 -5.8412553e-08, %v884_v58  ;;  %v827_v29 = vmul.f32 0.49, %v653_v37  ;;  %v1404_v7 = vshrl.u32 %v7954_v27, 16  ;;  %v1407_v60 = vshll.u32 %v7954_v27, 16  ;;  %8287 = vmatmul.mubr.msk.bf16.gmra.mrb[8].mxu0 %vm1741_vm5, %v8654_v41 }
  0xd7   : > { %v1419_v1 = vrot.slane %v1417_v62, 7  ;;  %v504_v16 = vmul.f32 %v10102_v51, %v10102_v51  ;;  %v435_v48 = vadd.f32 %v10099_v42, %v392_v14  ;;  %v1632_v20 = vrot.slane %v10074_v55, 4 }
  0xd8   : > { %v1172_v59 = vmul.f32 %v7527_v28, %v1127_v2  ;;  %v863_v57 = vadd.f32 %v827_v29, %v9865_v9  ;;  %v1406_v38 = vrot.slane %v1404_v7, 6  ;;  %v1409_v4 = vrot.slane %v1407_v60, 7  ;;  %v8658_v29 = vld [vmem:[#allocation2] sm:$0xff]  }
  0xd9   : > { %v10119_v33 = vadd.f32 1.4210855e-14, %v504_v16  ;;  %v507_v9 = vmul.f32 %v435_v48, %v435_v48  ;;  %v391_v23 = vmul.f32 %v10082_v43, %v8047_v35  ;;  %v1420_v47 = vor.u32 %v1419_v1, %v1416_v12 }
  0xda   : > { %v7977_v45 = vpack.c.bf16 %v1172_v59, %v1172_v59  ;;  %v7506_v32 = vadd.f32 -5.8412553e-08, %v863_v57  ;;  %v1410_v36 = vor.u32 %v1409_v4, %v1406_v38  ;;  %v8655_v11 = vld [vmem:[#allocation2 + $0x80] sm:$0xff]   ;;  %vm663_vm2 = vcmp.eq.f32.partialorder %v10071_v8, inf  ;;  %v1032_v59 = vpop.permute.xlu1 %1031 }
  0xdb   : > { %vm665_vm4 = vcmp.eq.f32.partialorder %v10071_v8, 0.0  ;;  %8875 = vrsqrt.f32 %v10119_v33  ;;  %8310 = vmatprep.mubr.msk.bf16.mxu1 %vm1741_vm5, %v8655_v11  ;;  %v666_v30 = vand.u32 2147483648, %v10071_v8  ;;  %v10131_v19 = vadd.f32 1.4210855e-14, %v507_v9 }
  0xdc   : > { %v1634_v40 = vshrl.u32 %v7977_v45, 16  ;;  %v1637_v49 = vshll.u32 %v7977_v45, 16  ;;  %v1151_v44 = vmul.f32 %v7506_v32, %v1022_v39  ;;  %v1411_v26 = vsel %vm9908_vm11, %v1402_v13, %v1410_v36  ;;  %v10159_v13 = vld [vmem:[#allocation2 + $0x8] sm:$0xff]  }
  0xdd   : > { %v1412_v61 = vrot.slane %v1410_v36, 4  ;;  %v8874_v3 = vpop.eup %8873  ;;  %1712 = vst.msk [vmem:[#allocation2 + $0x30] sm:$0xf] %vm1175_vm0, %v1411_v26  ;;  %v434_v54 = vadd.f32 %v10099_v42, %v391_v23  ;;  %v8087_v18 = vunpack.c.h.bf16 %v8104_v24  ;;  %8877 = vrsqrt.f32 %v10131_v19  ;;  %v8662_v26 = vld [vmem:[#allocation2 + $0x10] sm:$0xff]  }
  0xde   : > { %v1636_v56 = vrot.slane %v1634_v40, 6  ;;  %v1639_v10 = vrot.slane %v1637_v49, 7  ;;  %v7956_v63 = vpack.c.bf16 %v1151_v44, %v1151_v44  ;;  %v662_v53 = vmul.f32 %v8874_v3, %v10071_v8 }
  0xdf   : > { %v1421_v5 = vsel %vm9908_vm11, %v1412_v61, %v1420_v47  ;;  %v8086_v6 = vunpack.c.l.bf16 %v8104_v24  ;;  %v1422_v46 = vrot.slane %v1420_v47, 4  ;;  %v468_v62 = vmul.f32 0.51, %v10102_v51 }
  0xe0   : > { %v10136_v15 = vor.u32 %v1639_v10, %v1636_v56  ;;  %1713 = vst.msk [vmem:[#allocation2 + $0x34] sm:$0xf] %vm1175_vm0, %v1421_v5  ;;  %v1424_v55 = vshrl.u32 %v7956_v63, 16  ;;  %v1427_v34 = vshll.u32 %v7956_v63, 16  ;;  %v664_v25 = vsel %vm663_vm2, %v10071_v8, %v662_v53  ;;  %v10203_v63 = vld [vmem:[#allocation2 + $0x18] sm:$0xff]  }
  0xe1   : > { %v667_v58 = vsel %vm665_vm4, %v666_v30, %v664_v25  ;;  %v10151_v17 = vmul.f32 0.51, %v435_v48  ;;  %v506_v37 = vmul.f32 %v434_v54, %v434_v54  ;;  %v411_v52 = vmul.f32 %v10082_v43, %v8087_v18  ;;  %v1027_v30 = vpop.permute.xlu0 %1026 }
  0xe2   : > { %v1641_v14 = vsel %vm9908_vm11, %v1632_v20, %v10136_v15  ;;  %v1426_v22 = vrot.slane %v1424_v55, 6  ;;  %v1429_v21 = vrot.slane %v1427_v34, 7  ;;  %v829_v2 = vmul.f32 0.49, %v667_v58  ;;  %v1042_v58 = vpop.permute.xlu1 %1041 }
  0xe3   : > { %1735 = vst.msk [vmem:[#allocation2 + $0x8c] sm:$0xf] %vm1175_vm0, %v1641_v14  ;;  %vm656_vm6 = vcmp.eq.f32.partialorder %v10119_v33, inf  ;;  %vm658_vm8 = vcmp.eq.f32.partialorder %v10119_v33, 0.0  ;;  %v410_v28 = vmul.f32 %v10082_v43, %v8086_v6  ;;  %v659_v51 = vand.u32 2147483648, %v10119_v33 }
  0xe4   : > { %v10154_v27 = vor.u32 %v1429_v21, %v1426_v22  ;;  %v865_v8 = vadd.f32 %v829_v2, %v10110_v0  ;;  %v10163_v35 = vadd.f32 1.4210855e-14, %v506_v37  ;;  %v454_v41 = vadd.f32 %v10099_v42, %v411_v52 }
  0xe5   : > { %v8876_v7 = vpop.eup %8875  ;;  %vm677_vm9 = vcmp.eq.f32.partialorder %v10131_v19, inf  ;;  %vm679_vm10 = vcmp.eq.f32.partialorder %v10131_v19, 0.0  ;;  %v453_v43 = vadd.f32 %v10099_v42, %v410_v28  ;;  %v680_v12 = vand.u32 2147483648, %v10131_v19 }
  0xe6   : > { %v1431_v60 = vsel %vm9908_vm11, %v1422_v46, %v10154_v27  ;;  %v7508_v0 = vadd.f32 -5.8412553e-08, %v865_v8  ;;  %v655_v57 = vmul.f32 %v8876_v7, %v10119_v33  ;;  %8879 = vrsqrt.f32 %v10163_v35 }
  0xe7   : > { %1714 = vst.msk [vmem:[#allocation2 + $0x38] sm:$0xf] %vm1175_vm0, %v1431_v60  ;;  %v8656_v1 = vld [vmem:[#allocation2 + $0x30] sm:$0xff]   ;;  %v10176_v39 = vmul.f32 0.51, %v434_v54  ;;  %v526_v16 = vmul.f32 %v454_v41, %v454_v41  ;;  %v2418_v48 = vshrl.u32 %v8658_v29, 16  ;;  %v525_v32 = vmul.f32 %v453_v43, %v453_v43  ;;  %v8878_v9 = vpop.eup %8877 }
  0xe8   : > { %v2420_v38 = vshll.u32 %v8658_v29, 16  ;;  %v1432_v4 = vrot.slane %v10154_v27, 4  ;;  %v1153_v45 = vmul.f32 %v7508_v0, %v1032_v59  ;;  %v657_v42 = vsel %vm656_vm6, %v10119_v33, %v655_v57  ;;  %8290 = vmatprep.mubr.msk.bf16.mxu0 %vm1741_vm5, %v8656_v1 }
  0xe9   : > { %vm2416_vm1 = vsmask.f32 7424  ;;  %v660_v23 = vsel %vm658_vm8, %v659_v51, %v657_v42  ;;  %vm670_vm7 = vcmp.eq.f32.partialorder %v10163_v35, inf  ;;  %v10186_v36 = vadd.f32 1.4210855e-14, %v526_v16 }
  0xea   : > { %v8657_v20 = vld [vmem:[#allocation2 + $0x88] sm:$0xff]   ;;  %v2425_v40 = vshll.u32 %v10159_v13, 16  ;;  %v7958_v49 = vpack.c.bf16 %v1153_v45, %v1153_v45  ;;  %v828_v44 = vmul.f32 0.49, %v660_v23  ;;  %v676_v11 = vmul.f32 %v8878_v9, %v10131_v19 }
  0xeb   : > { %v10190_v47 = vadd.f32 1.4210855e-14, %v525_v32  ;;  %8311 = vmatmul.mubr.msk.bf16.gmra.mrb[12].mxu1 %vm1741_vm5, %v8657_v20  ;;  %vm672_vm12 = vcmp.eq.f32.partialorder %v10163_v35, 0.0  ;;  %v673_v24 = vand.u32 2147483648, %v10163_v35  ;;  %8881 = vrsqrt.f32 %v10186_v36 }
  0xec   : > { %v2422_v33 = vrot.slane %v2420_v38, 1  ;;  %v864_v61 = vadd.f32 %v828_v44, %v468_v62  ;;  %v678_v56 = vsel %vm677_vm9, %v10131_v19, %v676_v11  ;;  %v10199_v10 = vmul.f32 0.51, %v454_v41 }
  0xed   : > { %v10201_v3 = vmul.f32 0.51, %v453_v43  ;;  %v681_v54 = vsel %vm679_vm10, %v680_v12, %v678_v56  ;;  %vm810_vm13 = vcmp.eq.f32.partialorder %v10186_v36, inf  ;;  %8883 = vrsqrt.f32 %v10190_v47 }
  0xee   : > { %v2427_v5 = vrot.slane %v2425_v40, 1  ;;  %v1444_v53 = vshrl.u32 %v7958_v49, 16  ;;  %v7507_v18 = vadd.f32 -5.8412553e-08, %v864_v61  ;;  %v831_v55 = vmul.f32 0.49, %v681_v54 }
  0xef   : > { %vm812_vm14 = vcmp.eq.f32.partialorder %v10186_v36, 0.0  ;;  %v813_v34 = vand.u32 2147483648, %v10186_v36  ;;  %v2423_v6 = vor.u32 %v2422_v33, %v2418_v48  ;;  %v2429_v46 = vshrl.u32 %v10159_v13, 16  ;;  %v1037_v33 = vpop.permute.xlu0 %1036 }
  0xf0   : > { %v2433_v14 = vshll.u32 %v8662_v26, 16  ;;  %v8880_v25 = vpop.eup %8879  ;;  %v1447_v22 = vshll.u32 %v7958_v49, 16  ;;  %v1152_v19 = vmul.f32 %v7507_v18, %v1027_v30  ;;  %v867_v21 = vadd.f32 %v831_v55, %v10151_v17  ;;  %v10222_v17 = vld [vmem:[%s11416_s4 + $0x14] sm:$0xf]  ;;  %v8668_v18 = vld [vmem:[#allocation2 + $0x28] sm:$0xff]  }
  0xf1   : > { %vm803_vm2 = vcmp.eq.f32.partialorder %v10190_v47, inf  ;;  %v669_v62 = vmul.f32 %v8880_v25, %v10163_v35  ;;  %vm805_vm4 = vcmp.eq.f32.partialorder %v10190_v47, 0.0  ;;  %v2428_v2 = vsel %vm2416_vm1, %v2423_v6, %v2427_v5 }
  0xf2   : > { %v2431_v37 = vor.u32 %v2429_v46, %v2427_v5  ;;  %v2435_v52 = vrot.slane %v2433_v14, 1  ;;  %v1446_v28 = vrot.slane %v1444_v53, 6  ;;  %v7957_v29 = vpack.c.bf16 %v1152_v19, %v1152_v19  ;;  %8316 = vmatprep.mubr.msk.bf16.mxu1 %vm1741_vm5, %v2428_v2 }
  0xf3   : > { %v7510_v13 = vadd.f32 -5.8412553e-08, %v867_v21  ;;  %v2441_v8 = vshll.u32 %v10203_v63, 16  ;;  %v671_v51 = vsel %vm670_vm7, %v10163_v35, %v669_v62  ;;  %v2437_v7 = vshrl.u32 %v8662_v26, 16 }
  0xf4   : > { %v2436_v41 = vsel %vm2416_vm1, %v2431_v37, %v2435_v52  ;;  %v3643_v60 = vsel %vm1995_vm15, %v9945_v50, 0  ;;  %v1434_v59 = vshrl.u32 %v7957_v29, 16  ;;  %v1437_v43 = vshll.u32 %v7957_v29, 16  ;;  %v8667_v50 = vld [vmem:[#allocation2 + $0x20] sm:$0xff]  }
  0xf5   : > { %v1155_v0 = vmul.f32 %v7510_v13, %v1042_v58  ;;  %v674_v57 = vsel %vm672_vm12, %v673_v24, %v671_v51  ;;  %8317 = vmatmul.mubr.msk.bf16.vlgmr.msra.gmra.mrb[16].mxu1 %vm1741_vm5, %v2436_v41  ;;  %v8882_v12 = vpop.eup %8881  ;;  %v1449_v1 = vrot.slane %v1447_v22, 7  ;;  %v2439_v48 = vor.u32 %v2437_v7, %v2435_v52  ;;  %v1137_v58 = vpop.permute.xlu1 %1136 }
  0xf6   : > { %v830_v16 = vmul.f32 0.49, %v674_v57  ;;  %v2443_v38 = vrot.slane %v2441_v8, 1  ;;  %8391 = vmatpush3.bf16.msra.mxu1 %v3643_v60  ;;  %v1436_v45 = vrot.slane %v1434_v59, 6  ;;  %v1439_v42 = vrot.slane %v1437_v43, 7  ;;  %v1132_v51 = vpop.permute.xlu0 %1131  ;;  %v8671_v60 = vld [vmem:[#allocation2 + $0x30] sm:$0xff]  }
  0xf7   : > { %v7960_v32 = vpack.c.bf16 %v1155_v0, %v1155_v0  ;;  %v809_v20 = vmul.f32 %v8882_v12, %v10186_v36  ;;  %8626 = vmatprep.subr.msk.bf16.mxu1 %vm1995_vm15, %v10222_v17  ;;  %v8884_v9 = vpop.eup %8883  ;;  %v806_v23 = vand.u32 2147483648, %v10190_v47  ;;  %v2445_v49 = vshrl.u32 %v10203_v63, 16 }
  0xf8   : > { %v866_v35 = vadd.f32 %v830_v16, %v10176_v39  ;;  %v2444_v40 = vsel %vm2416_vm1, %v2439_v48, %v2443_v38  ;;  %v1440_v44 = vor.u32 %v1439_v42, %v1436_v45  ;;  %v1450_v61 = vor.u32 %v1449_v1, %v1446_v28 }
  0xf9   : > { %v1464_v11 = vshrl.u32 %v7960_v32, 16  ;;  %v1467_v24 = vshll.u32 %v7960_v32, 16  ;;  %v811_v26 = vsel %vm810_vm13, %v10186_v36, %v809_v20  ;;  %8320 = vmatprep.mubr.msk.bf16.mxu1 %vm1741_vm5, %v2444_v40  ;;  %v802_v30 = vmul.f32 %v8884_v9, %v10190_v47 }
  0xfa   : > { %v7509_v56 = vadd.f32 -5.8412553e-08, %v866_v35  ;;  %v814_v39 = vsel %vm812_vm14, %v813_v34, %v811_v26  ;;  %v1441_v63 = vsel %vm9908_vm11, %v1432_v4, %v1440_v44  ;;  %v1442_v54 = vrot.slane %v1440_v44, 4 }
  0xfb   : > { %v1466_v5 = vrot.slane %v1464_v11, 6  ;;  %v1469_v53 = vrot.slane %v1467_v24, 7  ;;  %1715 = vst.msk [vmem:[#allocation2 + $0x3c] sm:$0xf] %vm1175_vm0, %v1441_v63  ;;  %v850_v6 = vmul.f32 0.49, %v814_v39  ;;  %v804_v36 = vsel %vm803_vm2, %v10190_v47, %v802_v30 }
  0xfc   : > { %v1154_v55 = vmul.f32 %v7509_v56, %v1037_v33  ;;  %v1451_v34 = vsel %vm9908_vm11, %v1442_v54, %v1450_v61  ;;  %v807_v27 = vsel %vm805_vm4, %v806_v23, %v804_v36  ;;  %v2449_v4 = vshll.u32 %v8667_v50, 16  ;;  %v11442_v47 = vld [vmem:[#allocation8_spill] sm:$0xff]  ;;  %v8665_v56 = vld [vmem:[#allocation2] sm:$0xfe]  }
  0xfd   : > { %v1470_v46 = vor.u32 %v1469_v53, %v1466_v5  ;;  %1716 = vst.msk [vmem:[#allocation2 + $0x40] sm:$0xf] %vm1175_vm0, %v1451_v34  ;;  %v886_v25 = vadd.f32 %v850_v6, %v10199_v10  ;;  %v849_v22 = vmul.f32 0.49, %v807_v27  ;;  %v2447_v19 = vor.u32 %v2445_v49, %v2443_v38  ;;  %v8666_v53 = vld [vmem:[#allocation2 + $0x8] sm:$0xff]  }
  0xfe   : > { %v7959_v14 = vpack.c.bf16 %v1154_v55, %v1154_v55  ;;  %v2451_v62 = vrot.slane %v2449_v4, 1  ;;  %v2453_v2 = vshrl.u32 %v8667_v50, 16  ;;  %v2457_v37 = vshll.u32 %v8668_v18, 16 }
  0xff   : > { %v1472_v21 = vrot.slane %v1470_v46, 4  ;;  %v7529_v29 = vadd.f32 -5.8412553e-08, %v886_v25  ;;  %v885_v13 = vadd.f32 %v849_v22, %v10201_v3  ;;  %v1452_v16 = vrot.slane %v1450_v61, 4 }
 0x100   : > { %v1454_v52 = vshrl.u32 %v7959_v14, 16  ;;  %v1457_v28 = vshll.u32 %v7959_v14, 16  ;;  %v2452_v41 = vsel %vm2416_vm1, %v2447_v19, %v2451_v62  ;;  %v2455_v10 = vor.u32 %v2453_v2, %v2451_v62 }
 0x101   : > { %v1481_v8 = vsel %vm9908_vm11, %v1472_v21, %v11442_v47  ;;  %v2459_v7 = vrot.slane %v2457_v37, 1  ;;  %v1174_v0 = vmul.f32 %v7529_v29, %v1137_v58  ;;  %v7528_v57 = vadd.f32 -5.8412553e-08, %v885_v13  ;;  %8321 = vmatmul.mubr.msk.bf16.gmra.mrb[20].mxu1 %vm1741_vm5, %v2452_v41  ;;  %v8669_v58 = vld [vmem:[#allocation2 + $0x10] sm:$0xff]   ;;  %v8670_v37 = vld [vmem:[#allocation2 + $0x18] sm:$0xff]  }
 0x102   : > { %1719 = vst.msk [vmem:[#allocation2 + $0x4c] sm:$0xf] %vm1175_vm0, %v1481_v8  ;;  %v1456_v59 = vrot.slane %v1454_v52, 6  ;;  %v1459_v43 = vrot.slane %v1457_v28, 7  ;;  %v8660_v12 = vld [vmem:[#allocation2 + $0x38] sm:$0xff]   ;;  %v2461_v42 = vshrl.u32 %v8668_v18, 16 }
 0x103   : > { %v2460_v3 = vsel %vm2416_vm1, %v2455_v10, %v2459_v7  ;;  %v10269_v1 = vld [vmem:[#allocation2 + $0x38] sm:$0xff]   ;;  %v7979_v38 = vpack.c.bf16 %v1174_v0, %v1174_v0  ;;  %v1173_v45 = vmul.f32 %v7528_v57, %v1132_v51  ;;  %8291 = vmatmul.mubr.msk.bf16.gmra.mrb[12].mxu0 %vm1741_vm5, %v8660_v12  ;;  %v2465_v32 = vshll.u32 %v8671_v60, 16 }
 0x104   : > { %v1460_v48 = vor.u32 %v1459_v43, %v1456_v59  ;;  %8324 = vmatprep.mubr.msk.bf16.mxu1 %vm1741_vm5, %v2460_v3  ;;  %v2469_v20 = vshrl.u32 %v8671_v60, 16  ;;  %v2473_v50 = vshll.u32 %v10269_v1, 16  ;;  %v2463_v44 = vor.u32 %v2461_v42, %v2459_v7  ;;  %v1738_v18 = vld [vmem:[#allocation2 + $0x98] sm:$0x3] }
 0x105   : > { %v1654_v23 = vshrl.u32 %v7979_v38, 16  ;;  %v1657_v40 = vshll.u32 %v7979_v38, 16  ;;  %v7978_v49 = vpack.c.bf16 %v1173_v45, %v1173_v45  ;;  %v2467_v11 = vrot.slane %v2465_v32, 1  ;;  %v8680_v41 = vld [vmem:[#allocation2 + $0x58] sm:$0xff]   ;;  %v8683_v38 = vld [vmem:[#allocation2 + $0x60] sm:$0xff]  }
 0x106   : > { %v1461_v9 = vsel %vm9908_vm11, %v1452_v16, %v1460_v48  ;;  %v1462_v35 = vrot.slane %v1460_v48, 4  ;;  %v2475_v24 = vrot.slane %v2473_v50, 1  ;;  %v1642_v27 = vrot.slane %v10136_v15, 4  ;;  %v8901_v45 = vld [vmem:[%s11416_s4 + $0x10] sm:$0xf]  ;;  %v8673_v50 = vld [vmem:[#allocation2 + $0x20] sm:$0xff]  }
 0x107   : > { %1717 = vst.msk [vmem:[#allocation2 + $0x44] sm:$0xf] %vm1175_vm0, %v1461_v9  ;;  %v1656_v26 = vrot.slane %v1654_v23, 6  ;;  %v1659_v61 = vrot.slane %v1657_v40, 7  ;;  %v1644_v39 = vshrl.u32 %v7978_v49, 16  ;;  %v1647_v30 = vshll.u32 %v7978_v49, 16 }
 0x108   : > { %v1471_v33 = vsel %vm9908_vm11, %v1462_v35, %v1470_v46  ;;  %v2468_v63 = vsel %vm2416_vm1, %v2463_v44, %v2467_v11  ;;  %v2471_v54 = vor.u32 %v2469_v20, %v2467_v11  ;;  %v8679_v46 = vld [vmem:[#allocation2 + $0x50] sm:$0xff]   ;;  %v3040_v14 = vrot.slane %v8665_v56, 1  ;;  %v10310_v35 = vld [vmem:[%s11416_s4 + $0x18] sm:$0xf]  ;;  %v8674_v40 = vld [vmem:[#allocation2 + $0x28] sm:$0xff]  }
 0x109   : > { %1718 = vst.msk [vmem:[#allocation2 + $0x48] sm:$0xf] %vm1175_vm0, %v1471_v33  ;;  %v1660_v5 = vor.u32 %v1659_v61, %v1656_v26  ;;  %8325 = vmatmul.mubr.msk.bf16.gmra.mrb[24].mxu1 %vm1741_vm5, %v2468_v63  ;;  %v1646_v55 = vrot.slane %v1644_v39, 6  ;;  %v1649_v6 = vrot.slane %v1647_v30, 7  ;;  %v3041_v21 = vrot.slane %v8666_v53, 1  ;;  %v8684_v11 = vld [vmem:[#allocation2 + $0x68] sm:$0xff]  }
 0x10a   : > { %v2476_v36 = vsel %vm2416_vm1, %v2471_v54, %v2475_v24  ;;  %vm3039_vm6 = vcmask 1046528   ;;  %v2477_v29 = vshrl.u32 %v10269_v1, 16  ;;  %v2497_v51 = vshll.u32 %v8679_v46, 16  ;;  %v8687_v63 = vld [vmem:[#allocation2 + $0x70] sm:$0xff]  }
 0x10b   : > { %v1662_v34 = vrot.slane %v1660_v5, 4  ;;  %8328 = vmatprep.mubr.msk.bf16.mxu1 %vm1741_vm5, %v2476_v36  ;;  %v1650_v4 = vor.u32 %v1649_v6, %v1646_v55  ;;  %v3042_v8 = vsel %vm3039_vm6, %v3040_v14, %v3041_v21  ;;  %v3043_v59 = vrot.slane %v8669_v58, 1  ;;  %v8678_v55 = vld [vmem:[#allocation2 + $0x38] sm:$0xff]  }
 0x10c   : > { %v2479_v10 = vor.u32 %v2477_v29, %v2475_v24  ;;  %v3045_v43 = vrot.slane %v8670_v37, 1  ;;  %v2499_v3 = vrot.slane %v2497_v51, 1  ;;  %v2505_v1 = vshll.u32 %v8680_v41, 16 }
 0x10d   : > { %v1739_v22 = vsel %vm9012_vm3, %v1662_v34, %v1738_v18  ;;  %v1651_v62 = vsel %vm9908_vm11, %v1642_v27, %v1650_v4  ;;  %v1652_v2 = vrot.slane %v1650_v4, 4  ;;  %v4288_v42 = vsel %vm1995_vm15, %v8901_v45, 0  ;;  %v8688_v34 = vld [vmem:[#allocation2 + $0x78] sm:$0xff]  }
 0x10e   : > { %v8661_v19 = vld [vmem:[#allocation2 + $0x40] sm:$0xff]   ;;  %1740 = vst [vmem:[#allocation2 + $0x98] sm:$0x3] %v1739_v22  ;;  %1736 = vst.msk [vmem:[#allocation2 + $0x90] sm:$0xf] %vm1175_vm0, %v1651_v62  ;;  %v2501_v32 = vshrl.u32 %v8679_v46, 16  ;;  %v3044_v20 = vsel %vm3039_vm6, %v3041_v21, %v3043_v59  ;;  %v3046_v23 = vsel %vm3039_vm6, %v3043_v59, %v3045_v43 }
 0x10f   : > { %v8675_v52 = vld [vmem:[#allocation2 + $0x40] sm:$0xff]   ;;  %8294 = vmatprep.mubr.msk.bf16.mxu0 %vm1741_vm5, %v8661_v19  ;;  %v1661_v28 = vsel %vm9908_vm11, %v1652_v2, %v1660_v5  ;;  %v2507_v44 = vrot.slane %v2505_v1, 1  ;;  %v2513_v24 = vshll.u32 %v8683_v38, 16  ;;  %v3047_v33 = vrot.slane %v8673_v50, 1  ;;  %v8677_v5 = vld [vmem:[#allocation2 + $0x30] sm:$0xff]   ;;  %v8686_v1 = vld [vmem:[#allocation2 + $0x58] sm:$0xff]  }
 0x110   : > { %v8664_v15 = vld [vmem:[#allocation2 + $0x48] sm:$0xff]   ;;  %v2481_v13 = vshll.u32 %v8675_v52, 16  ;;  %1737 = vst.msk [vmem:[#allocation2 + $0x94] sm:$0xf] %vm1175_vm0, %v1661_v28  ;;  %v2485_v60 = vshrl.u32 %v8675_v52, 16  ;;  %v2503_v49 = vor.u32 %v2501_v32, %v2499_v3  ;;  %v3049_v61 = vrot.slane %v8674_v40, 1 }
 0x111   : > { %v8676_v47 = vld [vmem:[#allocation2 + $0x48] sm:$0xff]   ;;  %8295 = vmatmul.mubr.msk.bf16.gmra.mrb[16].mxu0 %vm1741_vm5, %v8664_v15  ;;  %v2521_v39 = vshll.u32 %v8684_v11, 16  ;;  %v2515_v30 = vrot.slane %v2513_v24, 1  ;;  %v3048_v54 = vsel %vm3039_vm6, %v3045_v43, %v3047_v33  ;;  %v2509_v53 = vshrl.u32 %v8680_v41, 16  ;;  %v8691_v62 = vld [vmem:[#allocation2 + $0x80] sm:$0xff]  }
 0x112   : > { %8354 = vmatprep.mubr.msk.bf16.mxu0 %vm1741_vm5, %v3042_v8  ;;  %v2483_v7 = vrot.slane %v2481_v13, 1  ;;  %v2489_v31 = vshll.u32 %v8676_v47, 16  ;;  %v2493_v48 = vshrl.u32 %v8676_v47, 16  ;;  %v2508_v56 = vsel %vm2416_vm1, %v2503_v49, %v2507_v44  ;;  %v8681_v37 = vld [vmem:[#allocation2 + $0x40] sm:$0xff]   ;;  %v8682_v28 = vld [vmem:[#allocation2 + $0x48] sm:$0xff]  }
 0x113   : > { %v3050_v18 = vsel %vm3039_vm6, %v3047_v33, %v3049_v61  ;;  %v2517_v6 = vshrl.u32 %v8683_v38, 16  ;;  %v2523_v36 = vrot.slane %v2521_v39, 1  ;;  %v2511_v46 = vor.u32 %v2509_v53, %v2507_v44  ;;  %v8692_v47 = vld [vmem:[#allocation2 + $0x88] sm:$0xff]   ;;  %v8685_v38 = vld [vmem:[#allocation2 + $0x50] sm:$0xff]   ;;  %v8689_v49 = vld [vmem:[#allocation2 + $0x60] sm:$0xff]  }
 0x114   : > { %v2484_v0 = vsel %vm2416_vm1, %v2479_v10, %v2483_v7  ;;  %v2487_v57 = vor.u32 %v2485_v60, %v2483_v7  ;;  %v2491_v12 = vrot.slane %v2489_v31, 1  ;;  %v2529_v4 = vshll.u32 %v8687_v63, 16  ;;  %v8696_v44 = vld [vmem:[#allocation2 + $0x8] sm:$0xfe]  }
 0x115   : > { %8329 = vmatmul.mubr.msk.bf16.gmra.mrb[28].mxu1 %vm1741_vm5, %v2484_v0  ;;  %v2519_v27 = vor.u32 %v2517_v6, %v2515_v30  ;;  %v3051_v14 = vrot.slane %v8677_v5, 1  ;;  %v2516_v25 = vsel %vm2416_vm1, %v2511_v46, %v2515_v30  ;;  %v3053_v22 = vrot.slane %v8678_v55, 1  ;;  %v8695_v0 = vld [vmem:[#allocation2 + $0x90] ss:$0 sps:$4 sm:$0x11]   ;;  %v8700_v5 = vld [vmem:[#allocation2 + $0x18] sm:$0xff]  }
 0x116   : > { %v2492_v16 = vsel %vm2416_vm1, %v2487_v57, %v2491_v12  ;;  %v2495_v9 = vor.u32 %v2493_v48, %v2491_v12  ;;  %v2537_v21 = vshll.u32 %v8688_v34, 16  ;;  %v2531_v58 = vrot.slane %v2529_v4, 1  ;;  %v10352_v55 = vld [vmem:[#allocation2 + $0x20] sm:$0xff]   ;;  %v8693_v6 = vld [vmem:[#allocation2 + $0x70] sm:$0xff]  }
 0x117   : > { %8332 = vmatprep.mubr.msk.bf16.mxu1 %vm1741_vm5, %v2492_v16  ;;  %v2524_v19 = vsel %vm2416_vm1, %v2519_v27, %v2523_v36  ;;  %v3052_v2 = vsel %vm3039_vm6, %v3049_v61, %v3051_v14  ;;  %v2525_v52 = vshrl.u32 %v8684_v11, 16  ;;  %v3054_v15 = vsel %vm3039_vm6, %v3051_v14, %v3053_v22  ;;  %v8690_v61 = vld [vmem:[#allocation2 + $0x68] sm:$0xff]   ;;  %v10358_v27 = vld [vmem:[#allocation2 + $0x78] sm:$0xff]  }
 0x118   : > { %v2500_v26 = vsel %vm2416_vm1, %v2495_v9, %v2499_v3  ;;  %v2533_v29 = vshrl.u32 %v8687_v63, 16  ;;  %v2539_v13 = vrot.slane %v2537_v21, 1  ;;  %v2545_v41 = vshll.u32 %v8691_v62, 16  ;;  %v10370_v21 = vld [vmem:[%s11416_s4 + $0x1c] sm:$0xf] }
 0x119   : > { %8355 = vmatmul.mubr.msk.bf16.vlgmr.msra.gmra.mrb[20].mxu0 %vm1741_vm5, %v3044_v20  ;;  %v2527_v8 = vor.u32 %v2525_v52, %v2523_v36  ;;  %v3055_v10 = vrot.slane %v8681_v37, 1  ;;  %v3057_v60 = vrot.slane %v8682_v28, 1  ;;  %v2553_v59 = vshll.u32 %v8692_v47, 16  ;;  %v10383_v37 = vld [vmem:[#allocation2 + $0x80] sm:$0xff]   ;;  %v10390_v28 = vld [vmem:[#allocation2 + $0x88] sm:$0xff]  }
 0x11a   : > { %8429 = vmatpush3.bf16.msra.mxu0 %v4288_v42  ;;  %8358 = vmatprep.mubr.msk.bf16.mxu0 %vm1741_vm5, %v3046_v23  ;;  %v2535_v51 = vor.u32 %v2533_v29, %v2531_v58  ;;  %v2547_v43 = vrot.slane %v2545_v41, 1  ;;  %v2541_v12 = vshrl.u32 %v8688_v34, 16  ;;  %v2549_v16 = vshrl.u32 %v8691_v62, 16  ;;  %v8697_v23 = vld [vmem:[#allocation2 + $0x10] sm:$0xff]  }
 0x11b   : > { %8627 = vmatprep.subr.msk.bf16.mxu0 %vm1995_vm15, %v10310_v35  ;;  %v2532_v7 = vsel %vm2416_vm1, %v2527_v8, %v2531_v58  ;;  %v3056_v57 = vsel %vm3039_vm6, %v3053_v22, %v3055_v10  ;;  %v3058_v3 = vsel %vm3039_vm6, %v3055_v10, %v3057_v60  ;;  %v2555_v48 = vrot.slane %v2553_v59, 1  ;;  %v10364_v22 = vld [vmem:[#allocation2 + $0x28] sm:$0xff]   ;;  %v8704_v29 = vld [vmem:[#allocation2 + $0x10] sm:$0xff]   ;;  %v8709_v10 = vld [vmem:[#allocation2 + $0x38] sm:$0xff]  }
 0x11c   : > { %v2540_v31 = vsel %vm2416_vm1, %v2535_v51, %v2539_v13  ;;  %v2543_v45 = vor.u32 %v2541_v12, %v2539_v13  ;;  %v2551_v42 = vor.u32 %v2549_v16, %v2547_v43  ;;  %v2561_v20 = vshll.u32 %v8695_v0, 16  ;;  %v8707_v0 = vld [vmem:[#allocation2 + $0x18] sm:$0xff]  }
 0x11d   : > { %8333 = vmatmul.mubr.msk.bf16.gmra.mrb[32].mxu1 %vm1741_vm5, %v2500_v26  ;;  %v3061_v50 = vrot.slane %v8686_v1, 1  ;;  %v3059_v40 = vrot.slane %v8685_v38, 1  ;;  %v2557_v24 = vshrl.u32 %v8692_v47, 16  ;;  %v3551_v30 = vrot.slane %v8696_v44, 1  ;;  %v8703_v47 = vld [vmem:[#allocation2 + $0x8] sm:$0xfe]  }
 0x11e   : > { %8336 = vmatprep.mubr.msk.bf16.mxu1 %vm1741_vm5, %v2508_v56  ;;  %v2548_v32 = vsel %vm2416_vm1, %v2543_v45, %v2547_v43  ;;  %v2556_v9 = vsel %vm2416_vm1, %v2551_v42, %v2555_v48  ;;  %v2563_v33 = vrot.slane %v2561_v20, 1  ;;  %v3552_v56 = vrot.slane %v8697_v23, 1  ;;  %v8710_v43 = vld [vmem:[#allocation2 + $0x40] sm:$0xff]   ;;  %v8702_v1 = vld [vmem:[#allocation2 + $0x90] ss:$0 sps:$4 sm:$0x11]  }
 0x11f   : > { %v3060_v11 = vsel %vm3039_vm6, %v3057_v60, %v3059_v40  ;;  %v3062_v26 = vsel %vm3039_vm6, %v3059_v40, %v3061_v50  ;;  %v2559_v39 = vor.u32 %v2557_v24, %v2555_v48  ;;  %v3063_v63 = vrot.slane %v8689_v49, 1  ;;  %v8708_v42 = vld [vmem:[#allocation2 + $0x20] sm:$0xff]   ;;  %v8713_v44 = vld [vmem:[#allocation2 + $0x48] sm:$0xff]  }
 0x120   : > { %v3065_v53 = vrot.slane %v8690_v61, 1  ;;  %v3554_v34 = vrot.slane %v8700_v5, 1  ;;  %v3556_v4 = vrot.slane %v10352_v55, 1  ;;  %v3067_v14 = vrot.slane %v8693_v6, 1  ;;  %v8712_v6 = vld [vmem:[#allocation2 + $0x30] sm:$0xff]  }
 0x121   : > { %8359 = vmatmul.mubr.msk.bf16.gmra.mrb[24].mxu0 %vm1741_vm5, %v3048_v54  ;;  %v2564_v54 = vsel %vm2416_vm1, %v2559_v39, %v2563_v33  ;;  %v3064_v36 = vsel %vm3039_vm6, %v3061_v50, %v3063_v63  ;;  %v3069_v58 = vrot.slane %v10358_v27, 1  ;;  %v3558_v52 = vrot.slane %v10364_v22, 1  ;;  %v8714_v39 = vld [vmem:[#allocation2 + $0x50] sm:$0xff]  }
 0x122   : > { %8362 = vmatprep.mubr.msk.bf16.mxu0 %vm1741_vm5, %v3050_v18  ;;  %v3553_v18 = vsel %vm3039_vm6, %v3551_v30, %v3552_v56  ;;  %v3066_v46 = vsel %vm3039_vm6, %v3063_v63, %v3065_v53  ;;  %v3557_v62 = vsel %vm3039_vm6, %v3554_v34, %v3556_v4  ;;  %v8911_v8 = vmov 0.0  }
 0x123   : > { %1764 = vst.msk [vmem:[#allocation3 + $0xb0] sm:$0xff] %vm1741_vm5, %v8911_v8  ;;  %1742 = vst.msk [vmem:[#allocation3] sm:$0xff] %vm1741_vm5, %v8911_v8  ;;  %v3071_v51 = vrot.slane %v10383_v37, 1  ;;  %v3559_v41 = vsel %vm3039_vm6, %v3556_v4, %v3558_v52  ;;  %v4072_v60 = vshrl.u32 %v8704_v29, 16  ;;  %v4067_v12 = vshll.u32 %v8703_v47, 16 }
 0x124   : > { %1743 = vst.msk [vmem:[#allocation3 + $0x8] sm:$0xff] %vm1741_vm5, %v8911_v8  ;;  %1744 = vst.msk [vmem:[#allocation3 + $0x10] sm:$0xff] %vm1741_vm5, %v8911_v8  ;;  %v3562_v16 = vrot.slane %v8709_v10, 1  ;;  %v4081_v23 = vshrl.u32 %v8707_v0, 16  ;;  %v4084_v40 = vshll.u32 %v8707_v0, 16  ;;  %v4090_v24 = vshrl.u32 %v8708_v42, 16 }
 0x125   : > { %8337 = vmatmul.mubr.msk.bf16.gmra.mrb[36].mxu1 %vm1741_vm5, %v2516_v25  ;;  %v4800_v25 = vsel %vm1995_vm15, %v10222_v17, 0  ;;  %v3068_v17 = vsel %vm3039_vm6, %v3065_v53, %v3067_v14  ;;  %1745 = vst.msk [vmem:[#allocation3 + $0x18] sm:$0xff] %vm1741_vm5, %v8911_v8  ;;  %1746 = vst.msk [vmem:[#allocation3 + $0x20] sm:$0xff] %vm1741_vm5, %v8911_v8  ;;  %v4074_v38 = vrot.slane %v4072_v60, 1  ;;  %v4069_v50 = vrot.slane %v4067_v12, 2  ;;  %v8722_v12 = vld [vmem:[#allocation2 + $0x70] sm:$0xff]  }
 0x126   : > { %8340 = vmatprep.mubr.msk.bf16.mxu1 %vm1741_vm5, %v2524_v19  ;;  %v3555_v19 = vsel %vm3039_vm6, %v3552_v56, %v3554_v34  ;;  %1747 = vst.msk [vmem:[#allocation3 + $0x28] sm:$0xff] %vm1741_vm5, %v8911_v8  ;;  %1748 = vst.msk [vmem:[#allocation3 + $0x30] sm:$0xff] %vm1741_vm5, %v8911_v8  ;;  %v4093_v33 = vshll.u32 %v8708_v42, 16  ;;  %vm4062_vm3 = vsmask.f32 6400  ;;  %v8711_v56 = vld [vmem:[#allocation2 + $0x28] sm:$0xff]  }
 0x127   : > { %1749 = vst.msk [vmem:[#allocation3 + $0x38] sm:$0xff] %vm1741_vm5, %v8911_v8  ;;  %1750 = vst.msk [vmem:[#allocation3 + $0x40] sm:$0xff] %vm1741_vm5, %v8911_v8  ;;  %v4083_v63 = vrot.slane %v4081_v23, 1  ;;  %v3566_v5 = vrot.slane %v8713_v44, 1  ;;  %v3568_v34 = vrot.slane %v8714_v39, 1  ;;  %v4102_v27 = vshll.u32 %v8711_v56, 16 }
 0x128   : > { %1751 = vst.msk [vmem:[#allocation3 + $0x48] sm:$0xff] %vm1741_vm5, %v8911_v8  ;;  %1752 = vst.msk [vmem:[#allocation3 + $0x50] sm:$0xff] %vm1741_vm5, %v8911_v8  ;;  %v4095_v55 = vrot.slane %v4093_v33, 2  ;;  %v4108_v22 = vshrl.u32 %v8712_v6, 16  ;;  %v8725_v44 = vld [vmem:[#allocation2 + $0x78] sm:$0xff]   ;;  %v8726_v33 = vld [vmem:[#allocation2 + $0x80] sm:$0xff]  }
 0x129   : > { %8363 = vmatmul.mubr.msk.bf16.gmra.mrb[28].mxu0 %vm1741_vm5, %v3052_v2  ;;  %v10377_v2 = vld [vmem:[#allocation2 + $0x30] sm:$0xff]   ;;  %1753 = vst.msk [vmem:[#allocation3 + $0x58] sm:$0xff] %vm1741_vm5, %v8911_v8  ;;  %1754 = vst.msk [vmem:[#allocation3 + $0x60] sm:$0xff] %vm1741_vm5, %v8911_v8  ;;  %vm4707_vm11 = vcmask 1045504   ;;  %vm6375_vm8 = vcmask 1044480  }
 0x12a   : > { %8366 = vmatprep.mubr.msk.bf16.mxu0 %vm1741_vm5, %v3054_v15  ;;  %v3070_v15 = vsel %vm3039_vm6, %v3067_v14, %v3069_v58  ;;  %v3560_v13 = vrot.slane %v10377_v2, 1  ;;  %1755 = vst.msk [vmem:[#allocation3 + $0x68] sm:$0xff] %vm1741_vm5, %v8911_v8  ;;  %1756 = vst.msk [vmem:[#allocation3 + $0x70] sm:$0xff] %vm1741_vm5, %v8911_v8  ;;  %v8717_v14 = vld [vmem:[#allocation2 + $0x58] sm:$0xff]  }
 0x12b   : > { %1757 = vst.msk [vmem:[#allocation3 + $0x78] sm:$0xff] %vm1741_vm5, %v8911_v8  ;;  %1758 = vst.msk [vmem:[#allocation3 + $0x80] sm:$0xff] %vm1741_vm5, %v8911_v8  ;;  %v8715_v2 = vld [vmem:[#allocation2 + $0x38] sm:$0xff]  }
 0x12c   : > { %1759 = vst.msk [vmem:[#allocation3 + $0x88] sm:$0xff] %vm1741_vm5, %v8911_v8  ;;  %1760 = vst.msk [vmem:[#allocation3 + $0x90] sm:$0xff] %vm1741_vm5, %v8911_v8  ;;  %v3561_v59 = vsel %vm3039_vm6, %v3558_v52, %v3560_v13  ;;  %v3563_v49 = vsel %vm3039_vm6, %v3560_v13, %v3562_v16  ;;  %v8716_v52 = vld [vmem:[#allocation2 + $0x40] sm:$0xff]  }
 0x12d   : > { %8341 = vmatmul.mubr.msk.bf16.gmra.mrb[40].mxu1 %vm1741_vm5, %v2532_v7  ;;  %1761 = vst.msk [vmem:[#allocation3 + $0x98] sm:$0xff] %vm1741_vm5, %v8911_v8  ;;  %1762 = vst.msk [vmem:[#allocation3 + $0xa0] sm:$0xff] %vm1741_vm5, %v8911_v8  ;;  %v3073_v7 = vrot.slane %v10390_v28, 1  ;;  %v4104_v28 = vrot.slane %v4102_v27, 2  ;;  %v10466_v13 = vld [vmem:[%s11416_s4 + $0x20] sm:$0xf] }
 0x12e   : > { %8344 = vmatprep.mubr.msk.bf16.mxu1 %vm1741_vm5, %v2540_v31  ;;  %1763 = vst.msk [vmem:[#allocation3 + $0xa8] sm:$0xff] %vm1741_vm5, %v8911_v8  ;;  %1765 = vst.msk [vmem:[#allocation3 + $0xb8] sm:$0xff] %vm1741_vm5, %v8911_v8  ;;  %v4075_v31 = vshll.u32 %v8704_v29, 16  ;;  %v3570_v29 = vrot.slane %v8717_v14, 1  ;;  %v4126_v60 = vshrl.u32 %v8716_v52, 16  ;;  %v4129_v0 = vshll.u32 %v8716_v52, 16 }
 0x12f   : > { %1766 = vst.msk [vmem:[#allocation3 + $0xc0] sm:$0xff] %vm1741_vm5, %v8911_v8  ;;  %1767 = vst.msk [vmem:[#allocation3 + $0xc8] sm:$0xff] %vm1741_vm5, %v8911_v8  ;;  %v3074_v48 = vsel %vm3039_vm6, %v3071_v51, %v3073_v7 }
 0x130   : > { %1768 = vst.msk [vmem:[#allocation3 + $0xd0] sm:$0xff] %vm1741_vm5, %v8911_v8  ;;  %1769 = vst.msk [vmem:[#allocation3 + $0xd8] sm:$0xff] %vm1741_vm5, %v8911_v8  ;;  %v4077_v45 = vrot.slane %v4075_v31, 2  ;;  %v3571_v31 = vsel %vm3039_vm6, %v3568_v34, %v3570_v29 }
 0x131   : > { %8367 = vmatmul.mubr.msk.bf16.gmra.mrb[32].mxu0 %vm1741_vm5, %v3056_v57  ;;  %1770 = vst.msk [vmem:[#allocation3 + $0xe0] sm:$0xff] %vm1741_vm5, %v8911_v8  ;;  %1771 = vst.msk [vmem:[#allocation3 + $0xe8] sm:$0xff] %vm1741_vm5, %v8911_v8  ;;  %v4064_v57 = vshrl.u32 %v8703_v47, 16 }
 0x132   : > { %8370 = vmatprep.mubr.msk.bf16.mxu0 %vm1741_vm5, %v3058_v3  ;;  %1772 = vst.msk [vmem:[#allocation3 + $0xf0] sm:$0xff] %vm1741_vm5, %v8911_v8  ;;  %1773 = vst.msk [vmem:[#allocation3 + $0xf8] sm:$0xff] %vm1741_vm5, %v8911_v8  ;;  %v3072_v3 = vsel %vm3039_vm6, %v3069_v58, %v3071_v51  ;;  %v3569_v58 = vsel %vm3039_vm6, %v3566_v5, %v3568_v34 }
 0x133   : > { %1774 = vst.msk [vmem:[#allocation3 + $0x100] sm:$0xff] %vm1741_vm5, %v8911_v8  ;;  %1775 = vst.msk [vmem:[#allocation3 + $0x108] sm:$0xff] %vm1741_vm5, %v8911_v8  ;;  %v4066_v20 = vrot.slane %v4064_v57, 1 }
 0x134   : > { %1776 = vst.msk [vmem:[#allocation3 + $0x110] sm:$0xff] %vm1741_vm5, %v8911_v8  ;;  %1777 = vst.msk [vmem:[#allocation3 + $0x118] sm:$0xff] %vm1741_vm5, %v8911_v8  ;;  %v4110_v8 = vrot.slane %v4108_v22, 1 }
 0x135   : > { %8345 = vmatmul.mubr.msk.bf16.gmra.mrb[44].mxu1 %vm1741_vm5, %v2548_v32  ;;  %v3564_v32 = vrot.slane %v8710_v43, 1  ;;  %v4070_v61 = vor.u32 %v4069_v50, %v4066_v20  ;;  %v3576_v20 = vrot.slane %v8722_v12, 1 }
 0x136   : > { %8348 = vmatprep.mubr.msk.bf16.mxu1 %vm1741_vm5, %v2556_v9  ;;  %v3075_v9 = vrot.slane %v8702_v1, 1  ;;  %v8719_v1 = vld [vmem:[#allocation2 + $0x48] sm:$0xff]  }
 0x137   : > { %v3567_v4 = vsel %vm3039_vm6, %v3564_v32, %v3566_v5  ;;  %v4135_v50 = vshrl.u32 %v8719_v1, 16 }
 0x138   : > { %v3076_v30 = vsel %vm3039_vm6, %v3073_v7, %v3075_v9  ;;  %v4120_v7 = vshll.u32 %v8715_v2, 16  ;;  %v8720_v9 = vld [vmem:[#allocation2 + $0x50] sm:$0xff]  }
 0x139   : > { %8371 = vmatmul.mubr.msk.bf16.gmra.mrb[36].mxu0 %vm1741_vm5, %v3060_v11  ;;  %v4078_v11 = vor.u32 %v4077_v45, %v4074_v38  ;;  %v4128_v38 = vrot.slane %v4126_v60, 1  ;;  %v4147_v39 = vshll.u32 %v8720_v9, 16 }
 0x13a   : > { %8374 = vmatprep.mubr.msk.bf16.mxu0 %vm1741_vm5, %v3062_v26  ;;  %v3565_v26 = vsel %vm3039_vm6, %v3562_v16, %v3564_v32  ;;  %v4131_v32 = vrot.slane %v4129_v0, 2 }
 0x13b   : > { %v4079_v53 = vsel %vm4062_vm3, %v4070_v61, %v4078_v11  ;;  %v4137_v61 = vrot.slane %v4135_v50, 1 }
 0x13d   : > { %8349 = vmatmul.mubr.msk.bf16.gmra.mrb[48].mxu1 %vm1741_vm5, %v2564_v54  ;;  %v4086_v54 = vrot.slane %v4084_v40, 2  ;;  %v4138_v40 = vshll.u32 %v8719_v1, 16  ;;  %v8734_v1 = vld [vmem:[#allocation2 + $0x8] sm:$0xfc]  }
 0x13e   : > { %8392 = vmatprep.mubr.msk.bf16.mxu1 %vm1741_vm5, %v3553_v18  ;;  %v4092_v18 = vrot.slane %v4090_v24, 1 }
 0x141   : > { %8375 = vmatmul.mubr.msk.bf16.gmra.mrb[40].mxu0 %vm1741_vm5, %v3064_v36  ;;  %v4099_v36 = vshrl.u32 %v8711_v56, 16  ;;  %v4144_v56 = vshrl.u32 %v8720_v9, 16 }
 0x142   : > { %8378 = vmatprep.mubr.msk.bf16.mxu0 %vm1741_vm5, %v3066_v46  ;;  %v4087_v46 = vor.u32 %v4086_v54, %v4083_v63  ;;  %v4140_v63 = vrot.slane %v4138_v40, 2  ;;  %v3578_v54 = vrot.slane %v8725_v44, 1  ;;  %v1799_v40 = vld [vmem:[#allocation3 + $0xa8] sm:$0xff] }
 0x143   : > { %v4101_v37 = vrot.slane %v4099_v36, 1  ;;  %v8729_v36 = vld [vmem:[#allocation2 + $0x88] sm:$0xff]   ;;  %v4146_v34 = vrot.slane %v4144_v56, 1 }
 0x144   : > { %v4141_v27 = vor.u32 %v4140_v63, %v4137_v61  ;;  %v3579_v14 = vsel %vm3039_vm6, %v3576_v20, %v3578_v54 }
 0x145   : > { %8393 = vmatmul.mubr.msk.bf16.vlgmr.msra.gmra.mrb[52].mxu1 %vm1741_vm5, %v3555_v19  ;;  %v4111_v19 = vshll.u32 %v8712_v6, 16  ;;  %v4105_v10 = vor.u32 %v4104_v28, %v4101_v37  ;;  %v8727_v6 = vld [vmem:[#allocation2 + $0x68] sm:$0xff]   ;;  %v3582_v28 = vrot.slane %v8729_v36, 1  ;;  %v10514_v36 = vld [vmem:[#allocation2 + $0x20] sm:$0xff]  }
 0x146   : > { %8396 = vmatprep.mubr.msk.bf16.mxu1 %vm1741_vm5, %v3557_v62  ;;  %8467 = vmatpush3.bf16.msra.mxu1 %v4800_v25  ;;  %v4096_v25 = vor.u32 %v4095_v55, %v4092_v18  ;;  %v8718_v62 = vld [vmem:[#allocation2 + $0x60] sm:$0xff]   ;;  %v3580_v18 = vrot.slane %v8726_v33, 1 }
 0x147   : > { %8628 = vmatprep.subr.msk.bf16.mxu1 %vm1995_vm15, %v10370_v21  ;;  %v4113_v51 = vrot.slane %v4111_v19, 2 }
 0x148   : > { %v4097_v47 = vsel %vm4062_vm3, %v4087_v46, %v4096_v25  ;;  %v4106_v16 = vsel %vm4062_vm3, %v4096_v25, %v4105_v10  ;;  %v10490_v25 = vld [vmem:[#allocation2 + $0x90] sm:$0xff]  }
 0x149   : > { %8379 = vmatmul.mubr.msk.bf16.gmra.mrb[44].mxu0 %vm1741_vm5, %v3068_v17  ;;  %v5311_v17 = vsel %vm1995_vm15, %v10310_v35, 0  ;;  %v4117_v35 = vshrl.u32 %v8715_v2, 16  ;;  %v4114_v43 = vor.u32 %v4113_v51, %v4110_v8 }
 0x14a   : > { %8382 = vmatprep.mubr.msk.bf16.mxu0 %vm1741_vm5, %v3070_v15  ;;  %v4088_v15 = vsel %vm4062_vm3, %v4078_v11, %v4087_v46  ;;  %v4132_v11 = vor.u32 %v4131_v32, %v4128_v38  ;;  %v4149_v46 = vrot.slane %v4147_v39, 2 }
 0x14b   : > { %v4115_v42 = vsel %vm4062_vm3, %v4105_v10, %v4114_v43 }
 0x14c   : > { %v4150_v2 = vor.u32 %v4149_v46, %v4146_v34  ;;  %v4142_v37 = vsel %vm4062_vm3, %v4132_v11, %v4141_v27  ;;  %v1780_v34 = vld [vmem:[#allocation3 + $0x10] sm:$0xff] }
 0x14d   : > { %8397 = vmatmul.mubr.msk.bf16.gmra.mrb[56].mxu1 %vm1741_vm5, %v3559_v41  ;;  %v3572_v41 = vrot.slane %v8718_v62, 1  ;;  %v8728_v62 = vld [vmem:[#allocation2 + $0x70] sm:$0xff]  }
 0x14e   : > { %8400 = vmatprep.mubr.msk.bf16.mxu1 %vm1741_vm5, %v3561_v59  ;;  %v8721_v59 = vld [vmem:[#allocation2 + $0x68] sm:$0xff]   ;;  %v4180_v10 = vshrl.u32 %v8728_v62, 16 }
 0x14f   : > { %v3573_v57 = vsel %vm3039_vm6, %v3570_v29, %v3572_v41  ;;  %v3574_v45 = vrot.slane %v8721_v59, 1  ;;  %v8733_v29 = vld [vmem:[#allocation2 + $0x98] ss:$0 sps:$4 sm:$0x11]  }
 0x150   : > { %v8731_v59 = vld [vmem:[#allocation2 + $0x78] sm:$0xff]   ;;  %v4182_v38 = vrot.slane %v4180_v10, 1 }
 0x151   : > { %8383 = vmatmul.mubr.msk.bf16.gmra.mrb[48].mxu0 %vm1741_vm5, %v3072_v3  ;;  %v4119_v3 = vrot.slane %v4117_v35, 1  ;;  %v3577_v24 = vsel %vm3039_vm6, %v3574_v45, %v3576_v20  ;;  %v4174_v35 = vshll.u32 %v8727_v6, 16  ;;  %v1801_v20 = vld [vmem:[#allocation3 + $0xb8] sm:$0xff]  ;;  %v4192_v61 = vshll.u32 %v8731_v59, 16 }
 0x152   : > { %8386 = vmatprep.mubr.msk.bf16.mxu0 %vm1741_vm5, %v3074_v48  ;;  %v4122_v48 = vrot.slane %v4120_v7, 2 }
 0x154   : > { %v4123_v23 = vor.u32 %v4122_v48, %v4119_v3  ;;  %v8732_v3 = vld [vmem:[#allocation2 + $0x80] sm:$0xff]   ;;  %v4176_v48 = vrot.slane %v4174_v35, 2 }
 0x155   : > { %8401 = vmatmul.mubr.msk.bf16.gmra.mrb[60].mxu1 %vm1741_vm5, %v3563_v49  ;;  %v3575_v49 = vsel %vm3039_vm6, %v3572_v41, %v3574_v45  ;;  %v3584_v41 = vrot.slane %v10490_v25, 1  ;;  %v3586_v45 = vrot.slane %v8733_v29, 1  ;;  %v4201_v63 = vshll.u32 %v8732_v3, 16 }
 0x156   : > { %8404 = vmatprep.mubr.msk.bf16.mxu1 %vm1741_vm5, %v3565_v26  ;;  %v8723_v26 = vld [vmem:[#allocation2 + $0x58] sm:$0xff]   ;;  %v4133_v5 = vsel %vm4062_vm3, %v4123_v23, %v4132_v11  ;;  %v4194_v25 = vrot.slane %v4192_v61, 2 }
 0x157   : > { %v4153_v55 = vshrl.u32 %v8723_v26, 16  ;;  %v3585_v12 = vsel %vm3039_vm6, %v3582_v28, %v3584_v41 }
 0x159   : > { %8387 = vmatmul.mubr.msk.bf16.gmra.mrb[52].mxu0 %vm1741_vm5, %v3076_v30  ;;  %v4124_v30 = vsel %vm4062_vm3, %v4114_v43, %v4123_v23  ;;  %v10501_v43 = vld [vmem:[#allocation2 + $0x10] sm:$0xff]  }
 0x15a   : > { %8430 = vmatprep.mubr.msk.bf16.mxu0 %vm1741_vm5, %v4079_v53  ;;  %v8724_v53 = vld [vmem:[#allocation2 + $0x60] sm:$0xff]   ;;  %v4709_v11 = vrot.slane %v10501_v43, 2 }
 0x15b   : > { %v4162_v22 = vshrl.u32 %v8724_v53, 16  ;;  %v4165_v19 = vshll.u32 %v8724_v53, 16 }
 0x15d   : > { %8405 = vmatmul.mubr.msk.bf16.gmra.mrb[64].mxu1 %vm1741_vm5, %v3567_v4  ;;  %v4156_v4 = vshll.u32 %v8723_v26, 16  ;;  %v4164_v8 = vrot.slane %v4162_v22, 1  ;;  %v4167_v51 = vrot.slane %v4165_v19, 2  ;;  %v4189_v26 = vshrl.u32 %v8731_v59, 16  ;;  %v1781_v19 = vld [vmem:[#allocation3 + $0x18] sm:$0xff] }
 0x15e   : > { %8408 = vmatprep.mubr.msk.bf16.mxu1 %vm1741_vm5, %v3569_v58  ;;  %v3581_v58 = vsel %vm3039_vm6, %v3578_v54, %v3580_v18  ;;  %v4708_v54 = vrot.slane %v8734_v1, 2 }
 0x15f   : > { %v4158_v52 = vrot.slane %v4156_v4, 2  ;;  %v4168_v0 = vor.u32 %v4167_v51, %v4164_v8  ;;  %v1778_v4 = vld [vmem:[#allocation3] sm:$0xff]  ;;  %v4713_v51 = vrot.slane %v10514_v36, 2 }
 0x161   : > { %8431 = vmatmul.mubr.msk.bf16.vlgmr.msra.gmra.mrb[56].mxu0 %vm1741_vm5, %v4088_v15  ;;  %v4171_v15 = vshrl.u32 %v8727_v6, 16  ;;  %v8736_v6 = vld [vmem:[#allocation2 + $0x88] sm:$0xff]  }
 0x162   : > { %8505 = vmatpush3.bf16.msra.mxu0 %v5311_v17  ;;  %8434 = vmatprep.mubr.msk.bf16.mxu0 %vm1741_vm5, %v4097_v47  ;;  %v4155_v17 = vrot.slane %v4153_v55, 1  ;;  %v4151_v47 = vsel %vm4062_vm3, %v4141_v27, %v4150_v2  ;;  %v3587_v55 = vsel %vm3039_vm6, %v3584_v41, %v3586_v45  ;;  %v4710_v27 = vsel %vm4707_vm11, %v4708_v54, %v4709_v11 }
 0x163   : > { %8629 = vmatprep.subr.msk.bf16.mxu0 %vm1995_vm15, %v10466_v13  ;;  %v4173_v60 = vrot.slane %v4171_v15, 1  ;;  %v4207_v10 = vshrl.u32 %v8736_v6, 16 }
 0x164   : > { %v4159_v7 = vor.u32 %v4158_v52, %v4155_v17  ;;  %v1779_v52 = vld [vmem:[#allocation3 + $0x8] sm:$0xff] }
 0x165   : > { %8409 = vmatmul.mubr.msk.bf16.gmra.mrb[68].mxu1 %vm1741_vm5, %v3571_v31  ;;  %v3583_v31 = vsel %vm3039_vm6, %v3580_v18, %v3582_v28  ;;  %v4177_v18 = vor.u32 %v4176_v48, %v4173_v60  ;;  %v4210_v60 = vshll.u32 %v8736_v6, 16  ;;  %v4209_v48 = vrot.slane %v4207_v10, 1  ;;  %v1782_v6 = vld [vmem:[#allocation3 + $0x20] sm:$0xff] }
 0x166   : > { %8412 = vmatprep.mubr.msk.bf16.mxu1 %vm1741_vm5, %v3573_v57  ;;  %v4183_v57 = vshll.u32 %v8728_v62, 16  ;;  %v4160_v50 = vsel %vm4062_vm3, %v4150_v2, %v4159_v7  ;;  %v4203_v62 = vrot.slane %v4201_v63, 2  ;;  %v8737_v2 = vld [vmem:[#allocation2 + $0x90] sm:$0xff]   ;;  %v1784_v63 = vld [vmem:[#allocation3 + $0x30] sm:$0xff]  ;;  %v8751_v10 = vld [vmem:[#allocation2 + $0x48] sm:$0xff]  }
 0x167   : > { %v4178_v15 = vsel %vm4062_vm3, %v4168_v0, %v4177_v18  ;;  %v4219_v1 = vshll.u32 %v8737_v2, 16 }
 0x168   : > { %v4185_v44 = vrot.slane %v4183_v57, 2  ;;  %v10532_v57 = vld [vmem:[#allocation2 + $0x30] sm:$0xff]  }
 0x169   : > { %8435 = vmatmul.mubr.msk.bf16.gmra.mrb[60].mxu0 %vm1741_vm5, %v4106_v16  ;;  %v1800_v16 = vld [vmem:[#allocation3 + $0xb0] sm:$0xff] }
 0x16a   : > { %8438 = vmatprep.mubr.msk.bf16.mxu0 %vm1741_vm5, %v4115_v42  ;;  %v1798_v42 = vld [vmem:[#allocation3 + $0xa0] sm:$0xff]  ;;  %v4186_v46 = vor.u32 %v4185_v44, %v4182_v38  ;;  %v4212_v38 = vrot.slane %v4210_v60, 2 }
 0x16c   : > { %v4187_v8 = vsel %vm4062_vm3, %v4177_v18, %v4186_v46 }
 0x16d   : > { %8413 = vmatmul.mubr.msk.bf16.gmra.mrb[72].mxu1 %vm1741_vm5, %v3575_v49  ;;  %v4169_v49 = vsel %vm4062_vm3, %v4159_v7, %v4168_v0  ;;  %v8743_v0 = vld [vmem:[#allocation2 + $0x28] sm:$0xff]  }
 0x16e   : > { %8416 = vmatprep.mubr.msk.bf16.mxu1 %vm1741_vm5, %v3577_v24 }
 0x171   : > { %8439 = vmatmul.mubr.msk.bf16.gmra.mrb[64].mxu0 %vm1741_vm5, %v4124_v30  ;;  %v4198_v30 = vshrl.u32 %v8732_v3, 16  ;;  %v4216_v3 = vshrl.u32 %v8737_v2, 16 }
 0x172   : > { %8442 = vmatprep.mubr.msk.bf16.mxu0 %vm1741_vm5, %v4133_v5  ;;  %v8738_v5 = vld [vmem:[#allocation2 + $0x18] sm:$0xff]  }
 0x173   : > { %v4711_v28 = vrot.slane %v8738_v5, 2 }
 0x175   : > { %8417 = vmatmul.mubr.msk.bf16.gmra.mrb[76].mxu1 %vm1741_vm5, %v3579_v14  ;;  %v4191_v14 = vrot.slane %v4189_v26, 1  ;;  %v4712_v43 = vsel %vm4707_vm11, %v4709_v11, %v4711_v28  ;;  %v8747_v11 = vld [vmem:[#allocation2 + $0x38] sm:$0xff]  }
 0x176   : > { %8420 = vmatprep.mubr.msk.bf16.mxu1 %vm1741_vm5, %v3581_v58  ;;  %v4200_v58 = vrot.slane %v4198_v30, 1  ;;  %v1803_v30 = vld [vmem:[#allocation3 + $0xc8] sm:$0xff]  ;;  %v4719_v2 = vrot.slane %v8747_v11, 2 }
 0x177   : > { %v4195_v59 = vor.u32 %v4194_v25, %v4191_v14 }
 0x179   : > { %8443 = vmatmul.mubr.msk.bf16.gmra.mrb[68].mxu0 %vm1741_vm5, %v4142_v37  ;;  %v4196_v45 = vsel %vm4062_vm3, %v4186_v46, %v4195_v59 }
 0x17a   : > { %8446 = vmatprep.mubr.msk.bf16.mxu0 %vm1741_vm5, %v4151_v47 }
 0x17d   : > { %8421 = vmatmul.mubr.msk.bf16.gmra.mrb[80].mxu1 %vm1741_vm5, %v3583_v31  ;;  %v8300_v32 = vpop.f32.mrb[0].mxu1  ;;  %v5956_v31 = vsel %vm1995_vm15, %v10370_v21, 0  ;;  %v8740_v21 = vld [vmem:[#allocation2 + $0x98] ss:$0 sps:$4 sm:$0x33]  }
 0x17e   : > { %8424 = vmatprep.mubr.msk.bf16.mxu1 %vm1741_vm5, %v3585_v12  ;;  %v2198_v9 = vadd.f32 %v8300_v32, %v1800_v16  ;;  %v2113_v23 = vpop.f32.mrb[1].mxu1  ;;  %v4204_v12 = vor.u32 %v4203_v62, %v4200_v58  ;;  %v4714_v16 = vsel %vm4707_vm11, %v4711_v28, %v4713_v51  ;;  %v4225_v44 = vshrl.u32 %v8740_v21, 16 }
 0x17f   : > { %v2196_v24 = vadd.f32 %v2113_v23, %v1798_v42  ;;  %v8301_v33 = vpop.f32.mrb[2].mxu1  ;;  %v4715_v42 = vrot.slane %v8743_v0, 2  ;;  %v1804_v23 = vld [vmem:[#allocation3 + $0xd0] sm:$0xff]  ;;  %v4228_v26 = vshll.u32 %v8740_v21, 16  ;;  %v8745_v0 = vld [vmem:[#allocation2 + $0x20] sm:$0xff]  }
 0x180   : > { %2234 = vst.msk [vmem:[#allocation3 + $0xb0] sm:$0xff] %vm1741_vm5, %v2198_v9  ;;  %v2199_v56 = vadd.f32 %v8301_v33, %v1801_v20  ;;  %v2116_v39 = vpop.f32.mrb[3].mxu1  ;;  %v4205_v32 = vsel %vm4062_vm3, %v4195_v59, %v4204_v12  ;;  %v4218_v20 = vrot.slane %v4216_v3, 1  ;;  %v4717_v9 = vrot.slane %v10532_v57, 2  ;;  %v1805_v33 = vld [vmem:[#allocation3 + $0xd8] sm:$0xff]  ;;  %v8752_v59 = vld [vmem:[#allocation2 + $0x50] sm:$0xff]  }
 0x181   : > { %8447 = vmatmul.mubr.msk.bf16.gmra.mrb[72].mxu0 %vm1741_vm5, %v4160_v50  ;;  %2232 = vst.msk [vmem:[#allocation3 + $0xa0] sm:$0xff] %vm1741_vm5, %v2196_v24  ;;  %v2197_v53 = vadd.f32 %v2116_v39, %v1799_v40  ;;  %v4221_v50 = vrot.slane %v4219_v1, 2  ;;  %v1802_v40 = vld [vmem:[#allocation3 + $0xc0] sm:$0xff]  ;;  %v4716_v61 = vsel %vm4707_vm11, %v4713_v51, %v4715_v42  ;;  %v4227_v58 = vrot.slane %v4225_v44, 1  ;;  %v8741_v51 = vld [vmem:[#allocation2 + $0x10] sm:$0xfc]  }
 0x182   : > { %8450 = vmatprep.mubr.msk.bf16.mxu0 %vm1741_vm5, %v4169_v49  ;;  %2235 = vst.msk [vmem:[#allocation3 + $0xb8] sm:$0xff] %vm1741_vm5, %v2199_v56  ;;  %v4213_v49 = vor.u32 %v4212_v38, %v4209_v48  ;;  %v4718_v5 = vsel %vm4707_vm11, %v4715_v42, %v4717_v9  ;;  %v4230_v62 = vrot.slane %v4228_v26, 2  ;;  %v4723_v57 = vrot.slane %v8751_v10, 2  ;;  %v8746_v3 = vld [vmem:[#allocation2 + $0x28] sm:$0xff]   ;;  %v1808_v1 = vld [vmem:[#allocation3 + $0xf0] sm:$0xff]  ;;  %v1809_v38 = vld [vmem:[#allocation3 + $0xf8] sm:$0xff] }
 0x183   : > { %2233 = vst.msk [vmem:[#allocation3 + $0xa8] sm:$0xff] %vm1741_vm5, %v2197_v53  ;;  %v4222_v54 = vor.u32 %v4221_v50, %v4218_v20  ;;  %v8748_v53 = vld [vmem:[#allocation2 + $0x40] sm:$0xff]   ;;  %v4725_v21 = vrot.slane %v8752_v59, 2  ;;  %v6468_v26 = vsel %vm1995_vm15, %v10466_v13, 0  ;;  %vm5730_vm15 = vsmask.f32 5376 }
 0x184   : > { %v4721_v28 = vrot.slane %v8748_v53, 2 }
 0x185   : > { %8425 = vmatmul.mubr.msk.bf16.gmra.mrb[84].mxu1 %vm1741_vm5, %v3587_v55  ;;  %v8280_v22 = vpop.f32.mrb[0].mxu0 }
 0x186   : > { %8468 = vmatprep.mubr.msk.bf16.mxu1 %vm1741_vm5, %v4710_v27  ;;  %v2178_v17 = vadd.f32 %v8280_v22, %v1780_v34  ;;  %v2033_v37 = vpop.f32.mrb[1].mxu0  ;;  %v1785_v27 = vld [vmem:[#allocation3 + $0x38] sm:$0xff]  ;;  %v4722_v60 = vsel %vm4707_vm11, %v4719_v2, %v4721_v28  ;;  %v4724_v42 = vsel %vm4707_vm11, %v4721_v28, %v4723_v57 }
 0x187   : > { %v2176_v29 = vadd.f32 %v2033_v37, %v1778_v4  ;;  %v8281_v47 = vpop.f32.mrb[2].mxu0  ;;  %v4214_v4 = vsel %vm4062_vm3, %v4204_v12, %v4213_v49 }
 0x188   : > { %2214 = vst.msk [vmem:[#allocation3 + $0x10] sm:$0xff] %vm1741_vm5, %v2178_v17  ;;  %v2179_v41 = vadd.f32 %v8281_v47, %v1781_v19  ;;  %v2036_v35 = vpop.f32.mrb[3].mxu0  ;;  %v1783_v19 = vld [vmem:[#allocation3 + $0x28] sm:$0xff] }
 0x189   : > { %8451 = vmatmul.mubr.msk.bf16.gmra.mrb[76].mxu0 %vm1741_vm5, %v4178_v15  ;;  %2212 = vst.msk [vmem:[#allocation3] sm:$0xff] %vm1741_vm5, %v2176_v29  ;;  %v2177_v7 = vadd.f32 %v2036_v35, %v1779_v52  ;;  %v4223_v52 = vsel %vm4062_vm3, %v4213_v49, %v4222_v54  ;;  %v8742_v15 = vld [vmem:[#allocation2 + $0x18] sm:$0xff]   ;;  %v4720_v35 = vsel %vm4707_vm11, %v4717_v9, %v4719_v2  ;;  %v1807_v9 = vld [vmem:[#allocation3 + $0xe8] sm:$0xff]  ;;  %v8756_v49 = vld [vmem:[#allocation2 + $0x60] sm:$0xff]  }
 0x18a   : > { %8454 = vmatprep.mubr.msk.bf16.mxu0 %vm1741_vm5, %v4187_v8  ;;  %2215 = vst.msk [vmem:[#allocation3 + $0x18] sm:$0xff] %vm1741_vm5, %v2179_v41  ;;  %v4231_v41 = vor.u32 %v4230_v62, %v4227_v58  ;;  %v4729_v53 = vrot.slane %v8756_v49, 2  ;;  %v8760_v58 = vld [vmem:[#allocation2 + $0x70] sm:$0xff]   ;;  %v10607_v49 = vld [vmem:[#allocation2 + $0x68] sm:$0xff]  }
 0x18b   : > { %2213 = vst.msk [vmem:[#allocation3 + $0x8] sm:$0xff] %vm1741_vm5, %v2177_v7  ;;  %v5220_v7 = vrot.slane %v8742_v15, 2 }
 0x18d   : > { %8469 = vmatmul.mubr.msk.bf16.vlgmr.msra.gmra.mrb[88].mxu1 %vm1741_vm5, %v4712_v43  ;;  %v4232_v43 = vsel %vm4062_vm3, %v4222_v54, %v4231_v41  ;;  %v8763_v41 = vld [vmem:[#allocation2 + $0x78] sm:$0xff]  }
 0x18e   : > { %8472 = vmatprep.mubr.msk.bf16.mxu1 %vm1741_vm5, %v4714_v16  ;;  %8543 = vmatpush3.bf16.msra.mxu1 %v5956_v31  ;;  %v5219_v31 = vrot.slane %v8741_v51, 2  ;;  %v1806_v16 = vld [vmem:[#allocation3 + $0xe0] sm:$0xff]  ;;  %v4735_v59 = vrot.slane %v8763_v41, 2 }
 0x190   : > { %v5221_v12 = vsel %vm4707_vm11, %v5219_v31, %v5220_v7  ;;  %v8758_v31 = vld [vmem:[#allocation2 + $0x58] sm:$0xff]  }
 0x191   : > { %8455 = vmatmul.mubr.msk.bf16.gmra.mrb[80].mxu0 %vm1741_vm5, %v4196_v45  ;;  %v8304_v24 = vpop.f32.mrb[4].mxu1  ;;  %v5222_v45 = vrot.slane %v8745_v0, 2 }
 0x192   : > { %8458 = vmatprep.mubr.msk.bf16.mxu0 %vm1741_vm5, %v4205_v32  ;;  %v2202_v56 = vadd.f32 %v8304_v24, %v1804_v23  ;;  %v2129_v39 = vpop.f32.mrb[5].mxu1  ;;  %v8755_v32 = vld [vmem:[#allocation2 + $0x58] sm:$0xff]   ;;  %v5224_v23 = vrot.slane %v8746_v3, 2  ;;  %v5236_v3 = vrot.slane %v8758_v31, 2 }
 0x193   : > { %v2200_v18 = vadd.f32 %v2129_v39, %v1802_v40  ;;  %v8305_v55 = vpop.f32.mrb[6].mxu1  ;;  %v4726_v40 = vsel %vm4707_vm11, %v4723_v57, %v4725_v21  ;;  %v8749_v39 = vld [vmem:[#allocation2 + $0x30] sm:$0xff]  }
 0x194   : > { %2238 = vst.msk [vmem:[#allocation3 + $0xd0] sm:$0xff] %vm1741_vm5, %v2202_v56  ;;  %v2203_v36 = vadd.f32 %v8305_v55, %v1805_v33  ;;  %v2132_v34 = vpop.f32.mrb[7].mxu1  ;;  %v5223_v56 = vsel %vm4707_vm11, %v5220_v7, %v5222_v45  ;;  %v5225_v54 = vsel %vm4707_vm11, %v5222_v45, %v5224_v23  ;;  %v1789_v55 = vld [vmem:[#allocation3 + $0x58] sm:$0xff]  ;;  %v8757_v57 = vld [vmem:[#allocation2 + $0x50] sm:$0xff]  }
 0x195   : > { %8473 = vmatmul.mubr.msk.bf16.gmra.mrb[92].mxu1 %vm1741_vm5, %v4716_v61  ;;  %v8284_v46 = vpop.f32.mrb[4].mxu0  ;;  %2236 = vst.msk [vmem:[#allocation3 + $0xc0] sm:$0xff] %vm1741_vm5, %v2200_v18  ;;  %v2201_v14 = vadd.f32 %v2132_v34, %v1803_v30  ;;  %v4727_v30 = vrot.slane %v8755_v32, 2  ;;  %v1786_v18 = vld [vmem:[#allocation3 + $0x40] sm:$0xff]  ;;  %v1787_v34 = vld [vmem:[#allocation3 + $0x48] sm:$0xff]  ;;  %v8764_v7 = vld [vmem:[#allocation2 + $0x80] sm:$0xff]  }
 0x196   : > { %8476 = vmatprep.mubr.msk.bf16.mxu1 %vm1741_vm5, %v4718_v5  ;;  %v2182_v25 = vadd.f32 %v8284_v46, %v1784_v63  ;;  %v2049_v22 = vpop.f32.mrb[5].mxu0  ;;  %2239 = vst.msk [vmem:[#allocation3 + $0xd8] sm:$0xff] %vm1741_vm5, %v2203_v36  ;;  %v1788_v63 = vld [vmem:[#allocation3 + $0x50] sm:$0xff]  ;;  %v5226_v46 = vrot.slane %v8749_v39, 2  ;;  %v4737_v0 = vrot.slane %v8764_v7, 2 }
 0x197   : > { %v2180_v17 = vadd.f32 %v2049_v22, %v1782_v6  ;;  %v8285_v37 = vpop.f32.mrb[6].mxu0  ;;  %2237 = vst.msk [vmem:[#allocation3 + $0xc8] sm:$0xff] %vm1741_vm5, %v2201_v14  ;;  %v8750_v5 = vld [vmem:[#allocation2 + $0x38] sm:$0xff]  }
 0x198   : > { %2218 = vst.msk [vmem:[#allocation3 + $0x30] sm:$0xff] %vm1741_vm5, %v2182_v25  ;;  %v2183_v29 = vadd.f32 %v8285_v37, %v1785_v27  ;;  %v2052_v47 = vpop.f32.mrb[7].mxu0  ;;  %v4728_v27 = vsel %vm4707_vm11, %v4725_v21, %v4727_v30  ;;  %v5228_v22 = vrot.slane %v8750_v5, 2  ;;  %v5227_v37 = vsel %vm4707_vm11, %v5224_v23, %v5226_v46  ;;  %v1810_v21 = vld [vmem:[#allocation3 + $0x100] sm:$0xff]  ;;  %v8773_v32 = vld [vmem:[#allocation2 + $0x18] sm:$0xff]   ;;  %v1811_v23 = vld [vmem:[#allocation3 + $0x108] sm:$0xff] }
 0x199   : > { %8459 = vmatmul.mubr.msk.bf16.gmra.mrb[84].mxu0 %vm1741_vm5, %v4214_v4  ;;  %2216 = vst.msk [vmem:[#allocation3 + $0x20] sm:$0xff] %vm1741_vm5, %v2180_v17  ;;  %v2181_v8 = vadd.f32 %v2052_v47, %v1783_v19  ;;  %v8759_v4 = vld [vmem:[#allocation2 + $0x68] sm:$0xff]   ;;  %v4730_v19 = vsel %vm4707_vm11, %v4727_v30, %v4729_v53  ;;  %v4733_v47 = vrot.slane %v8760_v58, 2  ;;  %v5743_v5 = vshll.u32 %v8773_v32, 16 }
 0x19a   : > { %8462 = vmatprep.mubr.msk.bf16.mxu0 %vm1741_vm5, %v4223_v52  ;;  %2219 = vst.msk [vmem:[#allocation3 + $0x38] sm:$0xff] %vm1741_vm5, %v2183_v29  ;;  %v8753_v52 = vld [vmem:[#allocation2 + $0x40] sm:$0xff]   ;;  %v4731_v15 = vrot.slane %v8759_v4, 2  ;;  %v5229_v28 = vsel %vm4707_vm11, %v5226_v46, %v5228_v22  ;;  %v8754_v29 = vld [vmem:[#allocation2 + $0x48] sm:$0xff]  }
 0x19b   : > { %2217 = vst.msk [vmem:[#allocation3 + $0x28] sm:$0xff] %vm1741_vm5, %v2181_v8  ;;  %v5230_v8 = vrot.slane %v8753_v52, 2  ;;  %v5745_v4 = vrot.slane %v5743_v5, 3  ;;  %v8785_v5 = vld [vmem:[#allocation2 + $0x40] sm:$0xff]  }
 0x19c   : > { %v4732_v51 = vsel %vm4707_vm11, %v4729_v53, %v4731_v15  ;;  %v4734_v10 = vsel %vm4707_vm11, %v4731_v15, %v4733_v47  ;;  %v2248_v15 = vld [vmem:[#allocation3] sm:$0xff] }
 0x19d   : > { %8477 = vmatmul.mubr.msk.bf16.gmra.mrb[96].mxu1 %vm1741_vm5, %v4720_v35  ;;  %v5232_v35 = vrot.slane %v8754_v29, 2 }
 0x19e   : > { %8480 = vmatprep.mubr.msk.bf16.mxu1 %vm1741_vm5, %v4722_v60  ;;  %v5231_v60 = vsel %vm4707_vm11, %v5228_v22, %v5230_v8 }
 0x1a0   : > { %v8308_v48 = vpop.f32.mrb[8].mxu1 }
 0x1a1   : > { %8463 = vmatmul.mubr.msk.bf16.gmra.mrb[88].mxu0 %vm1741_vm5, %v4232_v43  ;;  %v2206_v20 = vadd.f32 %v8308_v48, %v1808_v1  ;;  %v2145_v50 = vpop.f32.mrb[9].mxu1  ;;  %v5233_v43 = vsel %vm4707_vm11, %v5230_v8, %v5232_v35  ;;  %v4736_v1 = vsel %vm4707_vm11, %v4733_v47, %v4735_v59  ;;  %v4738_v48 = vsel %vm4707_vm11, %v4735_v59, %v4737_v0  ;;  %v10626_v8 = vld [vmem:[#allocation2 + $0x78] sm:$0xff]   ;;  %v2249_v59 = vld [vmem:[#allocation3 + $0x8] sm:$0xff] }
 0x1a2   : > { %8506 = vmatprep.mubr.msk.bf16.mxu0 %vm1741_vm5, %v5221_v12  ;;  %v2204_v44 = vadd.f32 %v2145_v50, %v1806_v16  ;;  %v8309_v11 = vpop.f32.mrb[10].mxu1  ;;  %v1812_v12 = vld [vmem:[#allocation3 + $0x110] sm:$0xff]  ;;  %v8767_v16 = vld [vmem:[#allocation2 + $0x88] sm:$0xff]  }
 0x1a3   : > { %2242 = vst.msk [vmem:[#allocation3 + $0xf0] sm:$0xff] %vm1741_vm5, %v2206_v20  ;;  %v2207_v24 = vadd.f32 %v8309_v11, %v1809_v38  ;;  %v2148_v33 = vpop.f32.mrb[11].mxu1  ;;  %v10604_v38 = vld [vmem:[#allocation2 + $0x90] sm:$0xff]   ;;  %v5234_v20 = vrot.slane %v8757_v57, 2 }
 0x1a4   : > { %2240 = vst.msk [vmem:[#allocation3 + $0xe0] sm:$0xff] %vm1741_vm5, %v2204_v44  ;;  %v2205_v61 = vadd.f32 %v2148_v33, %v1807_v9  ;;  %v4741_v30 = vrot.slane %v10604_v38, 2 }
 0x1a5   : > { %8481 = vmatmul.mubr.msk.bf16.gmra.mrb[100].mxu1 %vm1741_vm5, %v4724_v42  ;;  %2243 = vst.msk [vmem:[#allocation3 + $0xf8] sm:$0xff] %vm1741_vm5, %v2207_v24  ;;  %v1813_v42 = vld [vmem:[#allocation3 + $0x118] sm:$0xff]  ;;  %v8772_v24 = vld [vmem:[#allocation2 + $0x10] sm:$0xfc]   ;;  %v5235_v33 = vsel %vm4707_vm11, %v5232_v35, %v5234_v20 }
 0x1a6   : > { %8484 = vmatprep.mubr.msk.bf16.mxu1 %vm1741_vm5, %v4726_v40  ;;  %2241 = vst.msk [vmem:[#allocation3 + $0xe8] sm:$0xff] %vm1741_vm5, %v2205_v61  ;;  %v8761_v40 = vld [vmem:[#allocation2 + $0x60] sm:$0xff]   ;;  %v4739_v61 = vrot.slane %v8767_v16, 2 }
 0x1a7   : > { %v5238_v53 = vrot.slane %v8761_v40, 2  ;;  %v2251_v35 = vld [vmem:[#allocation3 + $0x18] sm:$0xff] }
 0x1a8   : > { %v4742_v46 = vsel %vm4707_vm11, %v4739_v61, %v4741_v30 }
 0x1a9   : > { %8507 = vmatmul.mubr.msk.bf16.vlgmr.msra.gmra.mrb[92].mxu0 %vm1741_vm5, %v5223_v56  ;;  %v8288_v13 = vpop.f32.mrb[8].mxu0 }
 0x1aa   : > { %8581 = vmatpush3.bf16.msra.mxu0 %v6468_v26  ;;  %8510 = vmatprep.mubr.msk.bf16.mxu0 %vm1741_vm5, %v5225_v54  ;;  %v2186_v6 = vadd.f32 %v8288_v13, %v1788_v63  ;;  %v2065_v36 = vpop.f32.mrb[9].mxu0  ;;  %v5237_v26 = vsel %vm4707_vm11, %v5234_v20, %v5236_v3  ;;  %v5740_v54 = vshrl.u32 %v8773_v32, 16  ;;  %v5732_v13 = vshrl.u32 %v8772_v24, 16  ;;  %v8782_v32 = vld [vmem:[#allocation2 + $0x38] sm:$0xff]   ;;  %v8769_v20 = vld [vmem:[#allocation2 + $0x80] sm:$0xff]  }
 0x1ab   : > { %v2184_v14 = vadd.f32 %v2065_v36, %v1786_v18  ;;  %v8289_v25 = vpop.f32.mrb[10].mxu0  ;;  %v5240_v18 = vrot.slane %v10607_v49, 2  ;;  %v8771_v36 = vld [vmem:[#allocation2 + $0x98] ss:$0 sps:$4 sm:$0x33]  }
 0x1ac   : > { %2222 = vst.msk [vmem:[#allocation3 + $0x50] sm:$0xff] %vm1741_vm5, %v2186_v6  ;;  %v2187_v62 = vadd.f32 %v8289_v25, %v1789_v55  ;;  %v2068_v2 = vpop.f32.mrb[11].mxu0  ;;  %v5735_v55 = vshll.u32 %v8772_v24, 16  ;;  %v4740_v6 = vsel %vm4707_vm11, %v4737_v0, %v4739_v61  ;;  %v5239_v25 = vsel %vm4707_vm11, %v5236_v3, %v5238_v53  ;;  %v8781_v3 = vld [vmem:[#allocation2 + $0x30] sm:$0xff]  }
 0x1ad   : > { %8485 = vmatmul.mubr.msk.bf16.gmra.mrb[104].mxu1 %vm1741_vm5, %v4728_v27  ;;  %2220 = vst.msk [vmem:[#allocation3 + $0x40] sm:$0xff] %vm1741_vm5, %v2184_v14  ;;  %v2185_v17 = vadd.f32 %v2068_v2, %v1787_v34  ;;  %v8776_v34 = vld [vmem:[#allocation2 + $0x20] sm:$0xff]   ;;  %v5742_v27 = vrot.slane %v5740_v54, 2  ;;  %v8777_v14 = vld [vmem:[#allocation2 + $0x28] sm:$0xff]   ;;  %v5241_v22 = vsel %vm4707_vm11, %v5238_v53, %v5240_v18  ;;  %v5734_v58 = vrot.slane %v5732_v13, 2  ;;  %v2250_v2 = vld [vmem:[#allocation3 + $0x10] sm:$0xff] }
 0x1ae   : > { %8488 = vmatprep.mubr.msk.bf16.mxu1 %vm1741_vm5, %v4730_v19  ;;  %2223 = vst.msk [vmem:[#allocation3 + $0x58] sm:$0xff] %vm1741_vm5, %v2187_v62  ;;  %v8765_v19 = vld [vmem:[#allocation2 + $0x70] sm:$0xff]   ;;  %v5737_v62 = vrot.slane %v5735_v55, 3  ;;  %v5749_v29 = vshrl.u32 %v8776_v34, 16  ;;  %v5752_v47 = vshll.u32 %v8776_v34, 16  ;;  %v5758_v7 = vshrl.u32 %v8777_v14, 16 }
 0x1af   : > { %2221 = vst.msk [vmem:[#allocation3 + $0x48] sm:$0xff] %vm1741_vm5, %v2185_v17  ;;  %v5242_v0 = vrot.slane %v8765_v19, 2  ;;  %v5776_v24 = vshrl.u32 %v8782_v32, 16  ;;  %v1792_v53 = vld [vmem:[#allocation3 + $0x70] sm:$0xff]  ;;  %v2252_v55 = vld [vmem:[#allocation3 + $0x20] sm:$0xff] }
 0x1b0   : > { %v5738_v57 = vor.u32 %v5737_v62, %v5734_v58  ;;  %v5751_v16 = vrot.slane %v5749_v29, 2  ;;  %v1793_v62 = vld [vmem:[#allocation3 + $0x78] sm:$0xff] }
 0x1b1   : > { %8511 = vmatmul.mubr.msk.bf16.gmra.mrb[96].mxu0 %vm1741_vm5, %v5227_v37  ;;  %v4743_v37 = vrot.slane %v8771_v36, 2  ;;  %v5243_v40 = vsel %vm4707_vm11, %v5240_v18, %v5242_v0  ;;  %v5778_v36 = vrot.slane %v5776_v24, 2  ;;  %v8789_v24 = vld [vmem:[#allocation2 + $0x50] sm:$0xff]  }
 0x1b2   : > { %8514 = vmatprep.mubr.msk.bf16.mxu0 %vm1741_vm5, %v5229_v28 }
 0x1b5   : > { %8489 = vmatmul.mubr.msk.bf16.gmra.mrb[108].mxu1 %vm1741_vm5, %v4732_v51  ;;  %v5746_v51 = vor.u32 %v5745_v4, %v5742_v27  ;;  %v1790_v27 = vld [vmem:[#allocation3 + $0x60] sm:$0xff] }
 0x1b6   : > { %8492 = vmatprep.mubr.msk.bf16.mxu1 %vm1741_vm5, %v4734_v10 }
 0x1b7   : > { %v5747_v38 = vsel %vm5730_vm15, %v5738_v57, %v5746_v51 }
 0x1b9   : > { %8515 = vmatmul.mubr.msk.bf16.gmra.mrb[100].mxu0 %vm1741_vm5, %v5231_v60  ;;  %v5761_v60 = vshll.u32 %v8777_v14, 16  ;;  %v2255_v14 = vld [vmem:[#allocation3 + $0x38] sm:$0xff] }
 0x1ba   : > { %8518 = vmatprep.mubr.msk.bf16.mxu0 %vm1741_vm5, %v5233_v43 }
 0x1bd   : > { %8493 = vmatmul.mubr.msk.bf16.gmra.mrb[112].mxu1 %vm1741_vm5, %v4736_v1  ;;  %v4744_v1 = vsel %vm4707_vm11, %v4741_v30, %v4743_v37  ;;  %v2253_v37 = vld [vmem:[#allocation3 + $0x28] sm:$0xff] }
 0x1be   : > { %v8312_v45 = vpop.f32.mrb[12].mxu1  ;;  %8496 = vmatprep.mubr.msk.bf16.mxu1 %vm1741_vm5, %v4738_v48  ;;  %v5244_v48 = vrot.slane %v10626_v8, 2  ;;  %v10656_v8 = vld [vmem:[#allocation2 + $0x98] sm:$0xff]  }
 0x1bf   : > { %v2210_v50 = vadd.f32 %v8312_v45, %v1812_v12  ;;  %v2161_v9 = vpop.f32.mrb[13].mxu1  ;;  %v5760_v45 = vrot.slane %v5758_v7, 2 }
 0x1c0   : > { %v2208_v44 = vadd.f32 %v2161_v9, %v1810_v21  ;;  %v8313_v11 = vpop.f32.mrb[14].mxu1  ;;  %v5754_v21 = vrot.slane %v5752_v47, 3  ;;  %v5767_v9 = vshrl.u32 %v8781_v3, 16  ;;  %v1791_v47 = vld [vmem:[#allocation3 + $0x68] sm:$0xff] }
 0x1c1   : > { %2246 = vst.msk [vmem:[#allocation3 + $0x110] sm:$0xff] %vm1741_vm5, %v2210_v50  ;;  %v2211_v56 = vadd.f32 %v8313_v11, %v1813_v42  ;;  %v2164_v39 = vpop.f32.mrb[15].mxu1  ;;  %8519 = vmatmul.mubr.msk.bf16.gmra.mrb[104].mxu0 %vm1741_vm5, %v5235_v33  ;;  %v5763_v42 = vrot.slane %v5761_v60, 3  ;;  %v10638_v50 = vld [vmem:[#allocation2 + $0x88] sm:$0xff]   ;;  %v5779_v33 = vshll.u32 %v8782_v32, 16 }
 0x1c2   : > { %2244 = vst.msk [vmem:[#allocation3 + $0x100] sm:$0xff] %vm1741_vm5, %v2208_v44  ;;  %v2209_v63 = vadd.f32 %v2164_v39, %v1811_v23  ;;  %8522 = vmatprep.mubr.msk.bf16.mxu0 %vm1741_vm5, %v5237_v26  ;;  %v5770_v23 = vshll.u32 %v8781_v3, 16  ;;  %v5755_v49 = vor.u32 %v5754_v21, %v5751_v16  ;;  %v5245_v44 = vsel %vm4707_vm11, %v5242_v0, %v5244_v48  ;;  %v2258_v16 = vld [vmem:[#allocation3 + $0x50] sm:$0xff]  ;;  %v2256_v32 = vld [vmem:[#allocation3 + $0x40] sm:$0xff] }
 0x1c3   : > { %2247 = vst.msk [vmem:[#allocation3 + $0x118] sm:$0xff] %vm1741_vm5, %v2211_v56  ;;  %v5764_v11 = vor.u32 %v5763_v42, %v5760_v45  ;;  %v5246_v26 = vrot.slane %v8769_v20, 2  ;;  %v5248_v61 = vrot.slane %v10638_v50, 2  ;;  %v5769_v56 = vrot.slane %v5767_v9, 2 }
 0x1c4   : > { %2245 = vst.msk [vmem:[#allocation3 + $0x108] sm:$0xff] %vm1741_vm5, %v2209_v63  ;;  %v5772_v39 = vrot.slane %v5770_v23, 3  ;;  %v5756_v30 = vsel %vm5730_vm15, %v5746_v51, %v5755_v49  ;;  %v2254_v63 = vld [vmem:[#allocation3 + $0x30] sm:$0xff]  ;;  %v5781_v34 = vrot.slane %v5779_v33, 3  ;;  %v5252_v3 = vrot.slane %v10656_v8, 2 }
 0x1c5   : > { %8497 = vmatmul.mubr.msk.bf16.gmra.mrb[116].mxu1 %vm1741_vm5, %v4740_v6  ;;  %v5765_v18 = vsel %vm5730_vm15, %v5755_v49, %v5764_v11  ;;  %v5249_v19 = vsel %vm4707_vm11, %v5246_v26, %v5248_v61  ;;  %v8778_v33 = vld [vmem:[#allocation2 + $0xa0] ss:$0 sps:$4 sm:$0x33]  }
 0x1c6   : > { %8500 = vmatprep.mubr.msk.bf16.mxu1 %vm1741_vm5, %v4742_v46  ;;  %v8786_v46 = vld [vmem:[#allocation2 + $0x48] sm:$0xff]   ;;  %v5782_v60 = vor.u32 %v5781_v34, %v5778_v36  ;;  %v5806_v36 = vshll.u32 %v8789_v24, 16 }
 0x1c7   : > { %v1794_v34 = vld [vmem:[#allocation3 + $0x80] sm:$0xff] }
 0x1c8   : > { %v8318_v17 = vpop.f32.mrb[16].mxu1 }
 0x1c9   : > { %v2801_v52 = vadd.f32 %v8318_v17, %v2250_v2  ;;  %v2656_v28 = vpop.f32.mrb[17].mxu1  ;;  %8523 = vmatmul.mubr.msk.bf16.gmra.mrb[108].mxu0 %vm1741_vm5, %v5239_v25  ;;  %v10653_v2 = vld [vmem:[#allocation2 + $0x90] sm:$0xff]  }
 0x1ca   : > { %v2799_v41 = vadd.f32 %v2656_v28, %v2248_v15  ;;  %v8319_v10 = vpop.f32.mrb[18].mxu1  ;;  %8526 = vmatprep.mubr.msk.bf16.mxu0 %vm1741_vm5, %v5241_v22  ;;  %v5247_v22 = vsel %vm4707_vm11, %v5244_v48, %v5246_v26  ;;  %v5773_v15 = vor.u32 %v5772_v39, %v5769_v56  ;;  %v2257_v56 = vld [vmem:[#allocation3 + $0x48] sm:$0xff] }
 0x1cb   : > { %2837 = vst.msk [vmem:[#allocation3 + $0x10] sm:$0xff] %vm1741_vm5, %v2801_v52  ;;  %v2802_v31 = vadd.f32 %v8319_v10, %v2251_v35  ;;  %v2659_v43 = vpop.f32.mrb[19].mxu1  ;;  %v5788_v35 = vshll.u32 %v8785_v5, 16 }
 0x1cc   : > { %2835 = vst.msk [vmem:[#allocation3] sm:$0xff] %vm1741_vm5, %v2799_v41  ;;  %v2800_v12 = vadd.f32 %v2659_v43, %v2249_v59  ;;  %v5785_v41 = vshrl.u32 %v8785_v5, 16  ;;  %v5797_v59 = vshll.u32 %v8786_v46, 16  ;;  %v5783_v45 = vsel %vm5730_vm15, %v5773_v15, %v5782_v60 }
 0x1cd   : > { %2838 = vst.msk [vmem:[#allocation3 + $0x18] sm:$0xff] %vm1741_vm5, %v2802_v31  ;;  %8501 = vmatmul.mubr.msk.bf16.gmra.mrb[120].mxu1 %vm1741_vm5, %v4744_v1  ;;  %v5794_v31 = vshrl.u32 %v8786_v46, 16  ;;  %v5774_v1 = vsel %vm5730_vm15, %v5764_v11, %v5773_v15  ;;  %v5254_v46 = vrot.slane %v8778_v33, 2 }
 0x1ce   : > { %2836 = vst.msk [vmem:[#allocation3 + $0x8] sm:$0xff] %vm1741_vm5, %v2800_v12  ;;  %8544 = vmatprep.mubr.msk.bf16.mxu1 %vm1741_vm5, %v5747_v38  ;;  %v5250_v12 = vrot.slane %v10653_v2, 2  ;;  %v5787_v48 = vrot.slane %v5785_v41, 2  ;;  %v5790_v38 = vrot.slane %v5788_v35, 3  ;;  %v5799_v23 = vrot.slane %v5797_v59, 3 }
 0x1cf   : > { %v5796_v9 = vrot.slane %v5794_v31, 2 }
 0x1d0   : > { %v5791_v5 = vor.u32 %v5790_v38, %v5787_v48 }
 0x1d1   : > { %8527 = vmatmul.mubr.msk.bf16.gmra.mrb[112].mxu0 %vm1741_vm5, %v5243_v40  ;;  %v8790_v40 = vld [vmem:[#allocation2 + $0x58] sm:$0xff]  }
 0x1d2   : > { %8530 = vmatprep.mubr.msk.bf16.mxu0 %vm1741_vm5, %v5245_v44  ;;  %v2259_v44 = vld [vmem:[#allocation3 + $0x58] sm:$0xff]  ;;  %v5815_v50 = vshll.u32 %v8790_v40, 16 }
 0x1d4   : > { %v8322_v54 = vpop.f32.mrb[20].mxu1 }
 0x1d5   : > { %8545 = vmatmul.mubr.msk.bf16.vlgmr.msra.gmra.mrb[124].mxu1 %vm1741_vm5, %v5756_v30  ;;  %v2805_v13 = vadd.f32 %v8322_v54, %v2254_v63  ;;  %v2672_v6 = vpop.f32.mrb[21].mxu1  ;;  %v5251_v30 = vsel %vm4707_vm11, %v5248_v61, %v5250_v12  ;;  %v10677_v63 = vld [vmem:[#allocation2 + $0x18] sm:$0xff]  }
 0x1d6   : > { %8548 = vmatprep.mubr.msk.bf16.mxu1 %vm1741_vm5, %v5765_v18  ;;  %v2803_v4 = vadd.f32 %v2672_v6, %v2252_v55  ;;  %v8323_v25 = vpop.f32.mrb[22].mxu1  ;;  %v8292_v58 = vpop.f32.mrb[12].mxu0  ;;  %v10685_v18 = vor.u32 %v5799_v23, %v5796_v9  ;;  %v1796_v61 = vld [vmem:[#allocation3 + $0x90] sm:$0xff]  ;;  %v8779_v55 = vld [vmem:[#allocation2 + $0x10] sm:$0xf8]   ;;  %v5803_v6 = vshrl.u32 %v8789_v24, 16 }
 0x1d7   : > { %2841 = vst.msk [vmem:[#allocation3 + $0x30] sm:$0xff] %vm1741_vm5, %v2805_v13  ;;  %v2806_v17 = vadd.f32 %v8323_v25, %v2255_v14  ;;  %v2675_v52 = vpop.f32.mrb[23].mxu1  ;;  %v2190_v28 = vadd.f32 %v8292_v58, %v1792_v53  ;;  %v2081_v29 = vpop.f32.mrb[13].mxu0  ;;  %v5253_v53 = vsel %vm4707_vm11, %v5250_v12, %v5252_v3  ;;  %v5812_v13 = vshrl.u32 %v8790_v40, 16 }
 0x1d8   : > { %2839 = vst.msk [vmem:[#allocation3 + $0x20] sm:$0xff] %vm1741_vm5, %v2803_v4  ;;  %v2804_v51 = vadd.f32 %v2675_v52, %v2253_v37  ;;  %v2188_v10 = vadd.f32 %v2081_v29, %v1790_v27  ;;  %v8293_v7 = vpop.f32.mrb[14].mxu0  ;;  %v1797_v4 = vld [vmem:[#allocation3 + $0x98] sm:$0xff]  ;;  %v6377_v14 = vrot.slane %v10677_v63, 3  ;;  %v5792_v25 = vsel %vm5730_vm15, %v5782_v60, %v5791_v5  ;;  %v8794_v52 = vld [vmem:[#allocation2 + $0x68] sm:$0xff]  }
 0x1d9   : > { %8531 = vmatmul.mubr.msk.bf16.gmra.mrb[116].mxu0 %vm1741_vm5, %v5247_v22  ;;  %2842 = vst.msk [vmem:[#allocation3 + $0x38] sm:$0xff] %vm1741_vm5, %v2806_v17  ;;  %2226 = vst.msk [vmem:[#allocation3 + $0x70] sm:$0xff] %vm1741_vm5, %v2190_v28  ;;  %v2191_v43 = vadd.f32 %v8293_v7, %v1793_v62  ;;  %v2084_v0 = vpop.f32.mrb[15].mxu0  ;;  %v8793_v22 = vld [vmem:[#allocation2 + $0x60] sm:$0xff]   ;;  %v1795_v62 = vld [vmem:[#allocation3 + $0x88] sm:$0xff]  ;;  %v5801_v2 = vsel %vm5730_vm15, %v5791_v5, %v10685_v18  ;;  %v5814_v17 = vrot.slane %v5812_v13, 2 }
 0x1da   : > { %8534 = vmatprep.mubr.msk.bf16.mxu0 %vm1741_vm5, %v5249_v19  ;;  %2840 = vst.msk [vmem:[#allocation3 + $0x28] sm:$0xff] %vm1741_vm5, %v2804_v51  ;;  %2224 = vst.msk [vmem:[#allocation3 + $0x60] sm:$0xff] %vm1741_vm5, %v2188_v10  ;;  %v2189_v57 = vadd.f32 %v2084_v0, %v1791_v47  ;;  %v5817_v37 = vrot.slane %v5815_v50, 3  ;;  %v6376_v29 = vrot.slane %v8779_v55, 3  ;;  %v5805_v47 = vrot.slane %v5803_v6, 2  ;;  %v8783_v7 = vld [vmem:[#allocation2 + $0x20] sm:$0xff]  }
 0x1db   : > { %2227 = vst.msk [vmem:[#allocation3 + $0x78] sm:$0xff] %vm1741_vm5, %v2191_v43  ;;  %v5808_v51 = vrot.slane %v5806_v36, 3  ;;  %v5255_v10 = vsel %vm4707_vm11, %v5252_v3, %v5254_v46  ;;  %v10699_v60 = vld [vmem:[#allocation2 + $0x28] sm:$0xff]   ;;  %v5824_v12 = vshll.u32 %v8793_v22, 16  ;;  %v5833_v48 = vshll.u32 %v8794_v52, 16  ;;  %v2874_v6 = vld [vmem:[#allocation3 + $0x18] sm:$0xff] }
 0x1dc   : > { %v8326_v21 = vpop.f32.mrb[24].mxu1  ;;  %2225 = vst.msk [vmem:[#allocation3 + $0x68] sm:$0xff] %vm1741_vm5, %v2189_v57  ;;  %v6378_v59 = vsel %vm6375_vm8, %v6376_v29, %v6377_v14  ;;  %v5821_v57 = vshrl.u32 %v8793_v22, 16  ;;  %v6381_v9 = vrot.slane %v10699_v60, 3  ;;  %v10729_v22 = vld [vmem:[#allocation2 + $0x38] sm:$0xff]  }
 0x1dd   : > { %8549 = vmatmul.mubr.msk.bf16.gmra.mrb[128].mxu1 %vm1741_vm5, %v5774_v1  ;;  %v2809_v42 = vadd.f32 %v8326_v21, %v2258_v16  ;;  %v2688_v20 = vpop.f32.mrb[25].mxu1  ;;  %v10707_v16 = vor.u32 %v5817_v37, %v5814_v17  ;;  %v5830_v21 = vshrl.u32 %v8794_v52, 16  ;;  %v5835_v50 = vrot.slane %v5833_v48, 3 }
 0x1de   : > { %8552 = vmatprep.mubr.msk.bf16.mxu1 %vm1741_vm5, %v5783_v45  ;;  %v2807_v49 = vadd.f32 %v2688_v20, %v2256_v32  ;;  %v8327_v11 = vpop.f32.mrb[26].mxu1  ;;  %v5809_v32 = vor.u32 %v5808_v51, %v5805_v47  ;;  %v6379_v20 = vrot.slane %v8783_v7, 3 }
 0x1df   : > { %2845 = vst.msk [vmem:[#allocation3 + $0x50] sm:$0xff] %vm1741_vm5, %v2809_v42  ;;  %v2810_v26 = vadd.f32 %v8327_v11, %v2259_v44  ;;  %v2691_v39 = vpop.f32.mrb[27].mxu1  ;;  %v2873_v44 = vld [vmem:[#allocation3 + $0x10] sm:$0xff]  ;;  %v5832_v13 = vrot.slane %v5830_v21, 2  ;;  %v2875_v48 = vld [vmem:[#allocation3 + $0x20] sm:$0xff] }
 0x1e0   : > { %2843 = vst.msk [vmem:[#allocation3 + $0x40] sm:$0xff] %vm1741_vm5, %v2807_v49  ;;  %v2808_v54 = vadd.f32 %v2691_v39, %v2257_v56  ;;  %v2262_v43 = vld [vmem:[#allocation3 + $0x70] sm:$0xff]  ;;  %v5810_v33 = vsel %vm5730_vm15, %v10685_v18, %v5809_v32  ;;  %v5826_v56 = vrot.slane %v5824_v12, 3  ;;  %v8797_v39 = vld [vmem:[#allocation2 + $0x70] sm:$0xff]  }
 0x1e1   : > { %8535 = vmatmul.mubr.msk.bf16.gmra.mrb[120].mxu0 %vm1741_vm5, %v5251_v30  ;;  %2846 = vst.msk [vmem:[#allocation3 + $0x58] sm:$0xff] %vm1741_vm5, %v2810_v26  ;;  %v2260_v3 = vld [vmem:[#allocation3 + $0x60] sm:$0xff]  ;;  %v5823_v26 = vrot.slane %v5821_v57, 2  ;;  %v5839_v17 = vshrl.u32 %v8797_v39, 16  ;;  %v5842_v37 = vshll.u32 %v8797_v39, 16 }
 0x1e2   : > { %8538 = vmatprep.mubr.msk.bf16.mxu0 %vm1741_vm5, %v5253_v53  ;;  %2844 = vst.msk [vmem:[#allocation3 + $0x48] sm:$0xff] %vm1741_vm5, %v2808_v54  ;;  %v2263_v45 = vld [vmem:[#allocation3 + $0x78] sm:$0xff]  ;;  %v2871_v54 = vld [vmem:[#allocation3] sm:$0xff]  ;;  %v5819_v53 = vsel %vm5730_vm15, %v5809_v32, %v10707_v16 }
 0x1e3   : > { %v2261_v40 = vld [vmem:[#allocation3 + $0x68] sm:$0xff] }
 0x1e4   : > { %v8296_v27 = vpop.f32.mrb[16].mxu0 }
 0x1e5   : > { %v2194_v19 = vadd.f32 %v8296_v27, %v1796_v61  ;;  %v2097_v58 = vpop.f32.mrb[17].mxu0  ;;  %8553 = vmatmul.mubr.msk.bf16.gmra.mrb[132].mxu1 %vm1741_vm5, %v5792_v25  ;;  %v8798_v61 = vld [vmem:[#allocation2 + $0x78] sm:$0xff]   ;;  %v6380_v27 = vsel %vm6375_vm8, %v6377_v14, %v6379_v20  ;;  %v8787_v25 = vld [vmem:[#allocation2 + $0x30] sm:$0xff]  }
 0x1e6   : > { %v2192_v15 = vadd.f32 %v2097_v58, %v1794_v34  ;;  %v8297_v28 = vpop.f32.mrb[18].mxu0  ;;  %8556 = vmatprep.mubr.msk.bf16.mxu1 %vm1741_vm5, %v5801_v2  ;;  %v2872_v34 = vld [vmem:[#allocation3 + $0x8] sm:$0xff]  ;;  %v5827_v2 = vor.u32 %v5826_v56, %v5823_v26  ;;  %v5851_v29 = vshll.u32 %v8798_v61, 16  ;;  %v8791_v26 = vld [vmem:[#allocation2 + $0x40] sm:$0xff]   ;;  %v10756_v56 = vld [vmem:[#allocation2 + $0x48] sm:$0xff]  }
 0x1e7   : > { %2230 = vst.msk [vmem:[#allocation3 + $0x90] sm:$0xff] %vm1741_vm5, %v2194_v19  ;;  %v2195_v41 = vadd.f32 %v8297_v28, %v1797_v4  ;;  %v2100_v35 = vpop.f32.mrb[19].mxu0  ;;  %v6382_v4 = vsel %vm6375_vm8, %v6379_v20, %v6381_v9  ;;  %v5848_v28 = vshrl.u32 %v8798_v61, 16  ;;  %v8802_v20 = vld [vmem:[#allocation2 + $0x88] sm:$0xff]  }
 0x1e8   : > { %2228 = vst.msk [vmem:[#allocation3 + $0x80] sm:$0xff] %vm1741_vm5, %v2192_v15  ;;  %v2193_v31 = vadd.f32 %v2100_v35, %v1795_v62  ;;  %v8330_v0 = vpop.f32.mrb[28].mxu1  ;;  %v10734_v15 = vor.u32 %v5835_v50, %v5832_v13  ;;  %v6383_v35 = vrot.slane %v8787_v25, 3  ;;  %v5828_v12 = vsel %vm5730_vm15, %v10707_v16, %v5827_v2  ;;  %v2269_v25 = vld [vmem:[#allocation3 + $0xa8] sm:$0xff] }
 0x1e9   : > { %2231 = vst.msk [vmem:[#allocation3 + $0x98] sm:$0xff] %vm1741_vm5, %v2195_v41  ;;  %8539 = vmatmul.mubr.msk.bf16.gmra.mrb[124].mxu0 %vm1741_vm5, %v5255_v10  ;;  %v2813_v8 = vadd.f32 %v8330_v0, %v2262_v43  ;;  %v2704_v1 = vpop.f32.mrb[29].mxu1  ;;  %v6385_v10 = vrot.slane %v10729_v22, 3  ;;  %v2877_v43 = vld [vmem:[#allocation3 + $0x30] sm:$0xff]  ;;  %v5853_v32 = vrot.slane %v5851_v29, 3 }
 0x1ea   : > { %2229 = vst.msk [vmem:[#allocation3 + $0x88] sm:$0xff] %vm1741_vm5, %v2193_v31  ;;  %8582 = vmatprep.mubr.msk.bf16.mxu0 %vm1741_vm5, %v6378_v59  ;;  %v2811_v38 = vadd.f32 %v2704_v1, %v2260_v3  ;;  %v8331_v42 = vpop.f32.mrb[30].mxu1  ;;  %v5844_v3 = vrot.slane %v5842_v37, 3  ;;  %v8801_v1 = vld [vmem:[#allocation2 + $0x80] sm:$0xff]  }
 0x1eb   : > { %2849 = vst.msk [vmem:[#allocation3 + $0x70] sm:$0xff] %vm1741_vm5, %v2813_v8  ;;  %v2814_v23 = vadd.f32 %v8331_v42, %v2263_v45  ;;  %v2707_v49 = vpop.f32.mrb[31].mxu1  ;;  %v5841_v8 = vrot.slane %v5839_v17, 2  ;;  %v5837_v45 = vsel %vm5730_vm15, %v5827_v2, %v10734_v15  ;;  %v5850_v42 = vrot.slane %v5848_v28, 2  ;;  %v2879_v28 = vld [vmem:[#allocation3 + $0x40] sm:$0xff] }
 0x1ec   : > { %v8356_v11 = vpop.f32.mrb[20].mxu0  ;;  %2847 = vst.msk [vmem:[#allocation3 + $0x60] sm:$0xff] %vm1741_vm5, %v2811_v38  ;;  %v2812_v24 = vadd.f32 %v2707_v49, %v2261_v40  ;;  %v2878_v40 = vld [vmem:[#allocation3 + $0x38] sm:$0xff]  ;;  %v5860_v13 = vshll.u32 %v8801_v1, 16 }
 0x1ed   : > { %v3313_v30 = vadd.f32 %v8356_v11, %v2873_v44  ;;  %v3168_v5 = vpop.f32.mrb[21].mxu0  ;;  %2850 = vst.msk [vmem:[#allocation3 + $0x78] sm:$0xff] %vm1741_vm5, %v2814_v23  ;;  %8557 = vmatmul.mubr.msk.bf16.gmra.mrb[136].mxu1 %vm1741_vm5, %v5810_v33  ;;  %v2876_v44 = vld [vmem:[#allocation3 + $0x28] sm:$0xff]  ;;  %v6386_v33 = vsel %vm6375_vm8, %v6383_v35, %v6385_v10  ;;  %v10761_v61 = vor.u32 %v5853_v32, %v5850_v42  ;;  %v2272_v42 = vld [vmem:[#allocation3 + $0xc0] sm:$0xff] }
 0x1ee   : > { %v3311_v55 = vadd.f32 %v3168_v5, %v2871_v54  ;;  %v8357_v36 = vpop.f32.mrb[22].mxu0  ;;  %2848 = vst.msk [vmem:[#allocation3 + $0x68] sm:$0xff] %vm1741_vm5, %v2812_v24  ;;  %8560 = vmatprep.mubr.msk.bf16.mxu1 %vm1741_vm5, %v5819_v53  ;;  %v2266_v58 = vld [vmem:[#allocation3 + $0x90] sm:$0xff]  ;;  %v6384_v24 = vsel %vm6375_vm8, %v6381_v9, %v6383_v35  ;;  %v5845_v5 = vor.u32 %v5844_v3, %v5841_v8  ;;  %v5857_v53 = vshrl.u32 %v8801_v1, 16  ;;  %v2268_v9 = vld [vmem:[#allocation3 + $0xa0] sm:$0xff] }
 0x1ef   : > { %3349 = vst.msk [vmem:[#allocation3 + $0x10] sm:$0xff] %vm1741_vm5, %v3313_v30  ;;  %v3314_v18 = vadd.f32 %v8357_v36, %v2874_v6  ;;  %v3171_v46 = vpop.f32.mrb[23].mxu0  ;;  %v2264_v14 = vld [vmem:[#allocation3 + $0x80] sm:$0xff]  ;;  %v2270_v30 = vld [vmem:[#allocation3 + $0xb0] sm:$0xff]  ;;  %v5869_v6 = vshll.u32 %v8802_v20, 16 }
 0x1f0   : > { %3347 = vst.msk [vmem:[#allocation3] sm:$0xff] %vm1741_vm5, %v3311_v55  ;;  %v3312_v19 = vadd.f32 %v3171_v46, %v2872_v34  ;;  %v8334_v62 = vpop.f32.mrb[32].mxu1  ;;  %v2267_v51 = vld [vmem:[#allocation3 + $0x98] sm:$0xff]  ;;  %v5866_v55 = vshrl.u32 %v8802_v20, 16  ;;  %v6387_v46 = vrot.slane %v8791_v26, 3  ;;  %v5846_v37 = vsel %vm5730_vm15, %v10734_v15, %v5845_v5  ;;  %v8806_v35 = vld [vmem:[#allocation2 + $0x98] sm:$0xff]  }
 0x1f1   : > { %3350 = vst.msk [vmem:[#allocation3 + $0x18] sm:$0xff] %vm1741_vm5, %v3314_v18  ;;  %8583 = vmatmul.mubr.msk.bf16.vlgmr.msra.gmra.mrb[128].mxu0 %vm1741_vm5, %v6380_v27  ;;  %v2817_v63 = vadd.f32 %v8334_v62, %v2266_v58  ;;  %v2720_v52 = vpop.f32.mrb[33].mxu1  ;;  %v2265_v31 = vld [vmem:[#allocation3 + $0x88] sm:$0xff]  ;;  %v2271_v18 = vld [vmem:[#allocation3 + $0xb8] sm:$0xff]  ;;  %v6389_v27 = vrot.slane %v10756_v56, 3  ;;  %v2881_v62 = vld [vmem:[#allocation3 + $0x50] sm:$0xff] }
 0x1f2   : > { %3348 = vst.msk [vmem:[#allocation3 + $0x8] sm:$0xff] %vm1741_vm5, %v3312_v19  ;;  %8586 = vmatprep.mubr.msk.bf16.mxu0 %vm1741_vm5, %v6382_v4  ;;  %v2815_v47 = vadd.f32 %v2720_v52, %v2264_v14  ;;  %v8335_v41 = vpop.f32.mrb[34].mxu1  ;;  %v10767_v58 = vld [vmem:[#allocation2 + $0x90] sm:$0xff]   ;;  %v5862_v14 = vrot.slane %v5860_v13, 3  ;;  %v10784_v8 = vld [vmem:[#allocation2 + $0x58] sm:$0xff]   ;;  %v10820_v56 = vld [vmem:[#allocation2 + $0x68] sm:$0xff]  }
 0x1f3   : > { %2853 = vst.msk [vmem:[#allocation3 + $0x90] sm:$0xff] %vm1741_vm5, %v2817_v63  ;;  %v2818_v7 = vadd.f32 %v8335_v41, %v2267_v51  ;;  %v2723_v59 = vpop.f32.mrb[35].mxu1  ;;  %v5859_v63 = vrot.slane %v5857_v53, 2  ;;  %v5868_v51 = vrot.slane %v5866_v55, 2  ;;  %v5871_v41 = vrot.slane %v5869_v6, 3  ;;  %v2273_v26 = vld [vmem:[#allocation3 + $0xc8] sm:$0xff] }
 0x1f4   : > { %v8360_v0 = vpop.f32.mrb[24].mxu0  ;;  %2851 = vst.msk [vmem:[#allocation3 + $0x80] sm:$0xff] %vm1741_vm5, %v2815_v47  ;;  %v2816_v57 = vadd.f32 %v2723_v59, %v2265_v31  ;;  %v5855_v47 = vsel %vm5730_vm15, %v5845_v5, %v10761_v61  ;;  %v2882_v31 = vld [vmem:[#allocation3 + $0x58] sm:$0xff]  ;;  %v5875_v3 = vshrl.u32 %v10767_v58, 16  ;;  %v5878_v22 = vshll.u32 %v10767_v58, 16  ;;  %v2883_v55 = vld [vmem:[#allocation3 + $0x60] sm:$0xff] }
 0x1f5   : > { %v3317_v21 = vadd.f32 %v8360_v0, %v2877_v43  ;;  %v3184_v38 = vpop.f32.mrb[25].mxu0  ;;  %2854 = vst.msk [vmem:[#allocation3 + $0x98] sm:$0xff] %vm1741_vm5, %v2818_v7  ;;  %8561 = vmatmul.mubr.msk.bf16.gmra.mrb[140].mxu1 %vm1741_vm5, %v5828_v12  ;;  %v2880_v43 = vld [vmem:[#allocation3 + $0x48] sm:$0xff]  ;;  %v10794_v20 = vor.u32 %v5871_v41, %v5868_v51 }
 0x1f6   : > { %v3315_v23 = vadd.f32 %v3184_v38, %v2875_v48  ;;  %v8361_v49 = vpop.f32.mrb[26].mxu0  ;;  %2852 = vst.msk [vmem:[#allocation3 + $0x88] sm:$0xff] %vm1741_vm5, %v2816_v57  ;;  %8564 = vmatprep.mubr.msk.bf16.mxu1 %vm1741_vm5, %v5837_v45  ;;  %v6388_v57 = vsel %vm6375_vm8, %v6385_v10, %v6387_v46  ;;  %v10782_v12 = vld [vmem:[#allocation2 + $0x50] sm:$0xff]   ;;  %v2274_v48 = vld [vmem:[#allocation3 + $0xd0] sm:$0xff]  ;;  %v5863_v45 = vor.u32 %v5862_v14, %v5859_v63 }
 0x1f7   : > { %3353 = vst.msk [vmem:[#allocation3 + $0x30] sm:$0xff] %vm1741_vm5, %v3317_v21  ;;  %v3318_v16 = vadd.f32 %v8361_v49, %v2878_v40  ;;  %v3187_v11 = vpop.f32.mrb[27].mxu0  ;;  %v6390_v21 = vsel %vm6375_vm8, %v6387_v46, %v6389_v27  ;;  %v5887_v40 = vshll.u32 %v8806_v35, 16 }
 0x1f8   : > { %3351 = vst.msk [vmem:[#allocation3 + $0x20] sm:$0xff] %vm1741_vm5, %v3315_v23  ;;  %v3316_v39 = vadd.f32 %v3187_v11, %v2876_v44  ;;  %v8338_v54 = vpop.f32.mrb[36].mxu1  ;;  %v5884_v23 = vshrl.u32 %v8806_v35, 16  ;;  %v6391_v11 = vrot.slane %v10782_v12, 3  ;;  %v5864_v13 = vsel %vm5730_vm15, %v10761_v61, %v5863_v45 }
 0x1f9   : > { %3354 = vst.msk [vmem:[#allocation3 + $0x38] sm:$0xff] %vm1741_vm5, %v3318_v16  ;;  %8587 = vmatmul.mubr.msk.bf16.gmra.mrb[132].mxu0 %vm1741_vm5, %v6384_v24  ;;  %v2821_v60 = vadd.f32 %v8338_v54, %v2270_v30  ;;  %v2736_v50 = vpop.f32.mrb[37].mxu1  ;;  %v2275_v16 = vld [vmem:[#allocation3 + $0xd8] sm:$0xff]  ;;  %v6393_v24 = vrot.slane %v10784_v8, 3  ;;  %v5877_v30 = vrot.slane %v5875_v3, 2  ;;  %v2885_v54 = vld [vmem:[#allocation3 + $0x70] sm:$0xff] }
 0x1fa   : > { %3352 = vst.msk [vmem:[#allocation3 + $0x28] sm:$0xff] %vm1741_vm5, %v3316_v39  ;;  %8590 = vmatprep.mubr.msk.bf16.mxu0 %vm1741_vm5, %v6386_v33  ;;  %v2819_v36 = vadd.f32 %v2736_v50, %v2268_v9  ;;  %v8339_v34 = vpop.f32.mrb[38].mxu1  ;;  %v8809_v9 = vld [vmem:[#allocation2 + $0xa0] ss:$0 sps:$4 sm:$0x77]  }
 0x1fb   : > { %2857 = vst.msk [vmem:[#allocation3 + $0xb0] sm:$0xff] %vm1741_vm5, %v2821_v60  ;;  %v2822_v4 = vadd.f32 %v8339_v34, %v2271_v18  ;;  %v2739_v19 = vpop.f32.mrb[39].mxu1  ;;  %v5880_v60 = vrot.slane %v5878_v22, 3  ;;  %v5886_v18 = vrot.slane %v5884_v23, 2  ;;  %v5889_v34 = vrot.slane %v5887_v40, 3 }
 0x1fc   : > { %v8364_v2 = vpop.f32.mrb[28].mxu0  ;;  %2855 = vst.msk [vmem:[#allocation3 + $0xa0] sm:$0xff] %vm1741_vm5, %v2819_v36  ;;  %v2820_v17 = vadd.f32 %v2739_v19, %v2269_v25  ;;  %v5873_v36 = vsel %vm5730_vm15, %v5863_v45, %v10794_v20  ;;  %v2884_v19 = vld [vmem:[#allocation3 + $0x68] sm:$0xff]  ;;  %v2887_v45 = vld [vmem:[#allocation3 + $0x80] sm:$0xff]  ;;  %v2890_v23 = vld [vmem:[#allocation3 + $0x98] sm:$0xff] }
 0x1fd   : > { %v3321_v52 = vadd.f32 %v8364_v2, %v2881_v62  ;;  %v3200_v29 = vpop.f32.mrb[29].mxu0  ;;  %2858 = vst.msk [vmem:[#allocation3 + $0xb8] sm:$0xff] %vm1741_vm5, %v2822_v4  ;;  %8565 = vmatmul.mubr.msk.bf16.gmra.mrb[144].mxu1 %vm1741_vm5, %v5846_v37  ;;  %v2886_v4 = vld [vmem:[#allocation3 + $0x78] sm:$0xff]  ;;  %v6392_v62 = vsel %vm6375_vm8, %v6389_v27, %v6391_v11  ;;  %v2278_v37 = vld [vmem:[#allocation3 + $0xf0] sm:$0xff]  ;;  %v5881_v14 = vor.u32 %v5880_v60, %v5877_v30 }
 0x1fe   : > { %v3319_v7 = vadd.f32 %v3200_v29, %v2879_v28  ;;  %v8365_v59 = vpop.f32.mrb[30].mxu0  ;;  %2856 = vst.msk [vmem:[#allocation3 + $0xa8] sm:$0xff] %vm1741_vm5, %v2820_v17  ;;  %8568 = vmatprep.mubr.msk.bf16.mxu1 %vm1741_vm5, %v5855_v47  ;;  %v8799_v2 = vld [vmem:[#allocation2 + $0x60] sm:$0xff]   ;;  %v5896_v28 = vshll.u32 %v8809_v9, 16  ;;  %v6394_v29 = vsel %vm6375_vm8, %v6391_v11, %v6393_v24  ;;  %v2276_v47 = vld [vmem:[#allocation3 + $0xe0] sm:$0xff]  ;;  %v10822_v41 = vor.u32 %v5889_v34, %v5886_v18 }
 0x1ff   : > { %3357 = vst.msk [vmem:[#allocation3 + $0x50] sm:$0xff] %vm1741_vm5, %v3321_v52  ;;  %v3322_v15 = vadd.f32 %v8365_v59, %v2882_v31  ;;  %v3203_v0 = vpop.f32.mrb[31].mxu0  ;;  %v5893_v52 = vshrl.u32 %v8809_v9, 16  ;;  %v6395_v59 = vrot.slane %v8799_v2, 3 }
 0x200   : > { %3355 = vst.msk [vmem:[#allocation3 + $0x40] sm:$0xff] %vm1741_vm5, %v3319_v7  ;;  %v3320_v1 = vadd.f32 %v3203_v0, %v2880_v43  ;;  %v8342_v38 = vpop.f32.mrb[40].mxu1  ;;  %v2279_v7 = vld [vmem:[#allocation3 + $0xf8] sm:$0xff]  ;;  %v2277_v43 = vld [vmem:[#allocation3 + $0xe8] sm:$0xff] }
 0x201   : > { %3358 = vst.msk [vmem:[#allocation3 + $0x58] sm:$0xff] %vm1741_vm5, %v3322_v15  ;;  %8591 = vmatmul.mubr.msk.bf16.gmra.mrb[136].mxu0 %vm1741_vm5, %v6388_v57  ;;  %v2825_v10 = vadd.f32 %v8342_v38, %v2274_v48  ;;  %v2752_v32 = vpop.f32.mrb[41].mxu1  ;;  %v2889_v57 = vld [vmem:[#allocation3 + $0x90] sm:$0xff]  ;;  %v5898_v48 = vrot.slane %v5896_v28, 3  ;;  %v6396_v11 = vsel %vm6375_vm8, %v6393_v24, %v6395_v59  ;;  %v2283_v24 = vld [vmem:[#allocation3 + $0x118] sm:$0xff] }
 0x202   : > { %3356 = vst.msk [vmem:[#allocation3 + $0x48] sm:$0xff] %vm1741_vm5, %v3320_v1  ;;  %8594 = vmatprep.mubr.msk.bf16.mxu0 %vm1741_vm5, %v6390_v21  ;;  %v2823_v49 = vadd.f32 %v2752_v32, %v2272_v42  ;;  %v8343_v44 = vpop.f32.mrb[42].mxu1  ;;  %v5882_v1 = vsel %vm5730_vm15, %v10794_v20, %v5881_v14  ;;  %v5895_v21 = vrot.slane %v5893_v52, 2  ;;  %v5891_v42 = vsel %vm5730_vm15, %v5881_v14, %v10822_v41 }
 0x203   : > { %2861 = vst.msk [vmem:[#allocation3 + $0xd0] sm:$0xff] %vm1741_vm5, %v2825_v10  ;;  %v2826_v33 = vadd.f32 %v8343_v44, %v2275_v16  ;;  %v2755_v39 = vpop.f32.mrb[43].mxu1  ;;  %v6397_v10 = vrot.slane %v10820_v56, 3  ;;  %v3385_v56 = vld [vmem:[#allocation3 + $0x10] sm:$0xff] }
 0x204   : > { %v8368_v5 = vpop.f32.mrb[32].mxu0  ;;  %2859 = vst.msk [vmem:[#allocation3 + $0xc0] sm:$0xff] %vm1741_vm5, %v2823_v49  ;;  %v2824_v53 = vadd.f32 %v2755_v39, %v2273_v26  ;;  %v2888_v49 = vld [vmem:[#allocation3 + $0x88] sm:$0xff]  ;;  %v2282_v26 = vld [vmem:[#allocation3 + $0x110] sm:$0xff]  ;;  %v5899_v30 = vor.u32 %v5898_v48, %v5895_v21  ;;  %v2894_v2 = vld [vmem:[#allocation3 + $0xb8] sm:$0xff] }
 0x205   : > { %v3325_v50 = vadd.f32 %v8368_v5, %v2885_v54  ;;  %v3216_v6 = vpop.f32.mrb[33].mxu0  ;;  %2862 = vst.msk [vmem:[#allocation3 + $0xd8] sm:$0xff] %vm1741_vm5, %v2826_v33  ;;  %8569 = vmatmul.mubr.msk.bf16.gmra.mrb[148].mxu1 %vm1741_vm5, %v5864_v13  ;;  %v8803_v33 = vld [vmem:[#allocation2 + $0x70] sm:$0xff]   ;;  %v6398_v54 = vsel %vm6375_vm8, %v6395_v59, %v6397_v10  ;;  %v10845_v5 = vld [vmem:[#allocation2 + $0x78] sm:$0xff]   ;;  %v2280_v13 = vld [vmem:[#allocation3 + $0x100] sm:$0xff] }
 0x206   : > { %v3323_v46 = vadd.f32 %v3216_v6, %v2883_v55  ;;  %v8369_v25 = vpop.f32.mrb[34].mxu0  ;;  %2860 = vst.msk [vmem:[#allocation3 + $0xc8] sm:$0xff] %vm1741_vm5, %v2824_v53  ;;  %8572 = vmatprep.mubr.msk.bf16.mxu1 %vm1741_vm5, %v5873_v36  ;;  %v2281_v55 = vld [vmem:[#allocation3 + $0x108] sm:$0xff]  ;;  %v2893_v36 = vld [vmem:[#allocation3 + $0xb0] sm:$0xff]  ;;  %v6399_v34 = vrot.slane %v8803_v33, 3  ;;  %v3386_v59 = vld [vmem:[#allocation3 + $0x18] sm:$0xff] }
 0x207   : > { %3361 = vst.msk [vmem:[#allocation3 + $0x70] sm:$0xff] %vm1741_vm5, %v3325_v50  ;;  %v3326_v61 = vadd.f32 %v8369_v25, %v2886_v4  ;;  %v3219_v58 = vpop.f32.mrb[35].mxu0  ;;  %v5900_v4 = vsel %vm5730_vm15, %v10822_v41, %v5899_v30 }
 0x208   : > { %3359 = vst.msk [vmem:[#allocation3 + $0x60] sm:$0xff] %vm1741_vm5, %v3323_v46  ;;  %v3324_v17 = vadd.f32 %v3219_v58, %v2884_v19  ;;  %v8346_v63 = vpop.f32.mrb[44].mxu1  ;;  %v6401_v58 = vrot.slane %v10845_v5, 3  ;;  %v6400_v28 = vsel %vm6375_vm8, %v6397_v10, %v6399_v34 }
 0x209   : > { %3362 = vst.msk [vmem:[#allocation3 + $0x78] sm:$0xff] %vm1741_vm5, %v3326_v61  ;;  %8595 = vmatmul.mubr.msk.bf16.gmra.mrb[140].mxu0 %vm1741_vm5, %v6392_v62  ;;  %v2829_v27 = vadd.f32 %v8346_v63, %v2278_v37  ;;  %v2768_v51 = vpop.f32.mrb[45].mxu1  ;;  %v2891_v61 = vld [vmem:[#allocation3 + $0xa0] sm:$0xff]  ;;  %v2892_v63 = vld [vmem:[#allocation3 + $0xa8] sm:$0xff] }
 0x20a   : > { %3360 = vst.msk [vmem:[#allocation3 + $0x68] sm:$0xff] %vm1741_vm5, %v3324_v17  ;;  %8598 = vmatprep.mubr.msk.bf16.mxu0 %vm1741_vm5, %v6394_v29  ;;  %v2827_v35 = vadd.f32 %v2768_v51, %v2276_v47  ;;  %v8347_v31 = vpop.f32.mrb[46].mxu1  ;;  %v8807_v29 = vld [vmem:[#allocation2 + $0x80] sm:$0xff]   ;;  %v6402_v47 = vsel %vm6375_vm8, %v6399_v34, %v6401_v58  ;;  %v10863_v51 = vld [vmem:[#allocation2 + $0x88] sm:$0xff]  }
 0x20b   : > { %2865 = vst.msk [vmem:[#allocation3 + $0xf0] sm:$0xff] %vm1741_vm5, %v2829_v27  ;;  %v2830_v15 = vadd.f32 %v8347_v31, %v2279_v7  ;;  %v2771_v0 = vpop.f32.mrb[47].mxu1 }
 0x20c   : > { %v8372_v12 = vpop.f32.mrb[36].mxu0  ;;  %2863 = vst.msk [vmem:[#allocation3 + $0xe0] sm:$0xff] %vm1741_vm5, %v2827_v35  ;;  %v2828_v3 = vadd.f32 %v2771_v0, %v2277_v43  ;;  %v3383_v35 = vld [vmem:[#allocation3] sm:$0xff]  ;;  %v3384_v0 = vld [vmem:[#allocation3 + $0x8] sm:$0xff] }
 0x20d   : > { %v3329_v38 = vadd.f32 %v8372_v12, %v2889_v57  ;;  %v3232_v22 = vpop.f32.mrb[37].mxu0  ;;  %2866 = vst.msk [vmem:[#allocation3 + $0xf8] sm:$0xff] %vm1741_vm5, %v2830_v15  ;;  %8573 = vmatmul.mubr.msk.bf16.gmra.mrb[152].mxu1 %vm1741_vm5, %v5882_v1  ;;  %v2897_v12 = vld [vmem:[#allocation3 + $0xd0] sm:$0xff]  ;;  %v6403_v1 = vrot.slane %v8807_v29, 3 }
 0x20e   : > { %v3327_v32 = vadd.f32 %v3232_v22, %v2887_v45  ;;  %v8373_v40 = vpop.f32.mrb[38].mxu0  ;;  %2864 = vst.msk [vmem:[#allocation3 + $0xe8] sm:$0xff] %vm1741_vm5, %v2828_v3  ;;  %8576 = vmatprep.mubr.msk.bf16.mxu1 %vm1741_vm5, %v5891_v42  ;;  %v6405_v22 = vrot.slane %v10863_v51, 3  ;;  %v2898_v42 = vld [vmem:[#allocation3 + $0xd8] sm:$0xff] }
 0x20f   : > { %3365 = vst.msk [vmem:[#allocation3 + $0x90] sm:$0xff] %vm1741_vm5, %v3329_v38  ;;  %v3330_v20 = vadd.f32 %v8373_v40, %v2890_v23  ;;  %v3235_v16 = vpop.f32.mrb[39].mxu0  ;;  %v2895_v38 = vld [vmem:[#allocation3 + $0xc0] sm:$0xff]  ;;  %v2896_v40 = vld [vmem:[#allocation3 + $0xc8] sm:$0xff]  ;;  %v3394_v51 = vld [vmem:[#allocation3 + $0x58] sm:$0xff] }
 0x210   : > { %3363 = vst.msk [vmem:[#allocation3 + $0x80] sm:$0xff] %vm1741_vm5, %v3327_v32  ;;  %v3328_v44 = vadd.f32 %v3235_v16, %v2888_v49  ;;  %v8350_v39 = vpop.f32.mrb[48].mxu1  ;;  %v6404_v16 = vsel %vm6375_vm8, %v6401_v58, %v6403_v1 }
 0x211   : > { %3366 = vst.msk [vmem:[#allocation3 + $0x98] sm:$0xff] %vm1741_vm5, %v3330_v20  ;;  %8599 = vmatmul.mubr.msk.bf16.gmra.mrb[144].mxu0 %vm1741_vm5, %v6396_v11  ;;  %v2833_v53 = vadd.f32 %v8350_v39, %v2282_v26  ;;  %v2784_v60 = vpop.f32.mrb[49].mxu1  ;;  %v3389_v11 = vld [vmem:[#allocation3 + $0x30] sm:$0xff]  ;;  %v6406_v26 = vsel %vm6375_vm8, %v6403_v1, %v6405_v22 }
 0x212   : > { %3364 = vst.msk [vmem:[#allocation3 + $0x88] sm:$0xff] %vm1741_vm5, %v3328_v44  ;;  %8602 = vmatprep.mubr.msk.bf16.mxu0 %vm1741_vm5, %v6398_v54  ;;  %v2831_v8 = vadd.f32 %v2784_v60, %v2280_v13  ;;  %v8351_v9 = vpop.f32.mrb[50].mxu1  ;;  %v8810_v44 = vld [vmem:[#allocation2 + $0x90] sm:$0xff]   ;;  %v10878_v39 = vld [vmem:[#allocation2 + $0x98] sm:$0xff]   ;;  %v3387_v54 = vld [vmem:[#allocation3 + $0x20] sm:$0xff] }
 0x213   : > { %2869 = vst.msk [vmem:[#allocation3 + $0x110] sm:$0xff] %vm1741_vm5, %v2833_v53  ;;  %v2834_v50 = vadd.f32 %v8351_v9, %v2283_v24  ;;  %v2787_v6 = vpop.f32.mrb[51].mxu1  ;;  %v3390_v13 = vld [vmem:[#allocation3 + $0x38] sm:$0xff]  ;;  %v3388_v24 = vld [vmem:[#allocation3 + $0x28] sm:$0xff]  ;;  %v2899_v34 = vld [vmem:[#allocation3 + $0xe0] sm:$0xff] }
 0x214   : > { %v8376_v18 = vpop.f32.mrb[40].mxu0  ;;  %2867 = vst.msk [vmem:[#allocation3 + $0x100] sm:$0xff] %vm1741_vm5, %v2831_v8  ;;  %v2832_v46 = vadd.f32 %v2787_v6, %v2281_v55  ;;  %v6407_v6 = vrot.slane %v8810_v44, 3  ;;  %v3398_v44 = vld [vmem:[#allocation3 + $0x78] sm:$0xff] }
 0x215   : > { %v3333_v25 = vadd.f32 %v8376_v18, %v2893_v36  ;;  %v3248_v19 = vpop.f32.mrb[41].mxu0  ;;  %2870 = vst.msk [vmem:[#allocation3 + $0x118] sm:$0xff] %vm1741_vm5, %v2834_v50  ;;  %8577 = vmatmul.mubr.msk.bf16.gmra.mrb[156].mxu1 %vm1741_vm5, %v5900_v4  ;;  %v2901_v50 = vld [vmem:[#allocation3 + $0xf0] sm:$0xff]  ;;  %v6409_v4 = vrot.slane %v10878_v39, 3 }
 0x216   : > { %v3331_v62 = vadd.f32 %v3248_v19, %v2891_v61  ;;  %v8377_v17 = vpop.f32.mrb[42].mxu0  ;;  %2868 = vst.msk [vmem:[#allocation3 + $0x108] sm:$0xff] %vm1741_vm5, %v2832_v46  ;;  %v2902_v61 = vld [vmem:[#allocation3 + $0xf8] sm:$0xff] }
 0x217   : > { %3369 = vst.msk [vmem:[#allocation3 + $0xb0] sm:$0xff] %vm1741_vm5, %v3333_v25  ;;  %v3334_v37 = vadd.f32 %v8377_v17, %v2894_v2  ;;  %v3251_v14 = vpop.f32.mrb[43].mxu0 }
 0x218   : > { %3367 = vst.msk [vmem:[#allocation3 + $0xa0] sm:$0xff] %vm1741_vm5, %v3331_v62  ;;  %v3332_v52 = vadd.f32 %v3251_v14, %v2892_v63  ;;  %v8394_v27 = vpop.f32.mrb[52].mxu1  ;;  %v2900_v62 = vld [vmem:[#allocation3 + $0xe8] sm:$0xff]  ;;  %v8812_v63 = vld [vmem:[#allocation2 + $0xa0] ss:$0 sps:$4 sm:$0x77]  }
 0x219   : > { %3370 = vst.msk [vmem:[#allocation3 + $0xb8] sm:$0xff] %vm1741_vm5, %v3334_v37  ;;  %8603 = vmatmul.mubr.msk.bf16.gmra.mrb[148].mxu0 %vm1741_vm5, %v6400_v28  ;;  %v3824_v41 = vadd.f32 %v8394_v27, %v3385_v56  ;;  %v3679_v7 = vpop.f32.mrb[53].mxu1  ;;  %v6408_v37 = vsel %vm6375_vm8, %v6405_v22, %v6407_v6  ;;  %v3393_v14 = vld [vmem:[#allocation3 + $0x50] sm:$0xff]  ;;  %v6410_v28 = vsel %vm6375_vm8, %v6407_v6, %v6409_v4  ;;  %v3391_v56 = vld [vmem:[#allocation3 + $0x40] sm:$0xff] }
 0x21a   : > { %3368 = vst.msk [vmem:[#allocation3 + $0xa8] sm:$0xff] %vm1741_vm5, %v3332_v52  ;;  %8606 = vmatprep.mubr.msk.bf16.mxu0 %vm1741_vm5, %v6402_v47  ;;  %v3822_v31 = vadd.f32 %v3679_v7, %v3383_v35  ;;  %v8395_v15 = vpop.f32.mrb[54].mxu1  ;;  %v3392_v7 = vld [vmem:[#allocation3 + $0x48] sm:$0xff] }
 0x21b   : > { %3860 = vst.msk [vmem:[#allocation3 + $0x10] sm:$0xff] %vm1741_vm5, %v3824_v41  ;;  %v3825_v43 = vadd.f32 %v8395_v15, %v3386_v59  ;;  %v3682_v57 = vpop.f32.mrb[55].mxu1  ;;  %v2905_v59 = vld [vmem:[#allocation3 + $0x110] sm:$0xff] }
 0x21c   : > { %v8380_v3 = vpop.f32.mrb[44].mxu0  ;;  %3858 = vst.msk [vmem:[#allocation3] sm:$0xff] %vm1741_vm5, %v3822_v31  ;;  %v3823_v21 = vadd.f32 %v3682_v57, %v3384_v0 }
 0x21d   : > { %v3337_v48 = vadd.f32 %v8380_v3, %v2897_v12  ;;  %v3264_v45 = vpop.f32.mrb[45].mxu0  ;;  %3861 = vst.msk [vmem:[#allocation3 + $0x18] sm:$0xff] %vm1741_vm5, %v3825_v43  ;;  %v6411_v43 = vrot.slane %v8812_v63, 3  ;;  %v2903_v12 = vld [vmem:[#allocation3 + $0x100] sm:$0xff] }
 0x21e   : > { %v3335_v10 = vadd.f32 %v3264_v45, %v2895_v38  ;;  %v8381_v32 = vpop.f32.mrb[46].mxu0  ;;  %3859 = vst.msk [vmem:[#allocation3 + $0x8] sm:$0xff] %vm1741_vm5, %v3823_v21  ;;  %v2906_v21 = vld [vmem:[#allocation3 + $0x118] sm:$0xff]  ;;  %v2904_v45 = vld [vmem:[#allocation3 + $0x108] sm:$0xff] }
 0x21f   : > { %3373 = vst.msk [vmem:[#allocation3 + $0xd0] sm:$0xff] %vm1741_vm5, %v3337_v48  ;;  %v3338_v23 = vadd.f32 %v8381_v32, %v2898_v42  ;;  %v3267_v20 = vpop.f32.mrb[47].mxu0  ;;  %v6412_v42 = vsel %vm6375_vm8, %v6409_v4, %v6411_v43  ;;  %v3397_v32 = vld [vmem:[#allocation3 + $0x70] sm:$0xff]  ;;  %v3399_v4 = vld [vmem:[#allocation3 + $0x80] sm:$0xff] }
 0x220   : > { %3371 = vst.msk [vmem:[#allocation3 + $0xc0] sm:$0xff] %vm1741_vm5, %v3335_v10  ;;  %v3336_v49 = vadd.f32 %v3267_v20, %v2896_v40  ;;  %v8398_v33 = vpop.f32.mrb[56].mxu1  ;;  %v3395_v20 = vld [vmem:[#allocation3 + $0x60] sm:$0xff] }
 0x221   : > { %3374 = vst.msk [vmem:[#allocation3 + $0xd8] sm:$0xff] %vm1741_vm5, %v3338_v23  ;;  %8607 = vmatmul.mubr.msk.bf16.gmra.mrb[152].mxu0 %vm1741_vm5, %v6404_v16  ;;  %v3828_v30 = vadd.f32 %v8398_v33, %v3389_v11  ;;  %v3695_v5 = vpop.f32.mrb[57].mxu1  ;;  %v3403_v43 = vld [vmem:[#allocation3 + $0xa0] sm:$0xff] }
 0x222   : > { %3372 = vst.msk [vmem:[#allocation3 + $0xc8] sm:$0xff] %vm1741_vm5, %v3336_v49  ;;  %8610 = vmatprep.mubr.msk.bf16.mxu0 %vm1741_vm5, %v6406_v26  ;;  %v3826_v53 = vadd.f32 %v3695_v5, %v3387_v54  ;;  %v8399_v60 = vpop.f32.mrb[58].mxu1  ;;  %v3396_v26 = vld [vmem:[#allocation3 + $0x68] sm:$0xff] }
 0x223   : > { %3864 = vst.msk [vmem:[#allocation3 + $0x30] sm:$0xff] %vm1741_vm5, %v3828_v30  ;;  %v3829_v8 = vadd.f32 %v8399_v60, %v3390_v13  ;;  %v3698_v9 = vpop.f32.mrb[59].mxu1  ;;  %v3896_v30 = vld [vmem:[#allocation3 + $0x10] sm:$0xff]  ;;  %v3894_v13 = vld [vmem:[#allocation3] sm:$0xff] }
 0x224   : > { %v8384_v55 = vpop.f32.mrb[48].mxu0  ;;  %3862 = vst.msk [vmem:[#allocation3 + $0x20] sm:$0xff] %vm1741_vm5, %v3826_v53  ;;  %v3827_v36 = vadd.f32 %v3698_v9, %v3388_v24  ;;  %v3897_v24 = vld [vmem:[#allocation3 + $0x18] sm:$0xff] }
 0x225   : > { %v3341_v18 = vadd.f32 %v8384_v55, %v2901_v50  ;;  %v3280_v46 = vpop.f32.mrb[49].mxu0  ;;  %3865 = vst.msk [vmem:[#allocation3 + $0x38] sm:$0xff] %vm1741_vm5, %v3829_v8  ;;  %v3895_v55 = vld [vmem:[#allocation3 + $0x8] sm:$0xff] }
 0x226   : > { %v3339_v25 = vadd.f32 %v3280_v46, %v2899_v34  ;;  %v8385_v19 = vpop.f32.mrb[50].mxu0  ;;  %3863 = vst.msk [vmem:[#allocation3 + $0x28] sm:$0xff] %vm1741_vm5, %v3827_v36 }
 0x227   : > { %3377 = vst.msk [vmem:[#allocation3 + $0xf0] sm:$0xff] %vm1741_vm5, %v3341_v18  ;;  %v3342_v58 = vadd.f32 %v8385_v19, %v2902_v61  ;;  %v3283_v2 = vpop.f32.mrb[51].mxu0  ;;  %v3401_v18 = vld [vmem:[#allocation3 + $0x90] sm:$0xff]  ;;  %v3402_v19 = vld [vmem:[#allocation3 + $0x98] sm:$0xff] }
 0x228   : > { %3375 = vst.msk [vmem:[#allocation3 + $0xe0] sm:$0xff] %vm1741_vm5, %v3339_v25  ;;  %v3340_v17 = vadd.f32 %v3283_v2, %v2900_v62  ;;  %v8402_v52 = vpop.f32.mrb[60].mxu1  ;;  %v3400_v2 = vld [vmem:[#allocation3 + $0x88] sm:$0xff] }
 0x229   : > { %3378 = vst.msk [vmem:[#allocation3 + $0xf8] sm:$0xff] %vm1741_vm5, %v3342_v58  ;;  %8611 = vmatmul.mubr.msk.bf16.gmra.mrb[156].mxu0 %vm1741_vm5, %v6408_v37  ;;  %v3832_v29 = vadd.f32 %v8402_v52, %v3393_v14  ;;  %v3711_v27 = vpop.f32.mrb[61].mxu1 }
 0x22a   : > { %3376 = vst.msk [vmem:[#allocation3 + $0xe8] sm:$0xff] %vm1741_vm5, %v3340_v17  ;;  %8614 = vmatprep.mubr.msk.bf16.mxu0 %vm1741_vm5, %v6410_v28  ;;  %v3830_v47 = vadd.f32 %v3711_v27, %v3391_v56  ;;  %v8403_v41 = vpop.f32.mrb[62].mxu1  ;;  %v3900_v37 = vld [vmem:[#allocation3 + $0x30] sm:$0xff] }
 0x22b   : > { %3868 = vst.msk [vmem:[#allocation3 + $0x50] sm:$0xff] %vm1741_vm5, %v3832_v29  ;;  %v3833_v35 = vadd.f32 %v8403_v41, %v3394_v51  ;;  %v3714_v31 = vpop.f32.mrb[63].mxu1  ;;  %v3898_v28 = vld [vmem:[#allocation3 + $0x20] sm:$0xff] }
 0x22c   : > { %v8388_v15 = vpop.f32.mrb[52].mxu0  ;;  %3866 = vst.msk [vmem:[#allocation3 + $0x40] sm:$0xff] %vm1741_vm5, %v3830_v47  ;;  %v3831_v0 = vadd.f32 %v3714_v31, %v3392_v7  ;;  %v3901_v27 = vld [vmem:[#allocation3 + $0x38] sm:$0xff]  ;;  %v3405_v31 = vld [vmem:[#allocation3 + $0xb0] sm:$0xff] }
 0x22d   : > { %v3345_v57 = vadd.f32 %v8388_v15, %v2905_v59  ;;  %v3296_v3 = vpop.f32.mrb[53].mxu0  ;;  %3869 = vst.msk [vmem:[#allocation3 + $0x58] sm:$0xff] %vm1741_vm5, %v3833_v35  ;;  %v3899_v41 = vld [vmem:[#allocation3 + $0x28] sm:$0xff] }
 0x22e   : > { %v3343_v1 = vadd.f32 %v3296_v3, %v2903_v12  ;;  %v8389_v48 = vpop.f32.mrb[54].mxu0  ;;  %3867 = vst.msk [vmem:[#allocation3 + $0x48] sm:$0xff] %vm1741_vm5, %v3831_v0  ;;  %v3406_v12 = vld [vmem:[#allocation3 + $0xb8] sm:$0xff] }
 0x22f   : > { %3381 = vst.msk [vmem:[#allocation3 + $0x110] sm:$0xff] %vm1741_vm5, %v3345_v57  ;;  %v3346_v38 = vadd.f32 %v8389_v48, %v2906_v21  ;;  %v3299_v22 = vpop.f32.mrb[55].mxu0  ;;  %v3404_v21 = vld [vmem:[#allocation3 + $0xa8] sm:$0xff] }
 0x230   : > { %3379 = vst.msk [vmem:[#allocation3 + $0x100] sm:$0xff] %vm1741_vm5, %v3343_v1  ;;  %v3344_v10 = vadd.f32 %v3299_v22, %v2904_v45  ;;  %v8406_v23 = vpop.f32.mrb[64].mxu1 }
 0x231   : > { %3382 = vst.msk [vmem:[#allocation3 + $0x118] sm:$0xff] %vm1741_vm5, %v3346_v38  ;;  %8615 = vmatmul.mubr.msk.bf16.gmra.mrb[160].mxu0 %vm1741_vm5, %v6412_v42  ;;  %v3836_v40 = vadd.f32 %v8406_v23, %v3397_v32  ;;  %v3727_v49 = vpop.f32.mrb[65].mxu1 }
 0x232   : > { %3380 = vst.msk [vmem:[#allocation3 + $0x108] sm:$0xff] %vm1741_vm5, %v3344_v10  ;;  %v3834_v16 = vadd.f32 %v3727_v49, %v3395_v20  ;;  %v8407_v11 = vpop.f32.mrb[66].mxu1  ;;  %v3904_v38 = vld [vmem:[#allocation3 + $0x50] sm:$0xff] }
 0x233   : > { %3872 = vst.msk [vmem:[#allocation3 + $0x70] sm:$0xff] %vm1741_vm5, %v3836_v40  ;;  %v3837_v33 = vadd.f32 %v8407_v11, %v3398_v44  ;;  %v3730_v39 = vpop.f32.mrb[67].mxu1  ;;  %v3902_v42 = vld [vmem:[#allocation3 + $0x40] sm:$0xff] }
 0x234   : > { %v8432_v54 = vpop.f32.mrb[56].mxu0  ;;  %3870 = vst.msk [vmem:[#allocation3 + $0x60] sm:$0xff] %vm1741_vm5, %v3834_v16  ;;  %v3835_v5 = vadd.f32 %v3730_v39, %v3396_v26  ;;  %v3905_v40 = vld [vmem:[#allocation3 + $0x58] sm:$0xff] }
 0x235   : > { %v4469_v53 = vadd.f32 %v8432_v54, %v3896_v30  ;;  %v4324_v60 = vpop.f32.mrb[57].mxu0  ;;  %3873 = vst.msk [vmem:[#allocation3 + $0x78] sm:$0xff] %vm1741_vm5, %v3837_v33  ;;  %v3903_v16 = vld [vmem:[#allocation3 + $0x48] sm:$0xff]  ;;  %v3409_v33 = vld [vmem:[#allocation3 + $0xd0] sm:$0xff]  ;;  %v3407_v30 = vld [vmem:[#allocation3 + $0xc0] sm:$0xff] }
 0x236   : > { %v4467_v8 = vadd.f32 %v4324_v60, %v3894_v13  ;;  %v8433_v9 = vpop.f32.mrb[58].mxu0  ;;  %3871 = vst.msk [vmem:[#allocation3 + $0x68] sm:$0xff] %vm1741_vm5, %v3835_v5 }
 0x237   : > { %4505 = vst.msk [vmem:[#allocation3 + $0x10] sm:$0xff] %vm1741_vm5, %v4469_v53  ;;  %v4470_v50 = vadd.f32 %v8433_v9, %v3897_v24  ;;  %v4327_v6 = vpop.f32.mrb[59].mxu0  ;;  %v3410_v53 = vld [vmem:[#allocation3 + $0xd8] sm:$0xff] }
 0x238   : > { %4503 = vst.msk [vmem:[#allocation3] sm:$0xff] %vm1741_vm5, %v4467_v8  ;;  %v4468_v36 = vadd.f32 %v4327_v6, %v3895_v55  ;;  %v8410_v34 = vpop.f32.mrb[68].mxu1  ;;  %v3408_v8 = vld [vmem:[#allocation3 + $0xc8] sm:$0xff] }
 0x239   : > { %4506 = vst.msk [vmem:[#allocation3 + $0x18] sm:$0xff] %vm1741_vm5, %v4470_v50  ;;  %v3840_v46 = vadd.f32 %v8410_v34, %v3401_v18  ;;  %v3743_v25 = vpop.f32.mrb[69].mxu1 }
 0x23a   : > { %4504 = vst.msk [vmem:[#allocation3 + $0x8] sm:$0xff] %vm1741_vm5, %v4468_v36  ;;  %v3838_v61 = vadd.f32 %v3743_v25, %v3399_v4  ;;  %v8411_v58 = vpop.f32.mrb[70].mxu1  ;;  %v3908_v9 = vld [vmem:[#allocation3 + $0x70] sm:$0xff] }
 0x23b   : > { %3876 = vst.msk [vmem:[#allocation3 + $0x90] sm:$0xff] %vm1741_vm5, %v3840_v46  ;;  %v3841_v62 = vadd.f32 %v8411_v58, %v3402_v19  ;;  %v3746_v17 = vpop.f32.mrb[71].mxu1  ;;  %v3906_v36 = vld [vmem:[#allocation3 + $0x60] sm:$0xff] }
 0x23c   : > { %v8436_v63 = vpop.f32.mrb[60].mxu0  ;;  %3874 = vst.msk [vmem:[#allocation3 + $0x80] sm:$0xff] %vm1741_vm5, %v3838_v61  ;;  %v3839_v14 = vadd.f32 %v3746_v17, %v3400_v2  ;;  %v3909_v46 = vld [vmem:[#allocation3 + $0x78] sm:$0xff] }
 0x23d   : > { %v4473_v52 = vadd.f32 %v8436_v63, %v3900_v37  ;;  %v4340_v29 = vpop.f32.mrb[61].mxu0  ;;  %3877 = vst.msk [vmem:[#allocation3 + $0x98] sm:$0xff] %vm1741_vm5, %v3841_v62  ;;  %v3907_v61 = vld [vmem:[#allocation3 + $0x68] sm:$0xff]  ;;  %v3413_v62 = vld [vmem:[#allocation3 + $0xf0] sm:$0xff]  ;;  %v3411_v37 = vld [vmem:[#allocation3 + $0xe0] sm:$0xff] }
 0x23e   : > { %v4471_v56 = vadd.f32 %v4340_v29, %v3898_v28  ;;  %v8437_v47 = vpop.f32.mrb[62].mxu0  ;;  %3875 = vst.msk [vmem:[#allocation3 + $0x88] sm:$0xff] %vm1741_vm5, %v3839_v14 }
 0x23f   : > { %4509 = vst.msk [vmem:[#allocation3 + $0x30] sm:$0xff] %vm1741_vm5, %v4473_v52  ;;  %v4474_v51 = vadd.f32 %v8437_v47, %v3901_v27  ;;  %v4343_v35 = vpop.f32.mrb[63].mxu0  ;;  %v3414_v52 = vld [vmem:[#allocation3 + $0xf8] sm:$0xff] }
 0x240   : > { %4507 = vst.msk [vmem:[#allocation3 + $0x20] sm:$0xff] %vm1741_vm5, %v4471_v56  ;;  %v4472_v7 = vadd.f32 %v4343_v35, %v3899_v41  ;;  %v8414_v59 = vpop.f32.mrb[72].mxu1  ;;  %v3412_v56 = vld [vmem:[#allocation3 + $0xe8] sm:$0xff] }
 0x241   : > { %4510 = vst.msk [vmem:[#allocation3 + $0x38] sm:$0xff] %vm1741_vm5, %v4474_v51  ;;  %v3844_v15 = vadd.f32 %v8414_v59, %v3405_v31  ;;  %v3759_v0 = vpop.f32.mrb[73].mxu1 }
 0x242   : > { %4508 = vst.msk [vmem:[#allocation3 + $0x28] sm:$0xff] %vm1741_vm5, %v4472_v7  ;;  %v3842_v57 = vadd.f32 %v3759_v0, %v3403_v43  ;;  %v8415_v3 = vpop.f32.mrb[74].mxu1  ;;  %v3912_v47 = vld [vmem:[#allocation3 + $0x90] sm:$0xff] }
 0x243   : > { %3880 = vst.msk [vmem:[#allocation3 + $0xb0] sm:$0xff] %vm1741_vm5, %v3844_v15  ;;  %v3845_v1 = vadd.f32 %v8415_v3, %v3406_v12  ;;  %v3762_v48 = vpop.f32.mrb[75].mxu1  ;;  %v3910_v7 = vld [vmem:[#allocation3 + $0x80] sm:$0xff] }
 0x244   : > { %v8440_v45 = vpop.f32.mrb[64].mxu0  ;;  %3878 = vst.msk [vmem:[#allocation3 + $0xa0] sm:$0xff] %vm1741_vm5, %v3842_v57  ;;  %v3843_v22 = vadd.f32 %v3762_v48, %v3404_v21  ;;  %v3913_v15 = vld [vmem:[#allocation3 + $0x98] sm:$0xff] }
 0x245   : > { %v4477_v10 = vadd.f32 %v8440_v45, %v3904_v38  ;;  %v4356_v32 = vpop.f32.mrb[65].mxu0  ;;  %3881 = vst.msk [vmem:[#allocation3 + $0xb8] sm:$0xff] %vm1741_vm5, %v3845_v1  ;;  %v3911_v57 = vld [vmem:[#allocation3 + $0x88] sm:$0xff]  ;;  %v3417_v1 = vld [vmem:[#allocation3 + $0x110] sm:$0xff]  ;;  %v3415_v38 = vld [vmem:[#allocation3 + $0x100] sm:$0xff] }
 0x246   : > { %v4475_v23 = vadd.f32 %v4356_v32, %v3902_v42  ;;  %v8441_v20 = vpop.f32.mrb[66].mxu0  ;;  %3879 = vst.msk [vmem:[#allocation3 + $0xa8] sm:$0xff] %vm1741_vm5, %v3843_v22 }
 0x247   : > { %4513 = vst.msk [vmem:[#allocation3 + $0x50] sm:$0xff] %vm1741_vm5, %v4477_v10  ;;  %v4478_v49 = vadd.f32 %v8441_v20, %v3905_v40  ;;  %v4359_v44 = vpop.f32.mrb[67].mxu0  ;;  %v3418_v10 = vld [vmem:[#allocation3 + $0x118] sm:$0xff] }
 0x248   : > { %4511 = vst.msk [vmem:[#allocation3 + $0x40] sm:$0xff] %vm1741_vm5, %v4475_v23  ;;  %v4476_v11 = vadd.f32 %v4359_v44, %v3903_v16  ;;  %v8418_v26 = vpop.f32.mrb[76].mxu1  ;;  %v3416_v23 = vld [vmem:[#allocation3 + $0x108] sm:$0xff] }
 0x249   : > { %4514 = vst.msk [vmem:[#allocation3 + $0x58] sm:$0xff] %vm1741_vm5, %v4478_v49  ;;  %v3848_v39 = vadd.f32 %v8418_v26, %v3409_v33  ;;  %v3775_v54 = vpop.f32.mrb[77].mxu1 }
 0x24a   : > { %4512 = vst.msk [vmem:[#allocation3 + $0x48] sm:$0xff] %vm1741_vm5, %v4476_v11  ;;  %v3846_v5 = vadd.f32 %v3775_v54, %v3407_v30  ;;  %v8419_v13 = vpop.f32.mrb[78].mxu1  ;;  %v3916_v20 = vld [vmem:[#allocation3 + $0xb0] sm:$0xff] }
 0x24b   : > { %3884 = vst.msk [vmem:[#allocation3 + $0xd0] sm:$0xff] %vm1741_vm5, %v3848_v39  ;;  %v3849_v60 = vadd.f32 %v8419_v13, %v3410_v53  ;;  %v3778_v24 = vpop.f32.mrb[79].mxu1  ;;  %v3914_v11 = vld [vmem:[#allocation3 + $0xa0] sm:$0xff] }
 0x24c   : > { %v8444_v50 = vpop.f32.mrb[68].mxu0  ;;  %3882 = vst.msk [vmem:[#allocation3 + $0xc0] sm:$0xff] %vm1741_vm5, %v3846_v5  ;;  %v3847_v55 = vadd.f32 %v3778_v24, %v3408_v8  ;;  %v3917_v39 = vld [vmem:[#allocation3 + $0xb8] sm:$0xff] }
 0x24d   : > { %v4481_v6 = vadd.f32 %v8444_v50, %v3908_v9  ;;  %v4372_v18 = vpop.f32.mrb[69].mxu0  ;;  %3885 = vst.msk [vmem:[#allocation3 + $0xd8] sm:$0xff] %vm1741_vm5, %v3849_v60  ;;  %v3915_v5 = vld [vmem:[#allocation3 + $0xa8] sm:$0xff]  ;;  %v4541_v60 = vld [vmem:[#allocation3 + $0x10] sm:$0xff]  ;;  %v4539_v9 = vld [vmem:[#allocation3] sm:$0xff] }
 0x24e   : > { %v4479_v34 = vadd.f32 %v4372_v18, %v3906_v36  ;;  %v8445_v4 = vpop.f32.mrb[70].mxu0  ;;  %3883 = vst.msk [vmem:[#allocation3 + $0xc8] sm:$0xff] %vm1741_vm5, %v3847_v55 }
 0x24f   : > { %4517 = vst.msk [vmem:[#allocation3 + $0x70] sm:$0xff] %vm1741_vm5, %v4481_v6  ;;  %v4482_v25 = vadd.f32 %v8445_v4, %v3909_v46  ;;  %v4375_v19 = vpop.f32.mrb[71].mxu0  ;;  %v4542_v6 = vld [vmem:[#allocation3 + $0x18] sm:$0xff] }
 0x250   : > { %4515 = vst.msk [vmem:[#allocation3 + $0x60] sm:$0xff] %vm1741_vm5, %v4479_v34  ;;  %v4480_v58 = vadd.f32 %v4375_v19, %v3907_v61  ;;  %v8422_v2 = vpop.f32.mrb[80].mxu1  ;;  %v4540_v34 = vld [vmem:[#allocation3 + $0x8] sm:$0xff] }
 0x251   : > { %4518 = vst.msk [vmem:[#allocation3 + $0x78] sm:$0xff] %vm1741_vm5, %v4482_v25  ;;  %v3852_v17 = vadd.f32 %v8422_v2, %v3413_v62  ;;  %v3791_v63 = vpop.f32.mrb[81].mxu1 }
 0x252   : > { %4516 = vst.msk [vmem:[#allocation3 + $0x68] sm:$0xff] %vm1741_vm5, %v4480_v58  ;;  %v3850_v14 = vadd.f32 %v3791_v63, %v3411_v37  ;;  %v8423_v28 = vpop.f32.mrb[82].mxu1  ;;  %v3920_v4 = vld [vmem:[#allocation3 + $0xd0] sm:$0xff] }
 0x253   : > { %3888 = vst.msk [vmem:[#allocation3 + $0xf0] sm:$0xff] %vm1741_vm5, %v3852_v17  ;;  %v3853_v29 = vadd.f32 %v8423_v28, %v3414_v52  ;;  %v3794_v27 = vpop.f32.mrb[83].mxu1  ;;  %v3918_v58 = vld [vmem:[#allocation3 + $0xc0] sm:$0xff] }
 0x254   : > { %v8448_v51 = vpop.f32.mrb[72].mxu0  ;;  %3886 = vst.msk [vmem:[#allocation3 + $0xe0] sm:$0xff] %vm1741_vm5, %v3850_v14  ;;  %v3851_v41 = vadd.f32 %v3794_v27, %v3412_v56  ;;  %v3921_v17 = vld [vmem:[#allocation3 + $0xd8] sm:$0xff] }
 0x255   : > { %v4485_v35 = vadd.f32 %v8448_v51, %v3912_v47  ;;  %v4388_v31 = vpop.f32.mrb[73].mxu0  ;;  %3889 = vst.msk [vmem:[#allocation3 + $0xf8] sm:$0xff] %vm1741_vm5, %v3853_v29  ;;  %v3919_v14 = vld [vmem:[#allocation3 + $0xc8] sm:$0xff]  ;;  %v4545_v29 = vld [vmem:[#allocation3 + $0x30] sm:$0xff]  ;;  %v4543_v47 = vld [vmem:[#allocation3 + $0x20] sm:$0xff] }
 0x256   : > { %v4483_v59 = vadd.f32 %v4388_v31, %v3910_v7  ;;  %v8449_v43 = vpop.f32.mrb[74].mxu0  ;;  %3887 = vst.msk [vmem:[#allocation3 + $0xe8] sm:$0xff] %vm1741_vm5, %v3851_v41 }
 0x257   : > { %4521 = vst.msk [vmem:[#allocation3 + $0x90] sm:$0xff] %vm1741_vm5, %v4485_v35  ;;  %v4486_v0 = vadd.f32 %v8449_v43, %v3913_v15  ;;  %v4391_v12 = vpop.f32.mrb[75].mxu0  ;;  %v4546_v35 = vld [vmem:[#allocation3 + $0x38] sm:$0xff] }
 0x258   : > { %4519 = vst.msk [vmem:[#allocation3 + $0x80] sm:$0xff] %vm1741_vm5, %v4483_v59  ;;  %v4484_v3 = vadd.f32 %v4391_v12, %v3911_v57  ;;  %v8426_v21 = vpop.f32.mrb[84].mxu1  ;;  %v4544_v59 = vld [vmem:[#allocation3 + $0x28] sm:$0xff] }
 0x259   : > { %4522 = vst.msk [vmem:[#allocation3 + $0x98] sm:$0xff] %vm1741_vm5, %v4486_v0  ;;  %v3856_v48 = vadd.f32 %v8426_v21, %v3417_v1  ;;  %v3807_v45 = vpop.f32.mrb[85].mxu1 }
 0x25a   : > { %4520 = vst.msk [vmem:[#allocation3 + $0x88] sm:$0xff] %vm1741_vm5, %v4484_v3  ;;  %v3854_v22 = vadd.f32 %v3807_v45, %v3415_v38  ;;  %v8427_v42 = vpop.f32.mrb[86].mxu1  ;;  %v3924_v43 = vld [vmem:[#allocation3 + $0xf0] sm:$0xff] }
 0x25b   : > { %3892 = vst.msk [vmem:[#allocation3 + $0x110] sm:$0xff] %vm1741_vm5, %v3856_v48  ;;  %v3857_v32 = vadd.f32 %v8427_v42, %v3418_v10  ;;  %v3810_v40 = vpop.f32.mrb[87].mxu1  ;;  %v3922_v3 = vld [vmem:[#allocation3 + $0xe0] sm:$0xff] }
 0x25c   : > { %v8452_v49 = vpop.f32.mrb[76].mxu0  ;;  %3890 = vst.msk [vmem:[#allocation3 + $0x100] sm:$0xff] %vm1741_vm5, %v3854_v22  ;;  %v3855_v16 = vadd.f32 %v3810_v40, %v3416_v23  ;;  %v3925_v48 = vld [vmem:[#allocation3 + $0xf8] sm:$0xff] }
 0x25d   : > { %v4489_v44 = vadd.f32 %v8452_v49, %v3916_v20  ;;  %v4404_v33 = vpop.f32.mrb[77].mxu0  ;;  %3893 = vst.msk [vmem:[#allocation3 + $0x118] sm:$0xff] %vm1741_vm5, %v3857_v32  ;;  %v3923_v22 = vld [vmem:[#allocation3 + $0xe8] sm:$0xff]  ;;  %v4549_v32 = vld [vmem:[#allocation3 + $0x50] sm:$0xff]  ;;  %v4547_v20 = vld [vmem:[#allocation3 + $0x40] sm:$0xff] }
 0x25e   : > { %v4487_v26 = vadd.f32 %v4404_v33, %v3914_v11  ;;  %v8453_v30 = vpop.f32.mrb[78].mxu0  ;;  %3891 = vst.msk [vmem:[#allocation3 + $0x108] sm:$0xff] %vm1741_vm5, %v3855_v16 }
 0x25f   : > { %4525 = vst.msk [vmem:[#allocation3 + $0xb0] sm:$0xff] %vm1741_vm5, %v4489_v44  ;;  %v4490_v54 = vadd.f32 %v8453_v30, %v3917_v39  ;;  %v4407_v53 = vpop.f32.mrb[79].mxu0  ;;  %v4550_v44 = vld [vmem:[#allocation3 + $0x58] sm:$0xff] }
 0x260   : > { %4523 = vst.msk [vmem:[#allocation3 + $0xa0] sm:$0xff] %vm1741_vm5, %v4487_v26  ;;  %v4488_v13 = vadd.f32 %v4407_v53, %v3915_v5  ;;  %v8470_v8 = vpop.f32.mrb[88].mxu1  ;;  %v4548_v26 = vld [vmem:[#allocation3 + $0x48] sm:$0xff] }
 0x261   : > { %4526 = vst.msk [vmem:[#allocation3 + $0xb8] sm:$0xff] %vm1741_vm5, %v4490_v54  ;;  %v4981_v24 = vadd.f32 %v8470_v8, %v4541_v60  ;;  %v4836_v50 = vpop.f32.mrb[89].mxu1 }
 0x262   : > { %4524 = vst.msk [vmem:[#allocation3 + $0xa8] sm:$0xff] %vm1741_vm5, %v4488_v13  ;;  %v4979_v55 = vadd.f32 %v4836_v50, %v4539_v9  ;;  %v8471_v36 = vpop.f32.mrb[90].mxu1  ;;  %v3928_v30 = vld [vmem:[#allocation3 + $0x110] sm:$0xff] }
 0x263   : > { %5017 = vst.msk [vmem:[#allocation3 + $0x10] sm:$0xff] %vm1741_vm5, %v4981_v24  ;;  %v4982_v18 = vadd.f32 %v8471_v36, %v4542_v6  ;;  %v4839_v46 = vpop.f32.mrb[91].mxu1  ;;  %v3926_v13 = vld [vmem:[#allocation3 + $0x100] sm:$0xff] }
 0x264   : > { %v8456_v25 = vpop.f32.mrb[80].mxu0  ;;  %5015 = vst.msk [vmem:[#allocation3] sm:$0xff] %vm1741_vm5, %v4979_v55  ;;  %v4980_v61 = vadd.f32 %v4839_v46, %v4540_v34  ;;  %v3929_v24 = vld [vmem:[#allocation3 + $0x118] sm:$0xff] }
 0x265   : > { %v4493_v19 = vadd.f32 %v8456_v25, %v3920_v4  ;;  %v4420_v62 = vpop.f32.mrb[81].mxu0  ;;  %5018 = vst.msk [vmem:[#allocation3 + $0x18] sm:$0xff] %vm1741_vm5, %v4982_v18  ;;  %v3927_v55 = vld [vmem:[#allocation3 + $0x108] sm:$0xff]  ;;  %v4553_v18 = vld [vmem:[#allocation3 + $0x70] sm:$0xff]  ;;  %v4551_v4 = vld [vmem:[#allocation3 + $0x60] sm:$0xff] }
 0x266   : > { %v4491_v2 = vadd.f32 %v4420_v62, %v3918_v58  ;;  %v8457_v37 = vpop.f32.mrb[82].mxu0  ;;  %5016 = vst.msk [vmem:[#allocation3 + $0x8] sm:$0xff] %vm1741_vm5, %v4980_v61 }
 0x267   : > { %4529 = vst.msk [vmem:[#allocation3 + $0xd0] sm:$0xff] %vm1741_vm5, %v4493_v19  ;;  %v4494_v63 = vadd.f32 %v8457_v37, %v3921_v17  ;;  %v4423_v52 = vpop.f32.mrb[83].mxu0  ;;  %v4554_v19 = vld [vmem:[#allocation3 + $0x78] sm:$0xff] }
 0x268   : > { %4527 = vst.msk [vmem:[#allocation3 + $0xc0] sm:$0xff] %vm1741_vm5, %v4491_v2  ;;  %v4492_v28 = vadd.f32 %v4423_v52, %v3919_v14  ;;  %v8474_v56 = vpop.f32.mrb[92].mxu1  ;;  %v4552_v2 = vld [vmem:[#allocation3 + $0x68] sm:$0xff] }
 0x269   : > { %4530 = vst.msk [vmem:[#allocation3 + $0xd8] sm:$0xff] %vm1741_vm5, %v4494_v63  ;;  %v4985_v27 = vadd.f32 %v8474_v56, %v4545_v29  ;;  %v4852_v51 = vpop.f32.mrb[93].mxu1 }
 0x26a   : > { %4528 = vst.msk [vmem:[#allocation3 + $0xc8] sm:$0xff] %vm1741_vm5, %v4492_v28  ;;  %v4983_v41 = vadd.f32 %v4852_v51, %v4543_v47  ;;  %v8475_v7 = vpop.f32.mrb[94].mxu1  ;;  %v5053_v37 = vld [vmem:[#allocation3 + $0x10] sm:$0xff] }
 0x26b   : > { %5021 = vst.msk [vmem:[#allocation3 + $0x30] sm:$0xff] %vm1741_vm5, %v4985_v27  ;;  %v4986_v31 = vadd.f32 %v8475_v7, %v4546_v35  ;;  %v4855_v15 = vpop.f32.mrb[95].mxu1  ;;  %v5051_v28 = vld [vmem:[#allocation3] sm:$0xff] }
 0x26c   : > { %v8460_v0 = vpop.f32.mrb[84].mxu0  ;;  %5019 = vst.msk [vmem:[#allocation3 + $0x20] sm:$0xff] %vm1741_vm5, %v4983_v41  ;;  %v4984_v57 = vadd.f32 %v4855_v15, %v4544_v59  ;;  %v5054_v27 = vld [vmem:[#allocation3 + $0x18] sm:$0xff] }
 0x26d   : > { %v4497_v12 = vadd.f32 %v8460_v0, %v3924_v43  ;;  %v4436_v1 = vpop.f32.mrb[85].mxu0  ;;  %5022 = vst.msk [vmem:[#allocation3 + $0x38] sm:$0xff] %vm1741_vm5, %v4986_v31  ;;  %v5052_v41 = vld [vmem:[#allocation3 + $0x8] sm:$0xff]  ;;  %v4557_v31 = vld [vmem:[#allocation3 + $0x90] sm:$0xff]  ;;  %v4555_v43 = vld [vmem:[#allocation3 + $0x80] sm:$0xff] }
 0x26e   : > { %v4495_v21 = vadd.f32 %v4436_v1, %v3922_v3  ;;  %v8461_v38 = vpop.f32.mrb[86].mxu0  ;;  %5020 = vst.msk [vmem:[#allocation3 + $0x28] sm:$0xff] %vm1741_vm5, %v4984_v57 }
 0x26f   : > { %4533 = vst.msk [vmem:[#allocation3 + $0xf0] sm:$0xff] %vm1741_vm5, %v4497_v12  ;;  %v4498_v45 = vadd.f32 %v8461_v38, %v3925_v48  ;;  %v4439_v10 = vpop.f32.mrb[87].mxu0  ;;  %v4558_v12 = vld [vmem:[#allocation3 + $0x98] sm:$0xff] }
 0x270   : > { %4531 = vst.msk [vmem:[#allocation3 + $0xe0] sm:$0xff] %vm1741_vm5, %v4495_v21  ;;  %v4496_v42 = vadd.f32 %v4439_v10, %v3923_v22  ;;  %v8478_v23 = vpop.f32.mrb[96].mxu1  ;;  %v4556_v21 = vld [vmem:[#allocation3 + $0x88] sm:$0xff] }
 0x271   : > { %4534 = vst.msk [vmem:[#allocation3 + $0xf8] sm:$0xff] %vm1741_vm5, %v4498_v45  ;;  %v4989_v40 = vadd.f32 %v8478_v23, %v4549_v32  ;;  %v4868_v49 = vpop.f32.mrb[97].mxu1 }
 0x272   : > { %4532 = vst.msk [vmem:[#allocation3 + $0xe8] sm:$0xff] %vm1741_vm5, %v4496_v42  ;;  %v4987_v16 = vadd.f32 %v4868_v49, %v4547_v20  ;;  %v8479_v11 = vpop.f32.mrb[98].mxu1  ;;  %v5057_v38 = vld [vmem:[#allocation3 + $0x30] sm:$0xff] }
 0x273   : > { %5025 = vst.msk [vmem:[#allocation3 + $0x50] sm:$0xff] %vm1741_vm5, %v4989_v40  ;;  %v4990_v33 = vadd.f32 %v8479_v11, %v4550_v44  ;;  %v4871_v39 = vpop.f32.mrb[99].mxu1  ;;  %v5055_v42 = vld [vmem:[#allocation3 + $0x20] sm:$0xff] }
 0x274   : > { %v8464_v54 = vpop.f32.mrb[88].mxu0  ;;  %5023 = vst.msk [vmem:[#allocation3 + $0x40] sm:$0xff] %vm1741_vm5, %v4987_v16  ;;  %v4988_v5 = vadd.f32 %v4871_v39, %v4548_v26  ;;  %v5058_v40 = vld [vmem:[#allocation3 + $0x38] sm:$0xff] }
 0x275   : > { %v4501_v53 = vadd.f32 %v8464_v54, %v3928_v30  ;;  %v4452_v60 = vpop.f32.mrb[89].mxu0  ;;  %5026 = vst.msk [vmem:[#allocation3 + $0x58] sm:$0xff] %vm1741_vm5, %v4990_v33  ;;  %v5056_v16 = vld [vmem:[#allocation3 + $0x28] sm:$0xff]  ;;  %v4561_v33 = vld [vmem:[#allocation3 + $0xb0] sm:$0xff]  ;;  %v4559_v30 = vld [vmem:[#allocation3 + $0xa0] sm:$0xff] }
 0x276   : > { %v4499_v8 = vadd.f32 %v4452_v60, %v3926_v13  ;;  %v8465_v9 = vpop.f32.mrb[90].mxu0  ;;  %5024 = vst.msk [vmem:[#allocation3 + $0x48] sm:$0xff] %vm1741_vm5, %v4988_v5 }
 0x277   : > { %4537 = vst.msk [vmem:[#allocation3 + $0x110] sm:$0xff] %vm1741_vm5, %v4501_v53  ;;  %v4502_v50 = vadd.f32 %v8465_v9, %v3929_v24  ;;  %v4455_v6 = vpop.f32.mrb[91].mxu0  ;;  %v4562_v53 = vld [vmem:[#allocation3 + $0xb8] sm:$0xff] }
 0x278   : > { %4535 = vst.msk [vmem:[#allocation3 + $0x100] sm:$0xff] %vm1741_vm5, %v4499_v8  ;;  %v4500_v36 = vadd.f32 %v4455_v6, %v3927_v55  ;;  %v8482_v34 = vpop.f32.mrb[100].mxu1  ;;  %v4560_v8 = vld [vmem:[#allocation3 + $0xa8] sm:$0xff] }
 0x279   : > { %4538 = vst.msk [vmem:[#allocation3 + $0x118] sm:$0xff] %vm1741_vm5, %v4502_v50  ;;  %v4993_v46 = vadd.f32 %v8482_v34, %v4553_v18  ;;  %v4884_v25 = vpop.f32.mrb[101].mxu1 }
 0x27a   : > { %4536 = vst.msk [vmem:[#allocation3 + $0x108] sm:$0xff] %vm1741_vm5, %v4500_v36  ;;  %v4991_v61 = vadd.f32 %v4884_v25, %v4551_v4  ;;  %v8483_v58 = vpop.f32.mrb[102].mxu1  ;;  %v5061_v9 = vld [vmem:[#allocation3 + $0x50] sm:$0xff] }
 0x27b   : > { %5029 = vst.msk [vmem:[#allocation3 + $0x70] sm:$0xff] %vm1741_vm5, %v4993_v46  ;;  %v4994_v62 = vadd.f32 %v8483_v58, %v4554_v19  ;;  %v4887_v17 = vpop.f32.mrb[103].mxu1  ;;  %v5059_v36 = vld [vmem:[#allocation3 + $0x40] sm:$0xff] }
 0x27c   : > { %v8508_v63 = vpop.f32.mrb[92].mxu0  ;;  %5027 = vst.msk [vmem:[#allocation3 + $0x60] sm:$0xff] %vm1741_vm5, %v4991_v61  ;;  %v4992_v14 = vadd.f32 %v4887_v17, %v4552_v2  ;;  %v5062_v46 = vld [vmem:[#allocation3 + $0x58] sm:$0xff] }
 0x27d   : > { %v5492_v52 = vadd.f32 %v8508_v63, %v5053_v37  ;;  %v5347_v29 = vpop.f32.mrb[93].mxu0  ;;  %5030 = vst.msk [vmem:[#allocation3 + $0x78] sm:$0xff] %vm1741_vm5, %v4994_v62  ;;  %v5060_v61 = vld [vmem:[#allocation3 + $0x48] sm:$0xff]  ;;  %v4565_v62 = vld [vmem:[#allocation3 + $0xd0] sm:$0xff]  ;;  %v4563_v37 = vld [vmem:[#allocation3 + $0xc0] sm:$0xff] }
 0x27e   : > { %v5490_v56 = vadd.f32 %v5347_v29, %v5051_v28  ;;  %v8509_v47 = vpop.f32.mrb[94].mxu0  ;;  %5028 = vst.msk [vmem:[#allocation3 + $0x68] sm:$0xff] %vm1741_vm5, %v4992_v14 }
 0x27f   : > { %5528 = vst.msk [vmem:[#allocation3 + $0x10] sm:$0xff] %vm1741_vm5, %v5492_v52  ;;  %v5493_v51 = vadd.f32 %v8509_v47, %v5054_v27  ;;  %v5350_v35 = vpop.f32.mrb[95].mxu0  ;;  %v4566_v52 = vld [vmem:[#allocation3 + $0xd8] sm:$0xff] }
 0x280   : > { %5526 = vst.msk [vmem:[#allocation3] sm:$0xff] %vm1741_vm5, %v5490_v56  ;;  %v5491_v7 = vadd.f32 %v5350_v35, %v5052_v41  ;;  %v8486_v59 = vpop.f32.mrb[104].mxu1  ;;  %v4564_v56 = vld [vmem:[#allocation3 + $0xc8] sm:$0xff] }
 0x281   : > { %5529 = vst.msk [vmem:[#allocation3 + $0x18] sm:$0xff] %vm1741_vm5, %v5493_v51  ;;  %v4997_v15 = vadd.f32 %v8486_v59, %v4557_v31  ;;  %v4900_v0 = vpop.f32.mrb[105].mxu1 }
 0x282   : > { %5527 = vst.msk [vmem:[#allocation3 + $0x8] sm:$0xff] %vm1741_vm5, %v5491_v7  ;;  %v4995_v57 = vadd.f32 %v4900_v0, %v4555_v43  ;;  %v8487_v3 = vpop.f32.mrb[106].mxu1  ;;  %v5065_v47 = vld [vmem:[#allocation3 + $0x70] sm:$0xff] }
 0x283   : > { %5033 = vst.msk [vmem:[#allocation3 + $0x90] sm:$0xff] %vm1741_vm5, %v4997_v15  ;;  %v4998_v1 = vadd.f32 %v8487_v3, %v4558_v12  ;;  %v4903_v48 = vpop.f32.mrb[107].mxu1  ;;  %v5063_v7 = vld [vmem:[#allocation3 + $0x60] sm:$0xff] }
 0x284   : > { %v8512_v45 = vpop.f32.mrb[96].mxu0  ;;  %5031 = vst.msk [vmem:[#allocation3 + $0x80] sm:$0xff] %vm1741_vm5, %v4995_v57  ;;  %v4996_v22 = vadd.f32 %v4903_v48, %v4556_v21  ;;  %v5066_v15 = vld [vmem:[#allocation3 + $0x78] sm:$0xff] }
 0x285   : > { %v5496_v10 = vadd.f32 %v8512_v45, %v5057_v38  ;;  %v5363_v32 = vpop.f32.mrb[97].mxu0  ;;  %5034 = vst.msk [vmem:[#allocation3 + $0x98] sm:$0xff] %vm1741_vm5, %v4998_v1  ;;  %v5064_v57 = vld [vmem:[#allocation3 + $0x68] sm:$0xff]  ;;  %v4569_v1 = vld [vmem:[#allocation3 + $0xf0] sm:$0xff]  ;;  %v4567_v38 = vld [vmem:[#allocation3 + $0xe0] sm:$0xff] }
 0x286   : > { %v5494_v23 = vadd.f32 %v5363_v32, %v5055_v42  ;;  %v8513_v20 = vpop.f32.mrb[98].mxu0  ;;  %5032 = vst.msk [vmem:[#allocation3 + $0x88] sm:$0xff] %vm1741_vm5, %v4996_v22 }
 0x287   : > { %5532 = vst.msk [vmem:[#allocation3 + $0x30] sm:$0xff] %vm1741_vm5, %v5496_v10  ;;  %v5497_v49 = vadd.f32 %v8513_v20, %v5058_v40  ;;  %v5366_v44 = vpop.f32.mrb[99].mxu0  ;;  %v4570_v10 = vld [vmem:[#allocation3 + $0xf8] sm:$0xff] }
 0x288   : > { %5530 = vst.msk [vmem:[#allocation3 + $0x20] sm:$0xff] %vm1741_vm5, %v5494_v23  ;;  %v5495_v11 = vadd.f32 %v5366_v44, %v5056_v16  ;;  %v8490_v26 = vpop.f32.mrb[108].mxu1  ;;  %v4568_v23 = vld [vmem:[#allocation3 + $0xe8] sm:$0xff] }
 0x289   : > { %5533 = vst.msk [vmem:[#allocation3 + $0x38] sm:$0xff] %vm1741_vm5, %v5497_v49  ;;  %v5001_v39 = vadd.f32 %v8490_v26, %v4561_v33  ;;  %v4916_v54 = vpop.f32.mrb[109].mxu1 }
 0x28a   : > { %5531 = vst.msk [vmem:[#allocation3 + $0x28] sm:$0xff] %vm1741_vm5, %v5495_v11  ;;  %v4999_v5 = vadd.f32 %v4916_v54, %v4559_v30  ;;  %v8491_v13 = vpop.f32.mrb[110].mxu1  ;;  %v5069_v20 = vld [vmem:[#allocation3 + $0x90] sm:$0xff] }
 0x28b   : > { %5037 = vst.msk [vmem:[#allocation3 + $0xb0] sm:$0xff] %vm1741_vm5, %v5001_v39  ;;  %v5002_v60 = vadd.f32 %v8491_v13, %v4562_v53  ;;  %v4919_v24 = vpop.f32.mrb[111].mxu1  ;;  %v5067_v11 = vld [vmem:[#allocation3 + $0x80] sm:$0xff] }
 0x28c   : > { %v8516_v50 = vpop.f32.mrb[100].mxu0  ;;  %5035 = vst.msk [vmem:[#allocation3 + $0xa0] sm:$0xff] %vm1741_vm5, %v4999_v5  ;;  %v5000_v55 = vadd.f32 %v4919_v24, %v4560_v8  ;;  %v5070_v39 = vld [vmem:[#allocation3 + $0x98] sm:$0xff] }
 0x28d   : > { %v5500_v6 = vadd.f32 %v8516_v50, %v5061_v9  ;;  %v5379_v18 = vpop.f32.mrb[101].mxu0  ;;  %5038 = vst.msk [vmem:[#allocation3 + $0xb8] sm:$0xff] %vm1741_vm5, %v5002_v60  ;;  %v5068_v5 = vld [vmem:[#allocation3 + $0x88] sm:$0xff]  ;;  %v4573_v60 = vld [vmem:[#allocation3 + $0x110] sm:$0xff]  ;;  %v4571_v9 = vld [vmem:[#allocation3 + $0x100] sm:$0xff] }
 0x28e   : > { %v5498_v34 = vadd.f32 %v5379_v18, %v5059_v36  ;;  %v8517_v4 = vpop.f32.mrb[102].mxu0  ;;  %5036 = vst.msk [vmem:[#allocation3 + $0xa8] sm:$0xff] %vm1741_vm5, %v5000_v55 }
 0x28f   : > { %5536 = vst.msk [vmem:[#allocation3 + $0x50] sm:$0xff] %vm1741_vm5, %v5500_v6  ;;  %v5501_v25 = vadd.f32 %v8517_v4, %v5062_v46  ;;  %v5382_v19 = vpop.f32.mrb[103].mxu0  ;;  %v4574_v6 = vld [vmem:[#allocation3 + $0x118] sm:$0xff] }
 0x290   : > { %5534 = vst.msk [vmem:[#allocation3 + $0x40] sm:$0xff] %vm1741_vm5, %v5498_v34  ;;  %v5499_v58 = vadd.f32 %v5382_v19, %v5060_v61  ;;  %v8494_v2 = vpop.f32.mrb[112].mxu1  ;;  %v4572_v34 = vld [vmem:[#allocation3 + $0x108] sm:$0xff] }
 0x291   : > { %5537 = vst.msk [vmem:[#allocation3 + $0x58] sm:$0xff] %vm1741_vm5, %v5501_v25  ;;  %v5005_v17 = vadd.f32 %v8494_v2, %v4565_v62  ;;  %v4932_v63 = vpop.f32.mrb[113].mxu1 }
 0x292   : > { %5535 = vst.msk [vmem:[#allocation3 + $0x48] sm:$0xff] %vm1741_vm5, %v5499_v58  ;;  %v5003_v14 = vadd.f32 %v4932_v63, %v4563_v37  ;;  %v8495_v28 = vpop.f32.mrb[114].mxu1  ;;  %v5073_v4 = vld [vmem:[#allocation3 + $0xb0] sm:$0xff] }
 0x293   : > { %5041 = vst.msk [vmem:[#allocation3 + $0xd0] sm:$0xff] %vm1741_vm5, %v5005_v17  ;;  %v5006_v29 = vadd.f32 %v8495_v28, %v4566_v52  ;;  %v4935_v27 = vpop.f32.mrb[115].mxu1  ;;  %v5071_v58 = vld [vmem:[#allocation3 + $0xa0] sm:$0xff] }
 0x294   : > { %v8520_v51 = vpop.f32.mrb[104].mxu0  ;;  %5039 = vst.msk [vmem:[#allocation3 + $0xc0] sm:$0xff] %vm1741_vm5, %v5003_v14  ;;  %v5004_v41 = vadd.f32 %v4935_v27, %v4564_v56  ;;  %v5074_v17 = vld [vmem:[#allocation3 + $0xb8] sm:$0xff] }
 0x295   : > { %v5504_v35 = vadd.f32 %v8520_v51, %v5065_v47  ;;  %v5395_v31 = vpop.f32.mrb[105].mxu0  ;;  %5042 = vst.msk [vmem:[#allocation3 + $0xd8] sm:$0xff] %vm1741_vm5, %v5006_v29  ;;  %v5072_v14 = vld [vmem:[#allocation3 + $0xa8] sm:$0xff]  ;;  %v5564_v29 = vld [vmem:[#allocation3 + $0x10] sm:$0xff]  ;;  %v5562_v47 = vld [vmem:[#allocation3] sm:$0xff] }
 0x296   : > { %v5502_v59 = vadd.f32 %v5395_v31, %v5063_v7  ;;  %v8521_v43 = vpop.f32.mrb[106].mxu0  ;;  %5040 = vst.msk [vmem:[#allocation3 + $0xc8] sm:$0xff] %vm1741_vm5, %v5004_v41 }
 0x297   : > { %5540 = vst.msk [vmem:[#allocation3 + $0x70] sm:$0xff] %vm1741_vm5, %v5504_v35  ;;  %v5505_v0 = vadd.f32 %v8521_v43, %v5066_v15  ;;  %v5398_v12 = vpop.f32.mrb[107].mxu0  ;;  %v5565_v35 = vld [vmem:[#allocation3 + $0x18] sm:$0xff] }
 0x298   : > { %5538 = vst.msk [vmem:[#allocation3 + $0x60] sm:$0xff] %vm1741_vm5, %v5502_v59  ;;  %v5503_v3 = vadd.f32 %v5398_v12, %v5064_v57  ;;  %v8498_v21 = vpop.f32.mrb[116].mxu1  ;;  %v5563_v59 = vld [vmem:[#allocation3 + $0x8] sm:$0xff]  ;;  %v11027_v12 = vpop.permute.xlu1 %6798 }
 0x299   : > { %5541 = vst.msk [vmem:[#allocation3 + $0x78] sm:$0xff] %vm1741_vm5, %v5505_v0  ;;  %v5009_v48 = vadd.f32 %v8498_v21, %v4569_v1  ;;  %v4948_v45 = vpop.f32.mrb[117].mxu1 }
 0x29a   : > { %5539 = vst.msk [vmem:[#allocation3 + $0x68] sm:$0xff] %vm1741_vm5, %v5503_v3  ;;  %v5007_v22 = vadd.f32 %v4948_v45, %v4567_v38  ;;  %v8499_v42 = vpop.f32.mrb[118].mxu1  ;;  %v5077_v43 = vld [vmem:[#allocation3 + $0xd0] sm:$0xff] }
 0x29b   : > { %5045 = vst.msk [vmem:[#allocation3 + $0xf0] sm:$0xff] %vm1741_vm5, %v5009_v48  ;;  %v5010_v32 = vadd.f32 %v8499_v42, %v4570_v10  ;;  %v4951_v40 = vpop.f32.mrb[119].mxu1  ;;  %v5075_v1 = vld [vmem:[#allocation3 + $0xc0] sm:$0xff]  ;;  %v11030_v48 = vpop.permute.xlu0 %6793 }
 0x29c   : > { %v8524_v49 = vpop.f32.mrb[108].mxu0  ;;  %5043 = vst.msk [vmem:[#allocation3 + $0xe0] sm:$0xff] %vm1741_vm5, %v5007_v22  ;;  %v5008_v16 = vadd.f32 %v4951_v40, %v4568_v23  ;;  %v5078_v45 = vld [vmem:[#allocation3 + $0xd8] sm:$0xff]  ;;  %v5568_v40 = vld [vmem:[#allocation3 + $0x30] sm:$0xff] }
 0x29d   : > { %v5508_v44 = vadd.f32 %v8524_v49, %v5069_v20  ;;  %v5411_v33 = vpop.f32.mrb[109].mxu0  ;;  %5046 = vst.msk [vmem:[#allocation3 + $0xf8] sm:$0xff] %vm1741_vm5, %v5010_v32  ;;  %v5076_v42 = vld [vmem:[#allocation3 + $0xc8] sm:$0xff] }
 0x29e   : > { %v5506_v26 = vadd.f32 %v5411_v33, %v5067_v11  ;;  %v8525_v30 = vpop.f32.mrb[110].mxu0  ;;  %5044 = vst.msk [vmem:[#allocation3 + $0xe8] sm:$0xff] %vm1741_vm5, %v5008_v16  ;;  %v5566_v16 = vld [vmem:[#allocation3 + $0x20] sm:$0xff]  ;;  %v5569_v33 = vld [vmem:[#allocation3 + $0x38] sm:$0xff] }
 0x29f   : > { %5544 = vst.msk [vmem:[#allocation3 + $0x90] sm:$0xff] %vm1741_vm5, %v5508_v44  ;;  %v5509_v54 = vadd.f32 %v8525_v30, %v5070_v39  ;;  %v5414_v53 = vpop.f32.mrb[111].mxu0  ;;  %v11037_v39 = vpop.permute.xlu1 %6808 }
 0x2a0   : > { %5542 = vst.msk [vmem:[#allocation3 + $0x80] sm:$0xff] %vm1741_vm5, %v5506_v26  ;;  %v5507_v13 = vadd.f32 %v5414_v53, %v5068_v5  ;;  %v8502_v8 = vpop.f32.mrb[120].mxu1  ;;  %v11040_v53 = vpop.permute.xlu0 %6803 }
 0x2a1   : > { %5545 = vst.msk [vmem:[#allocation3 + $0x98] sm:$0xff] %vm1741_vm5, %v5509_v54  ;;  %v5013_v24 = vadd.f32 %v8502_v8, %v4573_v60  ;;  %v4964_v50 = vpop.f32.mrb[121].mxu1  ;;  %v5567_v54 = vld [vmem:[#allocation3 + $0x28] sm:$0xff] }
 0x2a2   : > { %5543 = vst.msk [vmem:[#allocation3 + $0x88] sm:$0xff] %vm1741_vm5, %v5507_v13  ;;  %v5011_v55 = vadd.f32 %v4964_v50, %v4571_v9  ;;  %v8503_v36 = vpop.f32.mrb[122].mxu1  ;;  %v5081_v13 = vld [vmem:[#allocation3 + $0xf0] sm:$0xff] }
 0x2a3   : > { %5049 = vst.msk [vmem:[#allocation3 + $0x110] sm:$0xff] %vm1741_vm5, %v5013_v24  ;;  %v5014_v18 = vadd.f32 %v8503_v36, %v4574_v6  ;;  %v4967_v46 = vpop.f32.mrb[123].mxu1  ;;  %v5079_v9 = vld [vmem:[#allocation3 + $0xe0] sm:$0xff] }
 0x2a4   : > { %v8528_v25 = vpop.f32.mrb[112].mxu0  ;;  %5047 = vst.msk [vmem:[#allocation3 + $0x100] sm:$0xff] %vm1741_vm5, %v5011_v55  ;;  %v5012_v61 = vadd.f32 %v4967_v46, %v4572_v34  ;;  %v5082_v6 = vld [vmem:[#allocation3 + $0xf8] sm:$0xff] }
 0x2a5   : > { %v5512_v19 = vadd.f32 %v8528_v25, %v5073_v4  ;;  %v5427_v62 = vpop.f32.mrb[113].mxu0  ;;  %5050 = vst.msk [vmem:[#allocation3 + $0x118] sm:$0xff] %vm1741_vm5, %v5014_v18  ;;  %v5080_v34 = vld [vmem:[#allocation3 + $0xe8] sm:$0xff]  ;;  %v5572_v25 = vld [vmem:[#allocation3 + $0x50] sm:$0xff] }
 0x2a6   : > { %v5510_v2 = vadd.f32 %v5427_v62, %v5071_v58  ;;  %v8529_v37 = vpop.f32.mrb[114].mxu0  ;;  %5048 = vst.msk [vmem:[#allocation3 + $0x108] sm:$0xff] %vm1741_vm5, %v5012_v61  ;;  %v5570_v62 = vld [vmem:[#allocation3 + $0x40] sm:$0xff] }
 0x2a7   : > { %5548 = vst.msk [vmem:[#allocation3 + $0xb0] sm:$0xff] %vm1741_vm5, %v5512_v19  ;;  %v5513_v63 = vadd.f32 %v8529_v37, %v5074_v17  ;;  %v5430_v52 = vpop.f32.mrb[115].mxu0  ;;  %v11047_v19 = vpop.permute.xlu1 %6818 }
 0x2a8   : > { %5546 = vst.msk [vmem:[#allocation3 + $0xa0] sm:$0xff] %vm1741_vm5, %v5510_v2  ;;  %v5511_v28 = vadd.f32 %v5430_v52, %v5072_v14  ;;  %v8546_v56 = vpop.f32.mrb[124].mxu1  ;;  %v11050_v17 = vpop.permute.xlu0 %6813 }
 0x2a9   : > { %5549 = vst.msk [vmem:[#allocation3 + $0xb8] sm:$0xff] %vm1741_vm5, %v5513_v63  ;;  %v6137_v27 = vadd.f32 %v8546_v56, %v5564_v29  ;;  %v5992_v51 = vpop.f32.mrb[125].mxu1  ;;  %v5573_v63 = vld [vmem:[#allocation3 + $0x58] sm:$0xff] }
 0x2aa   : > { %5547 = vst.msk [vmem:[#allocation3 + $0xa8] sm:$0xff] %vm1741_vm5, %v5511_v28  ;;  %v6135_v41 = vadd.f32 %v5992_v51, %v5562_v47  ;;  %v8547_v7 = vpop.f32.mrb[126].mxu1  ;;  %v5571_v28 = vld [vmem:[#allocation3 + $0x48] sm:$0xff]  ;;  %v5085_v56 = vld [vmem:[#allocation3 + $0x110] sm:$0xff] }
 0x2ab   : > { %6173 = vst.msk [vmem:[#allocation3 + $0x10] sm:$0xff] %vm1741_vm5, %v6137_v27  ;;  %v6138_v31 = vadd.f32 %v8547_v7, %v5565_v35  ;;  %v5995_v15 = vpop.f32.mrb[127].mxu1 }
 0x2ac   : > { %v8532_v0 = vpop.f32.mrb[116].mxu0  ;;  %6171 = vst.msk [vmem:[#allocation3] sm:$0xff] %vm1741_vm5, %v6135_v41  ;;  %v6136_v57 = vadd.f32 %v5995_v15, %v5563_v59  ;;  %v5083_v41 = vld [vmem:[#allocation3 + $0x100] sm:$0xff]  ;;  %v11057_v15 = vpop.permute.xlu1 %6828 }
 0x2ad   : > { %v5516_v3 = vadd.f32 %v8532_v0, %v5077_v43  ;;  %v5443_v21 = vpop.f32.mrb[117].mxu0  ;;  %6174 = vst.msk [vmem:[#allocation3 + $0x18] sm:$0xff] %vm1741_vm5, %v6138_v31  ;;  %v5086_v31 = vld [vmem:[#allocation3 + $0x118] sm:$0xff]  ;;  %v5084_v0 = vld [vmem:[#allocation3 + $0x108] sm:$0xff] }
 0x2ae   : > { %v5514_v38 = vadd.f32 %v5443_v21, %v5075_v1  ;;  %v8533_v22 = vpop.f32.mrb[118].mxu0  ;;  %6172 = vst.msk [vmem:[#allocation3 + $0x8] sm:$0xff] %vm1741_vm5, %v6136_v57  ;;  %v5576_v21 = vld [vmem:[#allocation3 + $0x70] sm:$0xff] }
 0x2af   : > { %5552 = vst.msk [vmem:[#allocation3 + $0xd0] sm:$0xff] %vm1741_vm5, %v5516_v3  ;;  %v5517_v10 = vadd.f32 %v8533_v22, %v5078_v45  ;;  %v5446_v32 = vpop.f32.mrb[119].mxu0  ;;  %v11060_v3 = vpop.permute.xlu0 %6823  ;;  %v5574_v22 = vld [vmem:[#allocation3 + $0x60] sm:$0xff] }
 0x2b0   : > { %5550 = vst.msk [vmem:[#allocation3 + $0xc0] sm:$0xff] %vm1741_vm5, %v5514_v38  ;;  %v5515_v23 = vadd.f32 %v5446_v32, %v5076_v42  ;;  %v8550_v20 = vpop.f32.mrb[128].mxu1  ;;  %v5577_v32 = vld [vmem:[#allocation3 + $0x78] sm:$0xff] }
 0x2b1   : > { %5553 = vst.msk [vmem:[#allocation3 + $0xd8] sm:$0xff] %vm1741_vm5, %v5517_v10  ;;  %v6141_v49 = vadd.f32 %v8550_v20, %v5568_v40  ;;  %v6008_v44 = vpop.f32.mrb[129].mxu1  ;;  %v5575_v20 = vld [vmem:[#allocation3 + $0x68] sm:$0xff] }
 0x2b2   : > { %5551 = vst.msk [vmem:[#allocation3 + $0xc8] sm:$0xff] %vm1741_vm5, %v5515_v23  ;;  %v6139_v11 = vadd.f32 %v6008_v44, %v5566_v16  ;;  %v8551_v26 = vpop.f32.mrb[130].mxu1  ;;  %v6209_v16 = vld [vmem:[#allocation3 + $0x10] sm:$0xff] }
 0x2b3   : > { %6177 = vst.msk [vmem:[#allocation3 + $0x30] sm:$0xff] %vm1741_vm5, %v6141_v49  ;;  %v6142_v30 = vadd.f32 %v8551_v26, %v5569_v33  ;;  %v6011_v5 = vpop.f32.mrb[131].mxu1  ;;  %v11067_v33 = vpop.permute.xlu1 %6838 }
 0x2b4   : > { %v8536_v60 = vpop.f32.mrb[120].mxu0  ;;  %6175 = vst.msk [vmem:[#allocation3 + $0x20] sm:$0xff] %vm1741_vm5, %v6139_v11  ;;  %v6140_v8 = vadd.f32 %v6011_v5, %v5567_v54  ;;  %v11070_v5 = vpop.permute.xlu0 %6833 }
 0x2b5   : > { %v5520_v24 = vadd.f32 %v8536_v60, %v5081_v13  ;;  %v5459_v50 = vpop.f32.mrb[121].mxu0  ;;  %6178 = vst.msk [vmem:[#allocation3 + $0x38] sm:$0xff] %vm1741_vm5, %v6142_v30  ;;  %v6207_v30 = vld [vmem:[#allocation3] sm:$0xff]  ;;  %v6210_v60 = vld [vmem:[#allocation3 + $0x18] sm:$0xff] }
 0x2b6   : > { %v5518_v55 = vadd.f32 %v5459_v50, %v5079_v9  ;;  %v8537_v36 = vpop.f32.mrb[122].mxu0  ;;  %6176 = vst.msk [vmem:[#allocation3 + $0x28] sm:$0xff] %vm1741_vm5, %v6140_v8  ;;  %v6208_v9 = vld [vmem:[#allocation3 + $0x8] sm:$0xff] }
 0x2b7   : > { %5556 = vst.msk [vmem:[#allocation3 + $0xf0] sm:$0xff] %vm1741_vm5, %v5520_v24  ;;  %v5521_v18 = vadd.f32 %v8537_v36, %v5082_v6  ;;  %v5462_v46 = vpop.f32.mrb[123].mxu0  ;;  %v5580_v6 = vld [vmem:[#allocation3 + $0x90] sm:$0xff] }
 0x2b8   : > { %5554 = vst.msk [vmem:[#allocation3 + $0xe0] sm:$0xff] %vm1741_vm5, %v5518_v55  ;;  %v5519_v4 = vadd.f32 %v5462_v46, %v5080_v34  ;;  %v8554_v61 = vpop.f32.mrb[132].mxu1  ;;  %v5578_v34 = vld [vmem:[#allocation3 + $0x80] sm:$0xff] }
 0x2b9   : > { %5557 = vst.msk [vmem:[#allocation3 + $0xf8] sm:$0xff] %vm1741_vm5, %v5521_v18  ;;  %v6145_v58 = vadd.f32 %v8554_v61, %v5572_v25  ;;  %v6024_v2 = vpop.f32.mrb[133].mxu1  ;;  %v5581_v25 = vld [vmem:[#allocation3 + $0x98] sm:$0xff] }
 0x2ba   : > { %5555 = vst.msk [vmem:[#allocation3 + $0xe8] sm:$0xff] %vm1741_vm5, %v5519_v4  ;;  %v6143_v37 = vadd.f32 %v6024_v2, %v5570_v62  ;;  %v8555_v14 = vpop.f32.mrb[134].mxu1  ;;  %v5579_v2 = vld [vmem:[#allocation3 + $0x88] sm:$0xff] }
 0x2bb   : > { %6181 = vst.msk [vmem:[#allocation3 + $0x50] sm:$0xff] %vm1741_vm5, %v6145_v58  ;;  %v6146_v52 = vadd.f32 %v8555_v14, %v5573_v63  ;;  %v6027_v29 = vpop.f32.mrb[135].mxu1  ;;  %v11077_v58 = vpop.permute.xlu1 %6848  ;;  %v6213_v14 = vld [vmem:[#allocation3 + $0x30] sm:$0xff] }
 0x2bc   : > { %v8540_v27 = vpop.f32.mrb[124].mxu0  ;;  %6179 = vst.msk [vmem:[#allocation3 + $0x40] sm:$0xff] %vm1741_vm5, %v6143_v37  ;;  %v6144_v47 = vadd.f32 %v6027_v29, %v5571_v28  ;;  %v11080_v63 = vpop.permute.xlu0 %6843 }
 0x2bd   : > { %v5524_v51 = vadd.f32 %v8540_v27, %v5085_v56  ;;  %v5475_v35 = vpop.f32.mrb[125].mxu0  ;;  %6182 = vst.msk [vmem:[#allocation3 + $0x58] sm:$0xff] %vm1741_vm5, %v6146_v52  ;;  %v6211_v56 = vld [vmem:[#allocation3 + $0x20] sm:$0xff] }
 0x2be   : > { %v5522_v7 = vadd.f32 %v5475_v35, %v5083_v41  ;;  %v8541_v59 = vpop.f32.mrb[126].mxu0  ;;  %6180 = vst.msk [vmem:[#allocation3 + $0x48] sm:$0xff] %vm1741_vm5, %v6144_v47  ;;  %v6214_v41 = vld [vmem:[#allocation3 + $0x38] sm:$0xff] }
 0x2bf   : > { %5560 = vst.msk [vmem:[#allocation3 + $0x110] sm:$0xff] %vm1741_vm5, %v5524_v51  ;;  %v5525_v43 = vadd.f32 %v8541_v59, %v5086_v31  ;;  %v5478_v57 = vpop.f32.mrb[127].mxu0 }
 0x2c0   : > { %5558 = vst.msk [vmem:[#allocation3 + $0x100] sm:$0xff] %vm1741_vm5, %v5522_v7  ;;  %v5523_v1 = vadd.f32 %v5478_v57, %v5084_v0  ;;  %v8558_v38 = vpop.f32.mrb[136].mxu1 }
 0x2c1   : > { %5561 = vst.msk [vmem:[#allocation3 + $0x118] sm:$0xff] %vm1741_vm5, %v5525_v43  ;;  %v6149_v45 = vadd.f32 %v8558_v38, %v5576_v21  ;;  %v6040_v10 = vpop.f32.mrb[137].mxu1  ;;  %v6212_v43 = vld [vmem:[#allocation3 + $0x28] sm:$0xff]  ;;  %v11096_v38 = vpop.permute.xlu1 %6858 }
 0x2c2   : > { %5559 = vst.msk [vmem:[#allocation3 + $0x108] sm:$0xff] %vm1741_vm5, %v5523_v1  ;;  %v6147_v42 = vadd.f32 %v6040_v10, %v5574_v22  ;;  %v8559_v23 = vpop.f32.mrb[138].mxu1 }
 0x2c3   : > { %6185 = vst.msk [vmem:[#allocation3 + $0x70] sm:$0xff] %vm1741_vm5, %v6149_v45  ;;  %v6150_v40 = vadd.f32 %v8559_v23, %v5577_v32  ;;  %v6043_v49 = vpop.f32.mrb[139].mxu1  ;;  %v11100_v32 = vpop.permute.xlu0 %6853 }
 0x2c4   : > { %v8584_v44 = vpop.f32.mrb[128].mxu0  ;;  %6183 = vst.msk [vmem:[#allocation3 + $0x60] sm:$0xff] %vm1741_vm5, %v6147_v42  ;;  %v6148_v11 = vadd.f32 %v6043_v49, %v5575_v20 }
 0x2c5   : > { %v6649_v26 = vadd.f32 %v8584_v44, %v6209_v16  ;;  %v6504_v54 = vpop.f32.mrb[129].mxu0  ;;  %6186 = vst.msk [vmem:[#allocation3 + $0x78] sm:$0xff] %vm1741_vm5, %v6150_v40 }
 0x2c6   : > { %v6647_v13 = vadd.f32 %v6504_v54, %v6207_v30  ;;  %v8585_v8 = vpop.f32.mrb[130].mxu0  ;;  %6184 = vst.msk [vmem:[#allocation3 + $0x68] sm:$0xff] %vm1741_vm5, %v6148_v11 }
 0x2c7   : > { %6685 = vst.msk [vmem:[#allocation3 + $0x10] sm:$0xff] %vm1741_vm5, %v6649_v26  ;;  %v6650_v24 = vadd.f32 %v8585_v8, %v6210_v60  ;;  %v6507_v50 = vpop.f32.mrb[131].mxu0  ;;  %v5584_v8 = vld [vmem:[#allocation3 + $0xb0] sm:$0xff] }
 0x2c8   : > { %6683 = vst.msk [vmem:[#allocation3] sm:$0xff] %vm1741_vm5, %v6647_v13  ;;  %v6648_v55 = vadd.f32 %v6507_v50, %v6208_v9  ;;  %v8562_v36 = vpop.f32.mrb[140].mxu1  ;;  %v6217_v13 = vld [vmem:[#allocation3 + $0x50] sm:$0xff] }
 0x2c9   : > { %6686 = vst.msk [vmem:[#allocation3 + $0x18] sm:$0xff] %vm1741_vm5, %v6650_v24  ;;  %v6153_v18 = vadd.f32 %v8562_v36, %v5580_v6  ;;  %v6056_v46 = vpop.f32.mrb[141].mxu1 }
 0x2ca   : > { %6684 = vst.msk [vmem:[#allocation3 + $0x8] sm:$0xff] %vm1741_vm5, %v6648_v55  ;;  %v6151_v4 = vadd.f32 %v6056_v46, %v5578_v34  ;;  %v8563_v61 = vpop.f32.mrb[142].mxu1  ;;  %v6215_v55 = vld [vmem:[#allocation3 + $0x40] sm:$0xff]  ;;  %v5585_v34 = vld [vmem:[#allocation3 + $0xb8] sm:$0xff] }
 0x2cb   : > { %6189 = vst.msk [vmem:[#allocation3 + $0x90] sm:$0xff] %vm1741_vm5, %v6153_v18  ;;  %v6154_v62 = vadd.f32 %v8563_v61, %v5581_v25  ;;  %v6059_v37 = vpop.f32.mrb[143].mxu1  ;;  %v5582_v18 = vld [vmem:[#allocation3 + $0xa0] sm:$0xff]  ;;  %v6218_v61 = vld [vmem:[#allocation3 + $0x58] sm:$0xff] }
 0x2cc   : > { %v8588_v52 = vpop.f32.mrb[132].mxu0  ;;  %6187 = vst.msk [vmem:[#allocation3 + $0x80] sm:$0xff] %vm1741_vm5, %v6151_v4  ;;  %v6152_v28 = vadd.f32 %v6059_v37, %v5579_v2 }
 0x2cd   : > { %v6653_v29 = vadd.f32 %v8588_v52, %v6213_v14  ;;  %v6520_v27 = vpop.f32.mrb[133].mxu0  ;;  %6190 = vst.msk [vmem:[#allocation3 + $0x98] sm:$0xff] %vm1741_vm5, %v6154_v62  ;;  %v11117_v14 = vpop.permute.xlu1 %6868 }
 0x2ce   : > { %v6721_v47 = vld [vmem:[#allocation3 + $0x10] sm:$0xff]  ;;  %v6651_v51 = vadd.f32 %v6520_v27, %v6211_v56  ;;  %v8589_v35 = vpop.f32.mrb[134].mxu0  ;;  %6188 = vst.msk [vmem:[#allocation3 + $0x88] sm:$0xff] %vm1741_vm5, %v6152_v28 }
 0x2cf   : > { %v6973_v7 = vmul.f32 %v11040_v53, %v6721_v47  ;;  %v6719_v31 = vld [vmem:[#allocation3] sm:$0xff]  ;;  %6689 = vst.msk [vmem:[#allocation3 + $0x30] sm:$0xff] %vm1741_vm5, %v6653_v29  ;;  %v6654_v59 = vadd.f32 %v8589_v35, %v6214_v41  ;;  %v6523_v0 = vpop.f32.mrb[135].mxu0  ;;  %v6216_v47 = vld [vmem:[#allocation3 + $0x48] sm:$0xff]  ;;  %v11122_v35 = vpop.permute.xlu0 %6863 }
 0x2d0   : > { %v6971_v57 = vmul.f32 %v11030_v48, %v6719_v31  ;;  %v6722_v1 = vld [vmem:[#allocation3 + $0x18] sm:$0xff]  ;;  %6687 = vst.msk [vmem:[#allocation3 + $0x20] sm:$0xff] %vm1741_vm5, %v6651_v51  ;;  %v6652_v21 = vadd.f32 %v6523_v0, %v6212_v43  ;;  %v8566_v53 = vpop.f32.mrb[144].mxu1  ;;  %v5583_v41 = vld [vmem:[#allocation3 + $0xa8] sm:$0xff] }
 0x2d1   : > { %v7982_v45 = vpack.c.bf16 %v6973_v7, %v6973_v7  ;;  %v6974_v22 = vmul.f32 %v11037_v39, %v6722_v1  ;;  %v6720_v10 = vld [vmem:[#allocation3 + $0x8] sm:$0xff]  ;;  %6690 = vst.msk [vmem:[#allocation3 + $0x38] sm:$0xff] %vm1741_vm5, %v6654_v59  ;;  %v6072_v42 = vpop.f32.mrb[145].mxu1  ;;  %v7190_v49 = vsel %vm1741_vm5, %v6973_v7, 0.0  ;;  %v7268_v39 = vmul.f32 %v6973_v7, %v6973_v7 }
 0x2d2   : > { %v7980_v23 = vpack.c.bf16 %v6971_v57, %v6971_v57  ;;  %v7266_v48 = vmul.f32 %v6971_v57, %v6971_v57  ;;  %v6972_v40 = vmul.f32 %v11027_v12, %v6720_v10  ;;  %6688 = vst.msk [vmem:[#allocation3 + $0x28] sm:$0xff] %vm1741_vm5, %v6652_v21  ;;  %v8567_v20 = vpop.f32.mrb[146].mxu1  ;;  %v7187_v16 = vsel %vm1741_vm5, %v6971_v57, 0.0 }
 0x2d3   : > { %7153 = vst.msk [vmem:[%s11092_s20 + $0x8] sm:$0xf] %vm1175_vm0, %v7982_v45  ;;  %v7983_v44 = vpack.c.bf16 %v6974_v22, %v6974_v22  ;;  %v6075_v11 = vpop.f32.mrb[147].mxu1  ;;  %v7269_v26 = vmul.f32 %v6974_v22, %v6974_v22  ;;  %v6157_v36 = vadd.f32 %v8566_v53, %v5584_v8  ;;  %v6155_v2 = vadd.f32 %v6072_v42, %v5582_v18 }
 0x2d4   : > { %7151 = vst.msk [vmem:[%s11092_s20] sm:$0xf] %vm1175_vm0, %v7980_v23  ;;  %v7981_v30 = vpack.c.bf16 %v6972_v40, %v6972_v40  ;;  %v7188_v12 = vsel %vm1741_vm5, %v6972_v40, 0.0  ;;  %v7267_v54 = vmul.f32 %v6972_v40, %v6972_v40  ;;  %v8592_v60 = vpop.f32.mrb[136].mxu0  ;;  %v7302_v24 = vsel %vm1741_vm5, %v7266_v48, 0.0 }
 0x2d5   : > { %7154 = vst.msk [vmem:[%s11092_s20 + $0xc] sm:$0xf] %vm1175_vm0, %v7983_v44  ;;  %v7189_v9 = vadd.f32 %v7188_v12, %v7187_v16  ;;  %v6657_v50 = vadd.f32 %v8592_v60, %v6217_v13  ;;  %v6536_v6 = vpop.f32.mrb[137].mxu0  ;;  %v6158_v37 = vadd.f32 %v8567_v20, %v5585_v34  ;;  %v7305_v7 = vsel %vm1741_vm5, %v7268_v39, 0.0  ;;  %v5588_v39 = vld [vmem:[#allocation3 + $0xd0] sm:$0xff]  ;;  %v5586_v16 = vld [vmem:[#allocation3 + $0xc0] sm:$0xff]  ;;  %v11146_v13 = vpop.permute.xlu1 %6878 }
 0x2d6   : > { %7152 = vst.msk [vmem:[%s11092_s20 + $0x4] sm:$0xf] %vm1175_vm0, %v7981_v30  ;;  %v7303_v46 = vsel %vm1741_vm5, %v7267_v54, 0.0  ;;  %v6725_v4 = vld [vmem:[#allocation3 + $0x30] sm:$0xff]  ;;  %v6655_v25 = vadd.f32 %v6536_v6, %v6215_v55  ;;  %v8593_v62 = vpop.f32.mrb[138].mxu0  ;;  %v7192_v57 = vsel %vm1741_vm5, %v6974_v22, 0.0 }
 0x2d7   : > { %v7191_v52 = vadd.f32 %v7190_v49, %v7189_v9  ;;  %v7304_v28 = vadd.f32 %v7303_v46, %v7302_v24  ;;  %v6977_v29 = vmul.f32 %v11060_v3, %v6725_v4  ;;  %v6723_v56 = vld [vmem:[#allocation3 + $0x20] sm:$0xff]  ;;  %6693 = vst.msk [vmem:[#allocation3 + $0x50] sm:$0xff] %vm1741_vm5, %v6657_v50  ;;  %v6658_v27 = vadd.f32 %v8593_v62, %v6218_v61  ;;  %v6539_v51 = vpop.f32.mrb[139].mxu0  ;;  %v6221_v24 = vld [vmem:[#allocation3 + $0x70] sm:$0xff]  ;;  %v11149_v50 = vpop.permute.xlu0 %6873 }
 0x2d8   : > { %6193 = vst.msk [vmem:[#allocation3 + $0xb0] sm:$0xff] %vm1741_vm5, %v6157_v36  ;;  %v6975_v31 = vmul.f32 %v11050_v17, %v6723_v56  ;;  %v6726_v59 = vld [vmem:[#allocation3 + $0x38] sm:$0xff]  ;;  %6691 = vst.msk [vmem:[#allocation3 + $0x40] sm:$0xff] %vm1741_vm5, %v6655_v25  ;;  %v6656_v43 = vadd.f32 %v6539_v51, %v6216_v47  ;;  %v6156_v3 = vadd.f32 %v6075_v11, %v5583_v41  ;;  %v8570_v0 = vpop.f32.mrb[148].mxu1  ;;  %v7307_v1 = vsel %vm1741_vm5, %v7269_v26, 0.0  ;;  %v6219_v46 = vld [vmem:[#allocation3 + $0x60] sm:$0xff] }
 0x2d9   : > { %6191 = vst.msk [vmem:[#allocation3 + $0xa0] sm:$0xff] %vm1741_vm5, %v6155_v2  ;;  %6194 = vst.msk [vmem:[#allocation3 + $0xb8] sm:$0xff] %vm1741_vm5, %v6158_v37  ;;  %v7306_v21 = vadd.f32 %v7305_v7, %v7304_v28  ;;  %v7986_v53 = vpack.c.bf16 %v6977_v29, %v6977_v29  ;;  %v6724_v45 = vld [vmem:[#allocation3 + $0x28] sm:$0xff]  ;;  %v6088_v17 = vpop.f32.mrb[149].mxu1  ;;  %v7193_v42 = vadd.f32 %v7192_v57, %v7191_v52  ;;  %v7198_v60 = vsel %vm1741_vm5, %v6977_v29, 0.0  ;;  %v6222_v52 = vld [vmem:[#allocation3 + $0x78] sm:$0xff] }
 0x2da   : > { %6694 = vst.msk [vmem:[#allocation3 + $0x58] sm:$0xff] %vm1741_vm5, %v6658_v27  ;;  %v7984_v10 = vpack.c.bf16 %v6975_v31, %v6975_v31  ;;  %v7194_v23 = vsel %vm1741_vm5, %v6975_v31, 0.0  ;;  %v7270_v48 = vmul.f32 %v6975_v31, %v6975_v31  ;;  %6692 = vst.msk [vmem:[#allocation3 + $0x48] sm:$0xff] %vm1741_vm5, %v6656_v43  ;;  %v11135_v40 = vpop.f32.mrb[150].mxu1  ;;  %v6978_v20 = vmul.f32 %v11057_v15, %v6726_v59  ;;  %v6220_v28 = vld [vmem:[#allocation3 + $0x68] sm:$0xff] }
 0x2db   : > { %6192 = vst.msk [vmem:[#allocation3 + $0xa8] sm:$0xff] %vm1741_vm5, %v6156_v3  ;;  %v7308_v22 = vadd.f32 %v7307_v1, %v7306_v21  ;;  %v6976_v49 = vmul.f32 %v11047_v19, %v6724_v45  ;;  %v11141_v44 = vpop.f32.mrb[151].mxu1  ;;  %v7195_v11 = vadd.f32 %v7194_v23, %v7193_v42  ;;  %v6161_v12 = vadd.f32 %v8570_v0, %v5588_v39  ;;  %v11174_v45 = vpop.permute.xlu1 %6888 }
 0x2dc   : > { %7157 = vst.msk [vmem:[%s11092_s20 + $0x18] sm:$0xf] %vm1175_vm0, %v7986_v53  ;;  %7155 = vst.msk [vmem:[%s11092_s20 + $0x10] sm:$0xf] %vm1175_vm0, %v7984_v10  ;;  %v7309_v26 = vsel %vm1741_vm5, %v7270_v48, 0.0  ;;  %v8596_v30 = vpop.f32.mrb[140].mxu0  ;;  %v6159_v54 = vadd.f32 %v6088_v17, %v5586_v16  ;;  %v7272_v15 = vmul.f32 %v6977_v29, %v6977_v29  ;;  %v7987_v19 = vpack.c.bf16 %v6978_v20, %v6978_v20 }
 0x2dd   : > { %v7310_v8 = vadd.f32 %v7309_v26, %v7308_v22  ;;  %v6552_v9 = vpop.f32.mrb[141].mxu0  ;;  %v7985_v55 = vpack.c.bf16 %v6976_v49, %v6976_v49  ;;  %v7196_v6 = vsel %vm1741_vm5, %v6976_v49, 0.0  ;;  %v7271_v36 = vmul.f32 %v6976_v49, %v6976_v49  ;;  %6197 = vst.msk [vmem:[#allocation3 + $0xd0] sm:$0xff] %vm1741_vm5, %v6161_v12  ;;  %v5589_v48 = vld [vmem:[#allocation3 + $0xd8] sm:$0xff]  ;;  %v5587_v22 = vld [vmem:[#allocation3 + $0xc8] sm:$0xff]  ;;  %v11182_v49 = vpop.permute.xlu0 %6883 }
 0x2de   : > { %v6729_v18 = vld [vmem:[#allocation3 + $0x50] sm:$0xff]  ;;  %v6661_v34 = vadd.f32 %v8596_v30, %v6221_v24  ;;  %v8597_v4 = vpop.f32.mrb[142].mxu0  ;;  %6195 = vst.msk [vmem:[#allocation3 + $0xc0] sm:$0xff] %vm1741_vm5, %v6159_v54  ;;  %v7273_v25 = vmul.f32 %v6978_v20, %v6978_v20  ;;  %v7197_v61 = vadd.f32 %v7196_v6, %v7195_v11  ;;  %v6659_v37 = vadd.f32 %v6552_v9, %v6219_v46  ;;  %v6226_v46 = vld [vmem:[#allocation3 + $0x98] sm:$0xff] }
 0x2df   : > { %7158 = vst.msk [vmem:[%s11092_s20 + $0x1c] sm:$0xf] %vm1175_vm0, %v7987_v19  ;;  %v6981_v62 = vmul.f32 %v11080_v63, %v6729_v18  ;;  %v6727_v2 = vld [vmem:[#allocation3 + $0x40] sm:$0xff]  ;;  %v6555_v29 = vpop.f32.mrb[143].mxu0  ;;  %7156 = vst.msk [vmem:[%s11092_s20 + $0x14] sm:$0xf] %vm1175_vm0, %v7985_v55  ;;  %v6662_v51 = vadd.f32 %v8597_v4, %v6222_v52  ;;  %v6162_v26 = vadd.f32 %v11135_v40, %v5589_v48 }
 0x2e0   : > { %v7311_v56 = vsel %vm1741_vm5, %v7271_v36, 0.0  ;;  %v6979_v27 = vmul.f32 %v11070_v5, %v6727_v2  ;;  %6697 = vst.msk [vmem:[#allocation3 + $0x70] sm:$0xff] %vm1741_vm5, %v6661_v34  ;;  %v6660_v41 = vadd.f32 %v6555_v29, %v6220_v28  ;;  %v11162_v7 = vpop.f32.mrb[152].mxu1  ;;  %v7313_v63 = vsel %vm1741_vm5, %v7272_v15, 0.0  ;;  %6695 = vst.msk [vmem:[#allocation3 + $0x60] sm:$0xff] %vm1741_vm5, %v6659_v37  ;;  %v6225_v9 = vld [vmem:[#allocation3 + $0x90] sm:$0xff]  ;;  %v11202_v29 = vpop.permute.xlu1 %6898 }
 0x2e1   : > { %v6730_v47 = vld [vmem:[#allocation3 + $0x58] sm:$0xff]  ;;  %v7199_v31 = vadd.f32 %v7198_v60, %v7197_v61  ;;  %v7312_v59 = vadd.f32 %v7311_v56, %v7310_v8  ;;  %v7990_v43 = vpack.c.bf16 %v6981_v62, %v6981_v62  ;;  %v6728_v3 = vld [vmem:[#allocation3 + $0x48] sm:$0xff]  ;;  %v11166_v0 = vpop.f32.mrb[153].mxu1  ;;  %v7200_v5 = vsel %vm1741_vm5, %v6978_v20, 0.0  ;;  %6698 = vst.msk [vmem:[#allocation3 + $0x78] sm:$0xff] %vm1741_vm5, %v6662_v51  ;;  %v6223_v55 = vld [vmem:[#allocation3 + $0x80] sm:$0xff] }
 0x2e2   : > { %v7988_v57 = vpack.c.bf16 %v6979_v27, %v6979_v27  ;;  %v7202_v1 = vsel %vm1741_vm5, %v6979_v27, 0.0  ;;  %v7274_v21 = vmul.f32 %v6979_v27, %v6979_v27  ;;  %6696 = vst.msk [vmem:[#allocation3 + $0x68] sm:$0xff] %vm1741_vm5, %v6660_v41  ;;  %v11172_v53 = vpop.f32.mrb[154].mxu1  ;;  %v6982_v42 = vmul.f32 %v11077_v58, %v6730_v47  ;;  %6198 = vst.msk [vmem:[#allocation3 + $0xd8] sm:$0xff] %vm1741_vm5, %v6162_v26  ;;  %v6224_v52 = vld [vmem:[#allocation3 + $0x88] sm:$0xff] }
 0x2e3   : > { %v7314_v17 = vadd.f32 %v7313_v63, %v7312_v59  ;;  %7161 = vst.msk [vmem:[%s11092_s20 + $0x28] sm:$0xf] %vm1175_vm0, %v7990_v43  ;;  %v7201_v10 = vadd.f32 %v7200_v5, %v7199_v31  ;;  %v6980_v23 = vmul.f32 %v11067_v33, %v6728_v3  ;;  %v11180_v20 = vpop.f32.mrb[155].mxu1  ;;  %v7315_v39 = vsel %vm1741_vm5, %v7273_v25, 0.0 }
 0x2e4   : > { %7159 = vst.msk [vmem:[%s11092_s20 + $0x20] sm:$0xf] %vm1175_vm0, %v7988_v57  ;;  %v7317_v16 = vsel %vm1741_vm5, %v7274_v21, 0.0  ;;  %v8600_v11 = vpop.f32.mrb[144].mxu0  ;;  %v6160_v30 = vadd.f32 %v11141_v44, %v5587_v22  ;;  %v7206_v33 = vsel %vm1741_vm5, %v6981_v62, 0.0  ;;  %v7991_v54 = vpack.c.bf16 %v6982_v42, %v6982_v42 }
 0x2e5   : > { %v7203_v58 = vadd.f32 %v7202_v1, %v7201_v10  ;;  %v7316_v12 = vadd.f32 %v7315_v39, %v7314_v17  ;;  %v6568_v60 = vpop.f32.mrb[145].mxu0  ;;  %v7276_v15 = vmul.f32 %v6981_v62, %v6981_v62  ;;  %v7989_v8 = vpack.c.bf16 %v6980_v23, %v6980_v23 }
 0x2e6   : > { %v7204_v19 = vsel %vm1741_vm5, %v6980_v23, 0.0  ;;  %v7275_v24 = vmul.f32 %v6980_v23, %v6980_v23  ;;  %v8601_v6 = vpop.f32.mrb[146].mxu0  ;;  %6196 = vst.msk [vmem:[#allocation3 + $0xc8] sm:$0xff] %vm1741_vm5, %v6160_v30  ;;  %v6665_v18 = vadd.f32 %v8600_v11, %v6225_v9  ;;  %v6663_v34 = vadd.f32 %v6568_v60, %v6223_v55  ;;  %v6229_v30 = vld [vmem:[#allocation3 + $0xb0] sm:$0xff] }
 0x2e7   : > { %v7318_v40 = vadd.f32 %v7317_v16, %v7316_v12  ;;  %7162 = vst.msk [vmem:[%s11092_s20 + $0x2c] sm:$0xf] %vm1175_vm0, %v7991_v54  ;;  %v7205_v44 = vadd.f32 %v7204_v19, %v7203_v58  ;;  %v6733_v36 = vld [vmem:[#allocation3 + $0x70] sm:$0xff]  ;;  %v6571_v4 = vpop.f32.mrb[147].mxu0  ;;  %v7277_v25 = vmul.f32 %v6982_v42, %v6982_v42  ;;  %7160 = vst.msk [vmem:[%s11092_s20 + $0x24] sm:$0xf] %vm1175_vm0, %v7989_v8 }
 0x2e8   : > { %v7319_v61 = vsel %vm1741_vm5, %v7275_v24, 0.0  ;;  %v6985_v62 = vmul.f32 %v11122_v35, %v6733_v36  ;;  %v6731_v2 = vld [vmem:[#allocation3 + $0x60] sm:$0xff]  ;;  %v6666_v37 = vadd.f32 %v8601_v6, %v6226_v46  ;;  %v11200_v28 = vpop.f32.mrb[156].mxu1  ;;  %v6734_v51 = vld [vmem:[#allocation3 + $0x78] sm:$0xff]  ;;  %6701 = vst.msk [vmem:[#allocation3 + $0x90] sm:$0xff] %vm1741_vm5, %v6665_v18  ;;  %6699 = vst.msk [vmem:[#allocation3 + $0x80] sm:$0xff] %vm1741_vm5, %v6663_v34  ;;  %v6664_v41 = vadd.f32 %v6571_v4, %v6224_v52  ;;  %v11209_v35 = vpop.permute.xlu0 %6893 }
 0x2e9   : > { %v7207_v56 = vadd.f32 %v7206_v33, %v7205_v44  ;;  %v7320_v27 = vadd.f32 %v7319_v61, %v7318_v40  ;;  %v6983_v47 = vmul.f32 %v11100_v32, %v6731_v2  ;;  %v11207_v63 = vpop.f32.mrb[157].mxu1  ;;  %v7321_v31 = vsel %vm1741_vm5, %v7276_v15, 0.0  ;;  %v6732_v32 = vld [vmem:[#allocation3 + $0x68] sm:$0xff]  ;;  %v6227_v33 = vld [vmem:[#allocation3 + $0xa0] sm:$0xff]  ;;  %v5592_v12 = vld [vmem:[#allocation3 + $0xf0] sm:$0xff]  ;;  %v11236_v24 = vpop.permute.xlu1 %6908 }
 0x2ea   : > { %v7208_v59 = vsel %vm1741_vm5, %v6982_v42, 0.0  ;;  %v7994_v43 = vpack.c.bf16 %v6985_v62, %v6985_v62  ;;  %v11214_v3 = vmul.f32 %v11117_v14, %v6734_v51  ;;  %6702 = vst.msk [vmem:[#allocation3 + $0x98] sm:$0xff] %vm1741_vm5, %v6666_v37  ;;  %v11217_v5 = vpop.f32.mrb[158].mxu1  ;;  %6700 = vst.msk [vmem:[#allocation3 + $0x88] sm:$0xff] %vm1741_vm5, %v6664_v41  ;;  %v7323_v42 = vsel %vm1741_vm5, %v7277_v25, 0.0  ;;  %v6230_v40 = vld [vmem:[#allocation3 + $0xb8] sm:$0xff] }
 0x2eb   : > { %v7322_v57 = vadd.f32 %v7321_v31, %v7320_v27  ;;  %v7992_v1 = vpack.c.bf16 %v6983_v47, %v6983_v47  ;;  %v7209_v21 = vadd.f32 %v7208_v59, %v7207_v56  ;;  %v7210_v17 = vsel %vm1741_vm5, %v6983_v47, 0.0  ;;  %v11221_v10 = vpop.f32.mrb[159].mxu1  ;;  %v6228_v44 = vld [vmem:[#allocation3 + $0xa8] sm:$0xff]  ;;  %v5590_v18 = vld [vmem:[#allocation3 + $0xe0] sm:$0xff]  ;;  %v5593_v2 = vld [vmem:[#allocation3 + $0xf8] sm:$0xff] }
 0x2ec   : > { %7165 = vst.msk [vmem:[%s11092_s20 + $0x38] sm:$0xf] %vm1175_vm0, %v7994_v43  ;;  %v7214_v14 = vsel %vm1741_vm5, %v6985_v62, 0.0  ;;  %v7278_v23 = vmul.f32 %v6983_v47, %v6983_v47  ;;  %v7995_v48 = vpack.c.bf16 %v11214_v3, %v11214_v3  ;;  %v8604_v22 = vpop.f32.mrb[148].mxu0  ;;  %v7280_v39 = vmul.f32 %v6985_v62, %v6985_v62  ;;  %v11241_v34 = vpop.permute.xlu0 %6903  ;;  %v5591_v51 = vld [vmem:[#allocation3 + $0xe8] sm:$0xff] }
 0x2ed   : > { %7163 = vst.msk [vmem:[%s11092_s20 + $0x30] sm:$0xf] %vm1175_vm0, %v7992_v1  ;;  %v7211_v16 = vadd.f32 %v7210_v17, %v7209_v21  ;;  %v7324_v11 = vadd.f32 %v7323_v42, %v7322_v57  ;;  %v6984_v26 = vmul.f32 %v11096_v38, %v6732_v32  ;;  %v6584_v58 = vpop.f32.mrb[149].mxu0  ;;  %v6669_v60 = vadd.f32 %v8604_v22, %v6229_v30  ;;  %v11266_v17 = vpop.permute.xlu1 %6918  ;;  %v6233_v30 = vld [vmem:[#allocation3 + $0xd0] sm:$0xff] }
 0x2ee   : > { %v7325_v54 = vsel %vm1741_vm5, %v7278_v23, 0.0  ;;  %7166 = vst.msk [vmem:[%s11092_s20 + $0x3c] sm:$0xf] %vm1175_vm0, %v7995_v48  ;;  %v6667_v15 = vadd.f32 %v6584_v58, %v6227_v33  ;;  %v8605_v8 = vpop.f32.mrb[150].mxu0  ;;  %v6165_v19 = vadd.f32 %v11162_v7, %v5592_v12  ;;  %v7281_v55 = vmul.f32 %v11214_v3, %v11214_v3  ;;  %v6231_v33 = vld [vmem:[#allocation3 + $0xc0] sm:$0xff]  ;;  %v6234_v58 = vld [vmem:[#allocation3 + $0xd8] sm:$0xff] }
 0x2ef   : > { %v7326_v9 = vadd.f32 %v7325_v54, %v7324_v11  ;;  %v7993_v38 = vpack.c.bf16 %v6984_v26, %v6984_v26  ;;  %v7212_v6 = vsel %vm1741_vm5, %v6984_v26, 0.0  ;;  %v6587_v36 = vpop.f32.mrb[151].mxu0  ;;  %v7279_v4 = vmul.f32 %v6984_v26, %v6984_v26  ;;  %v6737_v25 = vld [vmem:[#allocation3 + $0x90] sm:$0xff]  ;;  %v6735_v7 = vld [vmem:[#allocation3 + $0x80] sm:$0xff]  ;;  %6705 = vst.msk [vmem:[#allocation3 + $0xb0] sm:$0xff] %vm1741_vm5, %v6669_v60 }
 0x2f0   : > { %v7213_v46 = vadd.f32 %v7212_v6, %v7211_v16  ;;  %6703 = vst.msk [vmem:[#allocation3 + $0xa0] sm:$0xff] %vm1741_vm5, %v6667_v15  ;;  %v6670_v61 = vadd.f32 %v8605_v8, %v6230_v40  ;;  %v6668_v62 = vadd.f32 %v6587_v36, %v6228_v44  ;;  %6201 = vst.msk [vmem:[#allocation3 + $0xf0] sm:$0xff] %vm1741_vm5, %v6165_v19  ;;  %v11274_v22 = vpop.permute.xlu0 %6913 }
 0x2f1   : > { %7164 = vst.msk [vmem:[%s11092_s20 + $0x34] sm:$0xf] %vm1175_vm0, %v7993_v38  ;;  %v6989_v37 = vmul.f32 %v11182_v49, %v6737_v25  ;;  %v6987_v52 = vmul.f32 %v11149_v50, %v6735_v7  ;;  %v6738_v56 = vld [vmem:[#allocation3 + $0x98] sm:$0xff]  ;;  %v6163_v27 = vadd.f32 %v11166_v0, %v5590_v18  ;;  %v6166_v47 = vadd.f32 %v11172_v53, %v5593_v2  ;;  %v6736_v32 = vld [vmem:[#allocation3 + $0x88] sm:$0xff] }
 0x2f2   : > { %v7215_v41 = vadd.f32 %v7214_v14, %v7213_v46  ;;  %v7327_v31 = vsel %vm1741_vm5, %v7279_v4, 0.0  ;;  %v11254_v59 = vmul.f32 %v11174_v45, %v6738_v56  ;;  %6706 = vst.msk [vmem:[#allocation3 + $0xb8] sm:$0xff] %vm1741_vm5, %v6670_v61  ;;  %6704 = vst.msk [vmem:[#allocation3 + $0xa8] sm:$0xff] %vm1741_vm5, %v6668_v62  ;;  %v6164_v49 = vadd.f32 %v11180_v20, %v5591_v51  ;;  %v6232_v7 = vld [vmem:[#allocation3 + $0xc8] sm:$0xff] }
 0x2f3   : > { %v7329_v50 = vsel %vm1741_vm5, %v7280_v39, 0.0  ;;  %v7216_v0 = vsel %vm1741_vm5, %v11214_v3, 0.0  ;;  %v7328_v53 = vadd.f32 %v7327_v31, %v7326_v9  ;;  %v7998_v43 = vpack.c.bf16 %v6989_v37, %v6989_v37  ;;  %6199 = vst.msk [vmem:[#allocation3 + $0xe0] sm:$0xff] %vm1741_vm5, %v6163_v27  ;;  %6202 = vst.msk [vmem:[#allocation3 + $0xf8] sm:$0xff] %vm1741_vm5, %v6166_v47 }
 0x2f4   : > { %v7996_v45 = vpack.c.bf16 %v6987_v52, %v6987_v52  ;;  %v7217_v57 = vadd.f32 %v7216_v0, %v7215_v41  ;;  %v7218_v1 = vsel %vm1741_vm5, %v6987_v52, 0.0  ;;  %v7282_v21 = vmul.f32 %v6987_v52, %v6987_v52  ;;  %6200 = vst.msk [vmem:[#allocation3 + $0xe8] sm:$0xff] %vm1741_vm5, %v6164_v49  ;;  %v8608_v20 = vpop.f32.mrb[152].mxu0  ;;  %v6924_v47 = vpop.permute.xlu0 %6923 }
 0x2f5   : > { %v7331_v3 = vsel %vm1741_vm5, %v7281_v55, 0.0  ;;  %v7330_v42 = vadd.f32 %v7329_v50, %v7328_v53  ;;  %7169 = vst.msk [vmem:[%s11092_s20 + $0x48] sm:$0xf] %vm1175_vm0, %v7998_v43  ;;  %v7222_v14 = vsel %vm1741_vm5, %v6989_v37, 0.0  ;;  %v7999_v23 = vpack.c.bf16 %v11254_v59, %v11254_v59  ;;  %v6600_v48 = vpop.f32.mrb[153].mxu0 }
 0x2f6   : > { %v7284_v39 = vmul.f32 %v6989_v37, %v6989_v37  ;;  %7167 = vst.msk [vmem:[%s11092_s20 + $0x40] sm:$0xf] %vm1175_vm0, %v7996_v45  ;;  %v7219_v16 = vadd.f32 %v7218_v1, %v7217_v57  ;;  %v7333_v11 = vsel %vm1741_vm5, %v7282_v21, 0.0  ;;  %v6988_v26 = vmul.f32 %v11146_v13, %v6736_v32  ;;  %v8609_v12 = vpop.f32.mrb[154].mxu0  ;;  %v6741_v60 = vld [vmem:[#allocation3 + $0xb0] sm:$0xff] }
 0x2f7   : > { %v7332_v54 = vadd.f32 %v7331_v3, %v7330_v42  ;;  %7170 = vst.msk [vmem:[%s11092_s20 + $0x4c] sm:$0xf] %vm1175_vm0, %v7999_v23  ;;  %v6739_v15 = vld [vmem:[#allocation3 + $0xa0] sm:$0xff]  ;;  %v6673_v8 = vadd.f32 %v8608_v20, %v6233_v30  ;;  %v6671_v19 = vadd.f32 %v6600_v48, %v6231_v33  ;;  %v6674_v9 = vadd.f32 %v8609_v12, %v6234_v58  ;;  %v6603_v55 = vpop.f32.mrb[155].mxu0  ;;  %v5597_v48 = vld [vmem:[#allocation3 + $0x118] sm:$0xff] }
 0x2f8   : > { %v7285_v38 = vmul.f32 %v11254_v59, %v11254_v59  ;;  %v7997_v6 = vpack.c.bf16 %v6988_v26, %v6988_v26  ;;  %v7220_v13 = vsel %vm1741_vm5, %v6988_v26, 0.0  ;;  %v7283_v40 = vmul.f32 %v6988_v26, %v6988_v26  ;;  %v5594_v23 = vld [vmem:[#allocation3 + $0x100] sm:$0xff] }
 0x2f9   : > { %v7334_v44 = vadd.f32 %v7333_v11, %v7332_v54  ;;  %v7221_v36 = vadd.f32 %v7220_v13, %v7219_v16  ;;  %v6993_v18 = vmul.f32 %v11241_v34, %v6741_v60  ;;  %v6991_v46 = vmul.f32 %v11209_v35, %v6739_v15  ;;  %v6742_v4 = vld [vmem:[#allocation3 + $0xb8] sm:$0xff]  ;;  %v6740_v25 = vld [vmem:[#allocation3 + $0xa8] sm:$0xff]  ;;  %6709 = vst.msk [vmem:[#allocation3 + $0xd0] sm:$0xff] %vm1741_vm5, %v6673_v8  ;;  %v6929_v35 = vpop.permute.xlu1 %6928 }
 0x2fa   : > { %6707 = vst.msk [vmem:[#allocation3 + $0xc0] sm:$0xff] %vm1741_vm5, %v6671_v19  ;;  %6710 = vst.msk [vmem:[#allocation3 + $0xd8] sm:$0xff] %vm1741_vm5, %v6674_v9  ;;  %v7335_v61 = vsel %vm1741_vm5, %v7283_v40, 0.0  ;;  %v6994_v62 = vmul.f32 %v11236_v24, %v6742_v4  ;;  %v6992_v2 = vmul.f32 %v11202_v29, %v6740_v25  ;;  %v6672_v34 = vadd.f32 %v6603_v55, %v6232_v7  ;;  %v5595_v19 = vld [vmem:[#allocation3 + $0x108] sm:$0xff]  ;;  %v6237_v9 = vld [vmem:[#allocation3 + $0xf0] sm:$0xff] }
 0x2fb   : > { %7168 = vst.msk [vmem:[%s11092_s20 + $0x44] sm:$0xf] %vm1175_vm0, %v7997_v6  ;;  %v7337_v37 = vsel %vm1741_vm5, %v7284_v39, 0.0  ;;  %v7223_v52 = vadd.f32 %v7222_v14, %v7221_v36  ;;  %v7336_v56 = vadd.f32 %v7335_v61, %v7334_v44  ;;  %v8002_v27 = vpack.c.bf16 %v6993_v18, %v6993_v18  ;;  %v5596_v14 = vld [vmem:[#allocation3 + $0x110] sm:$0xff] }
 0x2fc   : > { %v7224_v51 = vsel %vm1741_vm5, %v11254_v59, 0.0  ;;  %v8000_v41 = vpack.c.bf16 %v6991_v46, %v6991_v46  ;;  %v7226_v31 = vsel %vm1741_vm5, %v6991_v46, 0.0  ;;  %v7286_v49 = vmul.f32 %v6991_v46, %v6991_v46  ;;  %6708 = vst.msk [vmem:[#allocation3 + $0xc8] sm:$0xff] %vm1741_vm5, %v6672_v34  ;;  %v8612_v29 = vpop.f32.mrb[156].mxu0 }
 0x2fd   : > { %v7339_v24 = vsel %vm1741_vm5, %v7285_v38, 0.0  ;;  %v7338_v50 = vadd.f32 %v7337_v37, %v7336_v56  ;;  %7173 = vst.msk [vmem:[%s11092_s20 + $0x58] sm:$0xf] %vm1175_vm0, %v8002_v27  ;;  %v7225_v0 = vadd.f32 %v7224_v51, %v7223_v52  ;;  %v8003_v53 = vpack.c.bf16 %v6994_v62, %v6994_v62  ;;  %v11303_v43 = vpop.f32.mrb[157].mxu0  ;;  %v11320_v55 = vpop.permute.xlu1 %6938  ;;  %v6235_v52 = vld [vmem:[#allocation3 + $0xe0] sm:$0xff]  ;;  %v6238_v56 = vld [vmem:[#allocation3 + $0xf8] sm:$0xff] }
 0x2fe   : > { %v7230_v32 = vsel %vm1741_vm5, %v6993_v18, 0.0  ;;  %v7288_v59 = vmul.f32 %v6993_v18, %v6993_v18  ;;  %7171 = vst.msk [vmem:[%s11092_s20 + $0x50] sm:$0xf] %vm1175_vm0, %v8000_v41  ;;  %v7341_v45 = vsel %vm1741_vm5, %v7286_v49, 0.0  ;;  %v8001_v57 = vpack.c.bf16 %v6992_v2, %v6992_v2  ;;  %v8613_v1 = vpop.f32.mrb[158].mxu0  ;;  %v11322_v38 = vpop.permute.xlu0 %6933 }
 0x2ff   : > { %v7227_v21 = vadd.f32 %v7226_v31, %v7225_v0  ;;  %v7340_v20 = vadd.f32 %v7339_v24, %v7338_v50  ;;  %7174 = vst.msk [vmem:[%s11092_s20 + $0x5c] sm:$0xf] %vm1175_vm0, %v8003_v53  ;;  %v7228_v3 = vsel %vm1741_vm5, %v6992_v2, 0.0  ;;  %v7287_v42 = vmul.f32 %v6992_v2, %v6992_v2  ;;  %v11312_v39 = vpop.f32.mrb[159].mxu0 }
 0x300   : > { %v7289_v16 = vmul.f32 %v6994_v62, %v6994_v62  ;;  %7172 = vst.msk [vmem:[%s11092_s20 + $0x54] sm:$0xf] %vm1175_vm0, %v8001_v57  ;;  %v6745_v11 = vld [vmem:[#allocation3 + $0xd0] sm:$0xff]  ;;  %v6169_v33 = vadd.f32 %v11200_v28, %v5596_v14  ;;  %v6167_v58 = vadd.f32 %v11207_v63, %v5594_v23  ;;  %v6170_v12 = vadd.f32 %v11217_v5, %v5597_v48 }
 0x301   : > { %v6743_v26 = vld [vmem:[#allocation3 + $0xc0] sm:$0xff]  ;;  %v6746_v30 = vld [vmem:[#allocation3 + $0xd8] sm:$0xff]  ;;  %v7342_v54 = vadd.f32 %v7341_v45, %v7340_v20  ;;  %v7229_v60 = vadd.f32 %v7228_v3, %v7227_v21  ;;  %v7343_v15 = vsel %vm1741_vm5, %v7287_v42, 0.0  ;;  %v6997_v8 = vmul.f32 %v6924_v47, %v6745_v11 }
 0x302   : > { %v6995_v6 = vmul.f32 %v11274_v22, %v6743_v26  ;;  %v11325_v13 = vmul.f32 %v6929_v35, %v6746_v30  ;;  %6205 = vst.msk [vmem:[#allocation3 + $0x110] sm:$0xff] %vm1741_vm5, %v6169_v33  ;;  %6203 = vst.msk [vmem:[#allocation3 + $0x100] sm:$0xff] %vm1741_vm5, %v6167_v58  ;;  %v6168_v28 = vadd.f32 %v11221_v10, %v5595_v19  ;;  %v7232_v5 = vsel %vm1741_vm5, %v6994_v62, 0.0  ;;  %v6944_v24 = vpop.permute.xlu0 %6943 }
 0x303   : > { %6206 = vst.msk [vmem:[#allocation3 + $0x118] sm:$0xff] %vm1741_vm5, %v6170_v12  ;;  %v6677_v63 = vadd.f32 %v8612_v29, %v6237_v9  ;;  %v7231_v40 = vadd.f32 %v7230_v32, %v7229_v60  ;;  %v7344_v44 = vadd.f32 %v7343_v15, %v7342_v54  ;;  %v8006_v36 = vpack.c.bf16 %v6997_v8, %v6997_v8  ;;  %v6744_v18 = vld [vmem:[#allocation3 + $0xc8] sm:$0xff]  ;;  %v6949_v29 = vpop.permute.xlu1 %6948 }
 0x304   : > { %v7345_v22 = vsel %vm1741_vm5, %v7288_v59, 0.0  ;;  %v8004_v46 = vpack.c.bf16 %v6995_v6, %v6995_v6  ;;  %v7234_v4 = vsel %vm1741_vm5, %v6995_v6, 0.0  ;;  %v7290_v25 = vmul.f32 %v6995_v6, %v6995_v6  ;;  %6204 = vst.msk [vmem:[#allocation3 + $0x108] sm:$0xff] %vm1741_vm5, %v6168_v28  ;;  %v8616_v10 = vpop.f32.mrb[160].mxu0  ;;  %v6236_v32 = vld [vmem:[#allocation3 + $0xe8] sm:$0xff] }
 0x305   : > { %6713 = vst.msk [vmem:[#allocation3 + $0xf0] sm:$0xff] %vm1741_vm5, %v6677_v63  ;;  %v7346_v7 = vadd.f32 %v7345_v22, %v7344_v44  ;;  %v7233_v61 = vadd.f32 %v7232_v5, %v7231_v40  ;;  %v8007_v62 = vpack.c.bf16 %v11325_v13, %v11325_v13  ;;  %v6632_v2 = vpop.f32.mrb[161].mxu0  ;;  %v7347_v34 = vsel %vm1741_vm5, %v7289_v16, 0.0 }
 0x306   : > { %7177 = vst.msk [vmem:[%s11092_s20 + $0x68] sm:$0xf] %vm1175_vm0, %v8006_v36  ;;  %7175 = vst.msk [vmem:[%s11092_s20 + $0x60] sm:$0xf] %vm1175_vm0, %v8004_v46  ;;  %v7349_v35 = vsel %vm1741_vm5, %v7290_v25, 0.0  ;;  %v6996_v37 = vmul.f32 %v11266_v17, %v6744_v18  ;;  %v8617_v27 = vpop.f32.mrb[162].mxu0  ;;  %v6675_v41 = vadd.f32 %v11303_v43, %v6235_v52  ;;  %v6678_v31 = vadd.f32 %v8613_v1, %v6238_v56  ;;  %v6954_v54 = vpop.permute.xlu0 %6953 }
 0x307   : > { %v7235_v47 = vadd.f32 %v7234_v4, %v7233_v61  ;;  %v7348_v51 = vadd.f32 %v7347_v34, %v7346_v7  ;;  %7178 = vst.msk [vmem:[%s11092_s20 + $0x6c] sm:$0xf] %vm1175_vm0, %v8007_v62  ;;  %v6635_v49 = vpop.f32.mrb[163].mxu0  ;;  %v7292_v17 = vmul.f32 %v6997_v8, %v6997_v8  ;;  %v6676_v57 = vadd.f32 %v11312_v39, %v6236_v32  ;;  %v6959_v12 = vpop.permute.xlu1 %6958 }
 0x308   : > { %v8005_v50 = vpack.c.bf16 %v6996_v37, %v6996_v37  ;;  %v7236_v0 = vsel %vm1741_vm5, %v6996_v37, 0.0  ;;  %v7291_v53 = vmul.f32 %v6996_v37, %v6996_v37  ;;  %6711 = vst.msk [vmem:[#allocation3 + $0xe0] sm:$0xff] %vm1741_vm5, %v6675_v41  ;;  %6714 = vst.msk [vmem:[#allocation3 + $0xf8] sm:$0xff] %vm1741_vm5, %v6678_v31  ;;  %v7238_v23 = vsel %vm1741_vm5, %v6997_v8, 0.0 }
 0x309   : > { %v7350_v59 = vadd.f32 %v7349_v35, %v7348_v51  ;;  %v7237_v45 = vadd.f32 %v7236_v0, %v7235_v47  ;;  %v6241_v43 = vld [vmem:[#allocation3 + $0x110] sm:$0xff]  ;;  %v6239_v1 = vld [vmem:[#allocation3 + $0x100] sm:$0xff]  ;;  %6712 = vst.msk [vmem:[#allocation3 + $0xe8] sm:$0xff] %vm1741_vm5, %v6676_v57  ;;  %v7353_v33 = vsel %vm1741_vm5, %v7292_v17, 0.0  ;;  %v7293_v58 = vmul.f32 %v11325_v13, %v11325_v13 }
 0x30a   : > { %v6242_v21 = vld [vmem:[#allocation3 + $0x118] sm:$0xff]  ;;  %7176 = vst.msk [vmem:[%s11092_s20 + $0x64] sm:$0xf] %vm1175_vm0, %v8005_v50  ;;  %v7351_v20 = vsel %vm1741_vm5, %v7291_v53, 0.0  ;;  %v6681_v3 = vadd.f32 %v8616_v10, %v6241_v43  ;;  %v6679_v42 = vadd.f32 %v6632_v2, %v6239_v1  ;;  %v7240_v8 = vsel %vm1741_vm5, %v11325_v13, 0.0  ;;  %v6964_v7 = vpop.permute.xlu0 %6963 }
 0x30b   : > { %v6682_v14 = vadd.f32 %v8617_v27, %v6242_v21  ;;  %v7352_v48 = vadd.f32 %v7351_v20, %v7350_v59  ;;  %v6240_v11 = vld [vmem:[#allocation3 + $0x108] sm:$0xff]  ;;  %v7239_v26 = vadd.f32 %v7238_v23, %v7237_v45  ;;  %v7355_v28 = vsel %vm1741_vm5, %v7293_v58, 0.0  ;;  %v6969_v10 = vpop.permute.xlu1 %6968 }
 0x30c   : > { %v6749_v16 = vld [vmem:[#allocation3 + $0xf0] sm:$0xff]  ;;  %6717 = vst.msk [vmem:[#allocation3 + $0x110] sm:$0xff] %vm1741_vm5, %v6681_v3  ;;  %6715 = vst.msk [vmem:[#allocation3 + $0x100] sm:$0xff] %vm1741_vm5, %v6679_v42  ;;  %v6680_v30 = vadd.f32 %v6635_v49, %v6240_v11 }
 0x30d   : > { %v7001_v39 = vmul.f32 %v6944_v24, %v6749_v16  ;;  %6718 = vst.msk [vmem:[#allocation3 + $0x118] sm:$0xff] %vm1741_vm5, %v6682_v14  ;;  %v7354_v60 = vadd.f32 %v7353_v33, %v7352_v48  ;;  %v7241_v9 = vadd.f32 %v7240_v8, %v7239_v26 }
 0x30e   : > { %6716 = vst.msk [vmem:[#allocation3 + $0x108] sm:$0xff] %vm1741_vm5, %v6680_v30 }
 0x30f   : > { %v8010_v15 = vpack.c.bf16 %v7001_v39, %v7001_v39  ;;  %v6747_v19 = vld [vmem:[#allocation3 + $0xe0] sm:$0xff]  ;;  %v6750_v6 = vld [vmem:[#allocation3 + $0xf8] sm:$0xff]  ;;  %v7356_v40 = vadd.f32 %v7355_v28, %v7354_v60  ;;  %v7296_v27 = vmul.f32 %v7001_v39, %v7001_v39  ;;  %v7246_v41 = vsel %vm1741_vm5, %v7001_v39, 0.0 }
 0x310   : > { %v6999_v63 = vmul.f32 %v11322_v38, %v6747_v19  ;;  %v7002_v5 = vmul.f32 %v6949_v29, %v6750_v6  ;;  %v6748_v44 = vld [vmem:[#allocation3 + $0xe8] sm:$0xff] }
 0x311   : > { %7181 = vst.msk [vmem:[%s11092_s20 + $0x78] sm:$0xf] %vm1175_vm0, %v8010_v15  ;;  %v7000_v62 = vmul.f32 %v11320_v55, %v6748_v44  ;;  %v7361_v45 = vsel %vm1741_vm5, %v7296_v27, 0.0 }
 0x312   : > { %v8008_v36 = vpack.c.bf16 %v6999_v63, %v6999_v63  ;;  %v7242_v18 = vsel %vm1741_vm5, %v6999_v63, 0.0  ;;  %v7294_v22 = vmul.f32 %v6999_v63, %v6999_v63  ;;  %v8011_v46 = vpack.c.bf16 %v7002_v5, %v7002_v5 }
 0x313   : > { %v6753_v13 = vld [vmem:[#allocation3 + $0x110] sm:$0xff]  ;;  %v6751_v4 = vld [vmem:[#allocation3 + $0x100] sm:$0xff]  ;;  %v7243_v61 = vadd.f32 %v7242_v18, %v7241_v9  ;;  %v8009_v52 = vpack.c.bf16 %v7000_v62, %v7000_v62  ;;  %v7244_v56 = vsel %vm1741_vm5, %v7000_v62, 0.0  ;;  %v7295_v51 = vmul.f32 %v7000_v62, %v7000_v62 }
 0x314   : > { %v6754_v25 = vld [vmem:[#allocation3 + $0x118] sm:$0xff]  ;;  %7179 = vst.msk [vmem:[%s11092_s20 + $0x70] sm:$0xf] %vm1175_vm0, %v8008_v36  ;;  %v7357_v38 = vsel %vm1741_vm5, %v7294_v22, 0.0  ;;  %7182 = vst.msk [vmem:[%s11092_s20 + $0x7c] sm:$0xf] %vm1175_vm0, %v8011_v46  ;;  %v7005_v2 = vmul.f32 %v6964_v7, %v6753_v13  ;;  %v7003_v34 = vmul.f32 %v6954_v54, %v6751_v4  ;;  %v7297_v31 = vmul.f32 %v7002_v5, %v7002_v5 }
 0x315   : > { %v7006_v35 = vmul.f32 %v6969_v10, %v6754_v25  ;;  %v7358_v37 = vadd.f32 %v7357_v38, %v7356_v40  ;;  %v7245_v47 = vadd.f32 %v7244_v56, %v7243_v61  ;;  %7180 = vst.msk [vmem:[%s11092_s20 + $0x74] sm:$0xf] %vm1175_vm0, %v8009_v52  ;;  %v6752_v24 = vld [vmem:[#allocation3 + $0x108] sm:$0xff]  ;;  %v7359_v0 = vsel %vm1741_vm5, %v7295_v51, 0.0 }
 0x316   : > { %v8014_v55 = vpack.c.bf16 %v7005_v2, %v7005_v2  ;;  %v8012_v49 = vpack.c.bf16 %v7003_v34, %v7003_v34  ;;  %v7298_v29 = vmul.f32 %v7003_v34, %v7003_v34  ;;  %v7248_v32 = vsel %vm1741_vm5, %v7002_v5, 0.0 }
 0x317   : > { %v7247_v50 = vadd.f32 %v7246_v41, %v7245_v47  ;;  %v8015_v53 = vpack.c.bf16 %v7006_v35, %v7006_v35  ;;  %v7360_v17 = vadd.f32 %v7359_v0, %v7358_v37  ;;  %v7250_v59 = vsel %vm1741_vm5, %v7003_v34, 0.0 }
 0x318   : > { %7185 = vst.msk [vmem:[%s11092_s20 + $0x88] sm:$0xf] %vm1175_vm0, %v8014_v55  ;;  %7183 = vst.msk [vmem:[%s11092_s20 + $0x80] sm:$0xf] %vm1175_vm0, %v8012_v49  ;;  %v7004_v43 = vmul.f32 %v6959_v12, %v6752_v24  ;;  %v7363_v1 = vsel %vm1741_vm5, %v7297_v31, 0.0  ;;  %v7365_v20 = vsel %vm1741_vm5, %v7298_v29, 0.0  ;;  %v7300_v16 = vmul.f32 %v7005_v2, %v7005_v2 }
 0x319   : > { %v7249_v57 = vadd.f32 %v7248_v32, %v7247_v50  ;;  %7186 = vst.msk [vmem:[%s11092_s20 + $0x8c] sm:$0xf] %vm1175_vm0, %v8015_v53  ;;  %v7362_v21 = vadd.f32 %v7361_v45, %v7360_v17  ;;  %v7254_v39 = vsel %vm1741_vm5, %v7005_v2, 0.0  ;;  %v7301_v33 = vmul.f32 %v7006_v35, %v7006_v35 }
 0x31a   : > { %v8013_v42 = vpack.c.bf16 %v7004_v43, %v7004_v43  ;;  %v7252_v14 = vsel %vm1741_vm5, %v7004_v43, 0.0  ;;  %v7299_v23 = vmul.f32 %v7004_v43, %v7004_v43  ;;  %v7256_v12 = vsel %vm1741_vm5, %v7006_v35, 0.0 }
 0x31b   : > { %v7251_v3 = vadd.f32 %v7250_v59, %v7249_v57  ;;  %v7364_v48 = vadd.f32 %v7363_v1, %v7362_v21  ;;  %v7369_v60 = vsel %vm1741_vm5, %v7300_v16, 0.0  ;;  %v7371_v19 = vsel %vm1741_vm5, %v7301_v33, 0.0 }
 0x31c   : > { %7184 = vst.msk [vmem:[%s11092_s20 + $0x84] sm:$0xf] %vm1175_vm0, %v8013_v42  ;;  %v7367_v26 = vsel %vm1741_vm5, %v7299_v23, 0.0  ;;  %vm7264_vm0 = vcmask 57344  }
 0x31d   : > { %v7253_v11 = vadd.f32 %v7252_v14, %v7251_v3  ;;  %v7366_v30 = vadd.f32 %v7365_v20, %v7364_v48 }
 0x31f   : > { %v7255_v58 = vadd.f32 %v7254_v39, %v7253_v11  ;;  %v7368_v54 = vadd.f32 %v7367_v26, %v7366_v30 }
 0x321   : > { %v7257_v15 = vadd.f32 %v7256_v12, %v7255_v58  ;;  %v7370_v8 = vadd.f32 %v7369_v60, %v7368_v54 }
 0x323   : > { %v7258_v9 = vrot.slane %v7257_v15, 4  ;;  %v7372_v6 = vadd.f32 %v7371_v19, %v7370_v8 }
 0x325   : > { %v7259_v28 = vadd.f32 %v7258_v9, %v7257_v15  ;;  %v7373_v63 = vrot.slane %v7372_v6, 4 }
 0x327   : > { %v7260_v5 = vrot.slane %v7259_v28, 2  ;;  %v7374_v40 = vadd.f32 %v7373_v63, %v7372_v6 }
 0x329   : > { %v7261_v44 = vadd.f32 %v7260_v5, %v7259_v28  ;;  %v7375_v36 = vrot.slane %v7374_v40, 2 }
 0x32b   : > { %v7262_v18 = vrot.slane %v7261_v44, 1  ;;  %v7376_v22 = vadd.f32 %v7375_v36, %v7374_v40 }
 0x32d   : > { %v7263_v46 = vadd.f32 %v7262_v18, %v7261_v44  ;;  %v7377_v13 = vrot.slane %v7376_v22, 1 }
 0x32f   : > { %7265 = vst.msk [vmem:[%s292_s22] sm:$0x1] %vm7264_vm0, %v7263_v46  ;;  %v7378_v4 = vadd.f32 %v7377_v13, %v7376_v22 }
 0x331   : > { %7379 = vst.msk [vmem:[%s295_s27] sm:$0x1] %vm7264_vm0, %v7378_v4 }
 0x332 PF: > { %s18_s24 = sadd.s32 1, %s8908_s24  }
 0x333   : > { %p15_p4 = scmp.ge.s32.totalorder %s18_s24, 4  }
 0x335   :  { %17 = sbr.rel (!%p15_p4) target bundleno = 1 (0x1), region = 102 }

</bundles_post_ra>
